<compile_context>
chip_gen: v6e
topology: v6e:2x2x1
jax: 0.10.0
libtpu: 0.0.40
codegen_flags: <defaults>
</compile_context>

<pallas_src>
import functools

import jax
import jax.numpy as jnp
from jax.experimental import pallas as pl
from jax.experimental.pallas import tpu as pltpu

NEG_SLOPE = 0.01   # nn.LeakyReLU() default negative_slope
LANE = 128         # channels are zero-padded to a multiple of the lane width
EXTRA_ROWS = 8     # tail rows so the last shifted tap window stays in bounds


def _leaky(x):
    return jnp.where(x >= 0, x, NEG_SLOPE * x)


def _round_up(v, m):
    return ((v + m - 1) // m) * m


# --------------------------------------------------------------------------- #
# Fused DisBlock kernel (one grid step == one batch element)
# --------------------------------------------------------------------------- #
def _disblock_kernel(xp_ref, w1_ref, b1_ref, w2_ref, b2_ref, w0_ref, b0_ref,
                     o_ref, acc_ref, h1_ref, *, H, W, Cip, Cop, first):
    """Refs (per batch element; channel dims padded to multiples of 128).

    Flat "plane" coordinates: row r = h_pad*(W+2) + w_pad over the spatially
    zero-padded image, plus EXTRA_ROWS zero rows at the end.

      xp_ref  : (PR, Cip)  bf16   padded input plane (halo & tail rows are 0)
      w1_ref  : (9*Cip, Cop) bf16 c1 weight, rows ordered (kh, kw, cin)
      w2_ref  : (9*Cop, Cop) bf16 c2 weight
      w0_ref  : (Cip, Cop)   bf16 c0 (1x1 shortcut) weight
      b*_ref  : (1, Cop)     f32  biases
      o_ref   : (H/2, W/2, Cop) pooled block output
    Scratch:
      acc_ref : (H*(W+2), Cop) f32   accumulator in padded-flat coords
      h1_ref  : (PR, max(Cip,Cop)) bf16  activated-input staging / h1 plane
    """
    P = W + 2
    Ho, Wo = H // 2, W // 2
    PR = (H + 2) * P + EXTRA_ROWS   # total plane rows

    def conv3x3(src_ref, w_ref, cin):
        # 3x3 stride-1 conv = 9 shifted flat-offset matmuls over the padded
        # plane.  Taps are pitch-preserving contiguous row windows (no repack).
        # The 3 kw taps per kh are summed in vregs before a single accumulator
        # commit (3 RMW passes per conv instead of 9).
        for g in range(3):                       # g == kh (row shift)
            part = None
            for dw in range(3):                  # kw (column shift)
                k = 3 * g + dw
                tap = src_ref[pl.ds(g * P + dw, H * P), :cin]
                wk = w_ref[k * cin:(k + 1) * cin, :]
                d = jnp.dot(tap, wk, preferred_element_type=jnp.float32)
                part = d if part is None else part + d
            if g == 0:
                acc_ref[...] = part
            else:
                acc_ref[...] += part

    # ---- residual branch: [leaky] -> c1 --------------------------------------
    if first:
        src1 = xp_ref                            # raw input, halo already zero
    else:
        # Stage the bf16 LeakyReLU of the whole padded plane in the low lanes
        # of h1_ref (leaky(0)==0 keeps the zero halo / tail).  Raw x stays
        # intact in xp_ref for the 1x1 shortcut.  No dedicated xa scratch.
        h1_ref[:, :Cip] = _leaky(xp_ref[...])
        src1 = h1_ref
    conv3x3(src1, w1_ref, Cip)

    # ---- h1 = leaky(conv1 + b1), written as a plane with zero halo ------------
    # acc rows with w >= W are wrap-around garbage; mask them to zero so the
    # single shifted store below lands zeros in the halo columns of the plane.
    h1 = _leaky((acc_ref[...] + b1_ref[...]).astype(jnp.bfloat16))
    col = jax.lax.broadcasted_iota(jnp.int32, (H * P, 1), 0) % P
    h1 = jnp.where(col < W, h1, 0.0)
    h1_ref[pl.ds(P + 1, H * P), :Cop] = h1
    # Remaining halo / tail rows not covered by the shifted store.
    h1_ref[pl.ds(0, P + 1), :Cop] = jnp.zeros((P + 1, Cop), jnp.bfloat16)
    tail = PR - ((H + 1) * P + 1)
    h1_ref[pl.ds((H + 1) * P + 1, tail), :Cop] = jnp.zeros((tail, Cop), jnp.bfloat16)

    # ---- c2 -------------------------------------------------------------------
    conv3x3(h1_ref, w2_ref, Cop)

    # ---- 1x1 shortcut on raw x, added pre-pool (1x1 conv commutes with pool) --
    xint = xp_ref[pl.ds(P + 1, H * P), :]        # contiguous raw-interior view
    acc_ref[...] += jnp.dot(xint, w0_ref[...], preferred_element_type=jnp.float32)

    # ---- 2x2 average pool: pure VPU, value-level (no pool scratch) ------------
    # acc row parity == w parity (P is even), so stride-2 slices give the
    # even / odd columns; the trailing (garbage) column pair is sliced away.
    ev = acc_ref[pl.ds(0, H * (Wo + 1), stride=2), :]
    od = acc_ref[pl.ds(1, H * (Wo + 1), stride=2), :]
    cs = (ev + od).reshape(Ho, 2, Wo + 1, Cop)
    res = cs[:, 0, :Wo, :] + cs[:, 1, :Wo, :]     # sum of each 2x2 window
    # biases are constant under averaging -> add them once, post-pool.
    o_ref[...] = (res * 0.25 + b2_ref[...] + b0_ref[...]).astype(o_ref.dtype)


def _disblock_pallas_call(N, H, W, Cip, Cop, first, out_dtype=jnp.float32):
    Ho, Wo = H // 2, W // 2
    P = W + 2
    PR = (H + 2) * P + EXTRA_ROWS
    Cmax = max(Cip, Cop)
    kernel = functools.partial(_disblock_kernel, H=H, W=W, Cip=Cip, Cop=Cop,
                               first=first)

    grid_spec = pltpu.PrefetchScalarGridSpec(
        num_scalar_prefetch=0,
        grid=(N,),
        in_specs=[
            pl.BlockSpec((None, PR, Cip), lambda n: (n, 0, 0)),   # x plane
            pl.BlockSpec((9 * Cip, Cop), lambda n: (0, 0)),       # w1
            pl.BlockSpec((1, Cop), lambda n: (0, 0)),             # b1
            pl.BlockSpec((9 * Cop, Cop), lambda n: (0, 0)),       # w2
            pl.BlockSpec((1, Cop), lambda n: (0, 0)),             # b2
            pl.BlockSpec((Cip, Cop), lambda n: (0, 0)),           # w0
            pl.BlockSpec((1, Cop), lambda n: (0, 0)),             # b0
        ],
        out_specs=pl.BlockSpec((None, Ho, Wo, Cop), lambda n: (n, 0, 0, 0)),
        scratch_shapes=[
            pltpu.VMEM((H * P, Cop), jnp.float32),     # accumulator
            pltpu.VMEM((PR, Cmax), jnp.bfloat16),      # activated-x / h1 plane
        ],
    )

    out_bytes = jnp.dtype(out_dtype).itemsize
    wbytes = (9 * Cip + 9 * Cop + Cip) * Cop * 2 + 3 * Cop * 4
    blk = PR * Cip * 2 + Ho * Wo * Cop * out_bytes + wbytes
    scratch = H * P * Cop * 4 + PR * Cmax * 2
    # Double-buffered blocks + scratch + headroom; never below 32 MiB (so we
    # never under-shoot the compiler's own needs) and capped at v7x physical.
    vmem_limit = min(64 << 20, max(32 << 20, int(1.5 * (2 * blk + scratch)) + (4 << 20)))

    flops = 2 * N * H * W * Cop * (9 * Cip + 9 * Cop + Cip)
    bytes_accessed = N * PR * Cip * 2 + wbytes + N * Ho * Wo * Cop * out_bytes

    return pl.pallas_call(
        kernel,
        out_shape=jax.ShapeDtypeStruct((N, Ho, Wo, Cop), out_dtype),
        grid_spec=grid_spec,
        compiler_params=pltpu.CompilerParams(
            dimension_semantics=("parallel",),       # batch shards across TCs
            vmem_limit_bytes=vmem_limit),
        cost_estimate=pl.CostEstimate(flops=flops, transcendentals=0,
                                      bytes_accessed=bytes_accessed),
    )


# --------------------------------------------------------------------------- #
# Parameter prep (hoisted out of the forward path) and forward wrapper
# --------------------------------------------------------------------------- #
def prepare_kernel_params(params, ic, oc):
    """One-time weight re-layout: OIHW -> im2col (9*Cin_p, Cout_p), bf16,
    channels zero-padded to lane multiples for lane-dense MXU / stores."""
    cip = _round_up(ic, LANE)
    cop = _round_up(oc, LANE)

    def prep_3x3(w, b, cin_p):
        co, ci = w.shape[0], w.shape[1]
        wt = jnp.transpose(w, (2, 3, 1, 0))                      # (3,3,ci,co)
        wt = jnp.pad(wt, ((0, 0), (0, 0), (0, cin_p - ci), (0, cop - co)))
        wk = wt.reshape(9 * cin_p, cop).astype(jnp.bfloat16)     # rows: (kh,kw,cin)
        bk = jnp.pad(b, (0, cop - co)).reshape(1, cop).astype(jnp.float32)
        return wk, bk

    w1k, b1k = prep_3x3(params["w1"], params["b1"], cip)
    w2k, b2k = prep_3x3(params["w2"], params["b2"], cop)

    w0 = jnp.transpose(params["w0"].reshape(oc, ic), (1, 0))     # (ic, oc)
    w0k = jnp.pad(w0, ((0, cip - ic), (0, cop - oc))).astype(jnp.bfloat16)
    b0k = jnp.pad(params["b0"], (0, cop - oc)).reshape(1, cop).astype(jnp.float32)

    return {"w0": w0k, "b0": b0k, "w1": w1k, "b1": b1k, "w2": w2k, "b2": b2k,
            "ic": ic, "oc": oc, "cip": cip, "cop": cop}


def dis_block_forward(x_nchw, kparams, first=False, out_dtype=jnp.float32):
    """DisBlock forward. x: (N, IC, H, W) NCHW -> (N, OC, H/2, W/2) NCHW."""
    N, IC, H, W = x_nchw.shape
    assert H % 2 == 0 and W % 2 == 0, "spatial dims must be even for AvgPool2d(2)"
    assert IC == kparams["ic"]
    Cip, Cop, OC = kparams["cip"], kparams["cop"], kparams["oc"]

    # NCHW -> NHWC bf16; zero-pad: 1px spatial halo + channel pad; flatten to
    # the per-batch 2-D plane layout the kernel slices, plus zero tail rows.
    x = jnp.transpose(x_nchw, (0, 2, 3, 1)).astype(jnp.bfloat16)
    xp = jnp.pad(x, ((0, 0), (1, 1), (1, 1), (0, Cip - IC)))
    xflat = xp.reshape(N, (H + 2) * (W + 2), Cip)
    xflat = jnp.pad(xflat, ((0, 0), (0, EXTRA_ROWS), (0, 0)))

    out = _disblock_pallas_call(N, H, W, Cip, Cop, first, out_dtype)(
        xflat, kparams["w1"], kparams["b1"], kparams["w2"], kparams["b2"],
        kparams["w0"], kparams["b0"])

    out = out[..., :OC]                                    # drop channel padding
    return jnp.transpose(out, (0, 3, 1, 2))                # NHWC -> NCHW


# --------------------------------------------------------------------------- #
# Synthetic params (spectral norm applied at init, like torch at inference)
# --------------------------------------------------------------------------- #
def _spectral_normalize(w, n_iter=50):
    m = w.reshape(w.shape[0], -1).astype(jnp.float32)
    v = jnp.ones((m.shape[1],), jnp.float32) / jnp.sqrt(m.shape[1])
    u = jnp.ones((m.shape[0],), jnp.float32) / jnp.sqrt(m.shape[0])
    for _ in range(n_iter):
        u = m @ v
        u = u / (jnp.linalg.norm(u) + 1e-12)
        v = m.T @ u
        v = v / (jnp.linalg.norm(v) + 1e-12)
    sigma = u @ (m @ v)
    return w / sigma


def init_disblock_params(key, ic, oc):
    k0, k1, k2, kb0, kb1, kb2 = jax.random.split(key, 6)
    return {
        "w0": _spectral_normalize(0.2 * jax.random.normal(k0, (oc, ic, 1, 1), jnp.float32)),
        "b0": 0.05 * jax.random.normal(kb0, (oc,), jnp.float32),
        "w1": _spectral_normalize(0.2 * jax.random.normal(k1, (oc, ic, 3, 3), jnp.float32)),
        "b1": 0.05 * jax.random.normal(kb1, (oc,), jnp.float32),
        "w2": _spectral_normalize(0.2 * jax.random.normal(k2, (oc, oc, 3, 3), jnp.float32)),
        "b2": 0.05 * jax.random.normal(kb2, (oc,), jnp.float32),
    }


# --------------------------------------------------------------------------- #
# Pure-JAX reference for correctness checking
# --------------------------------------------------------------------------- #
def dis_block_ref(x_nchw, params, first=False):
    def conv(x, w, b, pad):
        y = jax.lax.conv_general_dilated(
            x, w, window_strides=(1, 1), padding=[(pad, pad), (pad, pad)],
            dimension_numbers=("NCHW", "OIHW", "NCHW"))
        return y + b[None, :, None, None]

    def pool(x):
        return jax.lax.reduce_window(x, 0.0, jax.lax.add,
                                     (1, 1, 2, 2), (1, 1, 2, 2), "VALID") / 4.0

    x = x_nchw.astype(jnp.float32)
    h = x if first else _leaky(x)
    h = _leaky(conv(h, params["w1"], params["b1"], 1))
    h = pool(conv(h, params["w2"], params["b2"], 1))
    if first:
        s = conv(pool(x), params["w0"], params["b0"], 0)
    else:
        s = pool(conv(x, params["w0"], params["b0"], 0))
    return h + s


# --------------------------------------------------------------------------- #
if __name__ == "__main__":
    key = jax.random.PRNGKey(0)
    kx, kp = jax.random.split(key)

    N, IC, OC, S = 2, 4, 8, 16
    x = jax.random.normal(kx, (N, IC, S, S), jnp.float32)    # NCHW like PyTorch
    params = init_disblock_params(kp, IC, OC)
    kparams = prepare_kernel_params(params, IC, OC)           # hoisted weight prep

    for first in (False, True):
        out = dis_block_forward(x, kparams, first=first)
        out = jax.block_until_ready(out)
        assert out.shape == (N, OC, S // 2, S // 2), out.shape

        ref = dis_block_ref(x, params, first=first)
        max_err = float(jnp.max(jnp.abs(out - ref)))
        # bf16 operands / storage -> ~1e-2 class error vs the f32 reference.
        assert jnp.allclose(out, ref, atol=3e-2, rtol=3e-2), \
            f"first={first}, max abs err={max_err}"

    print("KERNEL_OK")
</pallas_src>

<mosaic_0001>
module attributes {stable_mosaic.version = 11 : i64} {
  func.func @_disblock_kernel(%arg0: i32, %arg1: memref<1x332x128xbf16, #tpu.memory_space<vmem>>, %arg2: memref<1152x128xbf16, #tpu.memory_space<vmem>>, %arg3: memref<1x128xf32, #tpu.memory_space<vmem>>, %arg4: memref<1152x128xbf16, #tpu.memory_space<vmem>>, %arg5: memref<1x128xf32, #tpu.memory_space<vmem>>, %arg6: memref<128x128xbf16, #tpu.memory_space<vmem>>, %arg7: memref<1x128xf32, #tpu.memory_space<vmem>>, %arg8: memref<1x8x8x128xf32, #tpu.memory_space<vmem>>, %arg9: memref<288x128xf32, #tpu.memory_space<vmem>>, %arg10: memref<332x128xbf16, #tpu.memory_space<vmem>>) attributes {dimension_semantics = [#tpu.dimension_semantics<parallel>], iteration_bounds = array<i64: 2>, scalar_prefetch = 0 : i64, scratch_operands = 2 : i64, tpu.core_type = #tpu.core_type<tc>, window_params = [{transform_indices = @transform_0, window_bounds = array<i64: 1, 332, 128>}, {pipeline_mode = #tpu.pipeline_mode<synchronous>, transform_indices = @transform_1, window_bounds = array<i64: 1152, 128>}, {pipeline_mode = #tpu.pipeline_mode<synchronous>, transform_indices = @transform_2, window_bounds = array<i64: 1, 128>}, {pipeline_mode = #tpu.pipeline_mode<synchronous>, transform_indices = @transform_3, window_bounds = array<i64: 1152, 128>}, {pipeline_mode = #tpu.pipeline_mode<synchronous>, transform_indices = @transform_4, window_bounds = array<i64: 1, 128>}, {pipeline_mode = #tpu.pipeline_mode<synchronous>, transform_indices = @transform_5, window_bounds = array<i64: 128, 128>}, {pipeline_mode = #tpu.pipeline_mode<synchronous>, transform_indices = @transform_6, window_bounds = array<i64: 1, 128>}, {transform_indices = @transform_7, window_bounds = array<i64: 1, 8, 8, 128>}]} {
    %c0 = arith.constant 0 : index
    %c0_0 = arith.constant 0 : index
    %c0_1 = arith.constant 0 : index
    %0 = vector.load %arg1[%c0, %c0_0, %c0_1] : memref<1x332x128xbf16, #tpu.memory_space<vmem>>, vector<1x332x128xbf16>
    %1 = vector.shape_cast %0 : vector<1x332x128xbf16> to vector<332x128xbf16>
    %cst = arith.constant 0.000000e+00 : bf16
    %2 = vector.broadcast %cst : bf16 to vector<332x128xbf16>
    %3 = arith.cmpf oge, %1, %2 : vector<332x128xbf16>
    %cst_2 = arith.constant 1.000980e-02 : bf16
    %4 = vector.broadcast %cst_2 : bf16 to vector<332x128xbf16>
    %5 = arith.mulf %4, %1 : vector<332x128xbf16>
    %6 = arith.select %3, %1, %5 : vector<332x128xi1>, vector<332x128xbf16>
    %c0_3 = arith.constant 0 : index
    %c0_4 = arith.constant 0 : index
    %7 = vector.load %arg10[%c0_3, %c0_4] : memref<332x128xbf16, #tpu.memory_space<vmem>>, vector<332x128xbf16>
    tpu.vector_store %arg10[%c0_3, %c0_4], %6 {strides = array<i32>} : memref<332x128xbf16, #tpu.memory_space<vmem>>, vector<332x128xbf16>,
    %c0_5 = arith.constant 0 : index
    %c0_6 = arith.constant 0 : index
    %8 = vector.load %arg10[%c0_5, %c0_6] : memref<332x128xbf16, #tpu.memory_space<vmem>>, vector<288x128xbf16>
    %c0_7 = arith.constant 0 : index
    %c0_8 = arith.constant 0 : index
    %9 = vector.load %arg2[%c0_7, %c0_8] : memref<1152x128xbf16, #tpu.memory_space<vmem>>, vector<128x128xbf16>
    %cst_9 = arith.constant dense<0.000000e+00> : vector<288x128xf32>
    %10 = tpu.matmul %8, %9, %cst_9 {dimension_numbers = #tpu.dot_dimension_numbers<[1], [0], [0], [1], [0, 0, 1, 1], [], []>} : vector<288x128xbf16>, vector<128x128xbf16>, vector<288x128xf32> -> vector<288x128xf32>
    %c1 = arith.constant 1 : index
    %c0_10 = arith.constant 0 : index
    %11 = vector.load %arg10[%c1, %c0_10] : memref<332x128xbf16, #tpu.memory_space<vmem>>, vector<288x128xbf16>
    %c128 = arith.constant 128 : index
    %c0_11 = arith.constant 0 : index
    %12 = vector.load %arg2[%c128, %c0_11] : memref<1152x128xbf16, #tpu.memory_space<vmem>>, vector<128x128xbf16>
    %cst_12 = arith.constant dense<0.000000e+00> : vector<288x128xf32>
    %13 = tpu.matmul %11, %12, %cst_12 {dimension_numbers = #tpu.dot_dimension_numbers<[1], [0], [0], [1], [0, 0, 1, 1], [], []>} : vector<288x128xbf16>, vector<128x128xbf16>, vector<288x128xf32> -> vector<288x128xf32>
    %14 = arith.addf %10, %13 : vector<288x128xf32>
    %c2 = arith.constant 2 : index
    %c0_13 = arith.constant 0 : index
    %15 = vector.load %arg10[%c2, %c0_13] : memref<332x128xbf16, #tpu.memory_space<vmem>>, vector<288x128xbf16>
    %c256 = arith.constant 256 : index
    %c0_14 = arith.constant 0 : index
    %16 = vector.load %arg2[%c256, %c0_14] : memref<1152x128xbf16, #tpu.memory_space<vmem>>, vector<128x128xbf16>
    %cst_15 = arith.constant dense<0.000000e+00> : vector<288x128xf32>
    %17 = tpu.matmul %15, %16, %cst_15 {dimension_numbers = #tpu.dot_dimension_numbers<[1], [0], [0], [1], [0, 0, 1, 1], [], []>} : vector<288x128xbf16>, vector<128x128xbf16>, vector<288x128xf32> -> vector<288x128xf32>
    %18 = arith.addf %14, %17 : vector<288x128xf32>
    %c0_16 = arith.constant 0 : index
    %c0_17 = arith.constant 0 : index
    %19 = vector.load %arg9[%c0_16, %c0_17] : memref<288x128xf32, #tpu.memory_space<vmem>>, vector<288x128xf32>
    tpu.vector_store %arg9[%c0_16, %c0_17], %18 {strides = array<i32>} : memref<288x128xf32, #tpu.memory_space<vmem>>, vector<288x128xf32>,
    %c18 = arith.constant 18 : index
    %c0_18 = arith.constant 0 : index
    %20 = vector.load %arg10[%c18, %c0_18] : memref<332x128xbf16, #tpu.memory_space<vmem>>, vector<288x128xbf16>
    %c384 = arith.constant 384 : index
    %c0_19 = arith.constant 0 : index
    %21 = vector.load %arg2[%c384, %c0_19] : memref<1152x128xbf16, #tpu.memory_space<vmem>>, vector<128x128xbf16>
    %cst_20 = arith.constant dense<0.000000e+00> : vector<288x128xf32>
    %22 = tpu.matmul %20, %21, %cst_20 {dimension_numbers = #tpu.dot_dimension_numbers<[1], [0], [0], [1], [0, 0, 1, 1], [], []>} : vector<288x128xbf16>, vector<128x128xbf16>, vector<288x128xf32> -> vector<288x128xf32>
    %c19 = arith.constant 19 : index
    %c0_21 = arith.constant 0 : index
    %23 = vector.load %arg10[%c19, %c0_21] : memref<332x128xbf16, #tpu.memory_space<vmem>>, vector<288x128xbf16>
    %c512 = arith.constant 512 : index
    %c0_22 = arith.constant 0 : index
    %24 = vector.load %arg2[%c512, %c0_22] : memref<1152x128xbf16, #tpu.memory_space<vmem>>, vector<128x128xbf16>
    %cst_23 = arith.constant dense<0.000000e+00> : vector<288x128xf32>
    %25 = tpu.matmul %23, %24, %cst_23 {dimension_numbers = #tpu.dot_dimension_numbers<[1], [0], [0], [1], [0, 0, 1, 1], [], []>} : vector<288x128xbf16>, vector<128x128xbf16>, vector<288x128xf32> -> vector<288x128xf32>
    %26 = arith.addf %22, %25 : vector<288x128xf32>
    %c20 = arith.constant 20 : index
    %c0_24 = arith.constant 0 : index
    %27 = vector.load %arg10[%c20, %c0_24] : memref<332x128xbf16, #tpu.memory_space<vmem>>, vector<288x128xbf16>
    %c640 = arith.constant 640 : index
    %c0_25 = arith.constant 0 : index
    %28 = vector.load %arg2[%c640, %c0_25] : memref<1152x128xbf16, #tpu.memory_space<vmem>>, vector<128x128xbf16>
    %cst_26 = arith.constant dense<0.000000e+00> : vector<288x128xf32>
    %29 = tpu.matmul %27, %28, %cst_26 {dimension_numbers = #tpu.dot_dimension_numbers<[1], [0], [0], [1], [0, 0, 1, 1], [], []>} : vector<288x128xbf16>, vector<128x128xbf16>, vector<288x128xf32> -> vector<288x128xf32>
    %30 = arith.addf %26, %29 : vector<288x128xf32>
    %c0_27 = arith.constant 0 : index
    %c0_28 = arith.constant 0 : index
    %31 = vector.load %arg9[%c0_27, %c0_28] : memref<288x128xf32, #tpu.memory_space<vmem>>, vector<288x128xf32>
    %32 = arith.addf %31, %30 : vector<288x128xf32>
    %c0_29 = arith.constant 0 : index
    %c0_30 = arith.constant 0 : index
    %33 = vector.load %arg9[%c0_29, %c0_30] : memref<288x128xf32, #tpu.memory_space<vmem>>, vector<288x128xf32>
    tpu.vector_store %arg9[%c0_29, %c0_30], %32 {strides = array<i32>} : memref<288x128xf32, #tpu.memory_space<vmem>>, vector<288x128xf32>,
    %c36 = arith.constant 36 : index
    %c0_31 = arith.constant 0 : index
    %34 = vector.load %arg10[%c36, %c0_31] : memref<332x128xbf16, #tpu.memory_space<vmem>>, vector<288x128xbf16>
    %c768 = arith.constant 768 : index
    %c0_32 = arith.constant 0 : index
    %35 = vector.load %arg2[%c768, %c0_32] : memref<1152x128xbf16, #tpu.memory_space<vmem>>, vector<128x128xbf16>
    %cst_33 = arith.constant dense<0.000000e+00> : vector<288x128xf32>
    %36 = tpu.matmul %34, %35, %cst_33 {dimension_numbers = #tpu.dot_dimension_numbers<[1], [0], [0], [1], [0, 0, 1, 1], [], []>} : vector<288x128xbf16>, vector<128x128xbf16>, vector<288x128xf32> -> vector<288x128xf32>
    %c37 = arith.constant 37 : index
    %c0_34 = arith.constant 0 : index
    %37 = vector.load %arg10[%c37, %c0_34] : memref<332x128xbf16, #tpu.memory_space<vmem>>, vector<288x128xbf16>
    %c896 = arith.constant 896 : index
    %c0_35 = arith.constant 0 : index
    %38 = vector.load %arg2[%c896, %c0_35] : memref<1152x128xbf16, #tpu.memory_space<vmem>>, vector<128x128xbf16>
    %cst_36 = arith.constant dense<0.000000e+00> : vector<288x128xf32>
    %39 = tpu.matmul %37, %38, %cst_36 {dimension_numbers = #tpu.dot_dimension_numbers<[1], [0], [0], [1], [0, 0, 1, 1], [], []>} : vector<288x128xbf16>, vector<128x128xbf16>, vector<288x128xf32> -> vector<288x128xf32>
    %40 = arith.addf %36, %39 : vector<288x128xf32>
    %c38 = arith.constant 38 : index
    %c0_37 = arith.constant 0 : index
    %41 = vector.load %arg10[%c38, %c0_37] : memref<332x128xbf16, #tpu.memory_space<vmem>>, vector<288x128xbf16>
    %c1024 = arith.constant 1024 : index
    %c0_38 = arith.constant 0 : index
    %42 = vector.load %arg2[%c1024, %c0_38] : memref<1152x128xbf16, #tpu.memory_space<vmem>>, vector<128x128xbf16>
    %cst_39 = arith.constant dense<0.000000e+00> : vector<288x128xf32>
    %43 = tpu.matmul %41, %42, %cst_39 {dimension_numbers = #tpu.dot_dimension_numbers<[1], [0], [0], [1], [0, 0, 1, 1], [], []>} : vector<288x128xbf16>, vector<128x128xbf16>, vector<288x128xf32> -> vector<288x128xf32>
    %44 = arith.addf %40, %43 : vector<288x128xf32>
    %c0_40 = arith.constant 0 : index
    %c0_41 = arith.constant 0 : index
    %45 = vector.load %arg9[%c0_40, %c0_41] : memref<288x128xf32, #tpu.memory_space<vmem>>, vector<288x128xf32>
    %46 = arith.addf %45, %44 : vector<288x128xf32>
    %c0_42 = arith.constant 0 : index
    %c0_43 = arith.constant 0 : index
    %47 = vector.load %arg9[%c0_42, %c0_43] : memref<288x128xf32, #tpu.memory_space<vmem>>, vector<288x128xf32>
    tpu.vector_store %arg9[%c0_42, %c0_43], %46 {strides = array<i32>} : memref<288x128xf32, #tpu.memory_space<vmem>>, vector<288x128xf32>,
    %c0_44 = arith.constant 0 : index
    %c0_45 = arith.constant 0 : index
    %48 = vector.load %arg9[%c0_44, %c0_45] : memref<288x128xf32, #tpu.memory_space<vmem>>, vector<288x128xf32>
    %c0_46 = arith.constant 0 : index
    %c0_47 = arith.constant 0 : index
    %49 = vector.load %arg3[%c0_46, %c0_47] : memref<1x128xf32, #tpu.memory_space<vmem>>, vector<1x128xf32>
    %50 = vector.broadcast %49 : vector<1x128xf32> to vector<288x128xf32>
    %51 = arith.addf %48, %50 : vector<288x128xf32>
    %52 = arith.truncf %51 : vector<288x128xf32> to vector<288x128xbf16>
    %cst_48 = arith.constant 0.000000e+00 : bf16
    %53 = vector.broadcast %cst_48 : bf16 to vector<288x128xbf16>
    %54 = arith.cmpf oge, %52, %53 : vector<288x128xbf16>
    %cst_49 = arith.constant 1.000980e-02 : bf16
    %55 = vector.broadcast %cst_49 : bf16 to vector<288x128xbf16>
    %56 = arith.mulf %55, %52 : vector<288x128xbf16>
    %57 = arith.select %54, %52, %56 : vector<288x128xi1>, vector<288x128xbf16>
    %58 = tpu.iota {dimensions = array<i32: 0>} : vector<288x1xi32>
    %c18_i32 = arith.constant 18 : i32
    %c0_i32 = arith.constant 0 : i32
    %59 = arith.cmpi eq, %c18_i32, %c0_i32 : i32
    %c1_i32 = arith.constant 1 : i32
    %60 = arith.select %59, %c1_i32, %c18_i32 : i32
    %61 = vector.broadcast %60 : i32 to vector<288x1xi32>
    %62 = arith.remsi %58, %61 : vector<288x1xi32>
    %c0_i32_50 = arith.constant 0 : i32
    %63 = vector.broadcast %c0_i32_50 : i32 to vector<288x1xi32>
    %64 = arith.cmpi ne, %62, %63 : vector<288x1xi32>
    %c0_i32_51 = arith.constant 0 : i32
    %65 = vector.broadcast %c0_i32_51 : i32 to vector<288x1xi32>
    %66 = arith.cmpi slt, %62, %65 : vector<288x1xi32>
    %c0_i32_52 = arith.constant 0 : i32
    %67 = arith.cmpi slt, %60, %c0_i32_52 : i32
    %68 = vector.broadcast %67 : i1 to vector<288x1xi1>
    %69 = vector.broadcast %68 : vector<288x1xi1> to vector<288x1xi1>
    %70 = arith.xori %66, %69 : vector<288x1xi1>
    %71 = arith.andi %70, %64 : vector<288x1xi1>
    %72 = vector.broadcast %60 : i32 to vector<288x1xi32>
    %73 = arith.addi %62, %72 : vector<288x1xi32>
    %74 = arith.select %71, %73, %62 : vector<288x1xi1>, vector<288x1xi32>
    %c16_i32 = arith.constant 16 : i32
    %75 = vector.broadcast %c16_i32 : i32 to vector<288x1xi32>
    %76 = arith.cmpi slt, %74, %75 : vector<288x1xi32>
    %cst_53 = arith.constant 0.000000e+00 : f32
    %77 = arith.truncf %cst_53 : f32 to bf16
    %78 = vector.shape_cast %76 : vector<288x1xi1> to vector<288x1xi1>
    %79 = vector.broadcast %78 : vector<288x1xi1> to vector<288x128xi1>
    %80 = vector.broadcast %77 : bf16 to vector<288x128xbf16>
    %81 = arith.select %79, %57, %80 : vector<288x128xi1>, vector<288x128xbf16>
    %c19_54 = arith.constant 19 : index
    %c0_55 = arith.constant 0 : index
    %82 = vector.load %arg10[%c19_54, %c0_55] : memref<332x128xbf16, #tpu.memory_space<vmem>>, vector<288x128xbf16>
    tpu.vector_store %arg10[%c19_54, %c0_55], %81 {strides = array<i32>} : memref<332x128xbf16, #tpu.memory_space<vmem>>, vector<288x128xbf16>,
    %cst_56 = arith.constant 0.000000e+00 : bf16
    %83 = vector.broadcast %cst_56 : bf16 to vector<19x128xbf16>
    %c0_57 = arith.constant 0 : index
    %c0_58 = arith.constant 0 : index
    %84 = vector.load %arg10[%c0_57, %c0_58] : memref<332x128xbf16, #tpu.memory_space<vmem>>, vector<19x128xbf16>
    tpu.vector_store %arg10[%c0_57, %c0_58], %83 {strides = array<i32>} : memref<332x128xbf16, #tpu.memory_space<vmem>>, vector<19x128xbf16>,
    %cst_59 = arith.constant 0.000000e+00 : bf16
    %85 = vector.broadcast %cst_59 : bf16 to vector<25x128xbf16>
    %c307 = arith.constant 307 : index
    %c0_60 = arith.constant 0 : index
    %86 = vector.load %arg10[%c307, %c0_60] : memref<332x128xbf16, #tpu.memory_space<vmem>>, vector<25x128xbf16>
    tpu.vector_store %arg10[%c307, %c0_60], %85 {strides = array<i32>} : memref<332x128xbf16, #tpu.memory_space<vmem>>, vector<25x128xbf16>,
    %c0_61 = arith.constant 0 : index
    %c0_62 = arith.constant 0 : index
    %87 = vector.load %arg10[%c0_61, %c0_62] : memref<332x128xbf16, #tpu.memory_space<vmem>>, vector<288x128xbf16>
    %c0_63 = arith.constant 0 : index
    %c0_64 = arith.constant 0 : index
    %88 = vector.load %arg4[%c0_63, %c0_64] : memref<1152x128xbf16, #tpu.memory_space<vmem>>, vector<128x128xbf16>
    %cst_65 = arith.constant dense<0.000000e+00> : vector<288x128xf32>
    %89 = tpu.matmul %87, %88, %cst_65 {dimension_numbers = #tpu.dot_dimension_numbers<[1], [0], [0], [1], [0, 0, 1, 1], [], []>} : vector<288x128xbf16>, vector<128x128xbf16>, vector<288x128xf32> -> vector<288x128xf32>
    %c1_66 = arith.constant 1 : index
    %c0_67 = arith.constant 0 : index
    %90 = vector.load %arg10[%c1_66, %c0_67] : memref<332x128xbf16, #tpu.memory_space<vmem>>, vector<288x128xbf16>
    %c128_68 = arith.constant 128 : index
    %c0_69 = arith.constant 0 : index
    %91 = vector.load %arg4[%c128_68, %c0_69] : memref<1152x128xbf16, #tpu.memory_space<vmem>>, vector<128x128xbf16>
    %cst_70 = arith.constant dense<0.000000e+00> : vector<288x128xf32>
    %92 = tpu.matmul %90, %91, %cst_70 {dimension_numbers = #tpu.dot_dimension_numbers<[1], [0], [0], [1], [0, 0, 1, 1], [], []>} : vector<288x128xbf16>, vector<128x128xbf16>, vector<288x128xf32> -> vector<288x128xf32>
    %93 = arith.addf %89, %92 : vector<288x128xf32>
    %c2_71 = arith.constant 2 : index
    %c0_72 = arith.constant 0 : index
    %94 = vector.load %arg10[%c2_71, %c0_72] : memref<332x128xbf16, #tpu.memory_space<vmem>>, vector<288x128xbf16>
    %c256_73 = arith.constant 256 : index
    %c0_74 = arith.constant 0 : index
    %95 = vector.load %arg4[%c256_73, %c0_74] : memref<1152x128xbf16, #tpu.memory_space<vmem>>, vector<128x128xbf16>
    %cst_75 = arith.constant dense<0.000000e+00> : vector<288x128xf32>
    %96 = tpu.matmul %94, %95, %cst_75 {dimension_numbers = #tpu.dot_dimension_numbers<[1], [0], [0], [1], [0, 0, 1, 1], [], []>} : vector<288x128xbf16>, vector<128x128xbf16>, vector<288x128xf32> -> vector<288x128xf32>
    %97 = arith.addf %93, %96 : vector<288x128xf32>
    %c0_76 = arith.constant 0 : index
    %c0_77 = arith.constant 0 : index
    %98 = vector.load %arg9[%c0_76, %c0_77] : memref<288x128xf32, #tpu.memory_space<vmem>>, vector<288x128xf32>
    tpu.vector_store %arg9[%c0_76, %c0_77], %97 {strides = array<i32>} : memref<288x128xf32, #tpu.memory_space<vmem>>, vector<288x128xf32>,
    %c18_78 = arith.constant 18 : index
    %c0_79 = arith.constant 0 : index
    %99 = vector.load %arg10[%c18_78, %c0_79] : memref<332x128xbf16, #tpu.memory_space<vmem>>, vector<288x128xbf16>
    %c384_80 = arith.constant 384 : index
    %c0_81 = arith.constant 0 : index
    %100 = vector.load %arg4[%c384_80, %c0_81] : memref<1152x128xbf16, #tpu.memory_space<vmem>>, vector<128x128xbf16>
    %cst_82 = arith.constant dense<0.000000e+00> : vector<288x128xf32>
    %101 = tpu.matmul %99, %100, %cst_82 {dimension_numbers = #tpu.dot_dimension_numbers<[1], [0], [0], [1], [0, 0, 1, 1], [], []>} : vector<288x128xbf16>, vector<128x128xbf16>, vector<288x128xf32> -> vector<288x128xf32>
    %c19_83 = arith.constant 19 : index
    %c0_84 = arith.constant 0 : index
    %102 = vector.load %arg10[%c19_83, %c0_84] : memref<332x128xbf16, #tpu.memory_space<vmem>>, vector<288x128xbf16>
    %c512_85 = arith.constant 512 : index
    %c0_86 = arith.constant 0 : index
    %103 = vector.load %arg4[%c512_85, %c0_86] : memref<1152x128xbf16, #tpu.memory_space<vmem>>, vector<128x128xbf16>
    %cst_87 = arith.constant dense<0.000000e+00> : vector<288x128xf32>
    %104 = tpu.matmul %102, %103, %cst_87 {dimension_numbers = #tpu.dot_dimension_numbers<[1], [0], [0], [1], [0, 0, 1, 1], [], []>} : vector<288x128xbf16>, vector<128x128xbf16>, vector<288x128xf32> -> vector<288x128xf32>
    %105 = arith.addf %101, %104 : vector<288x128xf32>
    %c20_88 = arith.constant 20 : index
    %c0_89 = arith.constant 0 : index
    %106 = vector.load %arg10[%c20_88, %c0_89] : memref<332x128xbf16, #tpu.memory_space<vmem>>, vector<288x128xbf16>
    %c640_90 = arith.constant 640 : index
    %c0_91 = arith.constant 0 : index
    %107 = vector.load %arg4[%c640_90, %c0_91] : memref<1152x128xbf16, #tpu.memory_space<vmem>>, vector<128x128xbf16>
    %cst_92 = arith.constant dense<0.000000e+00> : vector<288x128xf32>
    %108 = tpu.matmul %106, %107, %cst_92 {dimension_numbers = #tpu.dot_dimension_numbers<[1], [0], [0], [1], [0, 0, 1, 1], [], []>} : vector<288x128xbf16>, vector<128x128xbf16>, vector<288x128xf32> -> vector<288x128xf32>
    %109 = arith.addf %105, %108 : vector<288x128xf32>
    %c0_93 = arith.constant 0 : index
    %c0_94 = arith.constant 0 : index
    %110 = vector.load %arg9[%c0_93, %c0_94] : memref<288x128xf32, #tpu.memory_space<vmem>>, vector<288x128xf32>
    %111 = arith.addf %110, %109 : vector<288x128xf32>
    %c0_95 = arith.constant 0 : index
    %c0_96 = arith.constant 0 : index
    %112 = vector.load %arg9[%c0_95, %c0_96] : memref<288x128xf32, #tpu.memory_space<vmem>>, vector<288x128xf32>
    tpu.vector_store %arg9[%c0_95, %c0_96], %111 {strides = array<i32>} : memref<288x128xf32, #tpu.memory_space<vmem>>, vector<288x128xf32>,
    %c36_97 = arith.constant 36 : index
    %c0_98 = arith.constant 0 : index
    %113 = vector.load %arg10[%c36_97, %c0_98] : memref<332x128xbf16, #tpu.memory_space<vmem>>, vector<288x128xbf16>
    %c768_99 = arith.constant 768 : index
    %c0_100 = arith.constant 0 : index
    %114 = vector.load %arg4[%c768_99, %c0_100] : memref<1152x128xbf16, #tpu.memory_space<vmem>>, vector<128x128xbf16>
    %cst_101 = arith.constant dense<0.000000e+00> : vector<288x128xf32>
    %115 = tpu.matmul %113, %114, %cst_101 {dimension_numbers = #tpu.dot_dimension_numbers<[1], [0], [0], [1], [0, 0, 1, 1], [], []>} : vector<288x128xbf16>, vector<128x128xbf16>, vector<288x128xf32> -> vector<288x128xf32>
    %c37_102 = arith.constant 37 : index
    %c0_103 = arith.constant 0 : index
    %116 = vector.load %arg10[%c37_102, %c0_103] : memref<332x128xbf16, #tpu.memory_space<vmem>>, vector<288x128xbf16>
    %c896_104 = arith.constant 896 : index
    %c0_105 = arith.constant 0 : index
    %117 = vector.load %arg4[%c896_104, %c0_105] : memref<1152x128xbf16, #tpu.memory_space<vmem>>, vector<128x128xbf16>
    %cst_106 = arith.constant dense<0.000000e+00> : vector<288x128xf32>
    %118 = tpu.matmul %116, %117, %cst_106 {dimension_numbers = #tpu.dot_dimension_numbers<[1], [0], [0], [1], [0, 0, 1, 1], [], []>} : vector<288x128xbf16>, vector<128x128xbf16>, vector<288x128xf32> -> vector<288x128xf32>
    %119 = arith.addf %115, %118 : vector<288x128xf32>
    %c38_107 = arith.constant 38 : index
    %c0_108 = arith.constant 0 : index
    %120 = vector.load %arg10[%c38_107, %c0_108] : memref<332x128xbf16, #tpu.memory_space<vmem>>, vector<288x128xbf16>
    %c1024_109 = arith.constant 1024 : index
    %c0_110 = arith.constant 0 : index
    %121 = vector.load %arg4[%c1024_109, %c0_110] : memref<1152x128xbf16, #tpu.memory_space<vmem>>, vector<128x128xbf16>
    %cst_111 = arith.constant dense<0.000000e+00> : vector<288x128xf32>
    %122 = tpu.matmul %120, %121, %cst_111 {dimension_numbers = #tpu.dot_dimension_numbers<[1], [0], [0], [1], [0, 0, 1, 1], [], []>} : vector<288x128xbf16>, vector<128x128xbf16>, vector<288x128xf32> -> vector<288x128xf32>
    %123 = arith.addf %119, %122 : vector<288x128xf32>
    %c0_112 = arith.constant 0 : index
    %c0_113 = arith.constant 0 : index
    %124 = vector.load %arg9[%c0_112, %c0_113] : memref<288x128xf32, #tpu.memory_space<vmem>>, vector<288x128xf32>
    %125 = arith.addf %124, %123 : vector<288x128xf32>
    %c0_114 = arith.constant 0 : index
    %c0_115 = arith.constant 0 : index
    %126 = vector.load %arg9[%c0_114, %c0_115] : memref<288x128xf32, #tpu.memory_space<vmem>>, vector<288x128xf32>
    tpu.vector_store %arg9[%c0_114, %c0_115], %125 {strides = array<i32>} : memref<288x128xf32, #tpu.memory_space<vmem>>, vector<288x128xf32>,
    %c0_116 = arith.constant 0 : index
    %c19_117 = arith.constant 19 : index
    %c0_118 = arith.constant 0 : index
    %127 = vector.load %arg1[%c0_116, %c19_117, %c0_118] : memref<1x332x128xbf16, #tpu.memory_space<vmem>>, vector<1x288x128xbf16>
    %128 = vector.shape_cast %127 : vector<1x288x128xbf16> to vector<288x128xbf16>
    %c0_119 = arith.constant 0 : index
    %c0_120 = arith.constant 0 : index
    %129 = vector.load %arg9[%c0_119, %c0_120] : memref<288x128xf32, #tpu.memory_space<vmem>>, vector<288x128xf32>
    %c0_121 = arith.constant 0 : index
    %c0_122 = arith.constant 0 : index
    %130 = vector.load %arg6[%c0_121, %c0_122] : memref<128x128xbf16, #tpu.memory_space<vmem>>, vector<128x128xbf16>
    %cst_123 = arith.constant dense<0.000000e+00> : vector<288x128xf32>
    %131 = tpu.matmul %128, %130, %cst_123 {dimension_numbers = #tpu.dot_dimension_numbers<[1], [0], [0], [1], [0, 0, 1, 1], [], []>} : vector<288x128xbf16>, vector<128x128xbf16>, vector<288x128xf32> -> vector<288x128xf32>
    %132 = arith.addf %129, %131 : vector<288x128xf32>
    %c0_124 = arith.constant 0 : index
    %c0_125 = arith.constant 0 : index
    %133 = vector.load %arg9[%c0_124, %c0_125] : memref<288x128xf32, #tpu.memory_space<vmem>>, vector<288x128xf32>
    tpu.vector_store %arg9[%c0_124, %c0_125], %132 {strides = array<i32>} : memref<288x128xf32, #tpu.memory_space<vmem>>, vector<288x128xf32>,
    %c0_126 = arith.constant 0 : index
    %c0_127 = arith.constant 0 : index
    %134 = tpu.strided_load %arg9[%c0_126, %c0_127] {strides = array<i32: 2, 1>} : memref<288x128xf32, #tpu.memory_space<vmem>>, vector<144x128xf32>
    %c1_128 = arith.constant 1 : index
    %c0_129 = arith.constant 0 : index
    %135 = tpu.strided_load %arg9[%c1_128, %c0_129] {strides = array<i32: 2, 1>} : memref<288x128xf32, #tpu.memory_space<vmem>>, vector<144x128xf32>
    %136 = arith.addf %134, %135 : vector<144x128xf32>
    %137 = vector.shape_cast %136 : vector<144x128xf32> to vector<8x2x9x128xf32>
    %138 = vector.extract_strided_slice %137 {offsets = [0, 0, 0, 0], sizes = [8, 1, 8, 128], strides = [1, 1, 1, 1]} : vector<8x2x9x128xf32> to vector<8x1x8x128xf32>
    %139 = vector.shape_cast %138 : vector<8x1x8x128xf32> to vector<8x8x128xf32>
    %140 = vector.extract_strided_slice %137 {offsets = [0, 1, 0, 0], sizes = [8, 1, 8, 128], strides = [1, 1, 1, 1]} : vector<8x2x9x128xf32> to vector<8x1x8x128xf32>
    %141 = vector.shape_cast %140 : vector<8x1x8x128xf32> to vector<8x8x128xf32>
    %142 = arith.addf %139, %141 : vector<8x8x128xf32>
    %cst_130 = arith.constant 2.500000e-01 : f32
    %143 = vector.broadcast %cst_130 : f32 to vector<8x8x128xf32>
    %144 = arith.mulf %142, %143 : vector<8x8x128xf32>
    %c0_131 = arith.constant 0 : index
    %c0_132 = arith.constant 0 : index
    %145 = vector.load %arg5[%c0_131, %c0_132] : memref<1x128xf32, #tpu.memory_space<vmem>>, vector<1x128xf32>
    %146 = vector.shape_cast %145 : vector<1x128xf32> to vector<1x1x128xf32>
    %147 = vector.broadcast %146 : vector<1x1x128xf32> to vector<8x8x128xf32>
    %148 = arith.addf %144, %147 : vector<8x8x128xf32>
    %c0_133 = arith.constant 0 : index
    %c0_134 = arith.constant 0 : index
    %149 = vector.load %arg7[%c0_133, %c0_134] : memref<1x128xf32, #tpu.memory_space<vmem>>, vector<1x128xf32>
    %150 = vector.shape_cast %149 : vector<1x128xf32> to vector<1x1x128xf32>
    %151 = vector.broadcast %150 : vector<1x1x128xf32> to vector<8x8x128xf32>
    %152 = arith.addf %148, %151 : vector<8x8x128xf32>
    %c0_135 = arith.constant 0 : index
    %c0_136 = arith.constant 0 : index
    %c0_137 = arith.constant 0 : index
    %c0_138 = arith.constant 0 : index
    %153 = vector.load %arg8[%c0_135, %c0_136, %c0_137, %c0_138] : memref<1x8x8x128xf32, #tpu.memory_space<vmem>>, vector<1x8x8x128xf32>
    %154 = vector.shape_cast %153 : vector<1x8x8x128xf32> to vector<8x8x128xf32>
    %155 = vector.shape_cast %152 : vector<8x8x128xf32> to vector<1x8x8x128xf32>
    tpu.vector_store %arg8[%c0_135, %c0_136, %c0_137, %c0_138], %155 {strides = array<i32>} : memref<1x8x8x128xf32, #tpu.memory_space<vmem>>, vector<1x8x8x128xf32>,
    return
  }
  func.func @transform_0(%arg0: i32) -> (i32, i32, i32) {
    %c0_i32 = arith.constant 0 : i32
    %c0_i32_0 = arith.constant 0 : i32
    %c0_i32_1 = arith.constant 0 : i32
    return %arg0, %c0_i32, %c0_i32_0 : i32, i32, i32
  }
  func.func @transform_1(%arg0: i32) -> (i32, i32) {
    %c0_i32 = arith.constant 0 : i32
    %c0_i32_0 = arith.constant 0 : i32
    %c0_i32_1 = arith.constant 0 : i32
    return %c0_i32, %c0_i32_0 : i32, i32
  }
  func.func @transform_2(%arg0: i32) -> (i32, i32) {
    %c0_i32 = arith.constant 0 : i32
    %c0_i32_0 = arith.constant 0 : i32
    %c0_i32_1 = arith.constant 0 : i32
    return %c0_i32, %c0_i32_0 : i32, i32
  }
  func.func @transform_3(%arg0: i32) -> (i32, i32) {
    %c0_i32 = arith.constant 0 : i32
    %c0_i32_0 = arith.constant 0 : i32
    %c0_i32_1 = arith.constant 0 : i32
    return %c0_i32, %c0_i32_0 : i32, i32
  }
  func.func @transform_4(%arg0: i32) -> (i32, i32) {
    %c0_i32 = arith.constant 0 : i32
    %c0_i32_0 = arith.constant 0 : i32
    %c0_i32_1 = arith.constant 0 : i32
    return %c0_i32, %c0_i32_0 : i32, i32
  }
  func.func @transform_5(%arg0: i32) -> (i32, i32) {
    %c0_i32 = arith.constant 0 : i32
    %c0_i32_0 = arith.constant 0 : i32
    %c0_i32_1 = arith.constant 0 : i32
    return %c0_i32, %c0_i32_0 : i32, i32
  }
  func.func @transform_6(%arg0: i32) -> (i32, i32) {
    %c0_i32 = arith.constant 0 : i32
    %c0_i32_0 = arith.constant 0 : i32
    %c0_i32_1 = arith.constant 0 : i32
    return %c0_i32, %c0_i32_0 : i32, i32
  }
  func.func @transform_7(%arg0: i32) -> (i32, i32, i32, i32) {
    %c0_i32 = arith.constant 0 : i32
    %c0_i32_0 = arith.constant 0 : i32
    %c0_i32_1 = arith.constant 0 : i32
    %c0_i32_2 = arith.constant 0 : i32
    return %arg0, %c0_i32, %c0_i32_0, %c0_i32_1 : i32, i32, i32, i32
  }
}

</mosaic_0001>

<bundles_post_ra>
// kernel: tpu_custom_call.1
= control target key start
LH: loop header
LB: loop body
LE: loop exit
PB: predicated region body
PF: predicated region fallthrough
CT: control target
= control target key end

     0   :  { %12 = vsyncpa [#allocation5], 0  ;;  %s20477_s0 = inlined_call_operand.vmem [shape: bf16[2,332,128], index: 0, kind: input, shape index: {}]   ;;  %s20478_s1 = inlined_call_operand.vmem [shape: bf16[1152,128], index: 1, kind: input, shape index: {}]   ;;  %s20479_s2 = inlined_call_operand.vmem [shape: f32[1,128], index: 2, kind: input, shape index: {}]   ;;  %s20480_s3 = inlined_call_operand.hbm [shape: bf16[1152,128], index: 3, kind: input, shape index: {}]   ;;  %s20481_s4 = inlined_call_operand.vmem [shape: f32[1,128], index: 4, kind: input, shape index: {}]   ;;  %s20482_s5 = inlined_call_operand.vmem [shape: bf16[128,128], index: 5, kind: input, shape index: {}]   ;;  %s20483_s6 = inlined_call_operand.vmem [shape: f32[1,128], index: 6, kind: input, shape index: {}]   ;;  %s20484_s7 = inlined_call_operand.hbm [shape: f32[2,8,8,128], index: 7, kind: output, shape index: {}]  }
   0x1   :  { %13 = vsyncpa [#allocation6], 0 }
   0x2   :  { %15 = vsyncpa [#allocation6 + $0x1], 0  ;;  %s14811_s24 = smov 0   ;;  %s14813_s25 = smov 0  }
   0x3   :  { %s14815_s26 = smov 0   ;;  %s14817_s27 = smov 0  }
   0x4 LB: > { %s14832_s28 = sadd.s32 4294967295, %s14761_s27   ;;  %s12358_s29 = sadd.s32 4294967294, %s14761_s27   ;;  %s14761_s27 = sphi %s14817_s27, %s21337_s27   ;;  %s14757_s26 = sphi %s14815_s26, %s21336_s26   ;;  %s14753_s25 = sphi %s14813_s25, %s21335_s25   ;;  %s14749_s24 = sphi %s14811_s24, %s21334_s24  }
   0x5   : > { %s14836_s30 = sadd.s32 1, %s14761_s27   ;;  %s180_s8 = sadd.s32 1, %s14757_s26 }
   0x6   : > { %s177_s9 = ssub.s32 %s14761_s27, %s14836_s30  ;;  %p190_p0 = scmp.ne.s32.totalorder %s14757_s26, %s14753_s25 }
   0x7   : > { %p178_p1 = scmp.eq.s32.totalorder %s177_s9, 0  ;;  %p191_p2 = scmp.eq.s32.totalorder %s14832_s28, 1 }
   0x8   : > { %p196_p3 = scmp.ne.s32.totalorder %s14753_s25, %s14749_s24  ;;  %p197_p4 = scmp.eq.s32.totalorder %s12358_s29, 1 }
   0x9   : > { %s14847_s10 = scalar_select %p178_p1, %s14757_s26, %s180_s8  }
   0xa   : > { %p14849_p5 = por %p191_p2, %p190_p0  ;;  %p14853_p6 = por %p197_p4, %p196_p3 }
   0xb   : > { %p12359_p7 = scmp.ge.s32.totalorder %s14761_s27, 1  ;;  %p204_p8 = scmp.lt.s32.totalorder %s14761_s27, 3 }
   0xc   : > { %s20534_s12 = scalar_select %p14853_p6, 1, 0 }
   0xd   : > { %p14309_p9 = scmp.eq.s32.totalorder %s14832_s28, 0  ;;  %p14860_p10 = pnand %p12359_p7, %p204_p8 }
   0xe   : > { %s14763_s14 = smov [#allocation4]  }
   0xf   : > { %s222_s15 = sshll.u32 %s14763_s14, 4  ;;  %p14301_p11 = pneg %p14860_p10  ;;  %s223_s15 = int_to_ptr.vmem [resolvable:$true] %s222_s15 }
  0x10   : > { %s14682_s16 = scalar_lea.vmem %s223_s15, 9216  ;;  %p14690_p3 = scmp.lt.s32.totalorder %s223_s15, %s223_s15 }
  0x11   : > { %p14302_p12 = pnand %p14309_p9, %p14301_p11  ;;  %p14683_p0 = scmp.ne.s32.totalorder %s223_s15, %s14682_s16 }
  0x12   : > { %p14691_p4 = scmp.lt.s32.totalorder %s14682_s16, %s14682_s16 }
  0x13   : > { %p14673_p13 = pneg %p14302_p12 }
  0x14   : > { %p14692_p6 = por %p14691_p4, %p14690_p3 }
  0x15   : > { %p14685_p1 = pnand %p14683_p0, %p14673_p13 }
  0x17   : > { %p14686_p2 = pneg %p14685_p1 }
  0x19   : > { %p14693_p7 = pnand %p14692_p6, %p14686_p2 }
  0x1b   : > { %14696 = shalt.err (!%p14693_p7)
}
  0x1c   : > { %s14764_s17 = smov 64   ;;  %s14765_s18 = smov 4  }
  0x1d   : > { %14304 = dma.hbm_to_vmem [thread:$0]  (!%p14302_p12), %s20480_s3, 9216, %s223_s15, [#allocation5], %s14764_s17, %s14764_s17, %s14765_s18  }
  0x1e   : > { %255 = sbr.rel (%p14860_p10) target bundleno = 1371 (0x55b), region = 48 }
  0x23   : > { %14740 = dma.done.wait (%p14309_p9), [#allocation5], 9216  }
  0x24   : > { %14742 = vsyncadd (%p14309_p9), [#allocation5], 4294958080  ;;  %p287_p8 = scmp.lt.s32.totalorder %s14832_s28, 1  ;;  %v14351_v0 = vld [vmem:[%s20478_s1 + $0x78] sm:$0xff]   ;;  %v14352_v1 = vld [vmem:[%s20478_s1 + $0x70] sm:$0xff]   ;;  %s284_s23 = sand.u32 1, %s14753_s25  }
  0x25   : > { %14206 = vmatprep.subr.bf16.mxu1 %v14351_v0  ;;  %13218 = vmatprep.subr.bf16.mxu0 %v14351_v0  ;;  %v14353_v2 = vld [vmem:[%s20478_s1 + $0x68] sm:$0xff]   ;;  %v14354_v3 = vld [vmem:[%s20478_s1 + $0x60] sm:$0xff]   ;;  %v14355_v14 = vld [vmem:[%s20478_s1 + $0x58] sm:$0xff]   ;;  %vm20502_vm12 = vsmask.f32 7424  ;;  %s12364_s29 = sshll.u32 %s284_s23, 6 }
  0x26   : > { %s288_s21 = scalar_select %p287_p8, %s14832_s28, 1  ;;  %14214 = vmatpush3.bf16.msra.mxu1 %v14351_v0  ;;  %13219 = vmatpush3.bf16.msra.mxu0 %v14351_v0  ;;  %v14356_v22 = vld [vmem:[%s20478_s1 + $0x50] sm:$0xff]   ;;  %v14357_v34 = vld [vmem:[%s20478_s1 + $0x48] sm:$0xff]   ;;  %v14358_v51 = vld [vmem:[%s20478_s1 + $0x40] sm:$0xff]  }
  0x27   : > { %14207 = vmatprep.subr.bf16.mxu1 %v14352_v1  ;;  %13220 = vmatprep.subr.bf16.mxu0 %v14352_v1  ;;  %v14362_v57 = vld [vmem:[%s20478_s1 + $0x38] sm:$0xff]   ;;  %s20295_s9 = scalar_lea.vmem [#allocation7], %s12364_s29  ;;  %s12723_s14 = sshll.u32 %s14832_s28, 10 }
  0x28   : > { %s14222_s22 = smul.u32 168, %s288_s21  ;;  %v14953_v60 = vld [vmem:[%s20478_s1 + $0xb8] sm:$0xff]   ;;  %s12284_s13 = sshll.u32 %s20295_s9, 4  ;;  %s20431_s13 = int_to_ptr.vmem [resolvable:$true] %s12284_s13 }
  0x29   : > { %s20429_s17 = scalar_lea.hbm %s20484_s7, %s12723_s14  ;;  %s20437_s28 = scalar_lea.sflag [#allocation6], %s284_s23 }
  0x2a   : > { %s14882_s8 = scalar_lea.vmem %s20477_s0, %s14222_s22  ;;  %14215 = vmatpush3.bf16.msra.mxu1 %v14352_v1  ;;  %13221 = vmatpush3.bf16.msra.mxu0 %v14352_v1  ;;  %s14697_s18 = scalar_lea.vmem %s20431_s13, 1024 }
  0x2b   : > { %v312_v4 = vld [vmem:[%s14882_s8 + $0x40] sm:$0xf]  ;;  %14208 = vmatprep.subr.bf16.mxu1 %v14353_v2  ;;  %13222 = vmatprep.subr.bf16.mxu0 %v14353_v2  ;;  %v313_v5 = vld [vmem:[%s14882_s8 + $0x44] sm:$0xf]  ;;  %v314_v6 = vld [vmem:[%s14882_s8 + $0x48] sm:$0xf]  ;;  %p14698_p6 = scmp.ne.s32.totalorder %s20431_s13, %s14697_s18 }
  0x2c   : > { %v315_v7 = vld [vmem:[%s14882_s8 + $0x4c] sm:$0xf]  ;;  %vm354_vm0 = vcmp.ge.bf16.partialorder %v312_v4, 0  ;;  %vm355_vm1 = vcmp.ge.bf16.partialorder %v313_v5, 0  ;;  %vm356_vm2 = vcmp.ge.bf16.partialorder %v314_v6, 0  ;;  %s14768_s19 = smov [#allocation7]  }
  0x2d   : > { %vm357_vm3 = vcmp.ge.bf16.partialorder %v315_v7, 0  ;;  %v316_v8 = vld [vmem:[%s14882_s8 + $0x50] sm:$0xf]  ;;  %v396_v9 = vmul.bf16 1009007652, %v312_v4  ;;  %p14699_p9 = pnand %p14698_p6, %p14849_p5 }
  0x2e   : > { %v397_v10 = vmul.bf16 1009007652, %v313_v5  ;;  %v398_v11 = vmul.bf16 1009007652, %v314_v6  ;;  %14216 = vmatpush3.bf16.msra.mxu1 %v14353_v2  ;;  %13223 = vmatpush3.bf16.msra.mxu0 %v14353_v2  ;;  %v399_v12 = vmul.bf16 1009007652, %v315_v7 }
  0x2f   : > { %v317_v13 = vld [vmem:[%s14882_s8 + $0x54] sm:$0xf]  ;;  %vm358_vm4 = vcmp.ge.bf16.partialorder %v316_v8, 0  ;;  %14209 = vmatprep.subr.bf16.mxu1 %v14354_v3  ;;  %13224 = vmatprep.subr.bf16.mxu0 %v14354_v3  ;;  %v438_v15 = vsel %vm354_vm0, %v312_v4, %v396_v9  ;;  %v400_v19 = vmul.bf16 1009007652, %v316_v8  ;;  %p14700_p10 = pneg %p14699_p9 }
  0x30   : > { %v439_v16 = vsel %vm355_vm1, %v313_v5, %v397_v10  ;;  %v440_v17 = vsel %vm356_vm2, %v314_v6, %v398_v11  ;;  %vm359_vm5 = vcmp.ge.bf16.partialorder %v317_v13, 0  ;;  %v441_v18 = vsel %vm357_vm3, %v315_v7, %v399_v12  ;;  %480 = vst [vmem:[#allocation3 + $0x40] sm:$0xf] %v438_v15  ;;  %v296_v21 = vld [vmem:[%s14882_s8] sm:$0xf] }
  0x31   : > { %481 = vst [vmem:[#allocation3 + $0x44] sm:$0xf] %v439_v16  ;;  %482 = vst [vmem:[#allocation3 + $0x48] sm:$0xf] %v440_v17  ;;  %v401_v20 = vmul.bf16 1009007652, %v317_v13  ;;  %v442_v26 = vsel %vm358_vm4, %v316_v8, %v400_v19 }
  0x32   : > { %483 = vst [vmem:[#allocation3 + $0x4c] sm:$0xf] %v441_v18  ;;  %v297_v23 = vld [vmem:[%s14882_s8 + $0x4] sm:$0xf]  ;;  %v298_v24 = vld [vmem:[%s14882_s8 + $0x8] sm:$0xf]  ;;  %14217 = vmatpush3.bf16.msra.mxu1 %v14354_v3  ;;  %13225 = vmatpush3.bf16.msra.mxu0 %v14354_v3 }
  0x33   : > { %v299_v25 = vld [vmem:[%s14882_s8 + $0xc] sm:$0xf]  ;;  %v443_v27 = vsel %vm359_vm5, %v317_v13, %v401_v20  ;;  %vm338_vm6 = vcmp.ge.bf16.partialorder %v296_v21, 0  ;;  %vm339_vm7 = vcmp.ge.bf16.partialorder %v297_v23, 0  ;;  %v300_v28 = vld [vmem:[%s14882_s8 + $0x10] sm:$0xf]  ;;  %14210 = vmatprep.subr.bf16.mxu1 %v14355_v14  ;;  %13226 = vmatprep.subr.bf16.mxu0 %v14355_v14 }
  0x34   : > { %v301_v29 = vld [vmem:[%s14882_s8 + $0x14] sm:$0xf]  ;;  %484 = vst [vmem:[#allocation3 + $0x50] sm:$0xf] %v442_v26  ;;  %485 = vst [vmem:[#allocation3 + $0x54] sm:$0xf] %v443_v27 }
  0x35   : > { %vm340_vm8 = vcmp.ge.bf16.partialorder %v298_v24, 0  ;;  %vm341_vm9 = vcmp.ge.bf16.partialorder %v299_v25, 0  ;;  %v380_v30 = vmul.bf16 1009007652, %v296_v21  ;;  %v381_v31 = vmul.bf16 1009007652, %v297_v23 }
  0x36   : > { %v382_v32 = vmul.bf16 1009007652, %v298_v24  ;;  %v383_v33 = vmul.bf16 1009007652, %v299_v25  ;;  %vm342_vm10 = vcmp.ge.bf16.partialorder %v300_v28, 0  ;;  %vm343_vm11 = vcmp.ge.bf16.partialorder %v301_v29, 0  ;;  %14218 = vmatpush3.bf16.msra.mxu1 %v14355_v14  ;;  %13227 = vmatpush3.bf16.msra.mxu0 %v14355_v14 }
  0x37   : > { %v422_v35 = vsel %vm338_vm6, %v296_v21, %v380_v30  ;;  %v423_v36 = vsel %vm339_vm7, %v297_v23, %v381_v31  ;;  %v384_v37 = vmul.bf16 1009007652, %v300_v28  ;;  %v385_v38 = vmul.bf16 1009007652, %v301_v29  ;;  %14211 = vmatprep.subr.bf16.mxu1 %v14356_v22  ;;  %13228 = vmatprep.subr.bf16.mxu0 %v14356_v22  ;;  %v318_v45 = vld [vmem:[%s14882_s8 + $0x58] sm:$0xf] }
  0x38   : > { %v424_v39 = vsel %vm340_vm8, %v298_v24, %v382_v32  ;;  %v425_v40 = vsel %vm341_vm9, %v299_v25, %v383_v33  ;;  %464 = vst [vmem:[#allocation3] sm:$0xf] %v422_v35  ;;  %465 = vst [vmem:[#allocation3 + $0x4] sm:$0xf] %v423_v36  ;;  %v14927_v43 = vld [vmem:[#allocation3 + $0x40] sm:$0xff]   ;;  %vm360_vm13 = vcmp.ge.bf16.partialorder %v318_v45, 0 }
  0x39   : > { %466 = vst [vmem:[#allocation3 + $0x8] sm:$0xf] %v424_v39  ;;  %467 = vst [vmem:[#allocation3 + $0xc] sm:$0xf] %v425_v40  ;;  %v426_v41 = vsel %vm342_vm10, %v300_v28, %v384_v37  ;;  %v427_v42 = vsel %vm343_vm11, %v301_v29, %v385_v38  ;;  %v14929_v44 = vld [vmem:[#allocation3 + $0x48] sm:$0xff]   ;;  %v733_v47 = vshll.u32 %v14927_v43, 16 }
  0x3a   : > { %468 = vst [vmem:[#allocation3 + $0x10] sm:$0xf] %v426_v41  ;;  %469 = vst [vmem:[#allocation3 + $0x14] sm:$0xf] %v427_v42  ;;  %v319_v46 = vld [vmem:[%s14882_s8 + $0x5c] sm:$0xf]  ;;  %14219 = vmatpush3.bf16.msra.mxu1 %v14356_v22  ;;  %13229 = vmatpush3.bf16.msra.mxu0 %v14356_v22 }
  0x3b   : > { %v737_v48 = vshrl.u32 %v14927_v43, 16  ;;  %v741_v49 = vshll.u32 %v14929_v44, 16  ;;  %v14936_v50 = vld [vmem:[#allocation3 + $0x50] sm:$0xff]   ;;  %14212 = vmatprep.subr.bf16.mxu1 %v14357_v34  ;;  %13230 = vmatprep.subr.bf16.mxu0 %v14357_v34  ;;  %v745_v52 = vshrl.u32 %v14929_v44, 16  ;;  %vm361_vm14 = vcmp.ge.bf16.partialorder %v319_v46, 0  ;;  %v14371_v32 = vld [vmem:[%s20478_s1 + $0x28] sm:$0xff]  }
  0x3c   : > { %v14942_v53 = vrot.slane %v733_v47, 1  ;;  %v749_v55 = vshll.u32 %v14936_v50, 16  ;;  %v402_v56 = vmul.bf16 1009007652, %v318_v45  ;;  %v403_v61 = vmul.bf16 1009007652, %v319_v46 }
  0x3d   : > { %v743_v54 = vrot.slane %v741_v49, 1  ;;  %v20485_v3 = vmov 0   ;;  %v753_v7 = vshrl.u32 %v14936_v50, 16  ;;  %v320_v11 = vld [vmem:[%s14882_s8 + $0x60] sm:$0xf]  ;;  %v14366_v18 = vld [vmem:[%s20478_s1 + $0x30] sm:$0xff]  }
  0x3e   : > { %14220 = vmatpush3.bf16.msra.mxu1 %v14357_v34  ;;  %13231 = vmatpush3.bf16.msra.mxu0 %v14357_v34  ;;  %v739_v62 = vor.u32 %v737_v48, %v14942_v53  ;;  %v751_v0 = vrot.slane %v749_v55, 1  ;;  %v444_v5 = vsel %vm360_vm13, %v318_v45, %v402_v56  ;;  %v445_v6 = vsel %vm361_vm14, %v319_v46, %v403_v61  ;;  %v321_v12 = vld [vmem:[%s14882_s8 + $0x64] sm:$0xf]  ;;  %v302_v25 = vld [vmem:[%s14882_s8 + $0x18] sm:$0xf]  ;;  %v14370_v28 = vld [vmem:[%s20478_s1 + $0xb0] sm:$0xff]  }
  0x3f   : > { %v506_v58 = vld [vmem:[#allocation3] sm:$0xf]  ;;  %v14948_v59 = vld [vmem:[#allocation3 + $0x4] sm:$0xf]  ;;  %v747_v63 = vor.u32 %v745_v52, %v743_v54  ;;  %14213 = vmatprep.subr.bf16.mxu1 %v14358_v51  ;;  %13232 = vmatprep.subr.bf16.mxu0 %v14358_v51  ;;  %486 = vst [vmem:[#allocation3 + $0x58] sm:$0xf] %v444_v5 }
  0x40   : > { %v14957_v1 = vcombine.low %v506_v58, %v14948_v59  ;;  %v14959_v2 = vld [vmem:[#allocation3 + $0x8] sm:$0xff]   ;;  %5856 = vst [vmem:[#allocation3 + $0x4] sm:$0xf] %v20485_v3  ;;  %v744_v8 = vsel %vm20502_vm12, %v739_v62, %v743_v54  ;;  %487 = vst [vmem:[#allocation3 + $0x5c] sm:$0xf] %v445_v6  ;;  %vm362_vm15 = vcmp.ge.bf16.partialorder %v320_v11, 0  ;;  %v755_v38 = vor.u32 %v753_v7, %v751_v0 }
  0x41   : > { %v14962_v4 = vld [vmem:[#allocation3 + $0x10] sm:$0xff]   ;;  %13250 = vmatprep.mubr.bf16.mxu1 %v744_v8  ;;  %v752_v13 = vsel %vm20502_vm12, %v747_v63, %v751_v0  ;;  %v677_v14 = vshll.u32 %v14959_v2, 16  ;;  %v681_v15 = vshrl.u32 %v14959_v2, 16  ;;  %vm363_vm0 = vcmp.ge.bf16.partialorder %v321_v12, 0  ;;  %v303_v29 = vld [vmem:[%s14882_s8 + $0x1c] sm:$0xf] }
  0x42   : > { %v670_v9 = vshrl.u32 %v14957_v1, 16  ;;  %v672_v10 = vshll.u32 %v14957_v1, 16  ;;  %v685_v16 = vshll.u32 %v14962_v4, 16  ;;  %14221 = vmatpush3.bf16.msra.mxu1 %v14358_v51  ;;  %13233 = vmatpush3.bf16.msra.mxu0 %v14358_v51  ;;  %v404_v19 = vmul.bf16 1009007652, %v320_v11  ;;  %v14374_v47 = vld [vmem:[%s20478_s1 + $0xa8] sm:$0xff]  }
  0x43   : > { %13270 = vmatprep.subr.bf16.mxu1 %v14362_v57  ;;  %v679_v20 = vrot.slane %v677_v14, 1  ;;  %13322 = vmatprep.subr.bf16.mxu0 %v14953_v60  ;;  %v405_v22 = vmul.bf16 1009007652, %v321_v12  ;;  %vm344_vm1 = vcmp.ge.bf16.partialorder %v302_v25, 0  ;;  %v386_v30 = vmul.bf16 1009007652, %v302_v25 }
  0x44   : > { %v674_v17 = vrot.slane %v672_v10, 1  ;;  %v14979_v21 = vrot.slane %v685_v16, 1  ;;  %v446_v24 = vsel %vm362_vm15, %v320_v11, %v404_v19  ;;  %vm345_vm2 = vcmp.ge.bf16.partialorder %v303_v29, 0  ;;  %v304_v34 = vld [vmem:[%s14882_s8 + $0x20] sm:$0xf] }
  0x45   : > { %13251 = vmatmul.mubr.bf16.vlgmr.msra.gmra.mxu1 %v752_v13  ;;  %v683_v26 = vor.u32 %v681_v15, %v679_v20  ;;  %v447_v27 = vsel %vm363_vm0, %v321_v12, %v405_v22  ;;  %488 = vst [vmem:[#allocation3 + $0x60] sm:$0xf] %v446_v24  ;;  %v387_v33 = vmul.bf16 1009007652, %v303_v29  ;;  %v428_v37 = vsel %vm344_vm1, %v302_v25, %v386_v30  ;;  %v305_v40 = vld [vmem:[%s14882_s8 + $0x24] sm:$0xf] }
  0x46   : > { %v675_v23 = vor.u32 %v674_v17, %v670_v9  ;;  %13271 = vmatpush3.bf16.msra.mxu1 %v14362_v57  ;;  %489 = vst [vmem:[#allocation3 + $0x64] sm:$0xf] %v447_v27  ;;  %vm346_vm3 = vcmp.ge.bf16.partialorder %v304_v34, 0  ;;  %470 = vst [vmem:[#allocation3 + $0x18] sm:$0xf] %v428_v37  ;;  %vm347_vm4 = vcmp.ge.bf16.partialorder %v305_v40, 0 }
  0x47   : > { %v688_v35 = vsel %vm20502_vm12, %v683_v26, %v14979_v21  ;;  %13272 = vmatprep.subr.bf16.mxu1 %v14366_v18  ;;  %v14994_v36 = vld [vmem:[#allocation3 + $0x58] sm:$0xff]   ;;  %v429_v39 = vsel %vm345_vm2, %v303_v29, %v387_v33  ;;  %v388_v41 = vmul.bf16 1009007652, %v304_v34  ;;  %v389_v46 = vmul.bf16 1009007652, %v305_v40  ;;  %v14376_v55 = vld [vmem:[%s20478_s1 + $0x20] sm:$0xff]  }
  0x48   : > { %v680_v31 = vsel %vm20502_vm12, %v675_v23, %v679_v20  ;;  %v757_v42 = vshll.u32 %v14994_v36, 16  ;;  %v761_v45 = vshrl.u32 %v14994_v36, 16  ;;  %471 = vst [vmem:[#allocation3 + $0x1c] sm:$0xf] %v429_v39  ;;  %v322_v49 = vld [vmem:[%s14882_s8 + $0x68] sm:$0xf] }
  0x49   : > { %13234 = vmatprep.mubr.bf16.mxu0 %v680_v31  ;;  %v430_v48 = vsel %vm346_vm3, %v304_v34, %v388_v41  ;;  %v323_v51 = vld [vmem:[%s14882_s8 + $0x6c] sm:$0xf]  ;;  %v431_v54 = vsel %vm347_vm4, %v305_v40, %v389_v46  ;;  %vm364_vm5 = vcmp.ge.bf16.partialorder %v322_v49, 0  ;;  %v406_v56 = vmul.bf16 1009007652, %v322_v49  ;;  %v14378_v58 = vld [vmem:[%s20478_s1 + $0xa0] sm:$0xff]  }
  0x4a   : > { %13235 = vmatmul.mubr.bf16.vlgmr.msra.gmra.mxu0 %v688_v35  ;;  %13273 = vmatpush3.bf16.msra.mxu1 %v14366_v18  ;;  %v759_v52 = vrot.slane %v757_v42, 1  ;;  %472 = vst [vmem:[#allocation3 + $0x20] sm:$0xf] %v430_v48  ;;  %vm365_vm6 = vcmp.ge.bf16.partialorder %v323_v51, 0  ;;  %473 = vst [vmem:[#allocation3 + $0x24] sm:$0xf] %v431_v54 }
  0x4b   : > { %13323 = vmatpush3.bf16.msra.mxu0 %v14953_v60  ;;  %13274 = vmatprep.subr.bf16.mxu1 %v14371_v32  ;;  %v407_v57 = vmul.bf16 1009007652, %v323_v51  ;;  %v689_v62 = vshrl.u32 %v14962_v4, 16  ;;  %v448_v63 = vsel %vm364_vm5, %v322_v49, %v406_v56  ;;  %v324_v5 = vld [vmem:[%s14882_s8 + $0x70] sm:$0xf]  ;;  %v14380_v9 = vld [vmem:[%s20478_s1 + $0x18] sm:$0xff]  }
  0x4c   : > { %13324 = vmatprep.subr.bf16.mxu0 %v14370_v28  ;;  %v760_v60 = vsel %vm20502_vm12, %v755_v38, %v759_v52  ;;  %v325_v6 = vld [vmem:[%s14882_s8 + $0x74] sm:$0xf]  ;;  %v763_v7 = vor.u32 %v761_v45, %v759_v52  ;;  %490 = vst [vmem:[#allocation3 + $0x68] sm:$0xf] %v448_v63  ;;  %vm366_vm7 = vcmp.ge.bf16.partialorder %v324_v5, 0  ;;  %v14382_v15 = vld [vmem:[%s20478_s1 + $0x98] sm:$0xff]  }
  0x4d   : > { %v15013_v61 = vld [vmem:[#allocation3 + $0x60] sm:$0xff]   ;;  %13254 = vmatprep.mubr.bf16.mxu1 %v760_v60  ;;  %v449_v0 = vsel %vm365_vm6, %v323_v51, %v407_v57  ;;  %vm367_vm8 = vcmp.ge.bf16.partialorder %v325_v6, 0  ;;  %v408_v11 = vmul.bf16 1009007652, %v324_v5  ;;  %v409_v14 = vmul.bf16 1009007652, %v325_v6 }
  0x4e   : > { %13275 = vmatpush3.bf16.msra.mxu1 %v14371_v32  ;;  %v765_v8 = vshll.u32 %v15013_v61, 16  ;;  %491 = vst [vmem:[#allocation3 + $0x6c] sm:$0xf] %v449_v0  ;;  %v769_v13 = vshrl.u32 %v15013_v61, 16  ;;  %v691_v16 = vor.u32 %v689_v62, %v14979_v21  ;;  %v306_v20 = vld [vmem:[%s14882_s8 + $0x28] sm:$0xf] }
  0x4f   : > { %13325 = vmatpush3.bf16.msra.mxu0 %v14370_v28  ;;  %13276 = vmatprep.subr.bf16.mxu1 %v14376_v55  ;;  %v15022_v10 = vld [vmem:[#allocation3 + $0x18] sm:$0xff]   ;;  %v450_v19 = vsel %vm366_vm7, %v324_v5, %v408_v11  ;;  %v14385_v22 = vld [vmem:[%s20478_s1 + $0x10] sm:$0xff]   ;;  %v451_v25 = vsel %vm367_vm8, %v325_v6, %v409_v14  ;;  %v307_v21 = vld [vmem:[%s14882_s8 + $0x2c] sm:$0xf]  ;;  %vm348_vm9 = vcmp.ge.bf16.partialorder %v306_v20, 0  ;;  %vm20500_vm7 = vcmask 1046528  }
  0x50   : > { %13326 = vmatprep.subr.bf16.mxu0 %v14374_v47  ;;  %v767_v12 = vrot.slane %v765_v8, 1  ;;  %v693_v17 = vshll.u32 %v15022_v10, 16  ;;  %v697_v18 = vshrl.u32 %v15022_v10, 16  ;;  %492 = vst [vmem:[#allocation3 + $0x70] sm:$0xf] %v450_v19  ;;  %vm349_vm10 = vcmp.ge.bf16.partialorder %v307_v21, 0 }
  0x51   : > { %v15036_v24 = vld [vmem:[#allocation3 + $0x20] sm:$0xff]   ;;  %493 = vst [vmem:[#allocation3 + $0x74] sm:$0xf] %v451_v25  ;;  %v390_v27 = vmul.bf16 1009007652, %v306_v20  ;;  %v14386_v30 = vld [vmem:[%s20478_s1 + $0x90] sm:$0xff]  }
  0x52   : > { %13277 = vmatpush3.bf16.msra.mxu1 %v14376_v55  ;;  %v768_v23 = vsel %vm20502_vm12, %v763_v7, %v767_v12  ;;  %v695_v26 = vrot.slane %v693_v17, 1  ;;  %v391_v28 = vmul.bf16 1009007652, %v307_v21  ;;  %v701_v29 = vshll.u32 %v15036_v24, 16  ;;  %v308_v39 = vld [vmem:[%s14882_s8 + $0x30] sm:$0xf] }
  0x53   : > { %13327 = vmatpush3.bf16.msra.mxu0 %v14374_v47  ;;  %13278 = vmatprep.subr.bf16.mxu1 %v14380_v9  ;;  %v432_v34 = vsel %vm348_vm9, %v306_v20, %v390_v27  ;;  %v771_v38 = vor.u32 %v769_v13, %v767_v12  ;;  %v309_v40 = vld [vmem:[%s14882_s8 + $0x34] sm:$0xf]  ;;  %vm350_vm11 = vcmp.ge.bf16.partialorder %v308_v39, 0  ;;  %v14388_v45 = vld [vmem:[%s20478_s1 + $0x88] sm:$0xff]   ;;  %v392_v47 = vmul.bf16 1009007652, %v308_v39 }
  0x54   : > { %13328 = vmatprep.subr.bf16.mxu0 %v14378_v58  ;;  %13255 = vmatmul.mubr.bf16.gmra.mxu1 %v768_v23  ;;  %v696_v31 = vsel %vm20502_vm12, %v691_v16, %v695_v26  ;;  %v699_v32 = vor.u32 %v697_v18, %v695_v26  ;;  %v433_v35 = vsel %vm349_vm10, %v307_v21, %v391_v28  ;;  %v703_v37 = vrot.slane %v701_v29, 1  ;;  %v326_v51 = vld [vmem:[%s14882_s8 + $0x78] sm:$0xf]  ;;  %v14389_v52 = vld [vmem:[%s20478_s1 + $0x8] sm:$0xff]   ;;  %v327_v57 = vld [vmem:[%s14882_s8 + $0x7c] sm:$0xf] }
  0x55   : > { %v15045_v33 = vld [vmem:[#allocation3 + $0x68] sm:$0xff]   ;;  %13238 = vmatprep.mubr.bf16.mxu0 %v696_v31  ;;  %474 = vst [vmem:[#allocation3 + $0x28] sm:$0xf] %v432_v34  ;;  %475 = vst [vmem:[#allocation3 + $0x2c] sm:$0xf] %v433_v35  ;;  %vm351_vm13 = vcmp.ge.bf16.partialorder %v309_v40, 0  ;;  %v434_v55 = vsel %vm350_vm11, %v308_v39, %v392_v47 }
  0x56   : > { %13279 = vmatpush3.bf16.msra.mxu1 %v14380_v9  ;;  %v773_v41 = vshll.u32 %v15045_v33, 16  ;;  %v777_v42 = vshrl.u32 %v15045_v33, 16  ;;  %v704_v46 = vsel %vm20502_vm12, %v699_v32, %v703_v37  ;;  %v393_v48 = vmul.bf16 1009007652, %v309_v40  ;;  %476 = vst [vmem:[#allocation3 + $0x30] sm:$0xf] %v434_v55 }
  0x57   : > { %13329 = vmatpush3.bf16.msra.mxu0 %v14378_v58  ;;  %13280 = vmatprep.subr.bf16.mxu1 %v14385_v22  ;;  %vm368_vm14 = vcmp.ge.bf16.partialorder %v326_v51, 0  ;;  %v705_v60 = vshrl.u32 %v15036_v24, 16  ;;  %vm369_vm15 = vcmp.ge.bf16.partialorder %v327_v57, 0  ;;  %v410_v62 = vmul.bf16 1009007652, %v326_v51  ;;  %v14392_v8 = vld [vmem:[%s20478_s1 + $0x80] sm:$0xff]  }
  0x58   : > { %13330 = vmatprep.subr.bf16.mxu0 %v14382_v15  ;;  %13239 = vmatmul.mubr.bf16.gmra.mxu0 %v704_v46  ;;  %v775_v49 = vrot.slane %v773_v41, 1  ;;  %v15059_v54 = vld [vmem:[#allocation3 + $0x70] sm:$0xff]   ;;  %v435_v56 = vsel %vm351_vm13, %v309_v40, %v393_v48  ;;  %v328_v63 = vld [vmem:[%s14882_s8 + $0x80] sm:$0xf]  ;;  %v411_v6 = vmul.bf16 1009007652, %v327_v57 }
  0x59   : > { %477 = vst [vmem:[#allocation3 + $0x34] sm:$0xf] %v435_v56  ;;  %v781_v5 = vshll.u32 %v15059_v54, 16  ;;  %v329_v7 = vld [vmem:[%s14882_s8 + $0x84] sm:$0xf]  ;;  %v452_v11 = vsel %vm368_vm14, %v326_v51, %v410_v62  ;;  %vm370_vm0 = vcmp.ge.bf16.partialorder %v328_v63, 0 }
  0x5a   : > { %13281 = vmatpush3.bf16.msra.mxu1 %v14385_v22  ;;  %v776_v58 = vsel %vm20502_vm12, %v771_v38, %v775_v49  ;;  %v779_v0 = vor.u32 %v777_v42, %v775_v49  ;;  %v453_v13 = vsel %vm369_vm15, %v327_v57, %v411_v6  ;;  %494 = vst [vmem:[#allocation3 + $0x78] sm:$0xf] %v452_v11  ;;  %vm371_vm1 = vcmp.ge.bf16.partialorder %v329_v7, 0  ;;  %v310_v22 = vld [vmem:[%s14882_s8 + $0x38] sm:$0xf] }
  0x5b   : > { %13331 = vmatpush3.bf16.msra.mxu0 %v14382_v15  ;;  %13282 = vmatprep.subr.bf16.mxu1 %v14389_v52  ;;  %v783_v12 = vrot.slane %v781_v5, 1  ;;  %v412_v14 = vmul.bf16 1009007652, %v328_v63  ;;  %v707_v15 = vor.u32 %v705_v60, %v703_v37  ;;  %495 = vst [vmem:[#allocation3 + $0x7c] sm:$0xf] %v453_v13  ;;  %vm352_vm2 = vcmp.ge.bf16.partialorder %v310_v22, 0 }
  0x5c   : > { %13332 = vmatprep.subr.bf16.mxu0 %v14386_v30  ;;  %13258 = vmatprep.mubr.bf16.mxu1 %v776_v58  ;;  %v15070_v9 = vld [vmem:[#allocation3 + $0x28] sm:$0xff]   ;;  %v413_v18 = vmul.bf16 1009007652, %v329_v7  ;;  %v311_v21 = vld [vmem:[%s14882_s8 + $0x3c] sm:$0xf]  ;;  %v785_v34 = vshrl.u32 %v15059_v54, 16 }
  0x5d   : > { %v709_v16 = vshll.u32 %v15070_v9, 16  ;;  %v713_v17 = vshrl.u32 %v15070_v9, 16  ;;  %v784_v19 = vsel %vm20502_vm12, %v779_v0, %v783_v12  ;;  %v454_v20 = vsel %vm370_vm0, %v328_v63, %v412_v14  ;;  %v330_v37 = vld [vmem:[%s14882_s8 + $0x88] sm:$0xf]  ;;  %v331_v38 = vld [vmem:[%s14882_s8 + $0x8c] sm:$0xf] }
  0x5e   : > { %13283 = vmatpush3.bf16.msra.mxu1 %v14389_v52  ;;  %v455_v25 = vsel %vm371_vm1, %v329_v7, %v413_v18  ;;  %496 = vst [vmem:[#allocation3 + $0x80] sm:$0xf] %v454_v20  ;;  %v394_v26 = vmul.bf16 1009007652, %v310_v22  ;;  %vm353_vm3 = vcmp.ge.bf16.partialorder %v311_v21, 0  ;;  %vm372_vm4 = vcmp.ge.bf16.partialorder %v330_v37, 0 }
  0x5f   : > { %13333 = vmatpush3.bf16.msra.mxu0 %v14386_v30  ;;  %13259 = vmatmul.mubr.bf16.gmra.mxu1 %v784_v19  ;;  %v711_v23 = vrot.slane %v709_v16, 1  ;;  %497 = vst [vmem:[#allocation3 + $0x84] sm:$0xf] %v455_v25  ;;  %v395_v29 = vmul.bf16 1009007652, %v311_v21  ;;  %vm373_vm5 = vcmp.ge.bf16.partialorder %v331_v38, 0  ;;  %v787_v47 = vor.u32 %v785_v34, %v783_v12 }
  0x60   : > { %13334 = vmatprep.subr.bf16.mxu0 %v14388_v45  ;;  %v15079_v27 = vld [vmem:[#allocation3 + $0x30] sm:$0xff]   ;;  %v436_v30 = vsel %vm352_vm2, %v310_v22, %v394_v26  ;;  %v414_v41 = vmul.bf16 1009007652, %v330_v37  ;;  %v415_v42 = vmul.bf16 1009007652, %v331_v38  ;;  %v14393_v58 = vld [vmem:[%s20478_s1] sm:$0xff]  }
  0x61   : > { %v712_v28 = vsel %vm20502_vm12, %v707_v15, %v711_v23  ;;  %v715_v31 = vor.u32 %v713_v17, %v711_v23  ;;  %v717_v32 = vshll.u32 %v15079_v27, 16  ;;  %478 = vst [vmem:[#allocation3 + $0x38] sm:$0xf] %v436_v30  ;;  %v437_v35 = vsel %vm353_vm3, %v311_v21, %v395_v29  ;;  %13284 = vmatprep.subr.bf16.mxu1 %v14393_v58  ;;  %v1303_v6 = vld [vmem:[#allocation3] sm:$0xe]  ;;  %v14394_v7 = vld [vmem:[%s20478_s1 + $0x138] sm:$0xff]  }
  0x62   : > { %13242 = vmatprep.mubr.bf16.mxu0 %v712_v28  ;;  %v15086_v40 = vld [vmem:[#allocation3 + $0x78] sm:$0xff]   ;;  %479 = vst [vmem:[#allocation3 + $0x3c] sm:$0xf] %v437_v35  ;;  %v456_v52 = vsel %vm372_vm4, %v330_v37, %v414_v41  ;;  %v457_v55 = vsel %vm373_vm5, %v331_v38, %v415_v42  ;;  %v721_v62 = vshrl.u32 %v15079_v27, 16  ;;  %13285 = vmatpush3.bf16.msra.mxu1 %v14393_v58  ;;  %5855 = vst [vmem:[#allocation3] sm:$0xf] %v20485_v3 }
  0x63   : > { %13335 = vmatpush3.bf16.msra.mxu0 %v14388_v45  ;;  %v719_v39 = vrot.slane %v717_v32, 1  ;;  %v332_v45 = vld [vmem:[%s14882_s8 + $0x90] sm:$0xf]  ;;  %v789_v48 = vshll.u32 %v15086_v40, 16  ;;  %v793_v49 = vshrl.u32 %v15086_v40, 16  ;;  %v12401_v12 = vcombine.low %v1303_v6, %v14948_v59  ;;  %13374 = vmatprep.subr.bf16.mxu1 %v14394_v7  ;;  %v14395_v14 = vld [vmem:[%s20478_s1 + $0xf8] sm:$0xff]  }
  0x64   : > { %13336 = vmatprep.subr.bf16.mxu0 %v14392_v8  ;;  %vm374_vm6 = vcmp.ge.bf16.partialorder %v332_v45, 0  ;;  %v416_v56 = vmul.bf16 1009007652, %v332_v45  ;;  %498 = vst [vmem:[#allocation3 + $0x88] sm:$0xf] %v456_v52  ;;  %v1325_v59 = vrot.slane %v14959_v2, 1 }
  0x65   : > { %v720_v46 = vsel %vm20502_vm12, %v715_v31, %v719_v39  ;;  %v791_v57 = vrot.slane %v789_v48, 1  ;;  %499 = vst [vmem:[#allocation3 + $0x8c] sm:$0xf] %v457_v55  ;;  %v723_v16 = vor.u32 %v721_v62, %v719_v39  ;;  %v1324_v19 = vrot.slane %v12401_v12, 1  ;;  %v14396_v48 = vld [vmem:[%s20478_s1 + $0x130] sm:$0xff]   ;;  %v14400_v58 = vld [vmem:[%s20478_s1 + $0x120] sm:$0xff]  }
  0x66   : > { %13243 = vmatmul.mubr.bf16.gmra.mxu0 %v720_v46  ;;  %v15092_v51 = vld [vmem:[#allocation3 + $0x80] sm:$0xff]   ;;  %v458_v63 = vsel %vm374_vm6, %v332_v45, %v416_v56  ;;  %v1327_v39 = vrot.slane %v14962_v4, 1  ;;  %v1329_v41 = vrot.slane %v15022_v10, 1  ;;  %v14397_v46 = vld [vmem:[%s20478_s1 + $0xf0] sm:$0xff]   ;;  %v14398_v56 = vld [vmem:[%s20478_s1 + $0x128] sm:$0xff]   ;;  %vm20498_vm15 = vcmask 1045504  }
  0x67   : > { %13337 = vmatpush3.bf16.msra.mxu0 %v14392_v8  ;;  %v797_v60 = vshll.u32 %v15092_v51, 16  ;;  %v792_v0 = vsel %vm20502_vm12, %v787_v47, %v791_v57  ;;  %v795_v5 = vor.u32 %v793_v49, %v791_v57  ;;  %500 = vst [vmem:[#allocation3 + $0x90] sm:$0xf] %v458_v63  ;;  %v801_v13 = vshrl.u32 %v15092_v51, 16  ;;  %v14401_v57 = vld [vmem:[%s20478_s1 + $0xe0] sm:$0xff]   ;;  %v14404_v6 = vld [vmem:[%s20478_s1 + $0x110] sm:$0xff]  }
  0x68   : > { %13262 = vmatprep.mubr.bf16.mxu1 %v792_v0  ;;  %13426 = vmatprep.subr.bf16.mxu0 %v14395_v14  ;;  %v1326_v30 = vsel %vm20500_vm7, %v1324_v19, %v1325_v59  ;;  %v1328_v45 = vsel %vm20500_vm7, %v1325_v59, %v1327_v39  ;;  %v1331_v47 = vrot.slane %v15036_v24, 1  ;;  %v1333_v49 = vrot.slane %v15070_v9, 1  ;;  %v14402_v0 = vld [vmem:[%s20478_s1 + $0x118] sm:$0xff]   ;;  %v14409_v12 = vld [vmem:[%s20478_s1 + $0xc0] sm:$0xff]   ;;  %v14646_v19 = vld [vmem:[#allocation3 + $0x48] sm:$0xff]  }
  0x69   : > { %v799_v8 = vrot.slane %v797_v60, 1  ;;  %v15103_v11 = vld [vmem:[#allocation3 + $0x38] sm:$0xff]   ;;  %vm20499_vm10 = vsmask.f32 6400  ;;  %vm20496_vm14 = vsmask.f32 5376 }
  0x6a   : > { %v725_v17 = vshll.u32 %v15103_v11, 16  ;;  %v729_v18 = vshrl.u32 %v15103_v11, 16  ;;  %v1332_v52 = vsel %vm20500_vm7, %v1329_v41, %v1331_v47  ;;  %v1334_v55 = vsel %vm20500_vm7, %v1331_v47, %v1333_v49  ;;  %v14403_v60 = vld [vmem:[%s20478_s1 + $0xd8] sm:$0xff]  }
  0x6b   : > { %v800_v15 = vsel %vm20502_vm12, %v795_v5, %v799_v8  ;;  %v803_v21 = vor.u32 %v801_v13, %v799_v8  ;;  %v14405_v5 = vld [vmem:[%s20478_s1 + $0xd0] sm:$0xff]   ;;  %v14408_v13 = vld [vmem:[%s20478_s1 + $0x100] sm:$0xff]   ;;  %vm20497_vm0 = vcmask 1044480  }
  0x6c   : > { %13263 = vmatmul.mubr.bf16.gmra.mxu1 %v800_v15  ;;  %v727_v20 = vrot.slane %v725_v17, 1  ;;  %v15115_v22 = vld [vmem:[#allocation3 + $0x88] sm:$0xff]   ;;  %v15206_v17 = vld [vmem:[%s20478_s1 + $0x178] sm:$0xff]  }
  0x6d   : > { %v805_v26 = vshll.u32 %v15115_v22, 16  ;;  %v809_v29 = vshrl.u32 %v15115_v22, 16 }
  0x6e   : > { %v728_v23 = vsel %vm20502_vm12, %v723_v16, %v727_v20  ;;  %v731_v25 = vor.u32 %v729_v18, %v727_v20  ;;  %v15119_v28 = vld [vmem:[#allocation3 + $0x90] ss:$0 sps:$4 sm:$0x11]   ;;  %v1349_v18 = vrot.slane %v15045_v33, 1 }
  0x6f   : > { %13246 = vmatprep.mubr.bf16.mxu0 %v728_v23  ;;  %v807_v32 = vrot.slane %v805_v26, 1  ;;  %v813_v34 = vshll.u32 %v15119_v28, 16  ;;  %v14647_v20 = vld [vmem:[#allocation3 + $0x50] sm:$0xff]  }
  0x70   : > { %v736_v31 = vsel %vm20502_vm12, %v731_v25, %v14942_v53  ;;  %v1330_v53 = vsel %vm20500_vm7, %v1327_v39, %v1329_v41  ;;  %v1351_v25 = vrot.slane %v15059_v54, 1  ;;  %v333_v26 = vld [vmem:[%s14882_s8 + $0x94] sm:$0xf] }
  0x71   : > { %13247 = vmatmul.mubr.bf16.gmra.mxu0 %v736_v31  ;;  %v808_v35 = vsel %vm20502_vm12, %v803_v21, %v807_v32  ;;  %v811_v37 = vor.u32 %v809_v29, %v807_v32  ;;  %v815_v38 = vrot.slane %v813_v34, 1  ;;  %v1353_v21 = vrot.slane %v15086_v40, 1  ;;  %v1676_v29 = vld [vmem:[#allocation3 + $0x8] sm:$0xe]  ;;  %v334_v32 = vld [vmem:[%s14882_s8 + $0x98] sm:$0xf] }
  0x72   : > { %13338 = vmatprep.mubr.bf16.mxu0 %v1326_v30  ;;  %13266 = vmatprep.mubr.bf16.mxu1 %v808_v35  ;;  %v15217_v30 = vld [vmem:[#allocation3 + $0xc] sm:$0xf]  ;;  %vm375_vm8 = vcmp.ge.bf16.partialorder %v333_v26, 0  ;;  %v417_v31 = vmul.bf16 1009007652, %v333_v26  ;;  %v1352_v34 = vsel %vm20500_vm7, %v1349_v18, %v1351_v25  ;;  %vm376_vm9 = vcmp.ge.bf16.partialorder %v334_v32, 0 }
  0x73   : > { %v816_v42 = vsel %vm20502_vm12, %v811_v37, %v815_v38  ;;  %v418_v35 = vmul.bf16 1009007652, %v334_v32  ;;  %v1354_v37 = vsel %vm20500_vm7, %v1351_v25, %v1353_v21  ;;  %v12410_v39 = vcombine.low %v1676_v29, %v15217_v30  ;;  %v15267_v25 = vld [vmem:[#allocation3 + $0x40] sm:$0xff]   ;;  %v15273_v29 = vld [vmem:[#allocation3 + $0x48] sm:$0xff]  }
  0x74   : > { %13267 = vmatmul.mubr.bf16.gmra.mxu1 %v816_v42  ;;  %v459_v38 = vsel %vm375_vm8, %v333_v26, %v417_v31  ;;  %v15225_v42 = vld [vmem:[#allocation3 + $0x10] sm:$0xff]  }
  0x75   : > { %13286 = vmatprep.mubr.bf16.mxu1 %v14957_v1  ;;  %v14399_v1 = vld [vmem:[%s20478_s1 + $0xe8] sm:$0xff]   ;;  %501 = vst [vmem:[#allocation3 + $0x94] sm:$0xf] %v459_v38  ;;  %v460_v41 = vsel %vm376_vm9, %v334_v32, %v418_v35  ;;  %v1849_v47 = vshrl.u32 %v15225_v42, 16  ;;  %v15276_v35 = vld [vmem:[#allocation3 + $0x50] sm:$0xff]  }
  0x76   : > { %502 = vst [vmem:[#allocation3 + $0x98] sm:$0xf] %v460_v41  ;;  %v2269_v41 = vrot.slane %v15267_v25, 1 }
  0x79   : > { %13339 = vmatmul.mubr.bf16.vlgmr.msra.gmra.mxu0 %v1328_v45  ;;  %v1357_v45 = vrot.slane %v15115_v22, 1 }
  0x7a   : > { %13427 = vmatpush3.bf16.msra.mxu0 %v14395_v14  ;;  %13342 = vmatprep.mubr.bf16.mxu0 %v1330_v53  ;;  %v15198_v14 = vld [vmem:[%s20478_s1 + $0x1f8] sm:$0xff]  }
  0x7b   : > { %13428 = vmatprep.subr.bf16.mxu0 %v14397_v46  ;;  %v15229_v53 = vld [vmem:[#allocation3 + $0x18] sm:$0xff]  }
  0x7c   : > { %13287 = vmatmul.mubr.bf16.vlgmr.msra.gmra.mxu1 %v14959_v2  ;;  %v1335_v2 = vrot.slane %v15079_v27, 1 }
  0x7d   : > { %13375 = vmatpush3.bf16.msra.mxu1 %v14394_v7  ;;  %13290 = vmatprep.mubr.bf16.mxu1 %v14962_v4  ;;  %v1337_v4 = vrot.slane %v15103_v11, 1  ;;  %v14407_v7 = vld [vmem:[%s20478_s1 + $0xc8] sm:$0xff]  }
  0x7e   : > { %13376 = vmatprep.subr.bf16.mxu1 %v14396_v48  ;;  %13429 = vmatpush3.bf16.msra.mxu0 %v14397_v46  ;;  %v1336_v62 = vsel %vm20500_vm7, %v1333_v49, %v1335_v2  ;;  %v1844_v46 = vshll.u32 %v12410_v39, 16 }
  0x7f   : > { %13430 = vmatprep.subr.bf16.mxu0 %v14399_v1  ;;  %v1338_v63 = vsel %vm20500_vm7, %v1335_v2, %v1337_v4  ;;  %v1851_v2 = vrot.slane %v1849_v47, 1  ;;  %v1912_v47 = vshrl.u32 %v15273_v29, 16 }
  0x81   : > { %13343 = vmatmul.mubr.bf16.gmra.mxu0 %v1332_v52  ;;  %13377 = vmatpush3.bf16.msra.mxu1 %v14396_v48  ;;  %v1852_v48 = vshll.u32 %v15225_v42, 16  ;;  %v1359_v52 = vrot.slane %v15119_v28, 1  ;;  %v2259_v28 = vrot.slane %v15229_v53, 1 }
  0x82   : > { %13346 = vmatprep.mubr.bf16.mxu0 %v1334_v55  ;;  %13378 = vmatprep.subr.bf16.mxu1 %v14398_v56 }
  0x83   : > { %13431 = vmatpush3.bf16.msra.mxu0 %v14399_v1 }
  0x84   : > { %13432 = vmatprep.subr.bf16.mxu0 %v14401_v57  ;;  %13291 = vmatmul.mubr.bf16.gmra.mxu1 %v15022_v10  ;;  %v1339_v10 = vrot.slane %v14927_v43, 1 }
  0x85   : > { %13294 = vmatprep.mubr.bf16.mxu1 %v15036_v24  ;;  %13379 = vmatpush3.bf16.msra.mxu1 %v14398_v56  ;;  %v1341_v24 = vrot.slane %v14929_v44, 1  ;;  %v14406_v44 = vld [vmem:[%s20478_s1 + $0x108] sm:$0xff]   ;;  %v1858_v56 = vshrl.u32 %v15229_v53, 16 }
  0x86   : > { %13380 = vmatprep.subr.bf16.mxu1 %v14400_v58  ;;  %v1340_v8 = vsel %vm20500_vm7, %v1337_v4, %v1339_v10  ;;  %v1861_v4 = vshll.u32 %v15229_v53, 16 }
  0x87   : > { %13433 = vmatpush3.bf16.msra.mxu0 %v14401_v57  ;;  %v1342_v43 = vsel %vm20500_vm7, %v1339_v10, %v1341_v24  ;;  %v1846_v57 = vrot.slane %v1844_v46, 2  ;;  %v1860_v10 = vrot.slane %v1858_v56, 1  ;;  %v14417_v46 = vld [vmem:[%s20478_s1 + $0x170] sm:$0xff]   ;;  %v15300_v56 = vld [vmem:[#allocation3 + $0x60] sm:$0xff]  }
  0x88   : > { %13434 = vmatprep.subr.bf16.mxu0 %v14403_v60 }
  0x89   : > { %13347 = vmatmul.mubr.bf16.gmra.mxu0 %v1336_v62  ;;  %13381 = vmatpush3.bf16.msra.mxu1 %v14400_v58  ;;  %v15240_v58 = vld [vmem:[#allocation3 + $0x20] sm:$0xff]   ;;  %v2256_v62 = vrot.slane %v12410_v39, 1 }
  0x8a   : > { %13350 = vmatprep.mubr.bf16.mxu0 %v1338_v63  ;;  %13382 = vmatprep.subr.bf16.mxu1 %v14402_v0  ;;  %v1360_v63 = vsel %vm20500_vm7, %v1357_v45, %v1359_v52  ;;  %v1921_v52 = vshrl.u32 %v15276_v35, 16 }
  0x8b   : > { %13435 = vmatpush3.bf16.msra.mxu0 %v14403_v60  ;;  %v15242_v60 = vld [vmem:[#allocation3 + $0x28] sm:$0xff]  }
  0x8c   : > { %13436 = vmatprep.subr.bf16.mxu0 %v14405_v5  ;;  %13295 = vmatmul.mubr.bf16.gmra.mxu1 %v15070_v9  ;;  %v1343_v9 = vrot.slane %v14936_v50, 1  ;;  %v14645_v50 = vld [vmem:[#allocation3 + $0x40] sm:$0xff]  }
  0x8d   : > { %13298 = vmatprep.mubr.bf16.mxu1 %v15079_v27  ;;  %13383 = vmatpush3.bf16.msra.mxu1 %v14402_v0  ;;  %v1345_v27 = vrot.slane %v14994_v36, 1 }
  0x8e   : > { %13384 = vmatprep.subr.bf16.mxu1 %v14404_v6  ;;  %v1344_v15 = vsel %vm20500_vm7, %v1341_v24, %v1343_v9  ;;  %v1863_v24 = vrot.slane %v1861_v4, 2  ;;  %v15307_v4 = vld [vmem:[#allocation3 + $0x68] sm:$0xff]  }
  0x8f   : > { %13437 = vmatpush3.bf16.msra.mxu0 %v14405_v5  ;;  %v1346_v16 = vsel %vm20500_vm7, %v1343_v9, %v1345_v27  ;;  %v15257_v9 = vld [vmem:[#allocation3 + $0x38] sm:$0xff]  }
  0x90   : > { %13438 = vmatprep.subr.bf16.mxu0 %v14407_v7  ;;  %v1864_v32 = vor.u32 %v1863_v24, %v1860_v10  ;;  %v2273_v24 = vrot.slane %v15276_v35, 1 }
  0x91   : > { %13351 = vmatmul.mubr.bf16.gmra.mxu0 %v1340_v8  ;;  %13385 = vmatpush3.bf16.msra.mxu1 %v14404_v6  ;;  %v15248_v6 = vld [vmem:[#allocation3 + $0x30] sm:$0xff]   ;;  %v1867_v8 = vshrl.u32 %v15240_v58, 16 }
  0x92   : > { %13354 = vmatprep.mubr.bf16.mxu0 %v1342_v43  ;;  %13386 = vmatprep.subr.bf16.mxu1 %v14406_v44  ;;  %v1870_v43 = vshll.u32 %v15240_v58, 16 }
  0x93   : > { %13439 = vmatpush3.bf16.msra.mxu0 %v14407_v7  ;;  %v2261_v7 = vrot.slane %v15240_v58, 1 }
  0x94   : > { %13440 = vmatprep.subr.bf16.mxu0 %v14409_v12  ;;  %13299 = vmatmul.mubr.bf16.gmra.mxu1 %v15103_v11  ;;  %v1347_v11 = vrot.slane %v15013_v61, 1 }
  0x95   : > { %13302 = vmatprep.mubr.bf16.mxu1 %v14645_v50  ;;  %13387 = vmatpush3.bf16.msra.mxu1 %v14406_v44  ;;  %v1876_v44 = vshrl.u32 %v15242_v60, 16  ;;  %v1888_v50 = vshll.u32 %v15248_v6, 16 }
  0x96   : > { %13388 = vmatprep.subr.bf16.mxu1 %v14408_v13  ;;  %v1348_v59 = vsel %vm20500_vm7, %v1345_v27, %v1347_v11  ;;  %v1350_v23 = vsel %vm20500_vm7, %v1347_v11, %v1349_v18  ;;  %v2263_v27 = vrot.slane %v15242_v60, 1  ;;  %v1894_v18 = vshrl.u32 %v15257_v9, 16 }
  0x97   : > { %13441 = vmatpush3.bf16.msra.mxu0 %v14409_v12  ;;  %v1878_v11 = vrot.slane %v1876_v44, 1 }
  0x98   : > { %13530 = vmatprep.subr.bf16.mxu0 %v15198_v14 }
  0x99   : > { %13355 = vmatmul.mubr.bf16.gmra.mxu0 %v1344_v15  ;;  %13389 = vmatpush3.bf16.msra.mxu1 %v14408_v13  ;;  %v1885_v13 = vshrl.u32 %v15248_v6, 16  ;;  %v1869_v15 = vrot.slane %v1867_v8, 1  ;;  %v14428_v8 = vld [vmem:[%s20478_s1 + $0x1e0] sm:$0xff]  }
  0x9a   : > { %13358 = vmatprep.mubr.bf16.mxu0 %v1346_v16  ;;  %13478 = vmatprep.subr.bf16.mxu1 %v15206_v17  ;;  %v1872_v16 = vrot.slane %v1870_v43, 2  ;;  %v15324_v43 = vrot.slane %v1921_v52, 1 }
  0x9b   : > { %v1887_v26 = vrot.slane %v1885_v13, 1 }
  0x9c   : > { %13303 = vmatmul.mubr.bf16.gmra.mxu1 %v14646_v19  ;;  %v1897_v19 = vshll.u32 %v15257_v9, 16  ;;  %v1873_v38 = vor.u32 %v1872_v16, %v1869_v15  ;;  %v1951_v15 = vshll.u32 %v15307_v4, 16 }
  0x9d   : > { %13306 = vmatprep.mubr.bf16.mxu1 %v14647_v20  ;;  %v2265_v20 = vrot.slane %v15248_v6, 1 }
  0xa1   : > { %13359 = vmatmul.mubr.bf16.gmra.mxu0 %v1348_v59 }
  0xa2   : > { %13362 = vmatprep.mubr.bf16.mxu0 %v1350_v23  ;;  %v2267_v23 = vrot.slane %v15257_v9, 1 }
  0xa4   : > { %13307 = vmatmul.mubr.bf16.gmra.mxu1 %v14994_v36  ;;  %v1355_v36 = vrot.slane %v15092_v51, 1  ;;  %v2268_v52 = vsel %vm20500_vm7, %v2265_v20, %v2267_v23 }
  0xa5   : > { %13310 = vmatprep.mubr.bf16.mxu1 %v15013_v61  ;;  %v1841_v61 = vshrl.u32 %v12410_v39, 16  ;;  %v15279_v39 = vrot.slane %v1894_v18, 1  ;;  %v15342_v18 = vld [vmem:[#allocation3 + $0x70] sm:$0xff]  }
  0xa6   : > { %v1356_v49 = vsel %vm20500_vm7, %v1353_v21, %v1355_v36  ;;  %v1358_v1 = vsel %vm20500_vm7, %v1355_v36, %v1357_v45  ;;  %v14418_v21 = vld [vmem:[%s20478_s1 + $0x1f0] sm:$0xff]   ;;  %v1903_v36 = vshrl.u32 %v15267_v25, 16  ;;  %v1906_v45 = vshll.u32 %v15267_v25, 16 }
  0xa7   : > { %v1843_v55 = vrot.slane %v1841_v61, 1  ;;  %v15286_v61 = vld [vmem:[#allocation3 + $0x58] sm:$0xff]  }
  0xa9   : > { %13363 = vmatmul.mubr.bf16.gmra.mxu0 %v1352_v34  ;;  %v1847_v0 = vor.u32 %v1846_v57, %v1843_v55  ;;  %v1890_v34 = vrot.slane %v1888_v50, 2  ;;  %v1924_v55 = vshll.u32 %v15276_v35, 16  ;;  %v2264_v57 = vsel %vm20500_vm7, %v2261_v7, %v2263_v27 }
  0xaa   : > { %13366 = vmatprep.mubr.bf16.mxu0 %v1354_v37  ;;  %v2262_v37 = vsel %vm20500_vm7, %v2259_v28, %v2261_v7  ;;  %v2275_v7 = vrot.slane %v15286_v61, 1 }
  0xab   : > { %v15326_v44 = vrot.slane %v1924_v55, 2  ;;  %v1891_v13 = vor.u32 %v1890_v34, %v1887_v26  ;;  %v14432_v26 = vld [vmem:[%s20478_s1 + $0x1d8] sm:$0xff]  }
  0xac   : > { %13311 = vmatmul.mubr.bf16.gmra.mxu1 %v15045_v33  ;;  %v1854_v33 = vrot.slane %v1852_v48, 2  ;;  %v1915_v48 = vshll.u32 %v15273_v29, 16 }
  0xad   : > { %13314 = vmatprep.mubr.bf16.mxu1 %v15059_v54  ;;  %v2257_v54 = vrot.slane %v15225_v42, 1 }
  0xae   : > { %v1855_v5 = vor.u32 %v1854_v33, %v1851_v2  ;;  %v1874_v2 = vsel %vm20499_vm10, %v1864_v32, %v1873_v38  ;;  %v15316_v10 = vrot.slane %v1915_v48, 2 }
  0xaf   : > { %v2258_v12 = vsel %vm20500_vm7, %v2256_v62, %v2257_v54  ;;  %v2260_v31 = vsel %vm20500_vm7, %v2257_v54, %v2259_v28  ;;  %v1905_v62 = vrot.slane %v1903_v36, 1  ;;  %v1908_v54 = vrot.slane %v1906_v45, 2 }
  0xb0   : > { %v1933_v28 = vshll.u32 %v15286_v61, 16  ;;  %v15361_v36 = vrot.slane %v1951_v15, 2  ;;  %v1960_v45 = vshll.u32 %v15342_v18, 16 }
  0xb1   : > { %13367 = vmatmul.mubr.bf16.gmra.mxu0 %v1356_v49  ;;  %v1865_v49 = vsel %vm20499_vm10, %v1855_v5, %v1864_v32 }
  0xb2   : > { %13370 = vmatprep.mubr.bf16.mxu0 %v1358_v1  ;;  %v14423_v1 = vld [vmem:[%s20478_s1 + $0x1e8] sm:$0xff]   ;;  %v15339_v16 = vrot.slane %v1933_v28, 2  ;;  %v1909_v28 = vor.u32 %v1908_v54, %v1905_v62 }
  0xb4   : > { %13315 = vmatmul.mubr.bf16.gmra.mxu1 %v15086_v40  ;;  %v1879_v40 = vshll.u32 %v15242_v60, 16 }
  0xb5   : > { %13318 = vmatprep.mubr.bf16.mxu1 %v15092_v51  ;;  %v1856_v51 = vsel %vm20499_vm10, %v1847_v0, %v1855_v5  ;;  %v14421_v0 = vld [vmem:[%s20478_s1 + $0x168] sm:$0xff]   ;;  %v15314_v5 = vrot.slane %v1912_v47, 1 }
  0xb6   : > { %v1881_v59 = vrot.slane %v1879_v40, 2  ;;  %v1942_v40 = vshll.u32 %v15300_v56, 16 }
  0xb8   : > { %v1882_v33 = vor.u32 %v1881_v59, %v1878_v11  ;;  %v2277_v11 = vrot.slane %v15300_v56, 1  ;;  %v15348_v59 = vld [vmem:[#allocation3 + $0x78] sm:$0xff]   ;;  %v15356_v32 = vrot.slane %v1942_v40, 2 }
  0xb9   : > { %13371 = vmatmul.mubr.bf16.gmra.mxu0 %v1360_v63  ;;  %v1930_v63 = vshrl.u32 %v15286_v61, 16  ;;  %v1966_v48 = vshrl.u32 %v15348_v59, 16 }
  0xba   : > { %13442 = vmatprep.mubr.bf16.mxu0 %v2258_v12  ;;  %v1939_v12 = vshrl.u32 %v15300_v56, 16  ;;  %v1892_v34 = vsel %vm20499_vm10, %v1882_v33, %v1891_v13 }
  0xbb   : > { %v15337_v50 = vrot.slane %v1930_v63, 1  ;;  %v2981_v63 = vld [vmem:[#allocation3 + $0x10] sm:$0xc]  ;;  %v15398_v40 = vrot.slane %v1966_v48, 1  ;;  %v335_v48 = vld [vmem:[%s14882_s8 + $0x9c] sm:$0xf] }
  0xbc   : > { %13319 = vmatmul.mubr.bf16.gmra.mxu1 %v15115_v22  ;;  %v15281_v22 = vrot.slane %v1897_v19, 2  ;;  %vm377_vm11 = vcmp.ge.bf16.partialorder %v335_v48, 0 }
  0xbd   : > { %13390 = vmatprep.mubr.bf16.mxu1 %v1856_v51  ;;  %v1948_v51 = vshrl.u32 %v15307_v4, 16 }
  0xbe   : > { %v1900_v55 = vor.u32 %v15281_v22, %v15279_v39  ;;  %v2982_v39 = vld [vmem:[#allocation3 + $0x14] sm:$0xf] }
  0xbf   : > { %v15407_v15 = vcombine.low %v2981_v63, %v2982_v39 }
  0xc0   : > { %v1901_v54 = vsel %vm20499_vm10, %v1891_v13, %v1900_v55  ;;  %v14440_v13 = vld [vmem:[%s20478_s1 + $0x1c8] sm:$0xff]  }
  0xc1   : > { %13443 = vmatmul.mubr.bf16.vlgmr.msra.gmra.mxu0 %v2260_v31  ;;  %v15354_v31 = vrot.slane %v1939_v12, 1  ;;  %v14435_v12 = vld [vmem:[%s20478_s1 + $0x150] sm:$0xff]   ;;  %v3146_v39 = vshrl.u32 %v15407_v15, 16 }
  0xc2   : > { %13531 = vmatpush3.bf16.msra.mxu0 %v15198_v14  ;;  %13446 = vmatprep.mubr.bf16.mxu0 %v2262_v37  ;;  %v2271_v14 = vrot.slane %v15273_v29, 1  ;;  %v15359_v37 = vrot.slane %v1948_v51, 1  ;;  %v15450_v51 = vld [vmem:[#allocation3 + $0x90] sm:$0xff]  }
  0xc3   : > { %13532 = vmatprep.subr.bf16.mxu0 %v14418_v21 }
  0xc4   : > { %13391 = vmatmul.mubr.bf16.vlgmr.msra.gmra.mxu1 %v1865_v49  ;;  %v1969_v49 = vshll.u32 %v15348_v59, 16 }
  0xc5   : > { %13479 = vmatpush3.bf16.msra.mxu1 %v15206_v17  ;;  %13394 = vmatprep.mubr.bf16.mxu1 %v1874_v2  ;;  %v2266_v17 = vsel %vm20500_vm7, %v2263_v27, %v2265_v20  ;;  %v14425_v27 = vld [vmem:[%s20478_s1 + $0x160] sm:$0xff]   ;;  %v14436_v2 = vld [vmem:[%s20478_s1 + $0x1d0] sm:$0xff]   ;;  %v2270_v20 = vsel %vm20500_vm7, %v2267_v23, %v2269_v41 }
  0xc6   : > { %13480 = vmatprep.subr.bf16.mxu1 %v14417_v46  ;;  %13533 = vmatpush3.bf16.msra.mxu0 %v14418_v21  ;;  %v1883_v21 = vsel %vm20499_vm10, %v1873_v38, %v1882_v33  ;;  %v1957_v38 = vshrl.u32 %v15342_v18, 16  ;;  %v15384_v33 = vld [vmem:[#allocation3 + $0x88] sm:$0xff]  }
  0xc7   : > { %13534 = vmatprep.subr.bf16.mxu0 %v14423_v1 }
  0xc8   : > { %v15391_v22 = vrot.slane %v1957_v38, 1  ;;  %v1987_v38 = vshll.u32 %v15384_v33, 16 }
  0xc9   : > { %13447 = vmatmul.mubr.bf16.gmra.mxu0 %v2264_v57  ;;  %13481 = vmatpush3.bf16.msra.mxu1 %v14417_v46  ;;  %v14430_v46 = vld [vmem:[%s20478_s1 + $0x158] sm:$0xff]  }
  0xca   : > { %13450 = vmatprep.mubr.bf16.mxu0 %v2266_v17  ;;  %13482 = vmatprep.subr.bf16.mxu1 %v14421_v0  ;;  %v15400_v17 = vrot.slane %v1969_v49, 2  ;;  %v336_v49 = vld [vmem:[%s14882_s8 + $0xa0] sm:$0xf]  ;;  %v15454_v19 = vrot.slane %v1987_v38, 2 }
  0xcb   : > { %13535 = vmatpush3.bf16.msra.mxu0 %v14423_v1  ;;  %v15371_v1 = vld [vmem:[#allocation3 + $0x80] sm:$0xff]   ;;  %vm378_vm13 = vcmp.ge.bf16.partialorder %v336_v49, 0 }
  0xcc   : > { %13536 = vmatprep.subr.bf16.mxu0 %v14428_v8  ;;  %13395 = vmatmul.mubr.bf16.gmra.mxu1 %v1883_v21  ;;  %v1975_v23 = vshrl.u32 %v15371_v1, 16  ;;  %v1978_v62 = vshll.u32 %v15371_v1, 16  ;;  %v1910_v21 = vsel %vm20499_vm10, %v1900_v55, %v1909_v28 }
  0xcd   : > { %13398 = vmatprep.mubr.bf16.mxu1 %v1892_v34  ;;  %13483 = vmatpush3.bf16.msra.mxu1 %v14421_v0  ;;  %v15393_v0 = vrot.slane %v1960_v45, 2  ;;  %v1984_v34 = vshrl.u32 %v15384_v33, 16  ;;  %v15415_v45 = vld [vmem:[#allocation3 + $0x18] sm:$0xff]  }
  0xce   : > { %13484 = vmatprep.subr.bf16.mxu1 %v14425_v27  ;;  %v15429_v55 = vrot.slane %v1975_v23, 1  ;;  %v15431_v63 = vrot.slane %v1978_v62, 2  ;;  %v2274_v23 = vsel %vm20500_vm7, %v2271_v14, %v2273_v24  ;;  %v1927_v62 = vor.u32 %v15326_v44, %v15324_v43  ;;  %v14443_v43 = vld [vmem:[%s20478_s1 + $0x140] sm:$0xff]  }
  0xcf   : > { %13537 = vmatpush3.bf16.msra.mxu0 %v14428_v8  ;;  %v2536_v8 = vld [vmem:[#allocation3 + $0x8] sm:$0xc]  ;;  %v3157_v44 = vshll.u32 %v15415_v45, 16 }
  0xd0   : > { %13538 = vmatprep.subr.bf16.mxu0 %v14432_v26 }
  0xd1   : > { %13451 = vmatmul.mubr.bf16.gmra.mxu0 %v2268_v52  ;;  %13485 = vmatpush3.bf16.msra.mxu1 %v14425_v27  ;;  %v2272_v27 = vsel %vm20500_vm7, %v2269_v41, %v2271_v14  ;;  %v14439_v52 = vld [vmem:[%s20478_s1 + $0x148] sm:$0xff]   ;;  %v14445_v41 = vld [vmem:[%s20478_s1 + $0x1c0] sm:$0xff]  }
  0xd2   : > { %13454 = vmatprep.mubr.bf16.mxu0 %v2270_v20  ;;  %13486 = vmatprep.subr.bf16.mxu1 %v14430_v46  ;;  %v15433_v20 = vld [vmem:[#allocation3 + $0x20] sm:$0xff]  }
  0xd3   : > { %13539 = vmatpush3.bf16.msra.mxu0 %v14432_v26  ;;  %v1918_v26 = vor.u32 %v15316_v10, %v15314_v5  ;;  %v419_v5 = vmul.bf16 1009007652, %v335_v48  ;;  %v420_v10 = vmul.bf16 1009007652, %v336_v49 }
  0xd4   : > { %13540 = vmatprep.subr.bf16.mxu0 %v14436_v2  ;;  %13399 = vmatmul.mubr.bf16.gmra.mxu1 %v1901_v54  ;;  %v3154_v54 = vshrl.u32 %v15415_v45, 16  ;;  %v1945_v45 = vor.u32 %v15356_v32, %v15354_v31 }
  0xd5   : > { %13402 = vmatprep.mubr.bf16.mxu1 %v1910_v21  ;;  %13487 = vmatpush3.bf16.msra.mxu1 %v14430_v46  ;;  %v3149_v46 = vshll.u32 %v15407_v15, 16  ;;  %v15448_v21 = vrot.slane %v1984_v34, 1  ;;  %v461_v57 = vsel %vm377_vm11, %v335_v48, %v419_v5  ;;  %v462_v47 = vsel %vm378_vm13, %v336_v49, %v420_v10  ;;  %v15487_v10 = vld [vmem:[%s20478_s1 + $0x1b8] sm:$0xff]  }
  0xd6   : > { %13488 = vmatprep.subr.bf16.mxu1 %v14435_v12  ;;  %v1919_v14 = vsel %vm20499_vm10, %v1909_v28, %v1918_v26  ;;  %503 = vst [vmem:[#allocation3 + $0x9c] sm:$0xf] %v461_v57  ;;  %504 = vst [vmem:[#allocation3 + $0xa0] sm:$0xf] %v462_v47  ;;  %v3163_v34 = vshrl.u32 %v15433_v20, 16  ;;  %v2558_v28 = vrot.slane %v15225_v42, 2  ;;  %v1928_v38 = vsel %vm20499_vm10, %v1918_v26, %v1927_v62 }
  0xd7   : > { %13541 = vmatpush3.bf16.msra.mxu0 %v14436_v2  ;;  %v15460_v2 = vrot.slane %v3146_v39, 2  ;;  %v15466_v48 = vrot.slane %v3149_v46, 3  ;;  %v15468_v49 = vrot.slane %v3154_v54, 2  ;;  %v15473_v47 = vld [vmem:[%s20478_s1 + $0x238] sm:$0xff]   ;;  %v14452_v57 = vld [vmem:[#allocation3 + $0x28] sm:$0xff]   ;;  %v1993_v26 = vshrl.u32 %v15450_v51, 16 }
  0xd8   : > { %13542 = vmatprep.subr.bf16.mxu0 %v14440_v13  ;;  %v14444_v39 = vld [vmem:[#allocation3 + $0x98] ss:$0 sps:$4 sm:$0x33]   ;;  %v12446_v5 = vcombine.low %v2536_v8, %v15217_v30  ;;  %v2278_v30 = vsel %vm20500_vm7, %v2275_v7, %v2277_v11  ;;  %v3172_v8 = vshrl.u32 %v14452_v57, 16  ;;  %v20548_v42 = vrot.slane %v15240_v58, 2 }
  0xd9   : > { %13455 = vmatmul.mubr.bf16.gmra.mxu0 %v2272_v27  ;;  %13489 = vmatpush3.bf16.msra.mxu1 %v14435_v12  ;;  %v3166_v27 = vshll.u32 %v15433_v20, 16  ;;  %v1936_v12 = vor.u32 %v15339_v16, %v15337_v50  ;;  %v15481_v20 = vld [vmem:[#allocation3 + $0x98] ss:$0 sps:$4 sm:$0x11]   ;;  %v2276_v50 = vsel %vm20500_vm7, %v2273_v24, %v2275_v7  ;;  %v14453_v16 = vld [vmem:[#allocation3 + $0x30] sm:$0xff]   ;;  %v15504_v24 = vrot.slane %v3157_v44, 3 }
  0xda   : > { %13458 = vmatprep.mubr.bf16.mxu0 %v2274_v23  ;;  %13490 = vmatprep.subr.bf16.mxu1 %v14439_v52  ;;  %v15510_v54 = vrot.slane %v12446_v5, 2  ;;  %v2289_v7 = vrot.slane %v15450_v51, 1  ;;  %v2291_v44 = vrot.slane %v15481_v20, 1  ;;  %v15519_v5 = vrot.slane %v3172_v8, 2 }
  0xdb   : > { %13543 = vmatpush3.bf16.msra.mxu0 %v14440_v13  ;;  %v1996_v13 = vshll.u32 %v15450_v51, 16  ;;  %v1937_v31 = vsel %vm20499_vm10, %v1927_v62, %v1936_v12  ;;  %v1946_v32 = vsel %vm20499_vm10, %v1936_v12, %v1945_v45  ;;  %v15508_v46 = vrot.slane %v3166_v27, 3 }
  0xdc   : > { %13544 = vmatprep.subr.bf16.mxu0 %v14445_v41  ;;  %13403 = vmatmul.mubr.bf16.gmra.mxu1 %v1919_v14  ;;  %v2002_v27 = vshrl.u32 %v14444_v39, 16  ;;  %v2005_v12 = vshll.u32 %v14444_v39, 16  ;;  %v20538_v39 = vrot.slane %v15342_v18, 1 }
  0xdd   : > { %13406 = vmatprep.mubr.bf16.mxu1 %v1928_v38  ;;  %13491 = vmatpush3.bf16.msra.mxu1 %v14439_v52  ;;  %v15502_v23 = vld [vmem:[#allocation3 + $0x98] sm:$0xff]   ;;  %v15506_v52 = vrot.slane %v3163_v34, 2  ;;  %v1995_v34 = vrot.slane %v1993_v26, 1  ;;  %v1998_v38 = vrot.slane %v1996_v13, 2  ;;  %v1954_v26 = vor.u32 %v15361_v36, %v15359_v37  ;;  %v14457_v13 = vld [vmem:[#allocation3 + $0x40] sm:$0xff]  }
  0xde   : > { %13492 = vmatprep.subr.bf16.mxu1 %v14443_v43  ;;  %20536 = vst [vmem:[#allocation10_spill] sm:$0xff] %v15502_v23  ;;  %5863 = vst [vmem:[#allocation3 + $0x9c] sm:$0xf] %v20485_v3  ;;  %v14456_v3 = vld [vmem:[#allocation3 + $0x38] sm:$0xff]   ;;  %v15537_v62 = vrot.slane %v2005_v12, 2  ;;  %v20542_v12 = vrot.slane %v15371_v1, 1 }
  0xdf   : > { %13545 = vmatpush3.bf16.msra.mxu0 %v14445_v41  ;;  %v20537_v41 = vrot.slane %v15307_v4, 1  ;;  %v3190_v4 = vshrl.u32 %v14456_v3, 16  ;;  %v3169_v51 = vor.u32 %v15508_v46, %v15506_v52  ;;  %v15632_v46 = vld [vmem:[#allocation3 + $0x68] sm:$0xff]  }
  0xe0   : > { %13634 = vmatprep.subr.bf16.mxu0 %v15473_v47 }
  0xe1   : > { %13459 = vmatmul.mubr.bf16.gmra.mxu0 %v2276_v50  ;;  %13493 = vmatpush3.bf16.msra.mxu1 %v14443_v43  ;;  %v3175_v50 = vshll.u32 %v14452_v57, 16  ;;  %v3184_v43 = vshll.u32 %v14453_v16, 16  ;;  %v2280_v14 = vsel %vm20500_vm7, %v2277_v11, %v20537_v41  ;;  %v20539_v8 = vmov %v20537_v41 }
  0xe2   : > { %13462 = vmatprep.mubr.bf16.mxu0 %v2278_v30  ;;  %13582 = vmatprep.subr.bf16.mxu1 %v15487_v10  ;;  %v3181_v30 = vshrl.u32 %v14453_v16, 16  ;;  %v2282_v57 = vsel %vm20500_vm7, %v20539_v8, %v20538_v39  ;;  %v1963_v16 = vor.u32 %v15393_v0, %v15391_v22  ;;  %v1955_v11 = vsel %vm20499_vm10, %v1945_v45, %v1954_v26 }
  0xe3   : > { %v3193_v41 = vshll.u32 %v14456_v3, 16  ;;  %v3199_v39 = vshrl.u32 %v14457_v13, 16  ;;  %v3202_v8 = vshll.u32 %v14457_v13, 16  ;;  %v20540_v22 = vrot.slane %v15348_v59, 1 }
  0xe4   : > { %13407 = vmatmul.mubr.bf16.gmra.mxu1 %v1937_v31  ;;  %v15535_v31 = vrot.slane %v2002_v27, 1  ;;  %v15542_v37 = vrot.slane %v3181_v30, 2  ;;  %v1964_v36 = vsel %vm20499_vm10, %v1954_v26, %v1963_v16  ;;  %v20541_v0 = vrot.slane %v15342_v18, 1  ;;  %v14459_v27 = vld [vmem:[#allocation3 + $0x48] sm:$0xff]  }
  0xe5   : > { %13410 = vmatprep.mubr.bf16.mxu1 %v1946_v32  ;;  %v15540_v32 = vrot.slane %v3175_v50, 3  ;;  %v1972_v45 = vor.u32 %v15400_v17, %v15398_v40  ;;  %v20543_v50 = vmov %v20540_v22  ;;  %v1981_v30 = vor.u32 %v15431_v63, %v15429_v55 }
  0xe6   : > { %v2286_v3 = vsel %vm20500_vm7, %v20543_v50, %v20542_v12  ;;  %v15559_v26 = vrot.slane %v3184_v43, 3  ;;  %v15561_v18 = vrot.slane %v3190_v4, 2  ;;  %v2566_v40 = vrot.slane %v15248_v6, 2  ;;  %v14461_v43 = vld [vmem:[#allocation3 + $0x50] sm:$0xff]  }
  0xe7   : > { %v1973_v13 = vsel %vm20499_vm10, %v1963_v16, %v1972_v45  ;;  %v1982_v17 = vsel %vm20499_vm10, %v1972_v45, %v1981_v30  ;;  %v15568_v59 = vrot.slane %v3199_v39, 2  ;;  %v2568_v55 = vrot.slane %v15257_v9, 2  ;;  %v14463_v39 = vld [vmem:[#allocation3 + $0x58] sm:$0xff]   ;;  %v14481_v9 = vld [vmem:[%s20478_s1 + $0x200] sm:$0xff]  }
  0xe8   : > { %v3208_v63 = vshrl.u32 %v14459_v27, 16  ;;  %v20545_v16 = vmov %v20542_v12  ;;  %v2570_v45 = vrot.slane %v15267_v25, 2  ;;  %v3152_v12 = vor.u32 %v15466_v48, %v15460_v2 }
  0xe9   : > { %13463 = vmatmul.mubr.bf16.gmra.mxu0 %v2280_v14  ;;  %v2284_v14 = vsel %vm20500_vm7, %v20541_v0, %v20540_v22  ;;  %v1999_v0 = vor.u32 %v1998_v38, %v1995_v34  ;;  %v3160_v34 = vor.u32 %v15504_v24, %v15468_v49  ;;  %v3217_v38 = vshrl.u32 %v14461_v43, 16 }
  0xea   : > { %13466 = vmatprep.mubr.bf16.mxu0 %v2282_v57  ;;  %v15564_v57 = vrot.slane %v3193_v41, 3  ;;  %v1990_v41 = vor.u32 %v15454_v19, %v15448_v21  ;;  %v15589_v19 = vrot.slane %v3208_v63, 2  ;;  %v2572_v21 = vrot.slane %v15273_v29, 2 }
  0xeb   : > { %v3220_v50 = vshll.u32 %v14461_v43, 16  ;;  %v2292_v2 = vsel %vm20500_vm7, %v2289_v7, %v2291_v44  ;;  %v2008_v48 = vor.u32 %v15537_v62, %v15535_v31  ;;  %v2559_v44 = vsel %vm20498_vm15, %v15510_v54, %v2558_v28 }
  0xec   : > { %13411 = vmatmul.mubr.bf16.gmra.mxu1 %v1955_v11  ;;  %v15570_v11 = vrot.slane %v3202_v8, 3  ;;  %v1991_v1 = vsel %vm20499_vm10, %v1981_v30, %v1990_v41  ;;  %v3161_v30 = vsel %vm20496_vm14, %v3152_v12, %v3160_v34  ;;  %v3178_v31 = vor.u32 %v15540_v32, %v15519_v5  ;;  %v15642_v32 = vld [vmem:[#allocation3 + $0x78] sm:$0xff]  }
  0xed   : > { %13414 = vmatprep.mubr.bf16.mxu1 %v1964_v36  ;;  %v20544_v36 = vrot.slane %v15384_v33, 1  ;;  %v2000_v33 = vsel %vm20499_vm10, %v1990_v41, %v1999_v0  ;;  %v2009_v63 = vsel %vm20499_vm10, %v1999_v0, %v2008_v48  ;;  %v15637_v41 = vld [vmem:[#allocation3 + $0x70] sm:$0xff]   ;;  %v3170_v54 = vsel %vm20496_vm14, %v3160_v34, %v3169_v51 }
  0xee   : > { %v2574_v0 = vrot.slane %v15276_v35, 2  ;;  %v3256_v48 = vshll.u32 %v15637_v41, 16 }
  0xef   : > { %v2288_v4 = vsel %vm20500_vm7, %v20545_v16, %v20544_v36  ;;  %v20546_v8 = vmov %v20544_v36 }
  0xf0   : > { %v2290_v22 = vsel %vm20500_vm7, %v20546_v8, %v2289_v7  ;;  %v15616_v7 = vrot.slane %v3220_v50, 3 }
  0xf1   : > { %13467 = vmatmul.mubr.bf16.gmra.mxu0 %v2284_v14  ;;  %v3211_v14 = vshll.u32 %v14459_v27, 16  ;;  %v3226_v27 = vshrl.u32 %v14463_v39, 16 }
  0xf2   : > { %13470 = vmatprep.mubr.bf16.mxu0 %v2286_v3  ;;  %v3229_v3 = vshll.u32 %v14463_v39, 16  ;;  %v3179_v39 = vsel %vm20496_vm14, %v3169_v51, %v3178_v31  ;;  %v15691_v51 = vld [vmem:[#allocation3 + $0xa0] ss:$0 sps:$4 sm:$0x77]  }
  0xf3   : > { %v15607_v24 = vrot.slane %v3211_v14, 3  ;;  %v15618_v62 = vrot.slane %v3226_v27, 2  ;;  %v3244_v27 = vshrl.u32 %v15632_v46, 16  ;;  %20550 = vst [vmem:[#allocation11_spill] sm:$0xff] %v15691_v51 }
  0xf4   : > { %13415 = vmatmul.mubr.bf16.gmra.mxu1 %v1973_v13  ;;  %v15595_v13 = vld [vmem:[#allocation3 + $0x60] sm:$0xff]   ;;  %v15626_v43 = vrot.slane %v3229_v3, 3  ;;  %v3253_v3 = vshrl.u32 %v15637_v41, 16 }
  0xf5   : > { %13418 = vmatprep.mubr.bf16.mxu1 %v1982_v17  ;;  %v15609_v17 = vrot.slane %v3217_v38, 2  ;;  %v3235_v36 = vshrl.u32 %v15595_v13, 16  ;;  %v3238_v52 = vshll.u32 %v15595_v13, 16  ;;  %v14460_v38 = vld [vmem:[%s20478_s1 + $0x228] sm:$0xff]  }
  0xf6   : > { %v3232_v6 = vor.u32 %v15626_v43, %v15618_v62 }
  0xf7   : > { %v15665_v50 = vrot.slane %v3235_v36, 2 }
  0xf9   : > { %13471 = vmatmul.mubr.bf16.gmra.mxu0 %v2288_v4  ;;  %v14455_v4 = vld [vmem:[%s20478_s1 + $0x230] sm:$0xff]  }
  0xfa   : > { %13474 = vmatprep.mubr.bf16.mxu0 %v2290_v22  ;;  %v14454_v22 = vld [vmem:[%s20478_s1 + $0x1b0] sm:$0xff]  }
  0xfc   : > { %13419 = vmatmul.mubr.bf16.gmra.mxu1 %v1991_v1  ;;  %v20547_v1 = vrot.slane %v15229_v53, 2  ;;  %v14458_v53 = vld [vmem:[%s20478_s1 + $0x1a8] sm:$0xff]  }
  0xfd   : > { %13422 = vmatprep.mubr.bf16.mxu1 %v2000_v33  ;;  %v3187_v33 = vor.u32 %v15559_v26, %v15542_v37  ;;  %v3196_v37 = vor.u32 %v15564_v57, %v15561_v18  ;;  %v3247_v26 = vshll.u32 %v15632_v46, 16  ;;  %v14465_v57 = vld [vmem:[%s20478_s1 + $0x220] sm:$0xff]  }
  0xfe   : > { %v2561_v12 = vsel %vm20498_vm15, %v2558_v28, %v20547_v1  ;;  %v20549_v28 = vmov %v20547_v1  ;;  %v15704_v1 = vrot.slane %v3238_v52, 3  ;;  %v14469_v52 = vld [vmem:[%s20478_s1 + $0x218] sm:$0xff]  }
 0x101   : > { %13475 = vmatmul.mubr.bf16.gmra.mxu0 %v2292_v2 }
 0x102   : > { %13546 = vmatprep.mubr.bf16.mxu0 %v3161_v30  ;;  %v3262_v30 = vshrl.u32 %v15642_v32, 16 }
 0x104   : > { %13423 = vmatmul.mubr.bf16.gmra.mxu1 %v2009_v63  ;;  %v3188_v63 = vsel %vm20496_vm14, %v3178_v31, %v3187_v33  ;;  %v15699_v31 = vld [vmem:[#allocation3 + $0xa0] ss:$0 sps:$4 sm:$0x33]  }
 0x105   : > { %v15605_v49 = vpop.f32.mrf.mxu1  ;;  %13494 = vmatprep.mubr.bf16.mxu1 %v2559_v44  ;;  %v3197_v44 = vsel %vm20496_vm14, %v3187_v33, %v3196_v37  ;;  %20551 = vst [vmem:[#allocation12_spill] sm:$0xff] %v15699_v31  ;;  %v20552_v33 = vmov 0  }
 0x106   : > { %5864 = vst [vmem:[#allocation3 + $0xa0] sm:$0xf] %v20552_v33 }
 0x107   : > { %v15614_v20 = vpop.f32.mrf.mxu1 }
 0x109   : > { %v15640_v5 = vpop.f32.mrf.mxu1  ;;  %13547 = vmatmul.mubr.bf16.vlgmr.msra.gmra.mxu0 %v3170_v54 }
 0x10a   : > { %v15629_v16 = vpop.f32.mrf.mxu0  ;;  %13635 = vmatpush3.bf16.msra.mxu0 %v15473_v47  ;;  %13550 = vmatprep.mubr.bf16.mxu0 %v3179_v39  ;;  %v2563_v47 = vsel %vm20498_vm15, %v20549_v28, %v20548_v42  ;;  %v14462_v39 = vld [vmem:[%s20478_s1 + $0x1a0] sm:$0xff]  }
 0x10b   : > { %v15660_v34 = vpop.f32.mrf.mxu1  ;;  %13636 = vmatprep.subr.bf16.mxu0 %v14455_v4 }
 0x10c   : > { %v15645_v8 = vpop.f32.mrf.mxu0  ;;  %13495 = vmatmul.mubr.bf16.vlgmr.msra.gmra.mxu1 %v2561_v12  ;;  %v15706_v12 = vrot.slane %v3244_v27, 2  ;;  %v2578_v27 = vrot.slane %v15300_v56, 2 }
 0x10d   : > { %13583 = vmatpush3.bf16.msra.mxu1 %v15487_v10  ;;  %13498 = vmatprep.mubr.bf16.mxu1 %v2563_v47  ;;  %v3265_v10 = vshll.u32 %v15642_v32, 16  ;;  %v3205_v47 = vor.u32 %v15570_v11, %v15568_v59  ;;  %v15729_v59 = vrot.slane %v3256_v48, 3  ;;  %v2569_v48 = vsel %vm20498_vm15, %v2566_v40, %v2568_v55 }
 0x10e   : > { %v15677_v2 = vpop.f32.mrf.mxu0  ;;  %13584 = vmatprep.subr.bf16.mxu1 %v14454_v22  ;;  %13637 = vmatpush3.bf16.msra.mxu0 %v14455_v4  ;;  %v20553_v4 = vrot.slane %v15242_v60, 2  ;;  %v14467_v60 = vld [vmem:[%s20478_s1 + $0x198] sm:$0xff]  }
 0x10f   : > { %13638 = vmatprep.subr.bf16.mxu0 %v14460_v38 }
 0x110   : > { %v15696_v54 = vpop.f32.mrf.mxu0  ;;  %v2565_v28 = vsel %vm20498_vm15, %v20548_v42, %v20553_v4  ;;  %v20554_v14 = vmov %v20553_v4  ;;  %v15735_v4 = vrot.slane %v3262_v30, 2  ;;  %v15737_v42 = vrot.slane %v3265_v10, 3 }
 0x111   : > { %13551 = vmatmul.mubr.bf16.gmra.mxu0 %v3188_v63  ;;  %13585 = vmatpush3.bf16.msra.mxu1 %v14454_v22  ;;  %v3249_v63 = vrot.slane %v3247_v26, 3  ;;  %v2567_v58 = vsel %vm20498_vm15, %v20554_v14, %v2566_v40  ;;  %v3214_v22 = vor.u32 %v15607_v24, %v15589_v19  ;;  %v3206_v19 = vsel %vm20496_vm14, %v3196_v37, %v3205_v47  ;;  %v14473_v24 = vld [vmem:[%s20478_s1 + $0x210] sm:$0xff]  }
 0x112   : > { %13554 = vmatprep.mubr.bf16.mxu0 %v3197_v44  ;;  %13586 = vmatprep.subr.bf16.mxu1 %v14458_v53  ;;  %v15727_v44 = vrot.slane %v3253_v3, 2  ;;  %v14472_v37 = vld [vmem:[%s20478_s1 + $0x190] sm:$0xff]   ;;  %v3223_v30 = vor.u32 %v15616_v7, %v15609_v17  ;;  %v14476_v17 = vld [vmem:[%s20478_s1 + $0x188] sm:$0xff]   ;;  %v3268_v35 = vor.u32 %v15737_v42, %v15735_v4 }
 0x113   : > { %13639 = vmatpush3.bf16.msra.mxu0 %v14460_v38  ;;  %v3215_v14 = vsel %vm20496_vm14, %v3205_v47, %v3214_v22  ;;  %v3241_v47 = vor.u32 %v15704_v1, %v15665_v50  ;;  %v15809_v50 = vld [vmem:[#allocation3 + $0x88] sm:$0xff]   ;;  %v14649_v42 = vld [vmem:[#allocation3 + $0x70] sm:$0xff]  }
 0x114   : > { %v15686_v18 = vpop.f32.mrf.mxu1  ;;  %13640 = vmatprep.subr.bf16.mxu0 %v14465_v57  ;;  %13499 = vmatmul.mubr.bf16.gmra.mxu1 %v2565_v28  ;;  %v3224_v7 = vsel %vm20496_vm14, %v3214_v22, %v3223_v30  ;;  %v3233_v62 = vsel %vm20496_vm14, %v3223_v30, %v3232_v6  ;;  %v2573_v28 = vsel %vm20498_vm15, %v2570_v45, %v2572_v21 }
 0x115   : > { %13502 = vmatprep.mubr.bf16.mxu1 %v2567_v58  ;;  %13587 = vmatpush3.bf16.msra.mxu1 %v14458_v53  ;;  %v14477_v53 = vld [vmem:[%s20478_s1 + $0x208] sm:$0xff]   ;;  %v2575_v58 = vsel %vm20498_vm15, %v2572_v21, %v2574_v0  ;;  %v3250_v22 = vor.u32 %v3249_v63, %v15706_v12  ;;  %20556 = vst [vmem:[#allocation14_spill] sm:$0xff] %v15809_v50  ;;  %v20557_v63 = vrot.slane %v15286_v61, 2 }
 0x116   : > { %v15694_v36 = vpop.f32.mrf.mxu1  ;;  %13588 = vmatprep.subr.bf16.mxu1 %v14462_v39  ;;  %v3242_v1 = vsel %vm20496_vm14, %v3232_v6, %v3241_v47 }
 0x117   : > { %13641 = vmatpush3.bf16.msra.mxu0 %v14465_v57  ;;  %v2571_v57 = vsel %vm20498_vm15, %v2568_v55, %v2570_v45  ;;  %v15807_v45 = vld [vmem:[#allocation3 + $0x80] sm:$0xff]   ;;  %v3251_v21 = vsel %vm20496_vm14, %v3241_v47, %v3250_v22  ;;  %v20558_v30 = vmov %v20557_v63 }
 0x118   : > { %v15731_v11 = vpop.f32.mrf.mxu1  ;;  %v15733_v26 = vpop.f32.mrf.mxu0  ;;  %13642 = vmatprep.subr.bf16.mxu0 %v14469_v52  ;;  %20555 = vst [vmem:[#allocation13_spill] sm:$0xff] %v15807_v45 }
 0x119   : > { %13555 = vmatmul.mubr.bf16.gmra.mxu0 %v3206_v19  ;;  %13589 = vmatpush3.bf16.msra.mxu1 %v14462_v39  ;;  %v14480_v39 = vld [vmem:[%s20478_s1 + $0x180] sm:$0xff]   ;;  %v2577_v19 = vsel %vm20498_vm15, %v2574_v0, %v20557_v63  ;;  %v3280_v0 = vshrl.u32 %v15809_v50, 16 }
 0x11a   : > { %v15747_v38 = vpop.f32.mrf.mxu1  ;;  %v15749_v3 = vpop.f32.mrf.mxu0  ;;  %13558 = vmatprep.mubr.bf16.mxu0 %v3215_v14  ;;  %13590 = vmatprep.subr.bf16.mxu1 %v14467_v60  ;;  %v3271_v14 = vshrl.u32 %v15807_v45, 16 }
 0x11b   : > { %13643 = vmatpush3.bf16.msra.mxu0 %v14469_v52  ;;  %v3282_v47 = vrot.slane %v3280_v0, 2  ;;  %v3301_v0 = vshll.u32 %v15502_v23, 16 }
 0x11c   : > { %v15773_v10 = vpop.f32.mrf.mxu0  ;;  %13644 = vmatprep.subr.bf16.mxu0 %v14473_v24  ;;  %13503 = vmatmul.mubr.bf16.gmra.mxu1 %v2569_v48  ;;  %v3273_v61 = vrot.slane %v3271_v14, 2 }
 0x11d   : > { %13506 = vmatprep.mubr.bf16.mxu1 %v2571_v57  ;;  %13591 = vmatpush3.bf16.msra.mxu1 %v14467_v60  ;;  %v3303_v31 = vrot.slane %v3301_v0, 3 }
 0x11e   : > { %13592 = vmatprep.subr.bf16.mxu1 %v14472_v37  ;;  %v15785_v43 = vpop.f32.mrf.mxu0 }
 0x11f   : > { %v15771_v40 = vpop.f32.mrf.mxu1  ;;  %13645 = vmatpush3.bf16.msra.mxu0 %v14473_v24  ;;  %v3259_v24 = vor.u32 %v15729_v59, %v15727_v44  ;;  %v3283_v44 = vshll.u32 %v15809_v50, 16 }
 0x120   : > { %13646 = vmatprep.subr.bf16.mxu0 %v14477_v53 }
 0x121   : > { %v15782_v55 = vpop.f32.mrf.mxu1  ;;  %13559 = vmatmul.mubr.bf16.gmra.mxu0 %v3224_v7  ;;  %13593 = vmatpush3.bf16.msra.mxu1 %v14472_v37  ;;  %v3274_v37 = vshll.u32 %v15807_v45, 16  ;;  %v3260_v6 = vsel %vm20496_vm14, %v3250_v22, %v3259_v24  ;;  %v3269_v4 = vsel %vm20496_vm14, %v3259_v24, %v3268_v35 }
 0x122   : > { %13562 = vmatprep.mubr.bf16.mxu0 %v3233_v62  ;;  %13594 = vmatprep.subr.bf16.mxu1 %v14476_v17  ;;  %v15844_v62 = vld [vmem:[#allocation3 + $0x90] sm:$0xff]  }
 0x123   : > { %v15797_v52 = vpop.f32.mrf.mxu1  ;;  %13647 = vmatpush3.bf16.msra.mxu0 %v14477_v53  ;;  %v2579_v53 = vsel %vm20498_vm15, %v20558_v30, %v2578_v27  ;;  %20559 = vst [vmem:[#allocation15_spill] sm:$0xff] %v15844_v62  ;;  %v3292_v14 = vshll.u32 %v15844_v62, 16 }
 0x124   : > { %13648 = vmatprep.subr.bf16.mxu0 %v14481_v9  ;;  %13507 = vmatmul.mubr.bf16.gmra.mxu1 %v2573_v28  ;;  %v2582_v28 = vrot.slane %v14649_v42, 2 }
 0x125   : > { %13510 = vmatprep.mubr.bf16.mxu1 %v2575_v58  ;;  %13595 = vmatpush3.bf16.msra.mxu1 %v14476_v17  ;;  %v15814_v29 = vpop.f32.mrf.mxu1  ;;  %v14648_v17 = vld [vmem:[#allocation3 + $0x68] sm:$0xff]   ;;  %v3285_v58 = vrot.slane %v3283_v44, 3 }
 0x126   : > { %v15805_v25 = vpop.f32.mrf.mxu0  ;;  %13596 = vmatprep.subr.bf16.mxu1 %v14480_v39  ;;  %v2580_v7 = vrot.slane %v14648_v17, 2 }
 0x127   : > { %13649 = vmatpush3.bf16.msra.mxu0 %v14481_v9  ;;  %v3276_v9 = vrot.slane %v3274_v37, 3  ;;  %v3286_v30 = vor.u32 %v3285_v58, %v3282_v47  ;;  %v14651_v47 = vld [vmem:[#allocation3 + $0x80] sm:$0xff]  }
 0x128   : > { %v15812_v60 = vpop.f32.mrf.mxu0  ;;  %v2581_v22 = vsel %vm20498_vm15, %v2578_v27, %v2580_v7  ;;  %v2583_v37 = vsel %vm20498_vm15, %v2580_v7, %v2582_v28  ;;  %v2586_v58 = vrot.slane %v14651_v47, 2 }
 0x129   : > { %13563 = vmatmul.mubr.bf16.gmra.mxu0 %v3242_v1  ;;  %13597 = vmatpush3.bf16.msra.mxu1 %v14480_v39  ;;  %v3277_v63 = vor.u32 %v3276_v9, %v3273_v61  ;;  %v3294_v9 = vrot.slane %v3292_v14, 3  ;;  %v3310_v14 = vshll.u32 %v15691_v51, 16 }
 0x12a   : > { %v15817_v12 = vpop.f32.mrf.mxu0  ;;  %13566 = vmatprep.mubr.bf16.mxu0 %v3251_v21 }
 0x12b   : > { %v3278_v27 = vsel %vm20496_vm14, %v3268_v35, %v3277_v63  ;;  %v3287_v42 = vsel %vm20496_vm14, %v3277_v63, %v3286_v30 }
 0x12c   : > { %v15828_v48 = vpop.f32.mrf.mxu1  ;;  %13511 = vmatmul.mubr.bf16.gmra.mxu1 %v2577_v19  ;;  %v15841_v57 = vpop.f32.mrf.mxu0  ;;  %v3289_v19 = vshrl.u32 %v15844_v62, 16 }
 0x12d   : > { %13514 = vmatprep.mubr.bf16.mxu1 %v2579_v53  ;;  %v3298_v53 = vshrl.u32 %v15502_v23, 16 }
 0x12e   : > { %v15839_v59 = vpop.f32.mrf.mxu1  ;;  %v3291_v61 = vrot.slane %v3289_v19, 2  ;;  %v3307_v19 = vshrl.u32 %v15691_v51, 16 }
 0x12f   : > { %v3300_v33 = vrot.slane %v3298_v53, 2  ;;  %v3841_v53 = vld [vmem:[#allocation3 + $0x10] sm:$0x8] }
 0x130   : > { %v15846_v39 = vpop.f32.mrf.mxu1 }
 0x131   : > { %v15849_v1 = vpop.f32.mrf.mxu0  ;;  %13567 = vmatmul.mubr.bf16.gmra.mxu0 %v3260_v6  ;;  %v14650_v6 = vld [vmem:[#allocation3 + $0x78] sm:$0xff]   ;;  %v3304_v47 = vor.u32 %v3303_v31, %v3300_v33  ;;  %v14654_v31 = vld [vmem:[#allocation3 + $0x14] sm:$0xf] }
 0x132   : > { %v15851_v21 = vpop.f32.mrf.mxu1  ;;  %13570 = vmatprep.mubr.bf16.mxu0 %v3269_v4  ;;  %v2584_v17 = vrot.slane %v14650_v6, 2  ;;  %v12491_v33 = vcombine.low %v3841_v53, %v14654_v31  ;;  %v3561_v31 = vrot.slane %v15407_v15, 2 }
 0x133   : > { %20560 = vst [vmem:[#allocation16_spill] sm:$0xff] %v15851_v21  ;;  %v15858_v24 = vpop.f32.mrf.mxu0  ;;  %v14653_v21 = vld [vmem:[#allocation3 + $0x90] sm:$0xff]  }
 0x134   : > { %v15863_v44 = vpop.f32.mrf.mxu1  ;;  %13515 = vmatmul.mubr.bf16.gmra.mxu1 %v2581_v22  ;;  %v2585_v35 = vsel %vm20498_vm15, %v2582_v28, %v2584_v17  ;;  %v2587_v63 = vsel %vm20498_vm15, %v2584_v17, %v2586_v58  ;;  %v2590_v17 = vrot.slane %v14653_v21, 2  ;;  %v3862_v53 = vrot.slane %v12491_v33, 3 }
 0x135   : > { %20561 = vst [vmem:[#allocation17_spill] sm:$0xff] %v15863_v44  ;;  %v15865_v56 = vpop.f32.mrf.mxu0  ;;  %13518 = vmatprep.mubr.bf16.mxu1 %v2583_v37  ;;  %v3295_v37 = vor.u32 %v3294_v9, %v3291_v61  ;;  %v3309_v9 = vrot.slane %v3307_v19, 2 }
 0x136   : > { %v15868_v4 = vpop.f32.mrf.mxu1 }
 0x137   : > { %20562 = vst [vmem:[#allocation18_spill] sm:$0xff] %v15868_v4  ;;  %v15870_v7 = vpop.f32.mrf.mxu0  ;;  %v14652_v4 = vld [vmem:[#allocation3 + $0x88] sm:$0xff]   ;;  %v3296_v61 = vsel %vm20496_vm14, %v3286_v30, %v3295_v37 }
 0x138   : > { %v15873_v22 = vpop.f32.mrf.mxu1 }
 0x139   : > { %20563 = vst [vmem:[#allocation19_spill] sm:$0xff] %v15873_v22  ;;  %v13340_v23 = vpop.f32.mrf.mxu0  ;;  %13571 = vmatmul.mubr.bf16.gmra.mxu0 %v3278_v27  ;;  %v2588_v27 = vrot.slane %v14652_v4, 2 }
 0x13a   : > { %13574 = vmatprep.mubr.bf16.mxu0 %v3287_v42  ;;  %v15878_v6 = vpop.f32.mrf.mxu1  ;;  %v3312_v42 = vrot.slane %v3310_v14, 3 }
 0x13b   : > { %20564 = vst [vmem:[#allocation20_spill] sm:$0xff] %v15878_v6  ;;  %v1461_v62 = vpop.f32.mrf.mxu0  ;;  %v3305_v6 = vsel %vm20496_vm14, %v3295_v37, %v3304_v47  ;;  %v2589_v19 = vsel %vm20498_vm15, %v2586_v58, %v2588_v27  ;;  %v2591_v21 = vsel %vm20498_vm15, %v2588_v27, %v2590_v17 }
 0x13c   : > { %v13288_v0 = vpop.f32.mrf.mxu1  ;;  %13519 = vmatmul.mubr.bf16.gmra.mxu1 %v2585_v35  ;;  %v3313_v14 = vor.u32 %v3312_v42, %v3309_v9 }
 0x13d   : > { %v13341_v22 = vpop.f32.mrf.mxu0  ;;  %v1169_v28 = vadd.f32 %v13288_v0, %v15629_v16  ;;  %13522 = vmatprep.mubr.bf16.mxu1 %v2587_v63 }
 0x13e   : > { %v1160_v51 = vpop.f32.mrf.mxu1 }
 0x13f   : > { %v1464_v44 = vpop.f32.mrf.mxu0  ;;  %v15884_v50 = vadd.f32 %v13340_v23, %v1169_v28  ;;  %v1161_v35 = vadd.f32 %v1160_v51, %v15645_v8  ;;  %v14655_v23 = vld [vmem:[#allocation3 + $0x18] sm:$0xff]  }
 0x140   : > { %v13289_v4 = vpop.f32.mrf.mxu1  ;;  %v3863_v0 = vrot.slane %v14655_v23, 3 }
 0x141   : > { %v13344_v45 = vpop.f32.mrf.mxu0  ;;  %13575 = vmatmul.mubr.bf16.gmra.mxu0 %v3296_v61  ;;  %v15887_v16 = vadd.f32 %v1461_v62, %v1161_v35  ;;  %v1172_v30 = vadd.f32 %v13289_v4, %v15677_v2  ;;  %v14656_v61 = vld [vmem:[#allocation3 + $0x98] ss:$0 sps:$4 sm:$0x33]  }
 0x142   : > { %13578 = vmatprep.mubr.bf16.mxu0 %v3305_v6  ;;  %v1163_v37 = vpop.f32.mrf.mxu1  ;;  %v3314_v6 = vsel %vm20496_vm14, %v3304_v47, %v3313_v14  ;;  %v2592_v27 = vrot.slane %v14656_v61, 2 }
 0x143   : > { %v1477_v63 = vpop.f32.mrf.mxu0  ;;  %v15892_v28 = vadd.f32 %v13341_v22, %v1172_v30  ;;  %v1164_v8 = vadd.f32 %v1163_v37, %v15696_v54  ;;  %v3864_v22 = vsel %vm20497_vm0, %v3862_v53, %v3863_v0  ;;  %v3562_v54 = vrot.slane %v14655_v23, 2 }
 0x144   : > { %v13292_v51 = vpop.f32.mrf.mxu1  ;;  %13523 = vmatmul.mubr.bf16.gmra.mxu1 %v2589_v19  ;;  %v2593_v30 = vsel %vm20498_vm15, %v2590_v17, %v2592_v27  ;;  %v14657_v19 = vld [vmem:[#allocation3 + $0x20] sm:$0xff]  }
 0x145   : > { %v13345_v62 = vpop.f32.mrf.mxu0  ;;  %v15895_v2 = vadd.f32 %v1464_v44, %v1164_v8  ;;  %v1185_v58 = vadd.f32 %v13292_v51, %v15733_v26  ;;  %13526 = vmatprep.mubr.bf16.mxu1 %v2591_v21  ;;  %v3865_v14 = vrot.slane %v14657_v19, 3  ;;  %v3563_v15 = vsel %vm20498_vm15, %v3561_v31, %v3562_v54 }
 0x146   : > { %v1176_v9 = vpop.f32.mrf.mxu1 }
 0x147   : > { %20565 = vst [vmem:[#allocation21_spill] sm:$0xff] %v15895_v2  ;;  %v1480_v42 = vpop.f32.mrf.mxu0  ;;  %v15901_v33 = vadd.f32 %v13344_v45, %v1185_v58  ;;  %v1177_v35 = vadd.f32 %v1176_v9, %v15749_v3  ;;  %v14658_v45 = vld [vmem:[#allocation3 + $0x28] sm:$0xff]   ;;  %v3866_v17 = vsel %vm20497_vm0, %v3863_v0, %v3865_v14  ;;  %v3564_v58 = vrot.slane %v14657_v19, 2 }
 0x148   : > { %v13293_v44 = vpop.f32.mrf.mxu1  ;;  %v3867_v53 = vrot.slane %v14658_v45, 3  ;;  %v3566_v27 = vrot.slane %v14658_v45, 2 }
 0x149   : > { %v13348_v4 = vpop.f32.mrf.mxu0  ;;  %13579 = vmatmul.mubr.bf16.gmra.mxu0 %v3314_v6  ;;  %v15904_v26 = vadd.f32 %v1477_v63, %v1177_v35  ;;  %v1188_v47 = vadd.f32 %v13293_v44, %v15773_v10  ;;  %v3565_v0 = vsel %vm20498_vm15, %v3562_v54, %v3564_v58  ;;  %v14659_v35 = vld [vmem:[#allocation3 + $0x30] sm:$0xff]  }
 0x14a   : > { %13650 = vmatprep.mubr.bf16.mxu0 %v3864_v22  ;;  %v1179_v37 = vpop.f32.mrf.mxu1  ;;  %v3868_v9 = vsel %vm20497_vm0, %v3865_v14, %v3867_v53  ;;  %v3869_v44 = vrot.slane %v14659_v35, 3  ;;  %v3567_v19 = vsel %vm20498_vm15, %v3564_v58, %v3566_v27  ;;  %v3568_v54 = vrot.slane %v14659_v35, 2 }
 0x14b   : > { %v1493_v21 = vpop.f32.mrf.mxu0  ;;  %v15909_v23 = vadd.f32 %v13345_v62, %v1188_v47  ;;  %v1180_v3 = vadd.f32 %v1179_v37, %v15785_v43 }
 0x14c   : > { %v13296_v8 = vpop.f32.mrf.mxu1  ;;  %13527 = vmatmul.mubr.bf16.gmra.mxu1 %v2593_v30 }
 0x14d   : > { %v13349_v63 = vpop.f32.mrf.mxu0  ;;  %v15912_v51 = vadd.f32 %v1480_v42, %v1180_v3  ;;  %v1201_v10 = vadd.f32 %v13296_v8, %v15805_v25  ;;  %13598 = vmatprep.mubr.bf16.mxu1 %v3563_v15  ;;  %v3870_v3 = vsel %vm20497_vm0, %v3867_v53, %v3869_v44  ;;  %v14661_v53 = vld [vmem:[#allocation3 + $0x40] sm:$0xff]  }
 0x14e   : > { %v1192_v6 = vpop.f32.mrf.mxu1 }
 0x14f   : > { %20566 = vst [vmem:[#allocation22_spill] sm:$0xff] %v15912_v51  ;;  %v1496_v61 = vpop.f32.mrf.mxu0  ;;  %v15917_v62 = vadd.f32 %v13348_v4, %v1201_v10  ;;  %v1193_v43 = vadd.f32 %v1192_v6, %v15812_v60  ;;  %v14660_v4 = vld [vmem:[#allocation3 + $0x38] sm:$0xff]  }
 0x150   : > { %v13297_v22 = vpop.f32.mrf.mxu1  ;;  %v3871_v14 = vrot.slane %v14660_v4, 3 }
 0x151   : > { %v13352_v31 = vpop.f32.mrf.mxu0  ;;  %13651 = vmatmul.mubr.bf16.vlgmr.msra.gmra.mxu0 %v3866_v17  ;;  %v15920_v42 = vadd.f32 %v1493_v21, %v1193_v43  ;;  %v1204_v25 = vadd.f32 %v13297_v22, %v15817_v12  ;;  %v3570_v17 = vrot.slane %v14660_v4, 2  ;;  %v3569_v43 = vsel %vm20498_vm15, %v3566_v27, %v3568_v54 }
 0x152   : > { %13654 = vmatprep.mubr.bf16.mxu0 %v3868_v9  ;;  %v1195_v47 = vpop.f32.mrf.mxu1  ;;  %v3872_v58 = vsel %vm20497_vm0, %v3869_v44, %v3871_v14  ;;  %v3873_v22 = vrot.slane %v14661_v53, 3  ;;  %v3572_v27 = vrot.slane %v14661_v53, 2 }
 0x153   : > { %v1509_v30 = vpop.f32.mrf.mxu0  ;;  %v15925_v37 = vadd.f32 %v13349_v63, %v1204_v25  ;;  %v1196_v60 = vadd.f32 %v1195_v47, %v15841_v57  ;;  %v3571_v35 = vsel %vm20498_vm15, %v3568_v54, %v3570_v17 }
 0x154   : > { %v13300_v15 = vpop.f32.mrf.mxu1  ;;  %13599 = vmatmul.mubr.bf16.vlgmr.msra.gmra.mxu1 %v3565_v0 }
 0x155   : > { %20567 = vst [vmem:[#allocation23_spill] sm:$0xff] %v15925_v37  ;;  %v13353_v21 = vpop.f32.mrf.mxu0  ;;  %v15928_v45 = vadd.f32 %v1496_v61, %v1196_v60  ;;  %v1217_v12 = vadd.f32 %v13300_v15, %v15849_v1  ;;  %13602 = vmatprep.mubr.bf16.mxu1 %v3567_v19  ;;  %v3874_v60 = vsel %vm20497_vm0, %v3871_v14, %v3873_v22  ;;  %v14663_v14 = vld [vmem:[#allocation3 + $0x50] sm:$0xff]  }
 0x156   : > { %v1208_v8 = vpop.f32.mrf.mxu1 }
 0x157   : > { %20568 = vst [vmem:[#allocation24_spill] sm:$0xff] %v15928_v45  ;;  %v1512_v10 = vpop.f32.mrf.mxu0  ;;  %v15933_v63 = vadd.f32 %v13352_v31, %v1217_v12  ;;  %v1209_v57 = vadd.f32 %v1208_v8, %v15858_v24  ;;  %v14662_v31 = vld [vmem:[#allocation3 + $0x48] sm:$0xff]  }
 0x158   : > { %v13301_v6 = vpop.f32.mrf.mxu1  ;;  %v3875_v44 = vrot.slane %v14662_v31, 3  ;;  %v3574_v54 = vrot.slane %v14662_v31, 2 }
 0x159   : > { %20569 = vst [vmem:[#allocation25_spill] sm:$0xff] %v15933_v63  ;;  %v13356_v9 = vpop.f32.mrf.mxu0  ;;  %13655 = vmatmul.mubr.bf16.gmra.mxu0 %v3870_v3  ;;  %v15936_v61 = vadd.f32 %v1509_v30, %v1209_v57  ;;  %v1220_v1 = vadd.f32 %v13301_v6, %v15865_v56  ;;  %v3573_v57 = vsel %vm20498_vm15, %v3570_v17, %v3572_v27  ;;  %v3877_v6 = vrot.slane %v14663_v14, 3 }
 0x15a   : > { %13658 = vmatprep.mubr.bf16.mxu0 %v3872_v58  ;;  %v1211_v25 = vpop.f32.mrf.mxu1  ;;  %v3876_v3 = vsel %vm20497_vm0, %v3873_v22, %v3875_v44  ;;  %v3575_v53 = vsel %vm20498_vm15, %v3572_v27, %v3574_v54  ;;  %v3576_v17 = vrot.slane %v14663_v14, 2 }
 0x15b   : > { %20570 = vst [vmem:[#allocation26_spill] sm:$0xff] %v15936_v61  ;;  %v1525_v0 = vpop.f32.mrf.mxu0  ;;  %v15941_v47 = vadd.f32 %v13353_v21, %v1220_v1  ;;  %v1212_v24 = vadd.f32 %v1211_v25, %v15870_v7 }
 0x15c   : > { %v13304_v19 = vpop.f32.mrf.mxu1  ;;  %13603 = vmatmul.mubr.bf16.gmra.mxu1 %v3569_v43 }
 0x15d   : > { %20571 = vst [vmem:[#allocation27_spill] sm:$0xff] %v15941_v47  ;;  %v13357_v30 = vpop.f32.mrf.mxu0  ;;  %v15944_v4 = vadd.f32 %v1512_v10, %v1212_v24  ;;  %v1233_v56 = vadd.f32 %v13304_v19, %v15605_v49  ;;  %13606 = vmatprep.mubr.bf16.mxu1 %v3571_v35  ;;  %v3878_v24 = vsel %vm20497_vm0, %v3875_v44, %v3877_v6  ;;  %v3881_v44 = vrot.slane %v15595_v13, 3 }
 0x15e   : > { %v1224_v15 = vpop.f32.mrf.mxu1 }
 0x15f   : > { %20572 = vst [vmem:[#allocation28_spill] sm:$0xff] %v15944_v4  ;;  %v1528_v12 = vpop.f32.mrf.mxu0  ;;  %v15949_v21 = vadd.f32 %v13356_v9, %v1233_v56  ;;  %v1225_v7 = vadd.f32 %v1224_v15, %v15614_v20  ;;  %v14664_v9 = vld [vmem:[#allocation3 + $0x58] sm:$0xff]  }
 0x160   : > { %v13305_v8 = vpop.f32.mrf.mxu1  ;;  %v3879_v22 = vrot.slane %v14664_v9, 3  ;;  %v3578_v27 = vrot.slane %v14664_v9, 2 }
 0x161   : > { %20573 = vst [vmem:[#allocation29_spill] sm:$0xff] %v15949_v21  ;;  %v13360_v58 = vpop.f32.mrf.mxu0  ;;  %13659 = vmatmul.mubr.bf16.gmra.mxu0 %v3874_v60  ;;  %v15952_v10 = vadd.f32 %v1525_v0, %v1225_v7  ;;  %v1236_v49 = vadd.f32 %v13305_v8, %v15640_v5  ;;  %v3577_v7 = vsel %vm20498_vm15, %v3574_v54, %v3576_v17  ;;  %v14665_v54 = vld [vmem:[#allocation3 + $0x60] sm:$0xff]  }
 0x162   : > { %13662 = vmatprep.mubr.bf16.mxu0 %v3876_v3  ;;  %v1227_v1 = vpop.f32.mrf.mxu1  ;;  %v3880_v60 = vsel %vm20497_vm0, %v3877_v6, %v3879_v22  ;;  %v3580_v13 = vrot.slane %v14665_v54, 2 }
 0x163   : > { %20574 = vst [vmem:[#allocation30_spill] sm:$0xff] %v15952_v10  ;;  %v1541_v43 = vpop.f32.mrf.mxu0  ;;  %v15957_v25 = vadd.f32 %v13357_v30, %v1236_v49  ;;  %v1228_v20 = vadd.f32 %v1227_v1, %v15660_v34 }
 0x164   : > { %v13308_v35 = vpop.f32.mrf.mxu1  ;;  %13607 = vmatmul.mubr.bf16.gmra.mxu1 %v3573_v57  ;;  %v3579_v57 = vsel %vm20498_vm15, %v3576_v17, %v3578_v27 }
 0x165   : > { %20575 = vst [vmem:[#allocation31_spill] sm:$0xff] %v15957_v25  ;;  %v13361_v0 = vpop.f32.mrf.mxu0  ;;  %v15960_v31 = vadd.f32 %v1528_v12, %v1228_v20  ;;  %v1249_v5 = vadd.f32 %v13308_v35, %v15686_v18  ;;  %13610 = vmatprep.mubr.bf16.mxu1 %v3575_v53  ;;  %v3882_v53 = vsel %vm20497_vm0, %v3879_v22, %v3881_v44  ;;  %v3582_v35 = vrot.slane %v15632_v46, 2  ;;  %v14488_v25 = vld [vmem:[#allocation4 + $0x30] sm:$0xff]  }
 0x166   : > { %v1240_v19 = vpop.f32.mrf.mxu1  ;;  %v3885_v22 = vrot.slane %v15637_v41, 3 }
 0x167   : > { %20576 = vst [vmem:[#allocation32_spill] sm:$0xff] %v15960_v31  ;;  %v1544_v56 = vpop.f32.mrf.mxu0  ;;  %v15965_v30 = vadd.f32 %v13360_v58, %v1249_v5  ;;  %v1241_v34 = vadd.f32 %v1240_v19, %v15694_v36  ;;  %v3883_v58 = vrot.slane %v15632_v46, 3 }
 0x168   : > { %v13309_v15 = vpop.f32.mrf.mxu1 }
 0x169   : > { %20577 = vst [vmem:[#allocation33_spill] sm:$0xff] %v15965_v30  ;;  %v13364_v3 = vpop.f32.mrf.mxu0  ;;  %13663 = vmatmul.mubr.bf16.gmra.mxu0 %v3878_v24  ;;  %v15968_v12 = vadd.f32 %v1541_v43, %v1241_v34  ;;  %v1252_v18 = vadd.f32 %v13309_v15, %v15731_v11  ;;  %v3583_v34 = vsel %vm20498_vm15, %v3580_v13, %v3582_v35  ;;  %v3887_v15 = vrot.slane %v15642_v32, 3 }
 0x16a   : > { %13666 = vmatprep.mubr.bf16.mxu0 %v3880_v60  ;;  %v1243_v8 = vpop.f32.mrf.mxu1 }
 0x16b   : > { %20578 = vst [vmem:[#allocation34_spill] sm:$0xff] %v15968_v12  ;;  %v1557_v49 = vpop.f32.mrf.mxu0  ;;  %v15975_v14 = vadd.f32 %v13361_v0, %v1252_v18  ;;  %v1244_v36 = vadd.f32 %v1243_v8, %v15747_v38  ;;  %v3884_v0 = vsel %vm20497_vm0, %v3881_v44, %v3883_v58  ;;  %v3886_v8 = vsel %vm20497_vm0, %v3883_v58, %v3885_v22  ;;  %v20587_v58 = vld [vmem:[#allocation13_spill] sm:$0xff] }
 0x16c   : > { %v13312_v6 = vpop.f32.mrf.mxu1  ;;  %13611 = vmatmul.mubr.bf16.gmra.mxu1 %v3577_v7 }
 0x16d   : > { %20579 = vst [vmem:[#allocation35_spill] sm:$0xff] %v15975_v14  ;;  %v13365_v1 = vpop.f32.mrf.mxu0  ;;  %v15978_v43 = vadd.f32 %v1544_v56, %v1244_v36  ;;  %v1265_v11 = vadd.f32 %v13312_v6, %v15771_v40  ;;  %13614 = vmatprep.mubr.bf16.mxu1 %v3579_v57  ;;  %v3581_v56 = vsel %vm20498_vm15, %v3578_v27, %v3580_v13  ;;  %v3584_v27 = vrot.slane %v15637_v41, 2 }
 0x16e   : > { %v1256_v9 = vpop.f32.mrf.mxu1  ;;  %v3586_v36 = vrot.slane %v15642_v32, 2  ;;  %v3888_v6 = vsel %vm20497_vm0, %v3885_v22, %v3887_v15 }
 0x16f   : > { %20580 = vst [vmem:[#allocation36_spill] sm:$0xff] %v15978_v43  ;;  %v1560_v20 = vpop.f32.mrf.mxu0  ;;  %v15984_v5 = vadd.f32 %v13364_v3, %v1265_v11  ;;  %v1257_v38 = vadd.f32 %v1256_v9, %v15782_v55  ;;  %v3585_v41 = vsel %vm20498_vm15, %v3582_v35, %v3584_v27 }
 0x170   : > { %v13313_v17 = vpop.f32.mrf.mxu1 }
 0x171   : > { %20581 = vst [vmem:[#allocation37_spill] sm:$0xff] %v15984_v5  ;;  %v13368_v24 = vpop.f32.mrf.mxu0  ;;  %13667 = vmatmul.mubr.bf16.gmra.mxu0 %v3882_v53  ;;  %v15987_v19 = vadd.f32 %v1557_v49, %v1257_v38  ;;  %v1268_v40 = vadd.f32 %v13313_v17, %v15797_v52  ;;  %v3889_v53 = vrot.slane %v20587_v58, 3 }
 0x172   : > { %13670 = vmatprep.mubr.bf16.mxu0 %v3884_v0  ;;  %v1259_v60 = vpop.f32.mrf.mxu1  ;;  %v20588_v0 = vld [vmem:[#allocation14_spill] sm:$0xff] }
 0x173   : > { %20582 = vst [vmem:[#allocation38_spill] sm:$0xff] %v15987_v19  ;;  %v1573_v46 = vpop.f32.mrf.mxu0  ;;  %v15994_v3 = vadd.f32 %v13365_v1, %v1268_v40  ;;  %v1260_v55 = vadd.f32 %v1259_v60, %v15814_v29  ;;  %v3891_v38 = vrot.slane %v20588_v0, 3  ;;  %v3588_v60 = vrot.slane %v20587_v58, 2 }
 0x174   : > { %v13316_v18 = vpop.f32.mrf.mxu1  ;;  %13615 = vmatmul.mubr.bf16.gmra.mxu1 %v3581_v56 }
 0x175   : > { %20583 = vst [vmem:[#allocation39_spill] sm:$0xff] %v15994_v3  ;;  %v13369_v7 = vpop.f32.mrf.mxu0  ;;  %v15997_v44 = vadd.f32 %v1560_v20, %v1260_v55  ;;  %v1281_v52 = vadd.f32 %v13316_v18, %v15828_v48  ;;  %13618 = vmatprep.mubr.bf16.mxu1 %v3583_v34  ;;  %v3587_v20 = vsel %vm20498_vm15, %v3584_v27, %v3586_v36  ;;  %v3590_v18 = vrot.slane %v20588_v0, 2  ;;  %v20594_v27 = vld [vmem:[#allocation18_spill] sm:$0xff] }
 0x176   : > { %v1272_v49 = vpop.f32.mrf.mxu1 }
 0x177   : > { %20584 = vst [vmem:[#allocation40_spill] sm:$0xff] %v15997_v44  ;;  %v1576_v57 = vpop.f32.mrf.mxu0  ;;  %v16004_v1 = vadd.f32 %v13368_v24, %v1281_v52  ;;  %v1273_v29 = vadd.f32 %v1272_v49, %v15839_v59  ;;  %v20590_v59 = vld [vmem:[#allocation16_spill] sm:$0xff] }
 0x178   : > { %v13317_v11 = vpop.f32.mrf.mxu1 }
 0x179   : > { %20585 = vst [vmem:[#allocation41_spill] sm:$0xff] %v16004_v1  ;;  %v13372_v54 = vpop.f32.mrf.mxu0  ;;  %13671 = vmatmul.mubr.bf16.gmra.mxu0 %v3886_v8  ;;  %v16007_v13 = vadd.f32 %v1573_v46, %v1273_v29  ;;  %v1284_v48 = vadd.f32 %v13317_v11, %v15846_v39  ;;  %v20592_v39 = vld [vmem:[#allocation17_spill] sm:$0xff]  ;;  %v3890_v46 = vsel %vm20497_vm0, %v3887_v15, %v3889_v53  ;;  %v20596_v29 = vld [vmem:[#allocation19_spill] sm:$0xff] }
 0x17a   : > { %13674 = vmatprep.mubr.bf16.mxu0 %v3888_v6  ;;  %v1275_v9 = vpop.f32.mrf.mxu1  ;;  %v3589_v15 = vsel %vm20498_vm15, %v3586_v36, %v3588_v60 }
 0x17b   : > { %20586 = vst [vmem:[#allocation42_spill] sm:$0xff] %v16007_v13  ;;  %v1589_v32 = vpop.f32.mrf.mxu0  ;;  %v16014_v17 = vadd.f32 %v13369_v7, %v1284_v48  ;;  %v1276_v24 = vadd.f32 %v1275_v9, %v20590_v59  ;;  %v3892_v7 = vsel %vm20497_vm0, %v3889_v53, %v3891_v38  ;;  %v20597_v48 = vld [vmem:[#allocation15_spill] sm:$0xff]  ;;  %v20598_v53 = vld [vmem:[#allocation10_spill] sm:$0xff] }
 0x17c   : > { %v13320_v40 = vpop.f32.mrf.mxu1  ;;  %13619 = vmatmul.mubr.bf16.gmra.mxu1 %v3585_v41  ;;  %v3893_v41 = vrot.slane %v20597_v48, 3  ;;  %v3592_v36 = vrot.slane %v20597_v48, 2 }
 0x17d   : > { %20589 = vst [vmem:[#allocation13_spill] sm:$0xff] %v16014_v17  ;;  %v13373_v56 = vpop.f32.mrf.mxu0  ;;  %v16017_v22 = vadd.f32 %v1576_v57, %v1276_v24  ;;  %v1297_v35 = vadd.f32 %v13320_v40, %v20592_v39  ;;  %13622 = vmatprep.mubr.bf16.mxu1 %v3587_v20  ;;  %v3895_v20 = vrot.slane %v20598_v53, 3 }
 0x17e   : > { %v1288_v34 = vpop.f32.mrf.mxu1  ;;  %v3894_v40 = vsel %vm20497_vm0, %v3891_v38, %v3893_v41 }
 0x17f   : > { %20591 = vst [vmem:[#allocation14_spill] sm:$0xff] %v16017_v22  ;;  %v16022_v55 = vpop.f32.mrf.mxu0  ;;  %v16026_v52 = vadd.f32 %v13372_v54, %v1297_v35  ;;  %v1289_v8 = vadd.f32 %v1288_v34, %v20594_v27  ;;  %v3591_v54 = vsel %vm20498_vm15, %v3588_v60, %v3590_v18  ;;  %v3896_v60 = vsel %vm20497_vm0, %v3893_v41, %v3895_v20 }
 0x180   : > { %v13321_v49 = vpop.f32.mrf.mxu1 }
 0x181   : > { %20593 = vst [vmem:[#allocation16_spill] sm:$0xff] %v16026_v52  ;;  %v13444_v57 = vpop.f32.mrf.mxu0  ;;  %13675 = vmatmul.mubr.bf16.gmra.mxu0 %v3890_v46  ;;  %v16029_v6 = vadd.f32 %v1589_v32, %v1289_v8  ;;  %v1300_v11 = vadd.f32 %v13321_v49, %v20596_v29  ;;  %v3594_v46 = vrot.slane %v20598_v53, 2  ;;  %v3593_v8 = vsel %vm20498_vm15, %v3590_v18, %v3592_v36  ;;  %v20600_v49 = vld [vmem:[#allocation11_spill] sm:$0xff] }
 0x182   : > { %13678 = vmatprep.mubr.bf16.mxu0 %v3892_v7  ;;  %v16034_v58 = vpop.f32.mrf.mxu1 }
 0x183   : > { %20595 = vst [vmem:[#allocation17_spill] sm:$0xff] %v16029_v6  ;;  %v2393_v9 = vpop.f32.mrf.mxu0  ;;  %v16038_v0 = vadd.f32 %v13373_v56, %v1300_v11  ;;  %v3595_v11 = vsel %vm20498_vm15, %v3592_v36, %v3594_v46 }
 0x184   : > { %v13392_v59 = vpop.f32.mrf.mxu1  ;;  %13623 = vmatmul.mubr.bf16.gmra.mxu1 %v3589_v15 }
 0x185   : > { %20599 = vst [vmem:[#allocation18_spill] sm:$0xff] %v16038_v0  ;;  %v13445_v32 = vpop.f32.mrf.mxu0  ;;  %v16040_v24 = vadd.f32 %v13444_v57, %v13392_v59  ;;  %13626 = vmatprep.mubr.bf16.mxu1 %v3591_v54  ;;  %v3897_v57 = vrot.slane %v20600_v49, 3  ;;  %v4437_v59 = vlaneseq }
 0x186   : > { %v2110_v39 = vpop.f32.mrf.mxu1 }
 0x187   : > { %v16044_v35 = vpop.f32.mrf.mxu0  ;;  %v16048_v34 = vadd.f32 %v2393_v9, %v2110_v39  ;;  %v20601_v9 = vld [vmem:[#allocation12_spill] sm:$0xff]  ;;  %v3898_v53 = vsel %vm20497_vm0, %v3895_v20, %v3897_v57  ;;  %v16065_v39 = vshrl.u32 %v4437_v59, 7 }
 0x188   : > { %v13393_v56 = vpop.f32.mrf.mxu1  ;;  %v3596_v54 = vrot.slane %v20601_v9, 2 }
 0x189   : > { %v13448_v7 = vpop.f32.mrf.mxu0  ;;  %13679 = vmatmul.mubr.bf16.gmra.mxu0 %v3894_v40  ;;  %v16050_v27 = vadd.f32 %v13445_v32, %v13393_v56  ;;  %20602 = vst [vmem:[#allocation19_spill] sm:$0xff] %v16065_v39  ;;  %v4440_v49 = vadd.s32 16, %v16065_v39  ;;  %v4441_v20 = vadd.s32 24, %v16065_v39  ;;  %v16087_v52 = vadd.s32 8, %v16065_v39 }
 0x18a   : > { %13682 = vmatprep.mubr.bf16.mxu0 %v3896_v60  ;;  %v16054_v38 = vpop.f32.mrf.mxu1  ;;  %v16118_v12 = vadd.s32 56, %v16065_v39 }
 0x18b   : > { %v2409_v29 = vpop.f32.mrf.mxu0  ;;  %v16100_v13 = vmul.u32.u64.low 3817748708, %v16087_v52  ;;  %v16101_v1 = vmul.u32.u64.high 3817748708, %v16087_v52, %v16100_v13 }
 0x18c   : > { %v13396_v15 = vpop.f32.mrf.mxu1  ;;  %13627 = vmatmul.mubr.bf16.gmra.mxu1 %v3593_v8  ;;  %v14484_v8 = vld [vmem:[#allocation4 + $0x78] sm:$0xff]  }
 0x18d   : > { %v13449_v48 = vpop.f32.mrf.mxu0  ;;  %v16057_v41 = vadd.f32 %v13448_v7, %v13396_v15  ;;  %13630 = vmatprep.mubr.bf16.mxu1 %v3595_v11  ;;  %v3597_v7 = vsel %vm20498_vm15, %v3594_v46, %v3596_v54  ;;  %13686 = vmatprep.subr.bf16.mxu1 %v14484_v8 }
 0x18e   : > { %v2126_v18 = vpop.f32.mrf.mxu1  ;;  %13687 = vmatpush3.bf16.msra.mxu1 %v14484_v8 }
 0x18f   : > { %v16061_v32 = vpop.f32.mrf.mxu0  ;;  %v16063_v40 = vadd.f32 %v2409_v29, %v2126_v18  ;;  %v16074_v29 = vmul.u32.u64.low 3817748708, %v4440_v49  ;;  %v16075_v15 = vmul.u32.u64.high 3817748708, %v4440_v49, %v16074_v29 }
 0x190   : > { %v13397_v60 = vpop.f32.mrf.mxu1 }
 0x191   : > { %v13452_v36 = vpop.f32.mrf.mxu0  ;;  %13683 = vmatmul.mubr.bf16.gmra.mxu0 %v3898_v53  ;;  %v16067_v56 = vadd.f32 %v13449_v48, %v13397_v60  ;;  %v16077_v53 = vmul.u32.u64.low 3817748708, %v4441_v20  ;;  %v16078_v48 = vmul.u32.u64.high 3817748708, %v4441_v20, %v16077_v53 }
 0x192   : > { %v16072_v57 = vpop.f32.mrf.mxu1 }
 0x193   : > { %v2425_v11 = vpop.f32.mrf.mxu0 }
 0x194   : > { %v13400_v9 = vpop.f32.mrf.mxu1  ;;  %13631 = vmatmul.mubr.bf16.gmra.mxu1 %v3597_v7  ;;  %v4502_v7 = vshrl.u32 %v16075_v15, 4 }
 0x195   : > { %v13453_v59 = vpop.f32.mrf.mxu0  ;;  %v16080_v18 = vadd.f32 %v13452_v36, %v13400_v9  ;;  %v16095_v36 = vmul.u32.u64.low 3817748708, %v16065_v39  ;;  %v16096_v8 = vmul.u32.u64.high 3817748708, %v16065_v39, %v16095_v36  ;;  %v14485_v9 = vld [vmem:[#allocation4 + $0x70] sm:$0xff]  }
 0x196   : > { %v2142_v46 = vpop.f32.mrf.mxu1  ;;  %13688 = vmatprep.subr.bf16.mxu1 %v14485_v9  ;;  %v4503_v15 = vmul.u32 18, %v4502_v7  ;;  %v16110_v36 = vadd.s32 48, %v16065_v39 }
 0x197   : > { %v16082_v54 = vpop.f32.mrf.mxu0  ;;  %v16084_v60 = vadd.f32 %v2425_v11, %v2142_v46  ;;  %v4513_v46 = vshrl.u32 %v16078_v48, 4  ;;  %13689 = vmatpush3.bf16.msra.mxu1 %v14485_v9  ;;  %v4480_v7 = vshrl.u32 %v16096_v8, 4  ;;  %v16130_v8 = vadd.s32 32, %v16065_v39 }
 0x198   : > { %v13401_v0 = vpop.f32.mrf.mxu1  ;;  %v4504_v14 = vsub.s32 %v4440_v49, %v4503_v15 }
 0x199   : > { %v13456_v6 = vpop.f32.mrf.mxu0  ;;  %v16089_v29 = vadd.f32 %v13453_v59, %v13401_v0  ;;  %v4514_v48 = vmul.u32 18, %v4513_v46  ;;  %v4481_v15 = vmul.u32 18, %v4480_v7 }
 0x19a   : > { %v16092_v22 = vpop.f32.mrf.mxu1  ;;  %vm4872_vm1 = vcmp.ne.s32.totalorder %v4504_v14, 0  ;;  %vm4908_vm2 = vcmp.lt.s32.totalorder %v4504_v14, 0 }
 0x19b   : > { %20603 = vst [vmem:[#allocation15_spill] sm:$0xff] %v16089_v29  ;;  %v2441_v53 = vpop.f32.mrf.mxu0  ;;  %v16124_v31 = vsub.s32 %v4441_v20, %v4514_v48  ;;  %v4980_v48 = vadd.s32 18, %v4504_v14  ;;  %vm16147_vm3 = vmand %vm4908_vm2, %vm4872_vm1 }
 0x19c   : > { %v13404_v17 = vpop.f32.mrf.mxu1 }
 0x19d   : > { %v13457_v11 = vpop.f32.mrf.mxu0  ;;  %v16103_v0 = vadd.f32 %v13456_v6, %v13404_v17  ;;  %v14486_v6 = vld [vmem:[#allocation4 + $0x38] sm:$0xff]   ;;  %vm4873_vm4 = vcmp.ne.s32.totalorder %v16124_v31, 0  ;;  %vm4909_vm5 = vcmp.lt.s32.totalorder %v16124_v31, 0 }
 0x19e   : > { %v2158_v59 = vpop.f32.mrf.mxu1  ;;  %13738 = vmatprep.subr.bf16.mxu0 %v14486_v6  ;;  %vm16179_vm6 = vmand %vm4909_vm5, %vm4873_vm4 }
 0x19f   : > { %20604 = vst [vmem:[#allocation10_spill] sm:$0xff] %v16103_v0  ;;  %v16105_v44 = vpop.f32.mrf.mxu0  ;;  %v16107_v3 = vadd.f32 %v2441_v53, %v2158_v59  ;;  %v16121_v53 = vmul.u32.u64.low 3817748708, %v16110_v36  ;;  %v16122_v9 = vmul.u32.u64.high 3817748708, %v16110_v36, %v16121_v53  ;;  %13739 = vmatpush3.bf16.msra.mxu0 %v14486_v6 }
 0x1a0   : > { %v13405_v19 = vpop.f32.mrf.mxu1  ;;  %v16135_v53 = vadd.s32 40, %v16065_v39  ;;  %13740 = vmatprep.subr.bf16.mxu0 %v14488_v25 }
 0x1a1   : > { %20605 = vst [vmem:[#allocation11_spill] sm:$0xff] %v16107_v3  ;;  %v13460_v5 = vpop.f32.mrf.mxu0  ;;  %v16112_v43 = vadd.f32 %v13457_v11, %v13405_v19  ;;  %v4491_v19 = vshrl.u32 %v16101_v1, 4 }
 0x1a2   : > { %v16114_v13 = vpop.f32.mrf.mxu1 }
 0x1a3   : > { %20606 = vst [vmem:[#allocation12_spill] sm:$0xff] %v16112_v43  ;;  %v2457_v17 = vpop.f32.mrf.mxu0  ;;  %v4492_v2 = vmul.u32 18, %v4491_v19  ;;  %13741 = vmatpush3.bf16.msra.mxu0 %v14488_v25  ;;  %v16233_v25 = vadd.s32 88, %v16065_v39 }
 0x1a4   : > { %v13408_v59 = vpop.f32.mrf.mxu1 }
 0x1a5   : > { %v13461_v30 = vpop.f32.mrf.mxu0  ;;  %v16127_v49 = vadd.f32 %v13460_v5, %v13408_v59  ;;  %v16140_v5 = vmul.u32.u64.low 3817748708, %v16118_v12  ;;  %v16141_v1 = vmul.u32.u64.high 3817748708, %v16118_v12, %v16140_v5  ;;  %v20609_v59 = vld [vmem:[#allocation20_spill] sm:$0xff]  ;;  %v16173_v4 = vsub.s32 %v16087_v52, %v4492_v2 }
 0x1a6   : > { %v2174_v11 = vpop.f32.mrf.mxu1  ;;  %v1292_v6 = vadd.f32 %v16034_v58, %v20609_v59  ;;  %v16162_v59 = vsub.s32 %v16065_v39, %v4481_v15 }
 0x1a7   : > { %20607 = vst [vmem:[#allocation43_spill] sm:$0xff] %v16127_v49  ;;  %v16132_v46 = vpop.f32.mrf.mxu0  ;;  %v16137_v20 = vadd.f32 %v2457_v17, %v2174_v11  ;;  %v16155_v11 = vmul.u32.u64.low 3817748708, %v16130_v8  ;;  %v16156_v5 = vmul.u32.u64.high 3817748708, %v16130_v8, %v16155_v11  ;;  %v4981_v49 = vadd.s32 18, %v16124_v31 }
 0x1a8   : > { %v13409_v10 = vpop.f32.mrf.mxu1  ;;  %v16184_v15 = vadd.f32 %v16022_v55, %v1292_v6  ;;  %vm4870_vm9 = vcmp.ne.s32.totalorder %v16162_v59, 0  ;;  %vm4906_vm11 = vcmp.lt.s32.totalorder %v16162_v59, 0  ;;  %vm4871_vm13 = vcmp.ne.s32.totalorder %v16173_v4, 0 }
 0x1a9   : > { %20608 = vst [vmem:[#allocation44_spill] sm:$0xff] %v16137_v20  ;;  %v13464_v51 = vpop.f32.mrf.mxu0  ;;  %v16151_v17 = vadd.f32 %v13461_v30, %v13409_v10  ;;  %v16165_v19 = vmul.u32.u64.low 3817748708, %v16135_v53  ;;  %v16166_v10 = vmul.u32.u64.high 3817748708, %v16135_v53, %v16165_v19  ;;  %v5016_v30 = vsel %vm16147_vm3, %v4980_v48, %v4504_v14  ;;  %vm16226_vm3 = vmand %vm4906_vm11, %vm4870_vm9 }
 0x1aa   : > { %v16158_v20 = vpop.f32.mrf.mxu1  ;;  %20616 = vst [vmem:[#allocation46_spill] sm:$0xff] %v16184_v15  ;;  %vm16188_vm8 = vcmp.lt.s32.totalorder %v5016_v30, 16  ;;  %v5017_v55 = vsel %vm16179_vm6, %v4981_v49, %v16124_v31  ;;  %vm4907_vm1 = vcmp.lt.s32.totalorder %v16173_v4, 0  ;;  %v16203_v6 = vadd.s32 80, %v16065_v39 }
 0x1ab   : > { %20612 = vst [vmem:[#allocation20_spill] sm:$0xff] %v16151_v17  ;;  %v2473_v58 = vpop.f32.mrf.mxu0  ;;  %v4546_v17 = vshrl.u32 %v16122_v9, 4  ;;  %vm5160_vm2 = vmpackc.low %vm16188_vm8, %vm16188_vm8  ;;  %v4524_v31 = vshrl.u32 %v16156_v5, 4  ;;  %v16218_v49 = vadd.f32 %v16061_v32, %v16072_v57  ;;  %v4535_v5 = vshrl.u32 %v16166_v10, 4 }
 0x1ac   : > { %v13412_v21 = vpop.f32.mrf.mxu1  ;;  %v16237_v32 = vadd.f32 %v16082_v54, %v16092_v22  ;;  %vm16239_vm4 = vcmp.lt.s32.totalorder %v5017_v55, 16  ;;  %vm16247_vm5 = vmand %vm4907_vm1, %vm4871_vm13  ;;  %v20630_v22 = vmov 0   ;;  %v16275_v48 = vadd.s32 72, %v16065_v39 }
 0x1ad   : > { %v13465_v11 = vpop.f32.mrf.mxu0  ;;  %v16175_v47 = vadd.f32 %v13464_v51, %v13412_v21  ;;  %v4547_v51 = vmul.u32 18, %v4546_v17  ;;  %v4557_v21 = vshrl.u32 %v16141_v1, 4  ;;  %v4978_v1 = vadd.s32 18, %v16162_v59  ;;  %20622 = vst [vmem:[#allocation50_spill] sm:$0xff] %v16218_v49  ;;  %vm5161_vm9 = vmpackc.low %vm16239_vm4, %vm16239_vm4 }
 0x1ae   : > { %v2190_v14 = vpop.f32.mrf.mxu1  ;;  %20625 = vst [vmem:[#allocation51_spill] sm:$0xff] %v16237_v32  ;;  %v16260_v54 = vsel %vm5160_vm2, 65537, %v20630_v22  ;;  %v4536_v61 = vmul.u32 18, %v4535_v5  ;;  %v16448_v32 = vadd.f32 %v16105_v44, %v16114_v13 }
 0x1af   : > { %20613 = vst [vmem:[#allocation45_spill] sm:$0xff] %v16175_v47  ;;  %v16186_v9 = vpop.f32.mrf.mxu0  ;;  %v16193_v2 = vadd.f32 %v2473_v58, %v2190_v14  ;;  %v16207_v58 = vadd.f32 %v16044_v35, %v16054_v38  ;;  %v4979_v38 = vadd.s32 18, %v16173_v4  ;;  %v16252_v10 = vsub.s32 %v16110_v36, %v4547_v51 }
 0x1b0   : > { %v13413_v52 = vpop.f32.mrf.mxu1  ;;  %v16267_v47 = vadd.s32 64, %v16065_v39  ;;  %v5014_v51 = vsel %vm16226_vm3, %v4978_v1, %v16162_v59  ;;  %v16293_v1 = vadd.s32 112, %v16065_v39 }
 0x1b1   : > { %20619 = vst [vmem:[#allocation47_spill] sm:$0xff] %v16193_v2  ;;  %v13468_v7 = vpop.f32.mrf.mxu0  ;;  %20620 = vst [vmem:[#allocation48_spill] sm:$0xff] %v16207_v58  ;;  %v16209_v17 = vadd.f32 %v13465_v11, %v13413_v52  ;;  %v14487_v11 = vld [vmem:[#allocation4 + $0x68] sm:$0xff]   ;;  %v4558_v52 = vmul.u32 18, %v4557_v21  ;;  %v16263_v55 = vmul.u32.u64.low 3817748708, %v16203_v6  ;;  %v16264_v2 = vmul.u32.u64.high 3817748708, %v16203_v6, %v16263_v55 }
 0x1b2   : > { %v16220_v19 = vpop.f32.mrf.mxu1  ;;  %13690 = vmatprep.subr.bf16.mxu1 %v14487_v11  ;;  %v4525_v21 = vmul.u32 18, %v4524_v31  ;;  %v5015_v55 = vsel %vm16247_vm5, %v4979_v38, %v16173_v4  ;;  %vm4876_vm6 = vcmp.ne.s32.totalorder %v16252_v10, 0  ;;  %vm4912_vm8 = vcmp.lt.s32.totalorder %v16252_v10, 0 }
 0x1b3   : > { %20621 = vst [vmem:[#allocation49_spill] sm:$0xff] %v16209_v17  ;;  %v2489_v30 = vpop.f32.mrf.mxu0  ;;  %13691 = vmatpush3.bf16.msra.mxu1 %v14487_v11  ;;  %v16289_v59 = vsub.s32 %v16118_v12, %v4558_v52  ;;  %v4590_v4 = vshrl.u32 %v16264_v2, 4  ;;  %v16298_v38 = vmul.u32.u64.low 3817748708, %v16267_v47  ;;  %v16299_v5 = vmul.u32.u64.high 3817748708, %v16267_v47, %v16298_v38  ;;  %vm16346_vm3 = vmand %vm4912_vm8, %vm4876_vm6 }
 0x1b4   : > { %v13416_v15 = vpop.f32.mrf.mxu1  ;;  %v16304_v12 = vsub.s32 %v16130_v8, %v4525_v21  ;;  %v16313_v2 = vsub.s32 %v16135_v53, %v4536_v61  ;;  %vm16322_vm11 = vcmp.lt.s32.totalorder %v5014_v51, 16  ;;  %vm16326_vm13 = vcmp.lt.s32.totalorder %v5015_v55, 16  ;;  %v14489_v61 = vld [vmem:[#allocation4 + $0x60] sm:$0xff]  }
 0x1b5   : > { %v13469_v17 = vpop.f32.mrf.mxu0  ;;  %v16269_v36 = vadd.f32 %v13468_v7, %v13416_v15  ;;  %v16283_v15 = vmul.u32.u64.low 3817748708, %v16233_v25  ;;  %v16284_v7 = vmul.u32.u64.high 3817748708, %v16233_v25, %v16283_v15  ;;  %vm4877_vm1 = vcmp.ne.s32.totalorder %v16289_v59, 0  ;;  %13692 = vmatprep.subr.bf16.mxu1 %v14489_v61  ;;  %vm5158_vm5 = vmpackc.low %vm16322_vm11, %vm16322_vm11 }
 0x1b6   : > { %v2206_v49 = vpop.f32.mrf.mxu1  ;;  %v16331_v53 = vmul.u32.u64.low 3817748708, %v16293_v1  ;;  %v16332_v21 = vmul.u32.u64.high 3817748708, %v16293_v1, %v16331_v53  ;;  %v4984_v38 = vadd.s32 18, %v16252_v10  ;;  %vm4913_vm2 = vcmp.lt.s32.totalorder %v16289_v59, 0  ;;  %vm5159_vm4 = vmpackc.low %vm16326_vm13, %vm16326_vm13 }
 0x1b7   : > { %20631 = vst [vmem:[#allocation52_spill] sm:$0xff] %v16269_v36  ;;  %v16277_v43 = vpop.f32.mrf.mxu0  ;;  %v14490_v36 = vld [vmem:[#allocation4 + $0x28] sm:$0xff]   ;;  %v16286_v35 = vadd.f32 %v2489_v30, %v2206_v49  ;;  %v16307_v30 = vmul.u32.u64.low 3817748708, %v16275_v48  ;;  %v16308_v14 = vmul.u32.u64.high 3817748708, %v16275_v48, %v16307_v30  ;;  %v4601_v3 = vshrl.u32 %v16284_v7, 4  ;;  %v14492_v7 = vld [vmem:[#allocation4 + $0x20] sm:$0xff]   ;;  %13693 = vmatpush3.bf16.msra.mxu1 %v14489_v61  ;;  %vm16382_vm0 = vmand %vm4913_vm2, %vm4877_vm1 }
 0x1b8   : > { %v13417_v31 = vpop.f32.mrf.mxu1  ;;  %13742 = vmatprep.subr.bf16.mxu0 %v14490_v36  ;;  %vm4874_vm6 = vcmp.ne.s32.totalorder %v16304_v12, 0  ;;  %vm4875_vm8 = vcmp.ne.s32.totalorder %v16313_v2, 0  ;;  %vm4910_vm14 = vcmp.lt.s32.totalorder %v16304_v12, 0  ;;  %v4568_v57 = vshrl.u32 %v16299_v5, 4  ;;  %v14491_v61 = vld [vmem:[#allocation4 + $0x58] sm:$0xff]  }
 0x1b9   : > { %20632 = vst [vmem:[#allocation53_spill] sm:$0xff] %v16286_v35  ;;  %v13472_v11 = vpop.f32.mrf.mxu0  ;;  %v16301_v49 = vadd.f32 %v13469_v17, %v13417_v31  ;;  %13743 = vmatpush3.bf16.msra.mxu0 %v14490_v36  ;;  %v4591_v35 = vmul.u32 18, %v4590_v4  ;;  %v16317_v17 = vadd.s32 120, %v16065_v39  ;;  %v4602_v30 = vmul.u32 18, %v4601_v3  ;;  %vm16409_vm1 = vmand %vm4910_vm14, %vm4874_vm6  ;;  %13694 = vmatprep.subr.bf16.mxu1 %v14491_v61 }
 0x1ba   : > { %v16310_v52 = vpop.f32.mrf.mxu1  ;;  %13744 = vmatprep.subr.bf16.mxu0 %v14492_v7  ;;  %v4985_v53 = vadd.s32 18, %v16289_v59  ;;  %v16422_v8 = vsel %vm5159_vm4, 65537, %v20630_v22  ;;  %v4569_v58 = vmul.u32 18, %v4568_v57 }
 0x1bb   : > { %20633 = vst [vmem:[#allocation54_spill] sm:$0xff] %v16301_v49  ;;  %v2505_v15 = vpop.f32.mrf.mxu0  ;;  %v16337_v51 = vsub.s32 %v16203_v6, %v4591_v35  ;;  %v16351_v49 = vmul.u32.u64.low 3817748708, %v16317_v17  ;;  %v16352_v63 = vmul.u32.u64.high 3817748708, %v16317_v17, %v16351_v49  ;;  %v16362_v35 = vsel %vm5161_vm9, 65537, %v20630_v22  ;;  %20648 = vst [vmem:[#allocation59_spill] sm:$0xff] %v16422_v8  ;;  %13695 = vmatpush3.bf16.msra.mxu1 %v14491_v61 }
 0x1bc   : > { %v13420_v31 = vpop.f32.mrf.mxu1  ;;  %vm4911_vm9 = vcmp.lt.s32.totalorder %v16313_v2, 0  ;;  %v4579_v49 = vshrl.u32 %v16308_v14, 4  ;;  %v16402_v14 = vsel %vm5158_vm5, 65537, %v20630_v22  ;;  %v16573_v61 = vadd.s32 152, %v16065_v39 }
 0x1bd   : > { %v13473_v4 = vpop.f32.mrf.mxu0  ;;  %v16339_v55 = vadd.f32 %v13472_v11, %v13420_v31  ;;  %13745 = vmatpush3.bf16.msra.mxu0 %v14492_v7  ;;  %v16390_v7 = vsub.s32 %v16233_v25, %v4602_v30  ;;  %vm4880_vm15 = vcmp.ne.s32.totalorder %v16337_v51, 0  ;;  %vm4916_vm10 = vcmp.lt.s32.totalorder %v16337_v51, 0  ;;  %20645 = vst [vmem:[#allocation58_spill] sm:$0xff] %v16402_v14  ;;  %vm16428_vm14 = vmand %vm4911_vm9, %vm4875_vm8 }
 0x1be   : > { %v2222_v6 = vpop.f32.mrf.mxu1  ;;  %vm16441_vm13 = vmand %vm4916_vm10, %vm4880_vm15  ;;  %v4580_v0 = vmul.u32 18, %v4579_v49  ;;  %v4645_v45 = vshrl.u32 %v16352_v63, 4  ;;  %v5021_v63 = vsel %vm16382_vm0, %v4985_v53, %v16289_v59 }
 0x1bf   : > { %20638 = vst [vmem:[#allocation55_spill] sm:$0xff] %v16339_v55  ;;  %v16354_v3 = vpop.f32.mrf.mxu0  ;;  %v16370_v11 = vadd.f32 %v2505_v15, %v2222_v6  ;;  %v5020_v15 = vsel %vm16346_vm3, %v4984_v38, %v16252_v10  ;;  %v4982_v10 = vadd.s32 18, %v16304_v12  ;;  %v4983_v6 = vadd.s32 18, %v16313_v2 }
 0x1c0   : > { %v13421_v31 = vpop.f32.mrf.mxu1  ;;  %vm16435_vm11 = vcmp.lt.s32.totalorder %v5020_v15, 16  ;;  %vm4881_vm2 = vcmp.ne.s32.totalorder %v16390_v7, 0  ;;  %vm4917_vm10 = vcmp.lt.s32.totalorder %v16390_v7, 0  ;;  %v4646_v30 = vmul.u32 18, %v4645_v45 }
 0x1c1   : > { %20641 = vst [vmem:[#allocation56_spill] sm:$0xff] %v16370_v11  ;;  %v13476_v55 = vpop.f32.mrf.mxu0  ;;  %v16394_v5 = vadd.f32 %v13473_v4, %v13421_v31  ;;  %v4988_v31 = vadd.s32 18, %v16337_v51  ;;  %v5018_v44 = vsel %vm16409_vm1, %v4982_v10, %v16304_v12  ;;  %vm5164_vm15 = vmpackc.low %vm16435_vm11, %vm16435_vm11  ;;  %v16487_v10 = vsub.s32 %v16267_v47, %v4569_v58 }
 0x1c2   : > { %v16414_v4 = vpop.f32.mrf.mxu1  ;;  %vm16482_vm0 = vmand %vm4917_vm10, %vm4881_vm2  ;;  %vm16502_vm3 = vcmp.lt.s32.totalorder %v5021_v63, 16  ;;  %v16507_v47 = vadd.s32 96, %v16065_v39  ;;  %vm16519_vm5 = vcmp.lt.s32.totalorder %v5018_v44, 16  ;;  %v16549_v63 = vsub.s32 %v16317_v17, %v4646_v30 }
 0x1c3   : > { %20644 = vst [vmem:[#allocation57_spill] sm:$0xff] %v16394_v5  ;;  %v2521_v38 = vpop.f32.mrf.mxu0  ;;  %v4634_v5 = vshrl.u32 %v16332_v21, 4  ;;  %v5024_v59 = vsel %vm16441_vm13, %v4988_v31, %v16337_v51  ;;  %v16494_v51 = vadd.f32 %v16132_v46, %v16158_v20  ;;  %vm4878_vm4 = vcmp.ne.s32.totalorder %v16487_v10, 0  ;;  %vm5162_vm13 = vmpackc.low %vm16519_vm5, %vm16519_vm5 }
 0x1c4   : > { %v13424_v37 = vpop.f32.mrf.mxu1  ;;  %vm16535_vm8 = vcmp.lt.s32.totalorder %v5024_v59, 16  ;;  %vm4914_vm1 = vcmp.lt.s32.totalorder %v16487_v10, 0  ;;  %vm4885_vm7 = vcmp.ne.s32.totalorder %v16549_v63, 0  ;;  %vm4921_vm2 = vcmp.lt.s32.totalorder %v16549_v63, 0 }
 0x1c5   : > { %v13477_v21 = vpop.f32.mrf.mxu0  ;;  %v16454_v29 = vadd.f32 %v13476_v55, %v13424_v37  ;;  %v5019_v37 = vsel %vm16428_vm14, %v4983_v6, %v16313_v2  ;;  %v16473_v55 = vadd.s32 18, %v16390_v7  ;;  %v4635_v12 = vmul.u32 18, %v4634_v5  ;;  %vm5165_vm14 = vmpackc.low %vm16502_vm3, %vm16502_vm3 }
 0x1c6   : > { %v2238_v13 = vpop.f32.mrf.mxu1  ;;  %v16490_v2 = vsub.s32 %v16275_v48, %v4580_v0  ;;  %v16498_v5 = vadd.f32 %v16186_v9, %v16220_v19  ;;  %v16517_v0 = vsel %vm5164_vm15, 65537, %v20630_v22  ;;  %vm16523_vm6 = vcmp.lt.s32.totalorder %v5019_v37, 16  ;;  %v14494_v9 = vld [vmem:[#allocation4 + $0x18] sm:$0xff]   ;;  %vm16601_vm12 = vmand %vm4914_vm1, %vm4878_vm4 }
 0x1c7   : > { %v16464_v49 = vpop.f32.mrf.mxu0  ;;  %v16478_v53 = vadd.f32 %v2521_v38, %v2238_v13  ;;  %v5025_v48 = vsel %vm16482_vm0, %v16473_v55, %v16390_v7  ;;  %v16540_v36 = vsub.s32 %v16293_v1, %v4635_v12  ;;  %13746 = vmatprep.subr.bf16.mxu0 %v14494_v9  ;;  %v16562_v37 = vadd.s32 144, %v16065_v39  ;;  %v14495_v12 = vld [vmem:[#allocation4 + $0x10] sm:$0xff]   ;;  %vm5168_vm0 = vmpackc.low %vm16535_vm8, %vm16535_vm8 }
 0x1c8   : > { %v13425_v38 = vpop.f32.mrf.mxu1  ;;  %vm4879_vm9 = vcmp.ne.s32.totalorder %v16490_v2, 0  ;;  %vm4915_vm11 = vcmp.lt.s32.totalorder %v16490_v2, 0  ;;  %v16558_v1 = vmul.u32.u64.low 3817748708, %v16507_v47  ;;  %v16559_v13 = vmul.u32.u64.high 3817748708, %v16507_v47, %v16558_v1  ;;  %13747 = vmatpush3.bf16.msra.mxu0 %v14494_v9  ;;  %v14493_v9 = vld [vmem:[#allocation4 + $0x50] sm:$0xff]  }
 0x1c9   : > { %v16500_v6 = vpop.f32.mrf.mxu0  ;;  %v16509_v45 = vadd.f32 %v13477_v21, %v13425_v38  ;;  %v16543_v21 = vadd.s32 104, %v16065_v39  ;;  %v4986_v55 = vadd.s32 18, %v16487_v10  ;;  %v16570_v59 = vadd.s32 18, %v16490_v2  ;;  %13748 = vmatprep.subr.bf16.mxu0 %v14495_v12  ;;  %13696 = vmatprep.subr.bf16.mxu1 %v14493_v9  ;;  %vm16619_vm4 = vmand %vm4915_vm11, %vm4879_vm9 }
 0x1ca   : > { %v16527_v58 = vpop.f32.mrf.mxu1  ;;  %vm4884_vm10 = vcmp.ne.s32.totalorder %v16540_v36, 0  ;;  %vm4920_vm15 = vcmp.lt.s32.totalorder %v16540_v36, 0  ;;  %v4992_v57 = vadd.s32 18, %v16540_v36  ;;  %13697 = vmatpush3.bf16.msra.mxu1 %v14493_v9  ;;  %vm16631_vm1 = vcmp.lt.s32.totalorder %v5025_v48, 16  ;;  %vm16666_vm11 = vmand %vm4921_vm2, %vm4885_vm7 }
 0x1cb   : > { %v16529_v19 = vpop.f32.mrf.mxu0  ;;  %vm16639_vm9 = vmand %vm4920_vm15, %vm4884_vm10  ;;  %v16702_v20 = vsel %vm5168_vm0, 65537, %v20630_v22 }
 0x1cc   : > { %v13496_v7 = vpop.f32.mrf.mxu1  ;;  %13749 = vmatpush3.bf16.msra.mxu0 %v14495_v12  ;;  %vm5169_vm7 = vmpackc.low %vm16631_vm1, %vm16631_vm1  ;;  %20681 = vst [vmem:[#allocation65_spill] sm:$0xff] %v16702_v20  ;;  %v5028_v14 = vsel %vm16639_vm9, %v4992_v57, %v16540_v36  ;;  %v16837_v36 = vadd.s32 136, %v16065_v39 }
 0x1cd   : > { %v16551_v44 = vpop.f32.mrf.mxu0  ;;  %v2839_v17 = vadd.f32 %v13496_v7, %v16040_v24  ;;  %v16583_v24 = vmul.u32.u64.low 3817748708, %v16543_v21  ;;  %v16584_v38 = vmul.u32.u64.high 3817748708, %v16543_v21, %v16583_v24 }
 0x1ce   : > { %v2694_v25 = vpop.f32.mrf.mxu1 }
 0x1cf   : > { %v16575_v30 = vpop.f32.mrf.mxu0  ;;  %v16587_v7 = vadd.f32 %v2839_v17, %v15884_v50  ;;  %v2837_v1 = vadd.f32 %v2694_v25, %v16048_v34  ;;  %v4612_v34 = vshrl.u32 %v16559_v13, 4  ;;  %v4623_v9 = vshrl.u32 %v16584_v38, 4  ;;  %v14496_v38 = vld [vmem:[#allocation4 + $0x48] sm:$0xff]  }
 0x1d0   : > { %20665 = vst [vmem:[#allocation60_spill] sm:$0xff] %v16575_v30  ;;  %v13497_v15 = vpop.f32.mrf.mxu1  ;;  %v16608_v17 = vmul.u32.u64.low 3817748708, %v16562_v37  ;;  %v16609_v25 = vmul.u32.u64.high 3817748708, %v16562_v37, %v16608_v17  ;;  %v16624_v13 = vmul.u32.u64.low 3817748708, %v16573_v61  ;;  %v16625_v30 = vmul.u32.u64.high 3817748708, %v16573_v61, %v16624_v13  ;;  %13698 = vmatprep.subr.bf16.mxu1 %v14496_v38 }
 0x1d1   : > { %v16595_v8 = vpop.f32.mrf.mxu0  ;;  %v16612_v24 = vadd.f32 %v2837_v1, %v15887_v16  ;;  %v14497_v17 = vld [vmem:[#allocation4 + $0x8] sm:$0xff]   ;;  %v4993_v1 = vadd.s32 18, %v16549_v63  ;;  %v16646_v13 = vadd.s32 128, %v16065_v39  ;;  %v4624_v50 = vmul.u32 18, %v4623_v9  ;;  %13699 = vmatpush3.bf16.msra.mxu1 %v14496_v38 }
 0x1d2   : > { %20666 = vst [vmem:[#allocation61_spill] sm:$0xff] %v16595_v8  ;;  %v2840_v8 = vadd.f32 %v13497_v15, %v16050_v27  ;;  %v16627_v12 = vpop.f32.mrf.mxu1  ;;  %13750 = vmatprep.subr.bf16.mxu0 %v14497_v17 }
 0x1d3   : > { %20669 = vst [vmem:[#allocation62_spill] sm:$0xff] %v16612_v24  ;;  %v16629_v16 = vpop.f32.mrf.mxu0  ;;  %v5022_v24 = vsel %vm16601_vm12, %v4986_v55, %v16487_v10  ;;  %v16678_v10 = vsel %vm5162_vm13, 65537, %v20630_v22  ;;  %vm20680_vm12 = vmpackc.low %vm16523_vm6, %vm16523_vm6  ;;  %v5023_v55 = vsel %vm16619_vm4, %v16570_v59, %v16490_v2  ;;  %13751 = vmatpush3.bf16.msra.mxu0 %v14497_v17  ;;  %v4678_v2 = vshrl.u32 %v16609_v25, 4 }
 0x1d4   : > { %20672 = vst [vmem:[#allocation63_spill] sm:$0xff] %v16629_v16  ;;  %v16649_v48 = vadd.f32 %v2840_v8, %v15892_v28  ;;  %v16657_v16 = vsel %vm5165_vm14, 65537, %v20630_v22  ;;  %v4613_v28 = vmul.u32 18, %v4612_v34  ;;  %v13500_v8 = vpop.f32.mrf.mxu1  ;;  %v16686_v31 = vsel %vm20680_vm12, 65537, %v20630_v22 }
 0x1d5   : > { %v2843_v46 = vadd.f32 %v13500_v8, %v16057_v41  ;;  %vm16710_vm3 = vcmp.lt.s32.totalorder %v5022_v24, 16  ;;  %v5029_v11 = vsel %vm16666_vm11, %v4993_v1, %v16549_v63  ;;  %vm16725_vm5 = vcmp.lt.s32.totalorder %v5023_v55, 16 }
 0x1d6   : > { %20677 = vst [vmem:[#allocation64_spill] sm:$0xff] %v16649_v48  ;;  %v16670_v48 = vpop.f32.mrf.mxu0  ;;  %v2710_v59 = vpop.f32.mrf.mxu1  ;;  %v16718_v17 = vmul.u32.u64.low 3817748708, %v16646_v13  ;;  %v16719_v27 = vmul.u32.u64.high 3817748708, %v16646_v13, %v16718_v17  ;;  %v16730_v25 = vsub.s32 %v16507_v47, %v4613_v28  ;;  %v16735_v63 = vsel %vm5169_vm7, 65537, %v20630_v22  ;;  %vm5166_vm8 = vmpackc.low %vm16710_vm3, %vm16710_vm3 }
 0x1d7   : > { %v16722_v15 = vadd.f32 %v2843_v46, %v15901_v33  ;;  %v2841_v57 = vadd.f32 %v2710_v59, %v16063_v40  ;;  %20686 = vst [vmem:[#allocation66_spill] sm:$0xff] %v16735_v63  ;;  %vm16737_vm6 = vcmp.lt.s32.totalorder %v5028_v14, 16  ;;  %v16742_v33 = vsub.s32 %v16543_v21, %v4624_v50  ;;  %v14498_v46 = vld [vmem:[#allocation4] sm:$0xff]   ;;  %vm5167_vm13 = vmpackc.low %vm16725_vm5, %vm16725_vm5 }
 0x1d8   : > { %v16708_v41 = vpop.f32.mrf.mxu0  ;;  %v13501_v24 = vpop.f32.mrf.mxu1  ;;  %v4689_v40 = vshrl.u32 %v16625_v30, 4  ;;  %vm16752_vm14 = vcmp.lt.s32.totalorder %v5029_v11, 16  ;;  %v4679_v55 = vmul.u32 18, %v4678_v2  ;;  %v16758_v21 = vadd.f32 %v16277_v43, %v16310_v52  ;;  %vm5172_vm2 = vmpackc.low %vm16737_vm6, %vm16737_vm6  ;;  %13752 = vmatprep.subr.bf16.mxu0 %v14498_v46  ;;  %v20699_v52 = vld [vmem:[#allocation15_spill] sm:$0xff] }
 0x1d9   : > { %v16746_v8 = vadd.f32 %v2841_v57, %v15904_v26  ;;  %v2844_v47 = vadd.f32 %v13501_v24, %v16067_v56  ;;  %v16762_v26 = vadd.f32 %v16354_v3, %v16414_v4  ;;  %vm4882_vm10 = vcmp.ne.s32.totalorder %v16730_v25, 0  ;;  %vm5173_vm0 = vmpackc.low %vm16752_vm14, %vm16752_vm14  ;;  %13753 = vmatpush3.bf16.msra.mxu0 %v14498_v46 }
 0x1da   : > { %v16732_v9 = vpop.f32.mrf.mxu0  ;;  %v16764_v30 = vpop.f32.mrf.mxu1  ;;  %vm4918_vm15 = vcmp.lt.s32.totalorder %v16730_v25, 0  ;;  %vm4883_vm4 = vcmp.ne.s32.totalorder %v16742_v33, 0  ;;  %vm4919_vm1 = vcmp.lt.s32.totalorder %v16742_v33, 0  ;;  %v4690_v2 = vmul.u32 18, %v4689_v40 }
 0x1db   : > { %v16776_v43 = vadd.f32 %v2844_v47, %v15909_v23  ;;  %v16793_v23 = vsel %vm5166_vm8, 65537, %v20630_v22  ;;  %v16802_v59 = vadd.f32 %v16464_v49, %v16527_v58  ;;  %v16811_v34 = vsel %vm5167_vm13, 65537, %v20630_v22  ;;  %vm16830_vm9 = vmand %vm4918_vm15, %vm4882_vm10  ;;  %v20708_v47 = vld [vmem:[#allocation10_spill] sm:$0xff] }
 0x1dc   : > { %v16766_v56 = vpop.f32.mrf.mxu0  ;;  %v13504_v3 = vpop.f32.mrf.mxu1  ;;  %v16814_v17 = vsub.s32 %v16562_v37, %v4679_v55  ;;  %v4990_v58 = vadd.s32 18, %v16730_v25  ;;  %v4991_v37 = vadd.s32 18, %v16742_v33  ;;  %v16849_v38 = vsel %vm5173_vm0, 65537, %v20630_v22  ;;  %vm16855_vm11 = vmand %vm4919_vm1, %vm4883_vm4 }
 0x1dd   : > { %v2847_v11 = vadd.f32 %v13504_v3, %v16080_v18  ;;  %v16824_v18 = vsel %vm5172_vm2, 65537, %v20630_v22  ;;  %v16863_v46 = vsub.s32 %v16573_v61, %v4690_v2  ;;  %v16866_v28 = vadd.s32 176, %v16065_v39 }
 0x1de   : > { %v16785_v4 = vpop.f32.mrf.mxu0  ;;  %v2726_v57 = vpop.f32.mrf.mxu1  ;;  %v16869_v3 = vadd.s32 184, %v16065_v39  ;;  %vm4888_vm12 = vcmp.ne.s32.totalorder %v16814_v17, 0  ;;  %vm4924_vm7 = vcmp.lt.s32.totalorder %v16814_v17, 0  ;;  %v5026_v14 = vsel %vm16830_vm9, %v4990_v58, %v16730_v25  ;;  %v20707_v58 = vld [vmem:[#allocation24_spill] sm:$0xff] }
 0x1df   : > { %20691 = vst [vmem:[#allocation67_spill] sm:$0xff] %v16785_v4  ;;  %v16840_v1 = vadd.f32 %v2847_v11, %v15917_v62  ;;  %v2845_v40 = vadd.f32 %v2726_v57, %v16084_v60  ;;  %v4656_v62 = vshrl.u32 %v16719_v27, 4  ;;  %v16872_v11 = vadd.s32 160, %v16065_v39  ;;  %vm16903_vm6 = vmand %vm4924_vm7, %vm4888_vm12 }
 0x1e0   : > { %v16816_v24 = vpop.f32.mrf.mxu0  ;;  %v13505_v55 = vpop.f32.mrf.mxu1  ;;  %v5027_v50 = vsel %vm16855_vm11, %v4991_v37, %v16742_v33  ;;  %v4996_v63 = vadd.s32 18, %v16814_v17  ;;  %vm4889_vm3 = vcmp.ne.s32.totalorder %v16863_v46, 0  ;;  %vm4925_vm5 = vcmp.lt.s32.totalorder %v16863_v46, 0 }
 0x1e1   : > { %20692 = vst [vmem:[#allocation68_spill] sm:$0xff] %v16816_v24  ;;  %v16875_v57 = vadd.f32 %v2845_v40, %v15920_v42  ;;  %v2848_v27 = vadd.f32 %v13505_v55, %v20699_v52  ;;  %v16889_v42 = vmul.u32.u64.low 3817748708, %v16837_v36  ;;  %v16890_v40 = vmul.u32.u64.high 3817748708, %v16837_v36, %v16889_v42  ;;  %v20701_v52 = vld [vmem:[#allocation23_spill] sm:$0xff]  ;;  %vm16935_vm14 = vmand %vm4925_vm5, %vm4889_vm3 }
 0x1e2   : > { %v16860_v60 = vpop.f32.mrf.mxu0  ;;  %v2729_v61 = vpop.f32.mrf.mxu1  ;;  %v16908_v33 = vmul.u32.u64.low 3817748708, %v16866_v28  ;;  %v16909_v49 = vmul.u32.u64.high 3817748708, %v16866_v28, %v16908_v33  ;;  %v20709_v42 = vld [vmem:[#allocation48_spill] sm:$0xff]  ;;  %vm16923_vm8 = vcmp.lt.s32.totalorder %v5026_v14, 16  ;;  %v5032_v14 = vsel %vm16903_vm6, %v4996_v63, %v16814_v17  ;;  %v20720_v63 = vld [vmem:[#allocation26_spill] sm:$0xff] }
 0x1e3   : > { %20697 = vst [vmem:[#allocation69_spill] sm:$0xff] %v16860_v60  ;;  %20698 = vst [vmem:[#allocation70_spill] sm:$0xff] %v16875_v57  ;;  %v16893_v55 = vadd.f32 %v2848_v27, %v20701_v52  ;;  %v20703_v60 = vld [vmem:[#allocation51_spill] sm:$0xff]  ;;  %v16919_v52 = vadd.f32 %v16627_v12, %v20709_v42  ;;  %v20713_v33 = vld [vmem:[#allocation25_spill] sm:$0xff]  ;;  %vm16947_vm13 = vcmp.lt.s32.totalorder %v5027_v50, 16  ;;  %vm16966_vm2 = vcmp.lt.s32.totalorder %v5032_v14, 16 }
 0x1e4   : > { %v16880_v2 = vpop.f32.mrf.mxu0  ;;  %v2846_v57 = vadd.f32 %v2729_v61, %v20703_v60  ;;  %v13508_v20 = vpop.f32.mrf.mxu1  ;;  %v16914_v60 = vmul.u32.u64.low 3817748708, %v16869_v3  ;;  %v16915_v27 = vmul.u32.u64.high 3817748708, %v16869_v3, %v16914_v60  ;;  %v14499_v61 = vld [vmem:[#allocation4 + $0x40] sm:$0xff]   ;;  %vm5170_vm10 = vmpackc.low %vm16923_vm8, %vm16923_vm8 }
 0x1e5   : > { %20700 = vst [vmem:[#allocation15_spill] sm:$0xff] %v16880_v2  ;;  %20702 = vst [vmem:[#allocation23_spill] sm:$0xff] %v16893_v55  ;;  %v4657_v2 = vmul.u32 18, %v4656_v62  ;;  %v2851_v62 = vadd.f32 %v13508_v20, %v20708_v47  ;;  %v4667_v20 = vshrl.u32 %v16890_v40, 4  ;;  %v20714_v47 = vld [vmem:[#allocation11_spill] sm:$0xff]  ;;  %13700 = vmatprep.subr.bf16.mxu1 %v14499_v61 }
 0x1e6   : > { %v16897_v24 = vpop.f32.mrf.mxu0  ;;  %v2918_v37 = vadd.f32 %v2846_v57, %v20707_v58  ;;  %v4997_v57 = vadd.s32 18, %v16863_v46  ;;  %13701 = vmatpush3.bf16.msra.mxu1 %v14499_v61  ;;  %vm5171_vm4 = vmpackc.low %vm16947_vm13, %vm16947_vm13 }
 0x1e7   : > { %20704 = vst [vmem:[#allocation51_spill] sm:$0xff] %v16897_v24  ;;  %v2742_v24 = vpop.f32.mrf.mxu1  ;;  %v2923_v58 = vadd.f32 %v2851_v62, %v20713_v33  ;;  %v16943_v42 = vsub.s32 %v16646_v13, %v4657_v2  ;;  %v4668_v62 = vmul.u32 18, %v4667_v20  ;;  %v4722_v33 = vshrl.u32 %v16909_v49, 4  ;;  %v20721_v13 = vld [vmem:[#allocation12_spill] sm:$0xff]  ;;  %vm5176_vm12 = vmpackc.low %vm16966_vm2, %vm16966_vm2 }
 0x1e8   : > { %v16921_v55 = vpop.f32.mrf.mxu0  ;;  %2954 = vst [vmem:[#allocation2 + $0x48] sm:$0xff] %v2918_v37  ;;  %v2849_v60 = vadd.f32 %v2742_v24, %v20714_v47  ;;  %v16953_v47 = vadd.s32 168, %v16065_v39  ;;  %v5033_v49 = vsel %vm16935_vm14, %v4997_v57, %v16863_v46  ;;  %v20726_v46 = vld [vmem:[#allocation50_spill] sm:$0xff]  ;;  %v17085_v24 = vsel %vm5176_vm12, 65537, %v20630_v22 }
 0x1e9   : > { %20710 = vst [vmem:[#allocation24_spill] sm:$0xff] %v16921_v55  ;;  %v13509_v40 = vpop.f32.mrf.mxu1  ;;  %2959 = vst [vmem:[#allocation2 + $0x70] sm:$0xff] %v2923_v58  ;;  %v16958_v25 = vmul.u32.u64.low 3817748708, %v16872_v11  ;;  %v16959_v55 = vmul.u32.u64.high 3817748708, %v16872_v11, %v16958_v25  ;;  %v16971_v61 = vsub.s32 %v16837_v36, %v4668_v62  ;;  %v4733_v58 = vshrl.u32 %v16915_v27, 4  ;;  %v20728_v27 = vld [vmem:[#allocation28_spill] sm:$0xff] }
 0x1ea   : > { %v16945_v37 = vpop.f32.mrf.mxu0  ;;  %v2921_v17 = vadd.f32 %v2849_v60, %v20720_v63  ;;  %v2852_v2 = vadd.f32 %v13509_v40, %v20721_v13  ;;  %v20725_v60 = vld [vmem:[#allocation27_spill] sm:$0xff]  ;;  %vm4886_vm15 = vcmp.ne.s32.totalorder %v16943_v42, 0  ;;  %vm4922_vm0 = vcmp.lt.s32.totalorder %v16943_v42, 0  ;;  %v20751_v13 = vld [vmem:[#allocation32_spill] sm:$0xff] }
 0x1eb   : > { %20717 = vst [vmem:[#allocation10_spill] sm:$0xff] %v16945_v37  ;;  %v2745_v50 = vpop.f32.mrf.mxu1  ;;  %v2842_v57 = vadd.f32 %v16764_v30, %v20726_v46  ;;  %vm4887_vm1 = vcmp.ne.s32.totalorder %v16971_v61, 0  ;;  %vm4923_vm9 = vcmp.lt.s32.totalorder %v16971_v61, 0  ;;  %v20729_v62 = vld [vmem:[#allocation43_spill] sm:$0xff]  ;;  %vm16992_vm11 = vcmp.lt.s32.totalorder %v5033_v49, 16  ;;  %vm17006_vm7 = vmand %vm4922_vm0, %vm4886_vm15 }
 0x1ec   : > { %v16961_v37 = vpop.f32.mrf.mxu0  ;;  %2957 = vst [vmem:[#allocation2 + $0x60] sm:$0xff] %v2921_v17  ;;  %v2924_v40 = vadd.f32 %v2852_v2, %v20725_v60  ;;  %v2850_v63 = vadd.f32 %v2745_v50, %v16448_v32  ;;  %v4723_v32 = vmul.u32 18, %v4722_v33  ;;  %v4994_v30 = vadd.s32 18, %v16943_v42  ;;  %vm17025_vm3 = vmand %vm4923_vm9, %vm4887_vm1 }
 0x1ed   : > { %20722 = vst [vmem:[#allocation48_spill] sm:$0xff] %v16961_v37  ;;  %v13512_v36 = vpop.f32.mrf.mxu1  ;;  %v4995_v50 = vadd.s32 18, %v16971_v61  ;;  %v4734_v49 = vmul.u32 18, %v4733_v58  ;;  %vm5177_vm5 = vmpackc.low %vm16992_vm11, %vm16992_vm11  ;;  %v4700_v4 = vshrl.u32 %v16959_v55, 4  ;;  %v17075_v55 = vadd.s32 208, %v16065_v39 }
 0x1ee   : > { %v16983_v12 = vpop.f32.mrf.mxu0  ;;  %2960 = vst [vmem:[#allocation2 + $0x78] sm:$0xff] %v2924_v40  ;;  %v2922_v14 = vadd.f32 %v2850_v63, %v20728_v27  ;;  %v2855_v17 = vadd.f32 %v13512_v36, %v20729_v62  ;;  %v17012_v60 = vmul.u32.u64.low 3817748708, %v16953_v47  ;;  %v17013_v40 = vmul.u32.u64.high 3817748708, %v16953_v47, %v17012_v60  ;;  %v20735_v63 = vld [vmem:[#allocation29_spill] sm:$0xff]  ;;  %v20736_v36 = vld [vmem:[#allocation44_spill] sm:$0xff]  ;;  %20746 = vst [vmem:[#allocation27_spill] sm:$0xff] %v17085_v24 }
 0x1ef   : > { %20727 = vst [vmem:[#allocation25_spill] sm:$0xff] %v16983_v12  ;;  %v2758_v2 = vpop.f32.mrf.mxu1  ;;  %v20739_v60 = vld [vmem:[#allocation21_spill] sm:$0xff]  ;;  %v17072_v33 = vsub.s32 %v16869_v3, %v4734_v49  ;;  %v17093_v3 = vsel %vm5177_vm5, 65537, %v20630_v22  ;;  %v17104_v20 = vadd.s32 216, %v16065_v39 }
 0x1f0   : > { %v17000_v25 = vpop.f32.mrf.mxu0  ;;  %2958 = vst [vmem:[#allocation2 + $0x68] sm:$0xff] %v2922_v14  ;;  %v2927_v46 = vadd.f32 %v2855_v17, %v20735_v63  ;;  %v2853_v27 = vadd.f32 %v2758_v2, %v20736_v36  ;;  %v17031_v14 = vadd.f32 %v16919_v52, %v20739_v60  ;;  %v20740_v17 = vld [vmem:[#allocation22_spill] sm:$0xff]  ;;  %v17050_v52 = vsub.s32 %v16866_v28, %v4723_v32 }
 0x1f1   : > { %20732 = vst [vmem:[#allocation11_spill] sm:$0xff] %v17000_v25  ;;  %v17034_v2 = vadd.f32 %v2842_v57, %v20740_v17  ;;  %v13513_v63 = vpop.f32.mrf.mxu1  ;;  %v17044_v25 = vsel %vm5170_vm10, 65537, %v20630_v22  ;;  %v20742_v57 = vld [vmem:[#allocation30_spill] sm:$0xff]  ;;  %v20743_v17 = vld [vmem:[#allocation20_spill] sm:$0xff]  ;;  %v17066_v28 = vsel %vm5171_vm4, 65537, %v20630_v22  ;;  %v5031_v32 = vsel %vm17025_vm3, %v4995_v50, %v16971_v61  ;;  %20747 = vst [vmem:[#allocation50_spill] sm:$0xff] %v17093_v3 }
 0x1f2   : > { %v17036_v36 = vpop.f32.mrf.mxu0  ;;  %2963 = vst [vmem:[#allocation2 + $0x90] sm:$0xff] %v2927_v46  ;;  %v2925_v60 = vadd.f32 %v2853_v27, %v20742_v57  ;;  %v2856_v62 = vadd.f32 %v13513_v63, %v20743_v17  ;;  %v5866_v61 = vld [vmem:[#allocation3] sm:$0xf]  ;;  %vm4892_vm8 = vcmp.ne.s32.totalorder %v17050_v52, 0  ;;  %vm4928_vm14 = vcmp.lt.s32.totalorder %v17050_v52, 0 }
 0x1f3   : > { %20741 = vst [vmem:[#allocation26_spill] sm:$0xff] %v17036_v36  ;;  %v5030_v36 = vsel %vm17006_vm7, %v4994_v30, %v16943_v42  ;;  %v2761_v12 = vpop.f32.mrf.mxu1  ;;  %v20745_v42 = vld [vmem:[#allocation31_spill] sm:$0xff]  ;;  %vm17108_vm13 = vcmp.lt.s32.totalorder %v5031_v32, 16  ;;  %vm4893_vm2 = vcmp.ne.s32.totalorder %v17072_v33, 0  ;;  %v4711_v17 = vshrl.u32 %v17013_v40, 4  ;;  %vm17138_vm0 = vmand %vm4928_vm14, %vm4892_vm8  ;;  %v20771_v63 = vld [vmem:[#allocation37_spill] sm:$0xff] }
 0x1f4   : > { %v17058_v37 = vpop.f32.mrf.mxu0  ;;  %2961 = vst [vmem:[#allocation2 + $0x80] sm:$0xff] %v2925_v60  ;;  %v2928_v30 = vadd.f32 %v2856_v62, %v20745_v42  ;;  %v2854_v46 = vadd.f32 %v2761_v12, %v16494_v51  ;;  %vm17097_vm6 = vcmp.lt.s32.totalorder %v5030_v36, 16  ;;  %v5867_v12 = vld [vmem:[#allocation3 + $0x4] sm:$0xf]  ;;  %v4701_v36 = vmul.u32 18, %v4700_v4  ;;  %vm5175_vm4 = vmpackc.low %vm17108_vm13, %vm17108_vm13  ;;  %v20768_v51 = vld [vmem:[#allocation36_spill] sm:$0xff] }
 0x1f5   : > { %20744 = vst [vmem:[#allocation12_spill] sm:$0xff] %v17058_v37  ;;  %v13516_v50 = vpop.f32.mrf.mxu1  ;;  %v20752_v62 = vld [vmem:[#allocation45_spill] sm:$0xff]  ;;  %vm5174_vm10 = vmpackc.low %vm17097_vm6, %vm17097_vm6  ;;  %vm4929_vm15 = vcmp.lt.s32.totalorder %v17072_v33, 0  ;;  %v17126_v4 = vcombine.low %v5866_v61, %v5867_v12  ;;  %v5000_v61 = vadd.s32 18, %v17050_v52  ;;  %v17144_v12 = vadd.s32 192, %v16065_v39 }
 0x1f6   : > { %v17095_v49 = vpop.f32.mrf.mxu0  ;;  %2964 = vst [vmem:[#allocation2 + $0x98] sm:$0xff] %v2928_v30  ;;  %v2926_v27 = vadd.f32 %v2854_v46, %v20751_v13  ;;  %v2859_v58 = vadd.f32 %v13516_v50, %v20752_v62  ;;  %v20756_v30 = vld [vmem:[#allocation33_spill] sm:$0xff]  ;;  %v20757_v50 = vld [vmem:[#allocation47_spill] sm:$0xff]  ;;  %v17153_v40 = vsub.s32 %v16872_v11, %v4701_v36  ;;  %vm17162_vm1 = vmand %vm4929_vm15, %vm4893_vm2  ;;  %v17179_v37 = vsel %vm5174_vm10, 65537, %v20630_v22 }
 0x1f7   : > { %20748 = vst [vmem:[#allocation28_spill] sm:$0xff] %v17095_v49  ;;  %v2774_v57 = vpop.f32.mrf.mxu1  ;;  %v17117_v42 = vmul.u32.u64.low 3817748708, %v17075_v55  ;;  %v17118_v49 = vmul.u32.u64.high 3817748708, %v17075_v55, %v17117_v42  ;;  %13754 = vmatprep.mubr.bf16.mxu0 %v17126_v4  ;;  %v20766_v36 = vld [vmem:[#allocation35_spill] sm:$0xff] }
 0x1f8   : > { %v17112_v60 = vpop.f32.mrf.mxu0  ;;  %2962 = vst [vmem:[#allocation2 + $0x88] sm:$0xff] %v2926_v27  ;;  %v2931_v46 = vadd.f32 %v2859_v58, %v20756_v30  ;;  %v2857_v32 = vadd.f32 %v2774_v57, %v20757_v50  ;;  %v20761_v57 = vld [vmem:[#allocation34_spill] sm:$0xff]  ;;  %v20762_v30 = vld [vmem:[#allocation49_spill] sm:$0xff]  ;;  %v5001_v27 = vadd.s32 18, %v17072_v33  ;;  %vm4890_vm9 = vcmp.ne.s32.totalorder %v17153_v40, 0 }
 0x1f9   : > { %20755 = vst [vmem:[#allocation43_spill] sm:$0xff] %v17112_v60  ;;  %v13517_v13 = vpop.f32.mrf.mxu1  ;;  %vm4926_vm11 = vcmp.lt.s32.totalorder %v17153_v40, 0 }
 0x1fa   : > { %v17128_v62 = vpop.f32.mrf.mxu0  ;;  %2967 = vst [vmem:[#allocation2 + $0xb0] sm:$0xff] %v2931_v46  ;;  %v2929_v42 = vadd.f32 %v2857_v32, %v20761_v57  ;;  %v2860_v50 = vadd.f32 %v13517_v13, %v20762_v30  ;;  %v4712_v32 = vmul.u32 18, %v4711_v17  ;;  %v4766_v13 = vshrl.u32 %v17118_v49, 4  ;;  %vm17240_vm3 = vmand %vm4926_vm11, %vm4890_vm9 }
 0x1fb   : > { %20758 = vst [vmem:[#allocation29_spill] sm:$0xff] %v17128_v62  ;;  %v2777_v62 = vpop.f32.mrf.mxu1  ;;  %v17168_v57 = vmul.u32.u64.low 3817748708, %v17104_v20  ;;  %v17169_v11 = vmul.u32.u64.high 3817748708, %v17104_v20, %v17168_v57  ;;  %v17182_v17 = vadd.s32 200, %v16065_v39 }
 0x1fc   : > { %v17156_v60 = vpop.f32.mrf.mxu0  ;;  %2965 = vst [vmem:[#allocation2 + $0xa0] sm:$0xff] %v2929_v42  ;;  %v2932_v30 = vadd.f32 %v2860_v50, %v20766_v36  ;;  %v5036_v42 = vsel %vm17138_vm0, %v5000_v61, %v17050_v52  ;;  %v4767_v50 = vmul.u32 18, %v4766_v13  ;;  %v20769_v36 = vld [vmem:[#allocation52_spill] sm:$0xff]  ;;  %v5037_v52 = vsel %vm17162_vm1, %v5001_v27, %v17072_v33 }
 0x1fd   : > { %20763 = vst [vmem:[#allocation44_spill] sm:$0xff] %v17156_v60  ;;  %v2858_v60 = vadd.f32 %v2777_v62, %v16498_v5  ;;  %v13520_v49 = vpop.f32.mrf.mxu1  ;;  %v17190_v5 = vmul.u32.u64.low 3817748708, %v17144_v12  ;;  %v17191_v62 = vmul.u32.u64.high 3817748708, %v17144_v12, %v17190_v5  ;;  %v17209_v13 = vsub.s32 %v16953_v47, %v4712_v32 }
 0x1fe   : > { %v17184_v3 = vpop.f32.mrf.mxu0  ;;  %2968 = vst [vmem:[#allocation2 + $0xb8] sm:$0xff] %v2932_v30  ;;  %v2863_v24 = vadd.f32 %v13520_v49, %v20769_v36  ;;  %v20772_v49 = vld [vmem:[#allocation53_spill] sm:$0xff]  ;;  %v17217_v46 = vmul.u32.u64.low 3817748708, %v17182_v17  ;;  %v17218_v33 = vmul.u32.u64.high 3817748708, %v17182_v17, %v17217_v46  ;;  %vm17222_vm12 = vcmp.lt.s32.totalorder %v5036_v42, 16 }
 0x1ff   : > { %20767 = vst [vmem:[#allocation21_spill] sm:$0xff] %v17184_v3  ;;  %v2930_v57 = vadd.f32 %v2858_v60, %v20768_v51  ;;  %v17201_v3 = vsel %vm5175_vm4, 65537, %v20630_v22  ;;  %v2790_v58 = vpop.f32.mrf.mxu1  ;;  %v4777_v60 = vshrl.u32 %v17169_v11, 4  ;;  %v4998_v32 = vadd.s32 18, %v17153_v40  ;;  %vm5180_vm8 = vmpackc.low %vm17222_vm12, %vm17222_vm12 }
 0x200   : > { %v17206_v61 = vpop.f32.mrf.mxu0  ;;  %v2935_v30 = vadd.f32 %v2863_v24, %v20771_v63  ;;  %v2861_v5 = vadd.f32 %v2790_v58, %v20772_v49  ;;  %v17228_v11 = vsub.s32 %v17075_v55, %v4767_v50  ;;  %v20776_v24 = vld [vmem:[#allocation38_spill] sm:$0xff]  ;;  %vm17232_vm7 = vcmp.lt.s32.totalorder %v5037_v52, 16 }
 0x201   : > { %20770 = vst [vmem:[#allocation22_spill] sm:$0xff] %v17206_v61  ;;  %2966 = vst [vmem:[#allocation2 + $0xa8] sm:$0xff] %v2930_v57  ;;  %v13521_v27 = vpop.f32.mrf.mxu1  ;;  %v4778_v57 = vmul.u32 18, %v4777_v60  ;;  %v20777_v58 = vld [vmem:[#allocation54_spill] sm:$0xff]  ;;  %v4744_v55 = vshrl.u32 %v17191_v62, 4  ;;  %vm4891_vm5 = vcmp.ne.s32.totalorder %v17209_v13, 0 }
 0x202   : > { %v17220_v51 = vpop.f32.mrf.mxu0  ;;  %2971 = vst [vmem:[#allocation2 + $0xd0] sm:$0xff] %v2935_v30  ;;  %v2933_v36 = vadd.f32 %v2861_v5, %v20776_v24  ;;  %v2864_v63 = vadd.f32 %v13521_v27, %v20777_v58  ;;  %vm4927_vm6 = vcmp.lt.s32.totalorder %v17209_v13, 0  ;;  %v17253_v30 = vadd.s32 240, %v16065_v39  ;;  %v20783_v5 = vld [vmem:[#allocation39_spill] sm:$0xff]  ;;  %vm5181_vm14 = vmpackc.low %vm17232_vm7, %vm17232_vm7  ;;  %v20795_v49 = vld [vmem:[#allocation42_spill] sm:$0xff] }
 0x203   : > { %20773 = vst [vmem:[#allocation30_spill] sm:$0xff] %v17220_v51  ;;  %v2793_v50 = vpop.f32.mrf.mxu1  ;;  %v17250_v52 = vsub.s32 %v17104_v20, %v4778_v57  ;;  %v4745_v24 = vmul.u32 18, %v4744_v55  ;;  %v4999_v20 = vadd.s32 18, %v17209_v13  ;;  %vm4896_vm13 = vcmp.ne.s32.totalorder %v17228_v11, 0  ;;  %v20785_v57 = vld [vmem:[#allocation40_spill] sm:$0xff]  ;;  %vm17279_vm10 = vmand %vm4927_vm6, %vm4891_vm5 }
 0x204   : > { %v17245_v60 = vpop.f32.mrf.mxu0  ;;  %2969 = vst [vmem:[#allocation2 + $0xc0] sm:$0xff] %v2933_v36  ;;  %v2936_v46 = vadd.f32 %v2864_v63, %v20783_v5  ;;  %v2862_v27 = vadd.f32 %v2793_v50, %v16758_v21  ;;  %v5034_v21 = vsel %vm17240_vm3, %v4998_v32, %v17153_v40  ;;  %vm4932_vm2 = vcmp.lt.s32.totalorder %v17228_v11, 0  ;;  %v20786_v63 = vld [vmem:[#allocation55_spill] sm:$0xff] }
 0x205   : > { %20782 = vst [vmem:[#allocation20_spill] sm:$0xff] %v17245_v60  ;;  %v13524_v58 = vpop.f32.mrf.mxu1  ;;  %vm4897_vm15 = vcmp.ne.s32.totalorder %v17250_v52, 0  ;;  %v4755_v40 = vshrl.u32 %v17218_v33, 4  ;;  %vm4933_vm0 = vcmp.lt.s32.totalorder %v17250_v52, 0  ;;  %v17289_v5 = vsub.s32 %v17144_v12, %v4745_v24  ;;  %vm17323_vm4 = vmand %vm4932_vm2, %vm4896_vm13 }
 0x206   : > { %v17262_v60 = vpop.f32.mrf.mxu0  ;;  %2972 = vst [vmem:[#allocation2 + $0xd8] sm:$0xff] %v2936_v46  ;;  %v2934_v36 = vadd.f32 %v2862_v27, %v20785_v57  ;;  %v2867_v55 = vadd.f32 %v13524_v58, %v20786_v63  ;;  %v17292_v46 = vmul.u32.u64.low 3817748708, %v17253_v30  ;;  %v17293_v27 = vmul.u32.u64.high 3817748708, %v17253_v30, %v17292_v46  ;;  %v20790_v58 = vld [vmem:[#allocation41_spill] sm:$0xff]  ;;  %v20791_v63 = vld [vmem:[#allocation56_spill] sm:$0xff]  ;;  %vm17338_vm9 = vmand %vm4933_vm0, %vm4897_vm15 }
 0x207   : > { %20784 = vst [vmem:[#allocation31_spill] sm:$0xff] %v17262_v60  ;;  %v2806_v32 = vpop.f32.mrf.mxu1  ;;  %v17303_v33 = vsel %vm5180_vm8, 65537, %v20630_v22  ;;  %v5004_v12 = vadd.s32 18, %v17228_v11  ;;  %v5035_v47 = vsel %vm17279_vm10, %v4999_v20, %v17209_v13  ;;  %v4756_v46 = vmul.u32 18, %v4755_v40 }
 0x208   : > { %v17285_v42 = vpop.f32.mrf.mxu0  ;;  %2970 = vst [vmem:[#allocation2 + $0xc8] sm:$0xff] %v2934_v36  ;;  %v2939_v57 = vadd.f32 %v2867_v55, %v20790_v58  ;;  %v2865_v62 = vadd.f32 %v2806_v32, %v20791_v63  ;;  %v17314_v36 = vsel %vm5181_vm14, 65537, %v20630_v22  ;;  %v5005_v32 = vadd.s32 18, %v17250_v52  ;;  %v20796_v63 = vld [vmem:[#allocation57_spill] sm:$0xff] }
 0x209   : > { %20789 = vst [vmem:[#allocation32_spill] sm:$0xff] %v17285_v42  ;;  %v13525_v24 = vpop.f32.mrf.mxu1  ;;  %vm17330_vm1 = vcmp.lt.s32.totalorder %v5034_v21, 16  ;;  %v17343_v20 = vadd.s32 248, %v16065_v39  ;;  %vm4894_vm11 = vcmp.ne.s32.totalorder %v17289_v5, 0  ;;  %vm4930_vm12 = vcmp.lt.s32.totalorder %v17289_v5, 0 }
 0x20a   : > { %v17306_v42 = vpop.f32.mrf.mxu0  ;;  %2975 = vst [vmem:[#allocation2 + $0xf0] sm:$0xff] %v2939_v57  ;;  %v2937_v58 = vadd.f32 %v2865_v62, %v20795_v49  ;;  %v17348_v62 = vsub.s32 %v17182_v17, %v4756_v46  ;;  %v4810_v21 = vshrl.u32 %v17293_v27, 4  ;;  %v20802_v57 = vld [vmem:[#allocation13_spill] sm:$0xff]  ;;  %vm17355_vm7 = vcmp.lt.s32.totalorder %v5035_v47, 16  ;;  %vm5178_vm3 = vmpackc.low %vm17330_vm1, %vm17330_vm1  ;;  %v20806_v27 = vld [vmem:[#allocation14_spill] sm:$0xff] }
 0x20b   : > { %20792 = vst [vmem:[#allocation45_spill] sm:$0xff] %v17306_v42  ;;  %v2868_v42 = vadd.f32 %v13525_v24, %v20796_v63  ;;  %v2809_v50 = vpop.f32.mrf.mxu1  ;;  %v5040_v17 = vsel %vm17323_vm4, %v5004_v12, %v17228_v11  ;;  %vm17379_vm8 = vmand %vm4930_vm12, %vm4894_vm11 }
 0x20c   : > { %v17345_v40 = vpop.f32.mrf.mxu0  ;;  %2973 = vst [vmem:[#allocation2 + $0xe0] sm:$0xff] %v2937_v58  ;;  %v2866_v49 = vadd.f32 %v2809_v50, %v16762_v26  ;;  %vm4895_vm5 = vcmp.ne.s32.totalorder %v17348_v62, 0  ;;  %vm4931_vm6 = vcmp.lt.s32.totalorder %v17348_v62, 0  ;;  %v5002_v26 = vadd.s32 18, %v17289_v5  ;;  %vm5179_vm10 = vmpackc.low %vm17355_vm7, %vm17355_vm7 }
 0x20d   : > { %20801 = vst [vmem:[#allocation33_spill] sm:$0xff] %v17345_v40  ;;  %v2940_v24 = vadd.f32 %v2868_v42, %v20802_v57  ;;  %v13528_v46 = vpop.f32.mrf.mxu1  ;;  %v5041_v42 = vsel %vm17338_vm9, %v5005_v32, %v17250_v52  ;;  %v5003_v52 = vadd.s32 18, %v17348_v62  ;;  %v4811_v55 = vmul.u32 18, %v4810_v21  ;;  %vm17392_vm13 = vmand %vm4931_vm6, %vm4895_vm5  ;;  %v20814_v21 = vld [vmem:[#allocation16_spill] sm:$0xff] }
 0x20e   : > { %v17362_v40 = vpop.f32.mrf.mxu0  ;;  %v2938_v11 = vadd.f32 %v2866_v49, %v20806_v27  ;;  %v2871_v12 = vadd.f32 %v13528_v46, %v16454_v29  ;;  %vm17388_vm14 = vcmp.lt.s32.totalorder %v5040_v17, 16  ;;  %vm17402_vm2 = vcmp.lt.s32.totalorder %v5041_v42, 16 }
 0x20f   : > { %20805 = vst [vmem:[#allocation47_spill] sm:$0xff] %v17362_v40  ;;  %2976 = vst [vmem:[#allocation2 + $0xf8] sm:$0xff] %v2940_v24  ;;  %v2822_v32 = vpop.f32.mrf.mxu1  ;;  %v17397_v57 = vmul.u32.u64.low 3817748708, %v17343_v20  ;;  %v17398_v24 = vmul.u32.u64.high 3817748708, %v17343_v20, %v17397_v57  ;;  %v4812_v17 = vsub.s32 %v17253_v30, %v4811_v55  ;;  %v6031_v30 = vshll.u32 %v17126_v4, 16 }
 0x210   : > { %v17384_v58 = vpop.f32.mrf.mxu0  ;;  %2974 = vst [vmem:[#allocation2 + $0xe8] sm:$0xff] %v2938_v11  ;;  %v2943_v49 = vadd.f32 %v2871_v12, %v20814_v21  ;;  %v2869_v46 = vadd.f32 %v2822_v32, %v16478_v53  ;;  %v17416_v11 = vsel %vm5178_vm3, 65537, %v20630_v22  ;;  %v5038_v53 = vsel %vm17379_vm8, %v5002_v26, %v17289_v5  ;;  %v20817_v12 = vld [vmem:[#allocation17_spill] sm:$0xff]  ;;  %vm5184_vm15 = vmpackc.low %vm17388_vm14, %vm17388_vm14  ;;  %v20818_v21 = vld [vmem:[#allocation18_spill] sm:$0xff] }
 0x211   : > { %20809 = vst [vmem:[#allocation34_spill] sm:$0xff] %v17384_v58  ;;  %v13529_v13 = vpop.f32.mrf.mxu1  ;;  %v17423_v42 = vadd.s32 224, %v16065_v39  ;;  %v5039_v60 = vsel %vm17392_vm13, %v5003_v52, %v17348_v62  ;;  %vm4900_vm0 = vcmp.ne.s32.totalorder %v4812_v17, 0  ;;  %vm5185_vm4 = vmpackc.low %vm17402_vm2, %vm17402_vm2  ;;  %v4821_v47 = vshrl.u32 %v17398_v24, 4  ;;  %v20840_v52 = vld [vmem:[#allocation58_spill] sm:$0xff] }
 0x212   : > { %v13652_v58 = vpop.f32.mrf.mxu0  ;;  %2979 = vst [vmem:[#allocation2 + $0x110] sm:$0xff] %v2943_v49  ;;  %v2941_v55 = vadd.f32 %v2869_v46, %v20817_v12  ;;  %v2872_v32 = vadd.f32 %v13529_v13, %v16509_v45  ;;  %vm4936_vm1 = vcmp.lt.s32.totalorder %v4812_v17, 0  ;;  %v5008_v57 = vadd.s32 18, %v4812_v17  ;;  %v14504_v13 = vld [vmem:[#allocation4 + $0xb8] sm:$0xff]  }
 0x213   : > { %v2825_v5 = vpop.f32.mrf.mxu1  ;;  %v17438_v45 = vadd.s32 232, %v16065_v39  ;;  %vm17442_vm9 = vmand %vm4936_vm1, %vm4900_vm0  ;;  %v17447_v29 = vmul.u32.u64.low 3817748708, %v17423_v42  ;;  %v17448_v46 = vmul.u32.u64.high 3817748708, %v17423_v42, %v17447_v29  ;;  %vm17466_vm11 = vcmp.lt.s32.totalorder %v5038_v53, 16  ;;  %13790 = vmatprep.subr.bf16.mxu1 %v14504_v13 }
 0x214   : > { %v3999_v26 = vpop.f32.mrf.mxu0  ;;  %2977 = vst [vmem:[#allocation2 + $0x100] sm:$0xff] %v2941_v55  ;;  %v2944_v49 = vadd.f32 %v2872_v32, %v20818_v21  ;;  %v2870_v62 = vadd.f32 %v2825_v5, %v16802_v59  ;;  %v17456_v55 = vsel %vm5179_vm10, 65537, %v20630_v22  ;;  %v17464_v59 = vsel %vm5184_vm15, 65537, %v20630_v22  ;;  %v20823_v21 = vld [vmem:[#allocation46_spill] sm:$0xff]  ;;  %vm5182_vm7 = vmpackc.low %vm17466_vm11, %vm17466_vm11 }
 0x215   : > { %v13600_v24 = vpop.f32.mrf.mxu1  ;;  %v4822_v5 = vmul.u32 18, %v4821_v47  ;;  %vm17472_vm12 = vcmp.lt.s32.totalorder %v5039_v60, 16  ;;  %v5044_v50 = vsel %vm17442_vm9, %v5008_v57, %v4812_v17  ;;  %v17484_v53 = vsel %vm5185_vm4, 65537, %v20630_v22 }
 0x216   : > { %v13653_v12 = vpop.f32.mrf.mxu0  ;;  %2980 = vst [vmem:[#allocation2 + $0x118] sm:$0xff] %v2944_v49  ;;  %v2942_v63 = vadd.f32 %v2870_v62, %v20823_v21  ;;  %v3707_v29 = vadd.f32 %v13600_v24, %v16500_v6  ;;  %20826 = vst [vmem:[#allocation49_spill] sm:$0xff] %v17484_v53  ;;  %v17488_v6 = vmul.u32.u64.low 3817748708, %v17438_v45  ;;  %v17489_v60 = vmul.u32.u64.high 3817748708, %v17438_v45, %v17488_v6 }
 0x217   : > { %v3698_v51 = vpop.f32.mrf.mxu1  ;;  %v4823_v47 = vsub.s32 %v17343_v20, %v4822_v5  ;;  %v6029_v57 = vshrl.u32 %v17126_v4, 16  ;;  %v4788_v27 = vshrl.u32 %v17448_v46, 4  ;;  %vm5183_vm3 = vmpackc.low %vm17472_vm12, %vm17472_vm12  ;;  %vm17500_vm8 = vcmp.lt.s32.totalorder %v5044_v50, 16 }
 0x218   : > { %v4002_v61 = vpop.f32.mrf.mxu0  ;;  %2978 = vst [vmem:[#allocation2 + $0x108] sm:$0xff] %v2942_v63  ;;  %v4144_v13 = vadd.f32 %v13652_v58, %v3707_v29  ;;  %v3699_v17 = vadd.f32 %v3698_v51, %v16529_v19  ;;  %v6033_v46 = vrot.slane %v6031_v30, 1  ;;  %v4799_v50 = vshrl.u32 %v17489_v60, 4  ;;  %v20834_v30 = vld [vmem:[#allocation60_spill] sm:$0xff]  ;;  %vm5188_vm2 = vmpackc.low %vm17500_vm8, %vm17500_vm8 }
 0x219   : > { %v13601_v49 = vpop.f32.mrf.mxu1  ;;  %vm4901_vm5 = vcmp.ne.s32.totalorder %v4823_v47, 0  ;;  %vm4937_vm6 = vcmp.lt.s32.totalorder %v4823_v47, 0  ;;  %v5009_v20 = vadd.s32 18, %v4823_v47  ;;  %v4789_v29 = vmul.u32 18, %v4788_v27 }
 0x21a   : > { %v13656_v62 = vpop.f32.mrf.mxu0  ;;  %v4216_v19 = vadd.f32 %v4144_v13, %v16587_v7  ;;  %v4142_v51 = vadd.f32 %v3999_v26, %v3699_v17  ;;  %v3710_v4 = vadd.f32 %v13601_v49, %v16551_v44  ;;  %vm17506_vm14 = vmand %vm4937_vm6, %vm4901_vm5  ;;  %v20831_v44 = vcombine.low %v16260_v54, %v16362_v35  ;;  %v17545_v35 = vld [vmem:[%s20479_s2] ss:$0 sm:$0xff]  ;;  %v20839_v49 = vld [vmem:[#allocation64_spill] sm:$0xff] }
 0x21b   : > { %v3701_v24 = vpop.f32.mrf.mxu1  ;;  %v5045_v63 = vsel %vm17506_vm14, %v5009_v20, %v4823_v47  ;;  %v17529_v47 = vsel %vm5182_vm7, 65537, %v20630_v22  ;;  %v17537_v54 = vsel %vm5183_vm3, 65537, %v20630_v22  ;;  %v17555_v27 = vadd.s32 272, %v16065_v39 }
 0x21c   : > { %v4015_v5 = vpop.f32.mrf.mxu0  ;;  %v4145_v7 = vadd.f32 %v13653_v12, %v3710_v4  ;;  %vm17518_vm13 = vcmp.ne.s16.totalorder %v20831_v44, 0  ;;  %v3702_v6 = vadd.f32 %v3701_v24, %v20834_v30  ;;  %v20835_v12 = vld [vmem:[#allocation62_spill] sm:$0xff]  ;;  %vm17550_vm10 = vcmp.lt.s32.totalorder %v5045_v63, 16  ;;  %v20841_v24 = vld [vmem:[#allocation59_spill] sm:$0xff]  ;;  %v20845_v30 = vld [vmem:[#allocation61_spill] sm:$0xff] }
 0x21d   : > { %v4214_v32 = vadd.f32 %v4142_v51, %v20835_v12  ;;  %v13604_v60 = vpop.f32.mrf.mxu1  ;;  %20838 = vst [vmem:[#allocation35_spill] sm:$0xff] %v17555_v27  ;;  %v20842_v44 = vcombine.low %v20840_v52, %v20841_v24  ;;  %v17566_v17 = vor.u32 %v6033_v46, %v6029_v57  ;;  %vm5189_vm0 = vmpackc.low %vm17550_vm10, %vm17550_vm10  ;;  %v17582_v57 = vsub.s32 %v17423_v42, %v4789_v29 }
 0x21e   : > { %v13657_v13 = vpop.f32.mrf.mxu0  ;;  %v4217_v20 = vadd.f32 %v4145_v7, %v20839_v49  ;;  %v4143_v4 = vadd.f32 %v4002_v61, %v3702_v6  ;;  %v3723_v12 = vadd.f32 %v13604_v60, %v20845_v30  ;;  %v17579_v61 = vsel %vm5188_vm2, 65537, %v20630_v22  ;;  %v20848_v49 = vld [vmem:[#allocation63_spill] sm:$0xff] }
 0x21f   : > { %vm17561_vm15 = vcmp.ne.s16.totalorder %v20842_v44, 0  ;;  %20846 = vst [vmem:[#allocation36_spill] sm:$0xff] %v17566_v17  ;;  %v3714_v63 = vpop.f32.mrf.mxu1  ;;  %20847 = vst [vmem:[#allocation52_spill] sm:$0xff] %v17582_v57  ;;  %v4800_v46 = vmul.u32 18, %v4799_v50  ;;  %v4331_v7 = vadd.f32 %v17545_v35, %v4216_v19  ;;  %v4329_v24 = vadd.f32 %v17545_v35, %v4214_v32 }
 0x220   : > { %v4018_v21 = vpop.f32.mrf.mxu0  ;;  %v4332_v6 = vadd.f32 %v17545_v35, %v4217_v20  ;;  %v4215_v60 = vadd.f32 %v4143_v4, %v17031_v14  ;;  %v3715_v52 = vadd.f32 %v3714_v63, %v20848_v49  ;;  %v4148_v44 = vadd.f32 %v13656_v62, %v3723_v12 }
 0x221   : > { %v13605_v30 = vpop.f32.mrf.mxu1  ;;  %v17590_v53 = vmul.u32.u64.low 3817748708, %v17555_v27  ;;  %v17591_v17 = vmul.u32.u64.high 3817748708, %v17555_v27, %v17590_v53  ;;  %v17602_v14 = vsel %vm5189_vm0, 65537, %v20630_v22  ;;  %v17607_v32 = vsub.s32 %v17438_v45, %v4800_v46 }
 0x222   : > { %v13660_v58 = vpop.f32.mrf.mxu0  ;;  %v4366_v42 = vpack.c.bf16 %v4332_v6, %v4331_v7  ;;  %v4330_v29 = vadd.f32 %v17545_v35, %v4215_v60  ;;  %v3726_v19 = vadd.f32 %v13605_v30, %v16670_v48  ;;  %vm4898_vm4 = vcmp.ne.s32.totalorder %v17582_v57, 0 }
 0x223   : > { %20849 = vst [vmem:[#allocation37_spill] sm:$0xff] %v17591_v17  ;;  %v3717_v62 = vpop.f32.mrf.mxu1  ;;  %20850 = vst [vmem:[#allocation53_spill] sm:$0xff] %v17607_v32  ;;  %vm4934_vm1 = vcmp.lt.s32.totalorder %v17582_v57, 0  ;;  %v17612_v48 = vadd.s32 280, %v16065_v39  ;;  %v4146_v40 = vadd.f32 %v4015_v5, %v3715_v52  ;;  %vm5809_vm11 = vcmask 1043457  }
 0x224   : > { %v17604_v50 = vpop.f32.mrf.mxu0  ;;  %vm4384_vm9 = vcmp.ge.bf16.partialorder %v4366_v42, 0  ;;  %v4402_v53 = vmul.bf16 1009007652, %v4366_v42  ;;  %v4365_v20 = vpack.c.bf16 %v4330_v29, %v4329_v24  ;;  %vm5810_vm12 = vsmask.f32 7942  ;;  %vm17640_vm6 = vmand %vm4934_vm1, %vm4898_vm4 }
 0x225   : > { %20851 = vst [vmem:[#allocation38_spill] sm:$0xff] %v17612_v48  ;;  %v4220_v4 = vadd.f32 %v4148_v44, %v16722_v15  ;;  %v3718_v12 = vadd.f32 %v3717_v62, %v16708_v41  ;;  %v4149_v63 = vadd.f32 %v13657_v13, %v3726_v19  ;;  %v13608_v45 = vpop.f32.mrf.mxu1  ;;  %v20852_v49 = vcombine.low %v16517_v0, %v16657_v16  ;;  %vm17683_vm2 = vmand %vm5809_vm11, %vm5810_vm12 }
 0x226   : > { %v17616_v46 = vpop.f32.mrf.mxu0  ;;  %v4420_v6 = vsel %vm4384_vm9, %v4366_v42, %v4402_v53  ;;  %vm4383_vm7 = vcmp.ge.bf16.partialorder %v4365_v20, 0  ;;  %v4401_v60 = vmul.bf16 1009007652, %v4365_v20  ;;  %v17628_v15 = vadd.s32 18, %v17582_v57 }
 0x227   : > { %vm17623_vm3 = vcmp.ne.s16.totalorder %v20852_v49, 0  ;;  %v5303_v41 = vsel %vm17518_vm13, %v4420_v6, 0  ;;  %v4221_v13 = vadd.f32 %v4149_v63, %v16776_v43  ;;  %v4147_v52 = vadd.f32 %v4018_v21, %v3718_v12  ;;  %v3730_v24 = vpop.f32.mrf.mxu1 }
 0x228   : > { %v17633_v44 = vpop.f32.mrf.mxu0  ;;  %vm4899_vm5 = vcmp.ne.s32.totalorder %v17607_v32, 0  ;;  %v12521_v16 = vcombine.low %v5303_v41, %v5303_v41  ;;  %v4419_v30 = vsel %vm4383_vm7, %v4365_v20, %v4401_v60  ;;  %v4218_v26 = vadd.f32 %v4146_v40, %v16746_v8 }
 0x229   : > { %v3739_v43 = vadd.f32 %v13608_v45, %v16732_v9  ;;  %v20857_v21 = vcombine.low %v16678_v10, %v16686_v31  ;;  %v5302_v29 = vsel %vm17561_vm15, %v4419_v30, 0  ;;  %v4335_v19 = vadd.f32 %v17545_v35, %v4220_v4  ;;  %v13609_v20 = vpop.f32.mrf.mxu1 }
 0x22a   : > { %v4336_v62 = vadd.f32 %v17545_v35, %v4221_v13  ;;  %v4219_v53 = vadd.f32 %v4147_v52, %v17034_v2  ;;  %v17658_v8 = vpop.f32.mrf.mxu0  ;;  %v17660_v9 = vcombine.high %v5303_v41, %v5303_v41  ;;  %vm4935_vm14 = vcmp.lt.s32.totalorder %v17607_v32, 0 }
 0x22b   : > { %vm17649_vm8 = vcmp.ne.s16.totalorder %v20857_v21, 0  ;;  %v17664_v10 = vadd.s32 18, %v17607_v32  ;;  %v12519_v51 = vcombine.low %v5302_v29, %v5302_v29  ;;  %v12520_v40 = vcombine.high %v5302_v29, %v5302_v29  ;;  %v3733_v12 = vpop.f32.mrf.mxu1  ;;  %vm17695_vm15 = vmand %vm4935_vm14, %vm4899_vm5 }
 0x22c   : > { %v4368_v4 = vpack.c.bf16 %v4336_v62, %v4335_v19  ;;  %v4334_v2 = vadd.f32 %v17545_v35, %v4219_v53  ;;  %v5433_v63 = vshrl.u32 %v12521_v16, 16  ;;  %v4333_v45 = vadd.f32 %v17545_v35, %v4218_v26  ;;  %v17675_v21 = vpop.f32.mrf.mxu0 }
 0x22d   : > { %20860 = vst [vmem:[#allocation54_spill] sm:$0xff] %v17664_v10  ;;  %v3731_v6 = vadd.f32 %v3730_v24, %v16766_v56  ;;  %v4152_v60 = vadd.f32 %v13660_v58, %v3739_v43  ;;  %v5436_v49 = vshll.u32 %v12521_v16, 16  ;;  %v5414_v41 = vshrl.u32 %v12519_v51, 16  ;;  %v17673_v30 = vpop.f32.mrf.mxu1  ;;  %v5812_v16 = vld [vmem:[#allocation3 + $0x8] sm:$0xe] }
 0x22e   : > { %v5417_v13 = vshll.u32 %v12519_v51, 16  ;;  %v5423_v52 = vshrl.u32 %v12520_v40, 16  ;;  %v5426_v31 = vshll.u32 %v12520_v40, 16  ;;  %vm4386_vm13 = vcmp.ge.bf16.partialorder %v4368_v4, 0 }
 0x22f   : > { %v4404_v29 = vmul.bf16 1009007652, %v4368_v4  ;;  %v4367_v19 = vpack.c.bf16 %v4334_v2, %v4333_v45  ;;  %v5443_v62 = vshrl.u32 %v17660_v9, 16  ;;  %v5446_v53 = vshll.u32 %v17660_v9, 16  ;;  %v17679_v56 = vpop.f32.mrf.mxu1 }
 0x230   : > { %v5416_v26 = vrot.slane %v5414_v41, 6  ;;  %v5419_v7 = vrot.slane %v5417_v13, 7  ;;  %v5435_v58 = vrot.slane %v5433_v63, 6  ;;  %v20861_v24 = vmov 0  ;;  %v13665_v13 = vpop.f32.mrf.mxu0 }
 0x231   : > { %v20862_v24 = vsel %vm17683_vm2, 4294967295, %v20861_v24  ;;  %v4422_v43 = vsel %vm4386_vm13, %v4368_v4, %v4404_v29  ;;  %vm4385_vm10 = vcmp.ge.bf16.partialorder %v4367_v19, 0  ;;  %v4403_v51 = vmul.bf16 1009007652, %v4367_v19  ;;  %v13613_v41 = vpop.f32.mrf.mxu1 }
 0x232   : > { %20863 = vst [vmem:[#allocation39_spill] sm:$0xff] %v20862_v24  ;;  %v5438_v40 = vrot.slane %v5436_v49, 7  ;;  %v17687_v2 = vor.u32 %v5419_v7, %v5416_v26  ;;  %v5425_v45 = vrot.slane %v5423_v52, 6  ;;  %v5305_v9 = vsel %vm17623_vm3, %v4422_v43, 0  ;;  %v20866_v49 = vld [vmem:[#allocation67_spill] sm:$0xff] }
 0x233   : > { %v5428_v63 = vrot.slane %v5426_v31, 7  ;;  %v12525_v39 = vcombine.low %v5305_v9, %v5305_v9  ;;  %v12526_v27 = vcombine.high %v5305_v9, %v5305_v9  ;;  %v4421_v48 = vsel %vm4385_vm10, %v4367_v19, %v4403_v51  ;;  %v3749_v29 = vpop.f32.mrf.mxu1 }
 0x234   : > { %v5813_v7 = vsel %vm17683_vm2, %v17687_v2, %v5812_v16  ;;  %v5304_v5 = vsel %vm17649_vm8, %v4421_v48, 0  ;;  %v4224_v31 = vadd.f32 %v4152_v60, %v16840_v1  ;;  %v3742_v52 = vadd.f32 %v13609_v20, %v20866_v49  ;;  %v4050_v16 = vpop.f32.mrf.mxu0  ;;  %v17720_v60 = vld [vmem:[#allocation4 + $0x138] sm:$0xff]  }
 0x235   : > { %5814 = vst [vmem:[#allocation3 + $0x8] sm:$0xe] %v5813_v7  ;;  %v5473_v19 = vshrl.u32 %v12525_v39, 16  ;;  %v5476_v26 = vshll.u32 %v12525_v39, 16  ;;  %v5483_v43 = vshrl.u32 %v12526_v27, 16  ;;  %v5486_v51 = vshll.u32 %v12526_v27, 16  ;;  %v17707_v57 = vpop.f32.mrf.mxu1  ;;  %13842 = vmatprep.subr.bf16.mxu0 %v17720_v60 }
 0x236   : > { %v12523_v9 = vcombine.low %v5304_v5, %v5304_v5  ;;  %v12524_v17 = vcombine.high %v5304_v5, %v5304_v5  ;;  %v4150_v22 = vadd.f32 %v17604_v50, %v3731_v6  ;;  %v17713_v48 = vor.u32 %v5438_v40, %v5435_v58  ;;  %v20867_v39 = vld [vmem:[#allocation68_spill] sm:$0xff]  ;;  %v20869_v40 = vld [vmem:[#allocation66_spill] sm:$0xff] }
 0x237   : > { %v17715_v42 = vrot.slane %v5443_v62, 6  ;;  %v17717_v20 = vrot.slane %v5446_v53, 7  ;;  %v3734_v27 = vadd.f32 %v3733_v12, %v20867_v39  ;;  %v5475_v7 = vrot.slane %v5473_v19, 6  ;;  %v20868_v62 = vld [vmem:[#allocation65_spill] sm:$0xff]  ;;  %v17734_v12 = vpop.f32.mrf.mxu1 }
 0x238   : > { %v5478_v50 = vrot.slane %v5476_v26, 7  ;;  %v5485_v6 = vrot.slane %v5483_v43, 6  ;;  %v5488_v5 = vrot.slane %v5486_v51, 7  ;;  %v17723_v24 = vor.u32 %v5428_v63, %v5425_v45  ;;  %v20873_v45 = vld [vmem:[#allocation70_spill] sm:$0xff]  ;;  %v17738_v51 = vpop.f32.mrf.mxu0  ;;  %v20875_v39 = vld [vmem:[#allocation69_spill] sm:$0xff] }
 0x239   : > { %v4339_v1 = vadd.f32 %v17545_v35, %v4224_v31  ;;  %v4153_v58 = vadd.f32 %v17616_v46, %v3742_v52  ;;  %v20870_v53 = vcombine.low %v20868_v62, %v20869_v40  ;;  %v5453_v19 = vshrl.u32 %v12523_v9, 16  ;;  %v20874_v46 = vld [vmem:[#allocation23_spill] sm:$0xff] }
 0x23a   : > { %v5456_v26 = vshll.u32 %v12523_v9, 16  ;;  %v5463_v43 = vshrl.u32 %v12524_v17, 16  ;;  %v4222_v63 = vadd.f32 %v4150_v22, %v20873_v45  ;;  %v5466_v31 = vshll.u32 %v12524_v17, 16  ;;  %v4187_v45 = vld [vmem:[#allocation2 + $0x48] sm:$0xff]  ;;  %v20880_v17 = vld [vmem:[#allocation15_spill] sm:$0xff] }
 0x23b   : > { %vm17730_vm0 = vcmp.ne.s16.totalorder %v20870_v53, 0  ;;  %v4225_v52 = vadd.f32 %v4153_v58, %v20874_v46  ;;  %v3755_v62 = vadd.f32 %v17673_v30, %v20875_v39  ;;  %v4151_v40 = vadd.f32 %v17633_v44, %v3734_v27  ;;  %v20881_v46 = vld [vmem:[#allocation51_spill] sm:$0xff]  ;;  %v17761_v39 = vpop.f32.mrf.mxu1 }
 0x23c   : > { %v20876_v53 = vcombine.low %v16793_v23, %v16811_v34  ;;  %v17751_v9 = vor.u32 %v5478_v50, %v5475_v7  ;;  %v17753_v22 = vor.u32 %v5488_v5, %v5485_v6  ;;  %v3747_v58 = vadd.f32 %v17679_v56, %v20880_v17  ;;  %v20882_v23 = vld [vmem:[#allocation24_spill] sm:$0xff]  ;;  %v4192_v50 = vld [vmem:[#allocation2 + $0x70] sm:$0xff] }
 0x23d   : > { %v3758_v10 = vadd.f32 %v13613_v41, %v20881_v46  ;;  %v4340_v30 = vadd.f32 %v17545_v35, %v4225_v52  ;;  %v4223_v44 = vadd.f32 %v4187_v45, %v4151_v40  ;;  %v4156_v27 = vadd.f32 %v17658_v8, %v3755_v62  ;;  %v4190_v40 = vld [vmem:[#allocation2 + $0x60] sm:$0xff]  ;;  %v4193_v45 = vld [vmem:[#allocation2 + $0x78] sm:$0xff]  ;;  %v17779_v46 = vpop.f32.mrf.mxu1 }
 0x23e   : > { %vm17747_vm4 = vcmp.ne.s16.totalorder %v20876_v53, 0  ;;  %20879 = vst [vmem:[#allocation40_spill] sm:$0xff] %v17751_v9  ;;  %v3750_v34 = vadd.f32 %v3749_v29, %v20882_v23  ;;  %v5455_v53 = vrot.slane %v5453_v19, 6  ;;  %v4337_v7 = vadd.f32 %v17545_v35, %v4222_v63  ;;  %v17765_v9 = vpop.f32.mrf.mxu0 }
 0x23f   : > { %v4154_v6 = vadd.f32 %v17675_v21, %v3747_v58  ;;  %v4157_v5 = vadd.f32 %v13665_v13, %v3758_v10  ;;  %v4370_v56 = vpack.c.bf16 %v4340_v30, %v4339_v1  ;;  %v4338_v41 = vadd.f32 %v17545_v35, %v4223_v44  ;;  %v4191_v58 = vld [vmem:[#allocation2 + $0x68] sm:$0xff] }
 0x240   : > { %v4228_v52 = vadd.f32 %v4192_v50, %v4156_v27  ;;  %v4155_v8 = vadd.f32 %v4050_v16, %v3750_v34  ;;  %v5458_v62 = vrot.slane %v5456_v26, 7  ;;  %v17768_v29 = vrot.slane %v5463_v43, 6  ;;  %v20902_v16 = vld [vmem:[#allocation26_spill] sm:$0xff] }
 0x241   : > { %v4226_v17 = vadd.f32 %v4190_v40, %v4154_v6  ;;  %v4229_v19 = vadd.f32 %v4193_v45, %v4157_v5  ;;  %v20883_v63 = vcombine.low %v16824_v18, %v16849_v38  ;;  %v17777_v10 = vrot.slane %v5466_v31, 7  ;;  %v17784_v18 = vpop.f32.mrf.mxu0  ;;  %v20886_v31 = vld [vmem:[#allocation10_spill] sm:$0xff]  ;;  %v20890_v40 = vld [vmem:[#allocation48_spill] sm:$0xff]  ;;  %v17801_v45 = vpop.f32.mrf.mxu1 }
 0x242   : > { %vm4388_vm9 = vcmp.ge.bf16.partialorder %v4370_v56, 0  ;;  %v4406_v13 = vmul.bf16 1009007652, %v4370_v56  ;;  %v4369_v1 = vpack.c.bf16 %v4338_v41, %v4337_v7  ;;  %v4343_v26 = vadd.f32 %v17545_v35, %v4228_v52 }
 0x243   : > { %vm17773_vm1 = vcmp.ne.s16.totalorder %v20883_v63, 0  ;;  %v4344_v43 = vadd.f32 %v17545_v35, %v4229_v19  ;;  %v4227_v30 = vadd.f32 %v4191_v58, %v4155_v8  ;;  %v3771_v27 = vadd.f32 %v17707_v57, %v20886_v31  ;;  %v17805_v8 = vpop.f32.mrf.mxu0  ;;  %v17810_v49 = vpop.f32.mrf.mxu1 }
 0x244   : > { %v4424_v38 = vsel %vm4388_vm9, %v4370_v56, %v4406_v13  ;;  %vm4387_vm11 = vcmp.ge.bf16.partialorder %v4369_v1, 0  ;;  %v4405_v44 = vmul.bf16 1009007652, %v4369_v1  ;;  %v20887_v23 = vcombine.low %v17044_v25, %v17066_v28 }
 0x245   : > { %v5307_v7 = vsel %vm17730_vm0, %v4424_v38, 0  ;;  %v4341_v50 = vadd.f32 %v17545_v35, %v4226_v17  ;;  %v4372_v6 = vpack.c.bf16 %v4344_v43, %v4343_v26  ;;  %v4342_v5 = vadd.f32 %v17545_v35, %v4227_v30 }
 0x246   : > { %vm17791_vm12 = vcmp.ne.s16.totalorder %v20887_v23, 0  ;;  %v12529_v56 = vcombine.low %v5307_v7, %v5307_v7  ;;  %v12530_v41 = vcombine.high %v5307_v7, %v5307_v7  ;;  %v4423_v52 = vsel %vm4387_vm11, %v4369_v1, %v4405_v44 }
 0x247   : > { %v3763_v57 = vadd.f32 %v17734_v12, %v20890_v40  ;;  %v5306_v25 = vsel %vm17747_vm4, %v4423_v52, 0  ;;  %vm4390_vm7 = vcmp.ge.bf16.partialorder %v4372_v6, 0  ;;  %v4408_v28 = vmul.bf16 1009007652, %v4372_v6 }
 0x248   : > { %v4371_v32 = vpack.c.bf16 %v4342_v5, %v4341_v50  ;;  %v5513_v17 = vshrl.u32 %v12529_v56, 16  ;;  %v5523_v19 = vshrl.u32 %v12530_v41, 16  ;;  %v5526_v63 = vshll.u32 %v12530_v41, 16  ;;  %v4196_v50 = vld [vmem:[#allocation2 + $0x90] sm:$0xff]  ;;  %v13672_v5 = vpop.f32.mrf.mxu0 }
 0x249   : > { %v4160_v13 = vadd.f32 %v17738_v51, %v3771_v27  ;;  %v5516_v58 = vshll.u32 %v12529_v56, 16  ;;  %v12527_v1 = vcombine.low %v5306_v25, %v5306_v25  ;;  %v12528_v26 = vcombine.high %v5306_v25, %v5306_v25 }
 0x24a   : > { %v4426_v43 = vsel %vm4390_vm7, %v4372_v6, %v4408_v28  ;;  %v17808_v12 = vor.u32 %v5458_v62, %v5455_v53  ;;  %v5525_v30 = vrot.slane %v5523_v19, 6  ;;  %v5528_v38 = vrot.slane %v5526_v63, 7  ;;  %v13621_v63 = vpop.f32.mrf.mxu1 }
 0x24b   : > { %vm4389_vm3 = vcmp.ge.bf16.partialorder %v4371_v32, 0  ;;  %v5493_v44 = vshrl.u32 %v12527_v1, 16  ;;  %v5496_v31 = vshll.u32 %v12527_v1, 16  ;;  %v5503_v23 = vshrl.u32 %v12528_v26, 16 }
 0x24c   : > { %v5506_v7 = vshll.u32 %v12528_v26, 16  ;;  %v5309_v51 = vsel %vm17773_vm1, %v4426_v43, 0  ;;  %v4407_v27 = vmul.bf16 1009007652, %v4371_v32  ;;  %v4232_v56 = vadd.f32 %v4196_v50, %v4160_v13  ;;  %v4194_v43 = vld [vmem:[#allocation2 + $0x80] sm:$0xff] }
 0x24d   : > { %v4158_v6 = vadd.f32 %v17765_v9, %v3763_v57  ;;  %v5515_v53 = vrot.slane %v5513_v17, 6  ;;  %v5518_v62 = vrot.slane %v5516_v58, 7  ;;  %v5495_v41 = vrot.slane %v5493_v44, 6  ;;  %v4079_v9 = vpop.f32.mrf.mxu0  ;;  %v20893_v58 = vld [vmem:[#allocation25_spill] sm:$0xff] }
 0x24e   : > { %v5498_v52 = vrot.slane %v5496_v31, 7  ;;  %v17815_v40 = vor.u32 %v5528_v38, %v5525_v30  ;;  %v12533_v25 = vcombine.low %v5309_v51, %v5309_v51  ;;  %v12534_v28 = vcombine.high %v5309_v51, %v5309_v51 }
 0x24f   : > { %v4425_v19 = vsel %vm4389_vm3, %v4371_v32, %v4407_v27  ;;  %v5505_v26 = vrot.slane %v5503_v23, 6  ;;  %v5508_v21 = vrot.slane %v5506_v7, 7  ;;  %v17824_v57 = vor.u32 %v17777_v10, %v17768_v29  ;;  %v3781_v27 = vpop.f32.mrf.mxu1  ;;  %v4197_v29 = vld [vmem:[#allocation2 + $0x98] sm:$0xff] }
 0x250   : > { %20891 = vst [vmem:[#allocation55_spill] sm:$0xff] %v17815_v40  ;;  %v17818_v1 = vor.u32 %v5498_v52, %v5495_v41  ;;  %v5308_v13 = vsel %vm17791_vm12, %v4425_v19, 0  ;;  %v5553_v17 = vshrl.u32 %v12533_v25, 16  ;;  %v3774_v30 = vadd.f32 %v17761_v39, %v20893_v58  ;;  %v20897_v19 = vld [vmem:[#allocation27_spill] sm:$0xff] }
 0x251   : > { %v4230_v38 = vadd.f32 %v4194_v43, %v4158_v6  ;;  %v5556_v32 = vshll.u32 %v12533_v25, 16  ;;  %v5563_v44 = vshrl.u32 %v12534_v28, 16  ;;  %v5566_v31 = vshll.u32 %v12534_v28, 16  ;;  %v13673_v6 = vpop.f32.mrf.mxu0  ;;  %v20896_v28 = vld [vmem:[#allocation11_spill] sm:$0xff] }
 0x252   : > { %20892 = vst [vmem:[#allocation41_spill] sm:$0xff] %v17818_v1  ;;  %v12531_v50 = vcombine.low %v5308_v13, %v5308_v13  ;;  %v17829_v7 = vor.u32 %v5518_v62, %v5515_v53  ;;  %v12532_v34 = vcombine.high %v5308_v13, %v5308_v13  ;;  %v4347_v51 = vadd.f32 %v17545_v35, %v4232_v56  ;;  %v20898_v56 = vld [vmem:[#allocation50_spill] sm:$0xff] }
 0x253   : > { %v17834_v41 = vor.u32 %v5508_v21, %v5505_v26  ;;  %v17836_v52 = vrot.slane %v5553_v17, 6  ;;  %v4345_v25 = vadd.f32 %v17545_v35, %v4230_v38  ;;  %v3766_v53 = vadd.f32 %v17779_v46, %v20896_v28 }
 0x254   : > { %20894 = vst [vmem:[#allocation56_spill] sm:$0xff] %v17829_v7  ;;  %v5533_v39 = vshrl.u32 %v12531_v50, 16  ;;  %v4161_v62 = vadd.f32 %v17784_v18, %v3774_v30  ;;  %v20899_v13 = vcombine.low %v20897_v19, %v20898_v56  ;;  %v17849_v26 = vrot.slane %v5556_v32, 7  ;;  %v13624_v32 = vpop.f32.mrf.mxu1  ;;  %v20909_v7 = vld [vmem:[#allocation29_spill] sm:$0xff] }
 0x255   : > { %20895 = vst [vmem:[#allocation42_spill] sm:$0xff] %v17834_v41  ;;  %v5565_v21 = vrot.slane %v5563_v44, 6  ;;  %v5568_v58 = vrot.slane %v5566_v31, 7  ;;  %v5536_v17 = vshll.u32 %v12531_v50, 16  ;;  %v5543_v10 = vshrl.u32 %v12532_v34, 16  ;;  %v4195_v31 = vld [vmem:[#allocation2 + $0x88] sm:$0xff] }
 0x256   : > { %vm17845_vm5 = vcmp.ne.s16.totalorder %v20899_v13, 0  ;;  %v4233_v38 = vadd.f32 %v4197_v29, %v4161_v62  ;;  %v3787_v46 = vadd.f32 %v17801_v45, %v20902_v16  ;;  %v4159_v18 = vadd.f32 %v17805_v8, %v3766_v53  ;;  %v20906_v50 = vld [vmem:[#allocation12_spill] sm:$0xff]  ;;  %v4082_v13 = vpop.f32.mrf.mxu0  ;;  %v20908_v53 = vld [vmem:[#allocation43_spill] sm:$0xff] }
 0x257   : > { %v20903_v30 = vcombine.low %v17179_v37, %v17201_v3  ;;  %v5535_v19 = vrot.slane %v5533_v39, 6  ;;  %v5546_v44 = vshll.u32 %v12532_v34, 16  ;;  %v3779_v56 = vadd.f32 %v17810_v49, %v20906_v50  ;;  %v20907_v29 = vld [vmem:[#allocation28_spill] sm:$0xff]  ;;  %v4198_v49 = vld [vmem:[#allocation2 + $0xa0] sm:$0xff] }
 0x258   : > { %v3790_v62 = vadd.f32 %v13621_v63, %v20907_v29  ;;  %v4348_v16 = vadd.f32 %v17545_v35, %v4233_v38  ;;  %v4231_v45 = vadd.f32 %v4195_v31, %v4159_v18  ;;  %v4164_v8 = vadd.f32 %v13672_v5, %v3787_v46  ;;  %v4201_v50 = vld [vmem:[#allocation2 + $0xb8] sm:$0xff]  ;;  %v4199_v18 = vld [vmem:[#allocation2 + $0xa8] sm:$0xff] }
 0x259   : > { %vm17857_vm8 = vcmp.ne.s16.totalorder %v20903_v30, 0  ;;  %v3782_v37 = vadd.f32 %v3781_v27, %v20908_v53  ;;  %v5538_v3 = vrot.slane %v5536_v17, 7  ;;  %v4200_v30 = vld [vmem:[#allocation2 + $0xb0] sm:$0xff]  ;;  %v4162_v23 = vadd.f32 %v4079_v9, %v3779_v56 }
 0x25a   : > { %v4165_v40 = vadd.f32 %v13673_v6, %v3790_v62  ;;  %v3803_v39 = vadd.f32 %v13624_v32, %v20909_v7  ;;  %v4374_v34 = vpack.c.bf16 %v4348_v16, %v4347_v51  ;;  %v4346_v41 = vadd.f32 %v17545_v35, %v4231_v45  ;;  %v13676_v7 = vpop.f32.mrf.mxu0  ;;  %v20916_v16 = vld [vmem:[#allocation44_spill] sm:$0xff] }
 0x25b   : > { %v4236_v1 = vadd.f32 %v4200_v30, %v4164_v8  ;;  %v4163_v63 = vadd.f32 %v4082_v13, %v3782_v37  ;;  %v17868_v29 = vor.u32 %v5568_v58, %v5565_v21  ;;  %v17870_v38 = vrot.slane %v5543_v10, 6  ;;  %v3794_v58 = vpop.f32.mrf.mxu1 }
 0x25c   : > { %v4234_v5 = vadd.f32 %v4198_v49, %v4162_v23  ;;  %v4237_v46 = vadd.f32 %v4201_v50, %v4165_v40  ;;  %v20910_v27 = vcombine.low %v17303_v33, %v17314_v36  ;;  %v17879_v51 = vrot.slane %v5546_v44, 7  ;;  %v4095_v8 = vpop.f32.mrf.mxu0 }
 0x25d   : > { %vm4392_vm13 = vcmp.ge.bf16.partialorder %v4374_v34, 0  ;;  %v4410_v6 = vmul.bf16 1009007652, %v4374_v34  ;;  %v4373_v17 = vpack.c.bf16 %v4346_v41, %v4345_v25  ;;  %v17881_v21 = vor.u32 %v5538_v3, %v5535_v19  ;;  %v13625_v37 = vpop.f32.mrf.mxu1 }
 0x25e   : > { %vm17875_vm14 = vcmp.ne.s16.totalorder %v20910_v27, 0  ;;  %v4351_v10 = vadd.f32 %v17545_v35, %v4236_v1  ;;  %v4352_v40 = vadd.f32 %v17545_v35, %v4237_v46  ;;  %v4235_v23 = vadd.f32 %v4199_v18, %v4163_v63  ;;  %v13677_v28 = vpop.f32.mrf.mxu0 }
 0x25f   : > { %v4428_v33 = vsel %vm4392_vm13, %v4374_v34, %v4410_v6  ;;  %vm4391_vm10 = vcmp.ge.bf16.partialorder %v4373_v17, 0  ;;  %v4409_v36 = vmul.bf16 1009007652, %v4373_v17  ;;  %v20913_v32 = vcombine.low %v17416_v11, %v17456_v55  ;;  %v4204_v34 = vld [vmem:[#allocation2 + $0xd0] sm:$0xff] }
 0x260   : > { %v4168_v41 = vadd.f32 %v13676_v7, %v3803_v39  ;;  %v5311_v25 = vsel %vm17845_vm5, %v4428_v33, 0  ;;  %v4349_v1 = vadd.f32 %v17545_v35, %v4234_v5  ;;  %v4376_v19 = vpack.c.bf16 %v4352_v40, %v4351_v10  ;;  %v3797_v40 = vpop.f32.mrf.mxu1 }
 0x261   : > { %vm17888_vm0 = vcmp.ne.s16.totalorder %v20913_v32, 0  ;;  %v4350_v31 = vadd.f32 %v17545_v35, %v4235_v23  ;;  %v12537_v56 = vcombine.low %v5311_v25, %v5311_v25  ;;  %v12538_v62 = vcombine.high %v5311_v25, %v5311_v25 }
 0x262   : > { %v4427_v13 = vsel %vm4391_vm10, %v4373_v17, %v4409_v36  ;;  %v3795_v45 = vadd.f32 %v3794_v58, %v20916_v16  ;;  %vm4394_vm4 = vcmp.ge.bf16.partialorder %v4376_v19, 0  ;;  %v4412_v55 = vmul.bf16 1009007652, %v4376_v19 }
 0x263   : > { %v5310_v11 = vsel %vm17857_vm8, %v4427_v13, 0  ;;  %v4375_v53 = vpack.c.bf16 %v4350_v31, %v4349_v1  ;;  %v5593_v43 = vshrl.u32 %v12537_v56, 16  ;;  %v5596_v3 = vshll.u32 %v12537_v56, 16  ;;  %v4098_v13 = vpop.f32.mrf.mxu0 }
 0x264   : > { %v5603_v30 = vshrl.u32 %v12538_v62, 16  ;;  %v5606_v39 = vshll.u32 %v12538_v62, 16  ;;  %v12535_v49 = vcombine.low %v5310_v11, %v5310_v11  ;;  %v12536_v50 = vcombine.high %v5310_v11, %v5310_v11  ;;  %v13628_v11 = vpop.f32.mrf.mxu1 }
 0x265   : > { %v4430_v63 = vsel %vm4394_vm4, %v4376_v19, %v4412_v55  ;;  %v4240_v5 = vadd.f32 %v4204_v34, %v4168_v41  ;;  %vm5850_vm1 = vcmask 1041408   ;;  %vm4393_vm9 = vcmp.ge.bf16.partialorder %v4375_v53, 0 }
 0x266   : > { %v5605_v46 = vrot.slane %v5603_v30, 6  ;;  %v5608_v27 = vrot.slane %v5606_v39, 7  ;;  %v4166_v7 = vadd.f32 %v4095_v8, %v3795_v45  ;;  %v5573_v6 = vshrl.u32 %v12535_v49, 16  ;;  %v4202_v39 = vld [vmem:[#allocation2 + $0xc0] sm:$0xff] }
 0x267   : > { %v5576_v17 = vshll.u32 %v12535_v49, 16  ;;  %v5583_v18 = vshrl.u32 %v12536_v50, 16  ;;  %v5586_v10 = vshll.u32 %v12536_v50, 16  ;;  %vm5410_vm11 = vsmask.f32 1280 }
 0x268   : > { %vm5411_vm12 = vsmask.f32 5392  ;;  %v5595_v23 = vrot.slane %v5593_v43, 6  ;;  %v5598_v58 = vrot.slane %v5596_v3, 7  ;;  %v5313_v33 = vsel %vm17875_vm14, %v4430_v63, 0  ;;  %v13680_v63 = vpop.f32.mrf.mxu0  ;;  %vm17939_vm3 = vmand %vm5850_vm1, %vm5410_vm11 }
 0x269   : > { %v4411_v36 = vmul.bf16 1009007652, %v4375_v53  ;;  %v17901_v32 = vor.u32 %v5608_v27, %v5605_v46  ;;  %v5575_v41 = vrot.slane %v5573_v6, 6  ;;  %v5578_v25 = vrot.slane %v5576_v17, 7  ;;  %v3810_v17 = vpop.f32.mrf.mxu1  ;;  %vm17955_vm8 = vmor %vm5410_vm11, %vm5411_vm12 }
 0x26a   : > { %v5585_v1 = vrot.slane %v5583_v18, 6  ;;  %v5588_v19 = vrot.slane %v5586_v10, 7  ;;  %v17903_v31 = vcombine.low %v5313_v33, %v5313_v33  ;;  %v12542_v56 = vcombine.high %v5313_v33, %v5313_v33  ;;  %v20918_v33 = vld [vmem:[#allocation22_spill] sm:$0xff] }
 0x26b   : > { %v4429_v62 = vsel %vm4393_vm9, %v4375_v53, %v4411_v36  ;;  %v17908_v16 = vor.u32 %v17849_v26, %v17836_v52  ;;  %v5571_v9 = vrot.slane %v17868_v29, 4  ;;  %v17913_v45 = vor.u32 %v17879_v51, %v17870_v38  ;;  %v20917_v53 = vld [vmem:[#allocation21_spill] sm:$0xff] }
 0x26c   : > { %v5312_v8 = vsel %vm17888_vm0, %v4429_v62, 0  ;;  %v5541_v55 = vrot.slane %v17881_v21, 4  ;;  %v5643_v43 = vshrl.u32 %v12542_v56, 16  ;;  %v5646_v3 = vshll.u32 %v12542_v56, 16  ;;  %v20925_v62 = vld [vmem:[#allocation30_spill] sm:$0xff] }
 0x26d   : > { %v3806_v30 = vadd.f32 %v13625_v37, %v20917_v53  ;;  %v17919_v34 = vor.u32 %v5578_v25, %v5575_v41  ;;  %v5633_v52 = vshrl.u32 %v17903_v31, 16  ;;  %v12539_v26 = vcombine.low %v5312_v8, %v5312_v8  ;;  %v5857_v25 = vld [vmem:[#allocation3 + $0x8] sm:$0x3]  ;;  %v14518_v53 = vld [vmem:[#allocation4 + $0x128] sm:$0xff]  }
 0x26e   : > { %v4238_v49 = vadd.f32 %v4202_v39, %v4166_v7  ;;  %v17922_v50 = vor.u32 %v5598_v58, %v5595_v23  ;;  %v5611_v38 = vrot.slane %v17901_v32, 4  ;;  %v17925_v51 = vor.u32 %v5588_v19, %v5585_v1  ;;  %v20919_v23 = vld [vmem:[#allocation49_spill] sm:$0xff]  ;;  %v4111_v39 = vpop.f32.mrf.mxu0 }
 0x26f   : > { %v4355_v44 = vadd.f32 %v17545_v35, %v4240_v5  ;;  %v5636_v46 = vshll.u32 %v17903_v31, 16  ;;  %v12540_v27 = vcombine.high %v5312_v8, %v5312_v8  ;;  %v5613_v37 = vshrl.u32 %v12539_v26, 16 }
 0x270   : > { %v5616_v6 = vshll.u32 %v12539_v26, 16  ;;  %v5645_v18 = vrot.slane %v5643_v43, 6  ;;  %v5648_v10 = vrot.slane %v5646_v3, 7  ;;  %v3798_v36 = vadd.f32 %v3797_v40, %v20918_v33  ;;  %v4205_v40 = vld [vmem:[#allocation2 + $0xd8] sm:$0xff] }
 0x271   : > { %v4169_v7 = vadd.f32 %v13677_v28, %v3806_v30  ;;  %v20920_v58 = vcombine.low %v17464_v59, %v20919_v23  ;;  %v5581_v1 = vrot.slane %v17919_v34, 4  ;;  %v5635_v19 = vrot.slane %v5633_v52, 6 }
 0x272   : > { %v5615_v31 = vrot.slane %v5613_v37, 6  ;;  %v4353_v28 = vadd.f32 %v17545_v35, %v4238_v49  ;;  %v5618_v56 = vrot.slane %v5616_v6, 7  ;;  %v3819_v8 = vadd.f32 %v13628_v11, %v20925_v62  ;;  %v4203_v49 = vld [vmem:[#allocation2 + $0xc8] sm:$0xff]  ;;  %v13629_v11 = vpop.f32.mrf.mxu1 }
 0x273   : > { %vm17933_vm7 = vcmp.ne.s16.totalorder %v20920_v58, 0  ;;  %v4241_v59 = vadd.f32 %v4205_v40, %v4169_v7  ;;  %v4167_v43 = vadd.f32 %v4098_v13, %v3798_v36  ;;  %v20926_v3 = vcombine.low %v17529_v47, %v17537_v54  ;;  %v4208_v40 = vld [vmem:[#allocation2 + $0xf0] sm:$0xff] }
 0x274   : > { %v5623_v52 = vshrl.u32 %v12540_v27, 16  ;;  %v5626_v26 = vshll.u32 %v12540_v27, 16  ;;  %v20931_v13 = vrot.slane %v17687_v2, 4  ;;  %v5858_v54 = vsel %vm17939_vm3, 0, %v5857_v25  ;;  %v20932_v27 = vld [vmem:[#allocation20_spill] sm:$0xff] }
 0x275   : > { %vm17949_vm5 = vcmp.ne.s16.totalorder %v20926_v3, 0  ;;  %v17966_v37 = vor.u32 %v5648_v10, %v5645_v18  ;;  %v4356_v6 = vadd.f32 %v17545_v35, %v4241_v59  ;;  %v4239_v33 = vadd.f32 %v4203_v49, %v4167_v43  ;;  %5859 = vst [vmem:[#allocation3 + $0x8] sm:$0x3] %v5858_v54  ;;  %v20933_v59 = vld [vmem:[#allocation31_spill] sm:$0xff]  ;;  %v13681_v43 = vpop.f32.mrf.mxu0  ;;  %v3813_v3 = vpop.f32.mrf.mxu1  ;;  %v4209_v54 = vld [vmem:[#allocation2 + $0xf8] sm:$0xff] }
 0x276   : > { %v5430_v47 = vsel %vm17955_vm8, %v20931_v13, %v17723_v24  ;;  %v4172_v36 = vadd.f32 %v13680_v63, %v3819_v8  ;;  %v3811_v7 = vadd.f32 %v3810_v17, %v20932_v27  ;;  %v5431_v23 = vrot.slane %v17723_v24, 4 }
 0x277   : > { %5815 = vst [vmem:[#allocation3 + $0xc] sm:$0xf] %v5430_v47  ;;  %v5441_v2 = vrot.slane %v17713_v48, 4  ;;  %v17974_v58 = vor.u32 %v17717_v20, %v17715_v42  ;;  %v17976_v25 = vor.u32 %v5618_v56, %v5615_v31  ;;  %v4378_v18 = vpack.c.bf16 %v4356_v6, %v4355_v44 }
 0x278   : > { %v4354_v10 = vadd.f32 %v17545_v35, %v4239_v33  ;;  %v3822_v62 = vadd.f32 %v13629_v11, %v20933_v59  ;;  %v5638_v63 = vrot.slane %v5636_v46, 7  ;;  %v4244_v8 = vadd.f32 %v4208_v40, %v4172_v36  ;;  %v14514_v11 = vld [vmem:[#allocation4 + $0x130] sm:$0xff]   ;;  %v4114_v40 = vpop.f32.mrf.mxu0 }
 0x279   : > { %v5440_v24 = vsel %vm17955_vm8, %v5431_v23, %v17713_v48  ;;  %v5450_v42 = vsel %vm17955_vm8, %v5441_v2, %v17974_v58  ;;  %v17986_v20 = vrot.slane %v5623_v52, 6  ;;  %vm4396_vm14 = vcmp.ge.bf16.partialorder %v4378_v18, 0  ;;  %v4206_v2 = vld [vmem:[#allocation2 + $0xe0] sm:$0xff] }
 0x27a   : > { %v4414_v44 = vmul.bf16 1009007652, %v4378_v18  ;;  %v4377_v17 = vpack.c.bf16 %v4354_v10, %v4353_v28  ;;  %5816 = vst [vmem:[#allocation3 + $0x10] sm:$0xf] %v5440_v24  ;;  %5817 = vst [vmem:[#allocation3 + $0x14] sm:$0xf] %v5450_v42  ;;  %v4170_v46 = vadd.f32 %v4111_v39, %v3811_v7  ;;  %v4173_v49 = vadd.f32 %v13681_v43, %v3822_v62 }
 0x27b   : > { %v5651_v31 = vrot.slane %v17966_v37, 4  ;;  %v17989_v56 = vrot.slane %v5626_v26, 7  ;;  %v5621_v48 = vrot.slane %v17976_v25, 4  ;;  %v20934_v52 = vcombine.low %v17579_v61, %v17602_v14  ;;  %v20937_v61 = vld [vmem:[#allocation32_spill] sm:$0xff] }
 0x27c   : > { %v4432_v13 = vsel %vm4396_vm14, %v4378_v18, %v4414_v44  ;;  %vm4395_vm13 = vcmp.ge.bf16.partialorder %v4377_v17, 0  ;;  %v4413_v47 = vmul.bf16 1009007652, %v4377_v17  ;;  %v17999_v6 = vor.u32 %v5638_v63, %v5635_v19  ;;  %v20938_v63 = vld [vmem:[#allocation52_spill] sm:$0xff] }
 0x27d   : > { %vm17995_vm10 = vcmp.ne.s16.totalorder %v20934_v52, 0  ;;  %v5315_v39 = vsel %vm17933_vm7, %v4432_v13, 0  ;;  %v4359_v33 = vadd.f32 %v17545_v35, %v4244_v8  ;;  %v4245_v36 = vadd.f32 %v4209_v54, %v4173_v49  ;;  %v13632_v49 = vpop.f32.mrf.mxu1  ;;  %v20943_v54 = vld [vmem:[#allocation53_spill] sm:$0xff] }
 0x27e   : > { %v18003_v26 = vld [vmem:[#allocation3 + $0x8] sm:$0xff]   ;;  %v12545_v27 = vcombine.low %v5315_v39, %v5315_v39  ;;  %v12546_v7 = vcombine.high %v5315_v39, %v5315_v39  ;;  %v4431_v23 = vsel %vm4395_vm13, %v4377_v17, %v4413_v47  ;;  %v3814_v14 = vadd.f32 %v3813_v3, %v20937_v61 }
 0x27f   : > { %v5314_v18 = vsel %vm17949_vm5, %v4431_v23, 0  ;;  %13755 = vmatmul.mubr.bf16.vlgmr.msra.gmra.mxu0 %v18003_v26  ;;  %v4242_v19 = vadd.f32 %v4206_v2, %v4170_v46  ;;  %v4360_v41 = vadd.f32 %v17545_v35, %v4245_v36  ;;  %v6036_v10 = vshll.u32 %v18003_v26, 16  ;;  %v20947_v23 = vld [vmem:[#allocation45_spill] sm:$0xff] }
 0x280   : > { %v5673_v59 = vshrl.u32 %v12545_v27, 16  ;;  %v5683_v62 = vshrl.u32 %v12546_v7, 16  ;;  %v5686_v43 = vshll.u32 %v12546_v7, 16  ;;  %v20939_v8 = vsel %vm17640_vm6, %v17628_v15, %v20938_v63  ;;  %13843 = vmatpush3.bf16.msra.mxu0 %v17720_v60  ;;  %v20942_v15 = vld [vmem:[#allocation54_spill] sm:$0xff] }
 0x281   : > { %vm18017_vm0 = vcmp.lt.s32.totalorder %v20939_v8, 16  ;;  %v5676_v42 = vshll.u32 %v12545_v27, 16  ;;  %v12543_v44 = vcombine.low %v5314_v18, %v5314_v18  ;;  %v12544_v17 = vcombine.high %v5314_v18, %v5314_v18  ;;  %v18022_v46 = vld [vmem:[#allocation3 + $0x10] sm:$0xff]   ;;  %13844 = vmatprep.subr.bf16.mxu0 %v14514_v11  ;;  %v3826_v8 = vpop.f32.mrf.mxu1 }
 0x282   : > { %v4380_v3 = vpack.c.bf16 %v4360_v41, %v4359_v33  ;;  %v5451_v0 = vrot.slane %v17974_v58, 4  ;;  %v6038_v13 = vrot.slane %v6036_v10, 1  ;;  %v4171_v47 = vadd.f32 %v4114_v40, %v3814_v14  ;;  %13758 = vmatprep.mubr.bf16.mxu0 %v18022_v46  ;;  %v20948_v40 = vld [vmem:[#allocation36_spill] sm:$0xff]  ;;  %v18432_v30 = vld [vmem:[#allocation3 + $0x10] sm:$0xff]  }
 0x283   : > { %v20944_v52 = vsel %vm17695_vm15, %v20942_v15, %v20943_v54  ;;  %v5685_v39 = vrot.slane %v5683_v62, 6  ;;  %v5688_v36 = vrot.slane %v5686_v43, 7  ;;  %v5653_v27 = vshrl.u32 %v12543_v44, 16  ;;  %vm5186_vm15 = vmpackc.low %vm18017_vm0, %vm18017_vm0 }
 0x284   : > { %vm18030_vm6 = vcmp.lt.s32.totalorder %v20944_v52, 16  ;;  %v5656_v7 = vshll.u32 %v12543_v44, 16  ;;  %v4357_v33 = vadd.f32 %v17545_v35, %v4242_v19  ;;  %vm4398_vm4 = vcmp.ge.bf16.partialorder %v4380_v3, 0  ;;  %13845 = vmatpush3.bf16.msra.mxu0 %v14514_v11  ;;  %v14522_v35 = vld [vmem:[#allocation4 + $0x120] sm:$0xff]  }
 0x285   : > { %v4416_v58 = vmul.bf16 1009007652, %v4380_v3  ;;  %v18037_v2 = vadd.f32 %v13632_v49, %v20947_v23  ;;  %v18042_v4 = vrot.slane %v5673_v59, 6  ;;  %v18044_v61 = vrot.slane %v5676_v42, 7  ;;  %vm5187_vm1 = vmpackc.low %vm18030_vm6, %vm18030_vm6  ;;  %13846 = vmatprep.subr.bf16.mxu0 %v14518_v53  ;;  %v4207_v11 = vld [vmem:[#allocation2 + $0xe8] sm:$0xff]  ;;  %v13684_v42 = vpop.f32.mrf.mxu0 }
 0x286   : > { %v5663_v14 = vshrl.u32 %v12544_v17, 16  ;;  %v6040_v18 = vshrl.u32 %v18003_v26, 16  ;;  %v5655_v19 = vrot.slane %v5653_v27, 6  ;;  %v5658_v41 = vrot.slane %v5656_v7, 7 }
 0x287   : > { %v4434_v10 = vsel %vm4398_vm4, %v4380_v3, %v4416_v58  ;;  %vm20949_vm9 = vsmask.f32 7424  ;;  %v18052_v59 = vor.u32 %v5688_v36, %v5685_v39  ;;  %v5666_v43 = vshll.u32 %v12544_v17, 16  ;;  %v14526_v39 = vld [vmem:[#allocation4 + $0x118] sm:$0xff]  }
 0x288   : > { %v6039_v62 = vsel %vm20949_vm9, %v20948_v40, %v6038_v13  ;;  %v5317_v63 = vsel %vm17995_vm10, %v4434_v10, 0  ;;  %v4243_v26 = vadd.f32 %v4207_v11, %v4171_v47  ;;  %v20950_v15 = vmov 0   ;;  %13847 = vmatpush3.bf16.msra.mxu0 %v14518_v53  ;;  %v18073_v47 = vld [vmem:[%s20479_s2] ss:$0 sm:$0xff]  ;;  %v4127_v10 = vpop.f32.mrf.mxu0  ;;  %vm20953_vm7 = vmmov %vm20949_vm9 }
 0x289   : > { %13702 = vmatprep.mubr.bf16.mxu1 %v6039_v62  ;;  %v18056_v44 = vcombine.low %v5317_v63, %v5317_v63  ;;  %v12550_v49 = vcombine.high %v5317_v63, %v5317_v63  ;;  %v5222_v3 = vsel %vm5186_vm15, 65537, %v20950_v15  ;;  %v5223_v28 = vsel %vm5187_vm1, 65537, %v20950_v15  ;;  %13848 = vmatprep.subr.bf16.mxu0 %v14522_v35  ;;  %v14529_v63 = vld [vmem:[#allocation4 + $0x110] sm:$0xff]   ;;  %vm20963_vm13 = vmmov %vm20953_vm7 }
 0x28a   : > { %v6042_v17 = vor.u32 %v6040_v18, %v6038_v13  ;;  %v4358_v54 = vadd.f32 %v18073_v47, %v4243_v26  ;;  %v12515_v52 = vcombine.low %v5222_v3, %v5223_v28  ;;  %v6044_v24 = vshll.u32 %v18022_v46, 16  ;;  %v13633_v18 = vpop.f32.mrf.mxu1 }
 0x28b   : > { %v18077_v36 = vor.u32 %v5658_v41, %v5655_v19  ;;  %v18079_v27 = vrot.slane %v5663_v14, 6  ;;  %v5723_v60 = vshrl.u32 %v12550_v49, 16  ;;  %v5726_v7 = vshll.u32 %v12550_v49, 16  ;;  %v14508_v41 = vld [vmem:[#allocation4 + $0xb0] sm:$0xff]  }
 0x28c   : > { %v18081_v53 = vrot.slane %v5666_v43, 7  ;;  %v4379_v13 = vpack.c.bf16 %v4358_v54, %v4357_v33  ;;  %v18083_v58 = vrot.slane %v6044_v24, 1  ;;  %v5460_v23 = vsel %vm17955_vm8, %v5451_v0, %v17808_v12  ;;  %13849 = vmatpush3.bf16.msra.mxu0 %v14522_v35  ;;  %v20955_v35 = vld [vmem:[#allocation33_spill] sm:$0xff]  ;;  %v20956_v24 = vld [vmem:[#allocation40_spill] sm:$0xff] }
 0x28d   : > { %v5713_v40 = vshrl.u32 %v18056_v44, 16  ;;  %v5725_v62 = vrot.slane %v5723_v60, 6  ;;  %v5728_v19 = vrot.slane %v5726_v7, 7  ;;  %vm18089_vm11 = vcmp.ne.s16.totalorder %v12515_v52, 0  ;;  %5818 = vst [vmem:[#allocation3 + $0x18] sm:$0xf] %v5460_v23  ;;  %13850 = vmatprep.subr.bf16.mxu0 %v14526_v39  ;;  %v3829_v7 = vpop.f32.mrf.mxu1  ;;  %v13685_v23 = vpop.f32.mrf.mxu0 }
 0x28e   : > { %vm4397_vm12 = vcmp.ge.bf16.partialorder %v4379_v13, 0  ;;  %v4415_v33 = vmul.bf16 1009007652, %v4379_v13  ;;  %v6047_v11 = vsel %vm20953_vm7, %v6042_v17, %v18083_v58  ;;  %v20954_v0 = vrot.slane %v17808_v12, 4  ;;  %v14667_v17 = vld [vmem:[#allocation4 + $0xb8] sm:$0xff]  }
 0x28f   : > { %v5661_v49 = vrot.slane %v18077_v36, 4  ;;  %v5716_v3 = vshll.u32 %v18056_v44, 16  ;;  %13703 = vmatmul.mubr.bf16.vlgmr.msra.gmra.mxu1 %v6047_v11  ;;  %v3827_v28 = vadd.f32 %v3826_v8, %v20955_v35  ;;  %v4176_v12 = vadd.f32 %v13684_v42, %v18037_v2  ;;  %v4212_v11 = vld [vmem:[#allocation2 + $0x110] sm:$0xff] }
 0x290   : > { %v5470_v43 = vsel %vm17955_vm8, %v20954_v0, %v17824_v57  ;;  %v4433_v54 = vsel %vm4397_vm12, %v4379_v13, %v4415_v33  ;;  %13791 = vmatpush3.bf16.msra.mxu1 %v14667_v17  ;;  %v5471_v52 = vrot.slane %v17824_v57, 4  ;;  %v5481_v60 = vrot.slane %v20956_v24, 4  ;;  %v20957_v8 = vld [vmem:[#allocation47_spill] sm:$0xff]  ;;  %13851 = vmatpush3.bf16.msra.mxu0 %v14526_v39  ;;  %v14517_v17 = vld [vmem:[#allocation4 + $0xa0] sm:$0xff]  }
 0x291   : > { %5819 = vst [vmem:[#allocation3 + $0x1c] sm:$0xf] %v5470_v43  ;;  %v18107_v0 = vrot.slane %v5713_v40, 6  ;;  %v18109_v26 = vor.u32 %v5728_v19, %v5725_v62  ;;  %v5316_v44 = vsel %vm18089_vm11, %v4433_v54, 0  ;;  %v3838_v13 = vadd.f32 %v13633_v18, %v20957_v8  ;;  %13792 = vmatprep.subr.bf16.mxu1 %v14508_v41  ;;  %v14513_v33 = vld [vmem:[#allocation4 + $0xa8] sm:$0xff]   ;;  %13852 = vmatprep.subr.bf16.mxu0 %v14529_v63  ;;  %v4210_v18 = vld [vmem:[#allocation2 + $0x100] sm:$0xff]  ;;  %vm20970_vm11 = vmmov %vm20953_vm7 }
 0x292   : > { %v12547_v2 = vcombine.low %v5316_v44, %v5316_v44  ;;  %v18114_v42 = vcombine.high %v5316_v44, %v5316_v44  ;;  %v4248_v57 = vadd.f32 %v4212_v11, %v4176_v12  ;;  %v5480_v40 = vsel %vm17955_vm8, %v5471_v52, %v20956_v24  ;;  %v14532_v62 = vld [vmem:[#allocation4 + $0x108] sm:$0xff]   ;;  %v20958_v43 = vld [vmem:[#allocation34_spill] sm:$0xff]  ;;  %v4213_v54 = vld [vmem:[#allocation2 + $0x118] sm:$0xff]  ;;  %v4130_v24 = vpop.f32.mrf.mxu0 }
 0x293   : > { %v5490_v19 = vsel %vm17955_vm8, %v5481_v60, %v17753_v22  ;;  %5820 = vst [vmem:[#allocation3 + $0x20] sm:$0xf] %v5480_v40  ;;  %v4174_v14 = vadd.f32 %v4127_v10, %v3827_v28  ;;  %v3830_v35 = vadd.f32 %v3829_v7, %v20958_v43  ;;  %v4177_v39 = vadd.f32 %v13685_v23, %v3838_v13  ;;  %v20959_v7 = vld [vmem:[#allocation37_spill] sm:$0xff]  ;;  %v14535_v43 = vld [vmem:[#allocation4 + $0x100] sm:$0xff]  }
 0x294   : > { %v18123_v44 = vrot.slane %v5716_v3, 7  ;;  %v5693_v12 = vshrl.u32 %v12547_v2, 16  ;;  %v5696_v11 = vshll.u32 %v12547_v2, 16  ;;  %v6048_v52 = vshrl.u32 %v18022_v46, 16  ;;  %5821 = vst [vmem:[#allocation3 + $0x24] sm:$0xf] %v5490_v19  ;;  %13793 = vmatpush3.bf16.msra.mxu1 %v14508_v41  ;;  %13853 = vmatpush3.bf16.msra.mxu0 %v14529_v63 }
 0x295   : > { %v18128_v60 = vor.u32 %v17989_v56, %v17986_v20  ;;  %v4249_v28 = vadd.f32 %v4213_v54, %v4177_v39  ;;  %v4854_v23 = vshrl.u32 %v20959_v7, 4  ;;  %13794 = vmatprep.subr.bf16.mxu1 %v14513_v33  ;;  %v5703_v3 = vshrl.u32 %v18114_v42, 16  ;;  %v4211_v2 = vld [vmem:[#allocation2 + $0x108] sm:$0xff]  ;;  %13854 = vmatprep.subr.bf16.mxu0 %v14532_v62 }
 0x296   : > { %v5706_v8 = vshll.u32 %v18114_v42, 16  ;;  %v6050_v46 = vor.u32 %v6048_v52, %v18083_v58  ;;  %v4246_v13 = vadd.f32 %v4210_v18, %v4174_v14  ;;  %v4363_v20 = vadd.f32 %v18073_v47, %v4248_v57  ;;  %v20960_v54 = vld [vmem:[#allocation38_spill] sm:$0xff]  ;;  %v20961_v57 = vld [vmem:[#allocation35_spill] sm:$0xff] }
 0x297   : > { %v4364_v56 = vadd.f32 %v18073_v47, %v4249_v28  ;;  %v4855_v40 = vmul.u32 18, %v4854_v23  ;;  %v4175_v19 = vadd.f32 %v4130_v24, %v3830_v35  ;;  %v18139_v39 = vrot.slane %v5693_v12, 6  ;;  %v14521_v35 = vld [vmem:[#allocation4 + $0x98] sm:$0xff]  }
 0x298   : > { %v18135_v41 = vld [vmem:[#allocation3 + $0x18] sm:$0xff]   ;;  %v18141_v63 = vrot.slane %v5696_v11, 7  ;;  %v18144_v42 = vmul.u32.u64.low 3817748708, %v20960_v54  ;;  %v18145_v7 = vmul.u32.u64.high 3817748708, %v20960_v54, %v18144_v42  ;;  %13795 = vmatpush3.bf16.msra.mxu1 %v14513_v33  ;;  %v18150_v24 = vrot.slane %v5703_v3, 6  ;;  %v20962_v11 = vld [vmem:[#allocation19_spill] sm:$0xff]  ;;  %13855 = vmatpush3.bf16.msra.mxu0 %v14532_v62 }
 0x299   : > { %v6052_v58 = vshll.u32 %v18135_v41, 16  ;;  %13759 = vmatmul.mubr.bf16.gmra.mxu0 %v18135_v41  ;;  %v4382_v14 = vpack.c.bf16 %v4364_v56, %v4363_v20  ;;  %v4856_v18 = vsub.s32 %v20961_v57, %v4855_v40  ;;  %v4247_v52 = vadd.f32 %v4211_v2, %v4175_v19  ;;  %13796 = vmatprep.subr.bf16.mxu1 %v14517_v17  ;;  %v18159_v33 = vld [vmem:[#allocation4 + $0x178] sm:$0xff]   ;;  %v14525_v19 = vld [vmem:[#allocation4 + $0x90] sm:$0xff]  }
 0x29a   : > { %v4361_v12 = vadd.f32 %v18073_v47, %v4246_v13  ;;  %v18154_v28 = vadd.s32 256, %v20962_v11  ;;  %v18157_v23 = vadd.s32 264, %v20962_v11  ;;  %v6056_v3 = vshrl.u32 %v18135_v41, 16  ;;  %13856 = vmatprep.subr.bf16.mxu0 %v14535_v43 }
 0x29b   : > { %v6054_v42 = vrot.slane %v6052_v58, 1  ;;  %v18161_v20 = vld [vmem:[#allocation3 + $0x20] sm:$0xff]   ;;  %vm4904_vm5 = vcmp.ne.s32.totalorder %v4856_v18, 0  ;;  %v4362_v2 = vadd.f32 %v18073_v47, %v4247_v52  ;;  %v4418_v56 = vmul.bf16 1009007652, %v4382_v14 }
 0x29c   : > { %v4865_v13 = vshrl.u32 %v18145_v7, 4  ;;  %vm4940_vm14 = vcmp.lt.s32.totalorder %v4856_v18, 0  ;;  %v5012_v40 = vadd.s32 18, %v4856_v18  ;;  %13797 = vmatpush3.bf16.msra.mxu1 %v14517_v17  ;;  %13762 = vmatprep.mubr.bf16.mxu0 %v18161_v20  ;;  %v18176_v52 = vor.u32 %v18044_v61, %v18042_v4 }
 0x29d   : > { %v6055_v62 = vsel %vm20963_vm13, %v6050_v46, %v6054_v42  ;;  %vm4976_vm10 = vmand %vm4940_vm14, %vm4904_vm5  ;;  %v18168_v58 = vpack.c.bf16 %v4362_v2, %v4361_v12  ;;  %v18171_v57 = vmul.u32.u64.low 3817748708, %v18154_v28  ;;  %v18172_v47 = vmul.u32.u64.high 3817748708, %v18154_v28, %v18171_v57  ;;  %13798 = vmatprep.subr.bf16.mxu1 %v14521_v35  ;;  %13857 = vmatpush3.bf16.msra.mxu0 %v14535_v43 }
 0x29e   : > { %13706 = vmatprep.mubr.bf16.mxu1 %v6055_v62  ;;  %vm4400_vm0 = vcmp.ge.bf16.partialorder %v4382_v14, 0  ;;  %v4866_v17 = vmul.u32 18, %v4865_v13  ;;  %v5048_v7 = vsel %vm4976_vm10, %v5012_v40, %v4856_v18  ;;  %v18178_v46 = vrot.slane %v5706_v8, 7  ;;  %13946 = vmatprep.subr.bf16.mxu0 %v18159_v33  ;;  %v20966_v8 = vld [vmem:[#allocation41_spill] sm:$0xff]  ;;  %v20968_v62 = vld [vmem:[#allocation42_spill] sm:$0xff] }
 0x29f   : > { %vm18180_vm6 = vcmp.lt.s32.totalorder %v5048_v7, 16  ;;  %v6058_v12 = vor.u32 %v6056_v3, %v6054_v42  ;;  %v6060_v2 = vshll.u32 %v18161_v20, 16  ;;  %v20967_v43 = vrot.slane %v17753_v22, 4 }
 0x2a0   : > { %v4867_v57 = vsub.s32 %v20960_v54, %v4866_v17  ;;  %vm5192_vm4 = vmpackc.low %vm18180_vm6, %vm18180_vm6  ;;  %v18191_v4 = vmul.u32.u64.low 3817748708, %v18157_v23  ;;  %v18192_v61 = vmul.u32.u64.high 3817748708, %v18157_v23, %v18191_v4  ;;  %13799 = vmatpush3.bf16.msra.mxu1 %v14521_v35  ;;  %v18199_v42 = vsel %vm4400_vm0, %v4382_v14, %v4418_v56  ;;  %v14530_v35 = vld [vmem:[#allocation4 + $0x88] sm:$0xff]  }
 0x2a1   : > { %v5500_v18 = vsel %vm17955_vm8, %v20967_v43, %v20966_v8  ;;  %v4417_v3 = vmul.bf16 1009007652, %v18168_v58  ;;  %v4832_v54 = vshrl.u32 %v18172_v47, 4  ;;  %v18203_v13 = vrot.slane %v6060_v2, 1  ;;  %13800 = vmatprep.subr.bf16.mxu1 %v14525_v19 }
 0x2a2   : > { %5822 = vst [vmem:[#allocation3 + $0x28] sm:$0xf] %v5500_v18  ;;  %vm4905_vm15 = vcmp.ne.s32.totalorder %v4867_v57, 0  ;;  %vm4941_vm1 = vcmp.lt.s32.totalorder %v4867_v57, 0  ;;  %v5013_v40 = vadd.s32 18, %v4867_v57  ;;  %v20969_v22 = vrot.slane %v20966_v8, 4 }
 0x2a3   : > { %vm4977_vm9 = vmand %vm4941_vm1, %vm4905_vm15  ;;  %v5228_v14 = vsel %vm5192_vm4, 65537, %v20950_v15  ;;  %v4833_v56 = vmul.u32 18, %v4832_v54  ;;  %v6063_v47 = vsel %vm20970_vm11, %v6058_v12, %v18203_v13  ;;  %v5511_v7 = vrot.slane %v20968_v62, 4  ;;  %v20971_v8 = vld [vmem:[#allocation56_spill] sm:$0xff]  ;;  %v20972_v18 = vld [vmem:[#allocation55_spill] sm:$0xff] }
 0x2a4   : > { %v5510_v17 = vsel %vm17955_vm8, %v20969_v22, %v20968_v62  ;;  %v5049_v2 = vsel %vm4977_vm9, %v5013_v40, %v4867_v57  ;;  %v4843_v4 = vshrl.u32 %v18192_v61, 4  ;;  %13707 = vmatmul.mubr.bf16.gmra.mxu1 %v6063_v47  ;;  %v5521_v43 = vrot.slane %v20971_v8, 4 }
 0x2a5   : > { %5823 = vst [vmem:[#allocation3 + $0x2c] sm:$0xf] %v5510_v17  ;;  %v20973_v22 = vrot.slane %v20972_v18, 4  ;;  %vm18226_vm12 = vcmp.lt.s32.totalorder %v5049_v2, 16  ;;  %vm4399_vm7 = vcmp.ge.bf16.partialorder %v18168_v58, 0  ;;  %v4834_v12 = vsub.s32 %v18154_v28, %v4833_v56  ;;  %13801 = vmatpush3.bf16.msra.mxu1 %v14525_v19  ;;  %v14536_v19 = vld [vmem:[#allocation4 + $0x80] sm:$0xff]  }
 0x2a6   : > { %v6064_v57 = vshrl.u32 %v18161_v20, 16  ;;  %v5520_v61 = vsel %vm17955_vm8, %v5511_v7, %v20971_v8  ;;  %vm5193_vm5 = vmpackc.low %vm18226_vm12, %vm18226_vm12  ;;  %v4844_v40 = vmul.u32 18, %v4843_v4  ;;  %v5530_v62 = vsel %vm17955_vm8, %v5521_v43, %v20972_v18  ;;  %13802 = vmatprep.subr.bf16.mxu1 %v14530_v35 }
 0x2a7   : > { %v5540_v10 = vsel %vm17955_vm8, %v20973_v22, %v17881_v21  ;;  %5824 = vst [vmem:[#allocation3 + $0x30] sm:$0xf] %v5520_v61  ;;  %v5550_v28 = vsel %vm17955_vm8, %v5541_v55, %v17913_v45  ;;  %v5551_v17 = vrot.slane %v17913_v45, 4  ;;  %v5229_v56 = vsel %vm5193_vm5, 65537, %v20950_v15  ;;  %5825 = vst [vmem:[#allocation3 + $0x34] sm:$0xf] %v5530_v62 }
 0x2a8   : > { %5826 = vst [vmem:[#allocation3 + $0x38] sm:$0xf] %v5540_v10  ;;  %vm4902_vm14 = vcmp.ne.s32.totalorder %v4834_v12, 0  ;;  %vm4938_vm13 = vcmp.lt.s32.totalorder %v4834_v12, 0  ;;  %v5010_v47 = vadd.s32 18, %v4834_v12  ;;  %v12518_v7 = vcombine.low %v5228_v14, %v5229_v56 }
 0x2a9   : > { %5827 = vst [vmem:[#allocation3 + $0x3c] sm:$0xf] %v5550_v28  ;;  %v4845_v2 = vsub.s32 %v18157_v23, %v4844_v40  ;;  %vm18250_vm10 = vmand %vm4938_vm13, %vm4902_vm14  ;;  %v5560_v21 = vsel %vm17955_vm8, %v5551_v17, %v17908_v16  ;;  %v5561_v45 = vrot.slane %v17908_v16, 4  ;;  %v5580_v23 = vsel %vm17955_vm8, %v5571_v9, %v17919_v34  ;;  %13803 = vmatpush3.bf16.msra.mxu1 %v14530_v35  ;;  %v18271_v16 = vld [vmem:[#allocation4 + $0xf8] sm:$0xff]  }
 0x2aa   : > { %v5046_v55 = vsel %vm18250_vm10, %v5010_v47, %v4834_v12  ;;  %5828 = vst [vmem:[#allocation3 + $0x40] sm:$0xf] %v5560_v21  ;;  %v5590_v14 = vsel %vm17955_vm8, %v5581_v1, %v17925_v51  ;;  %v5591_v8 = vrot.slane %v17925_v51, 4  ;;  %vm5301_vm0 = vcmp.ne.s16.totalorder %v12518_v7, 0  ;;  %5830 = vst [vmem:[#allocation3 + $0x48] sm:$0xf] %v5580_v23  ;;  %13804 = vmatprep.subr.bf16.mxu1 %v14536_v19 }
 0x2ab   : > { %vm4903_vm6 = vcmp.ne.s32.totalorder %v4845_v2, 0  ;;  %vm4939_vm4 = vcmp.lt.s32.totalorder %v4845_v2, 0  ;;  %v5011_v43 = vadd.s32 18, %v4845_v2  ;;  %5831 = vst [vmem:[#allocation3 + $0x4c] sm:$0xf] %v5590_v14  ;;  %v5319_v9 = vsel %vm5301_vm0, %v18199_v42, 0 }
 0x2ac   : > { %vm4975_vm15 = vmand %vm4939_vm4, %vm4903_vm6  ;;  %vm5082_vm1 = vcmp.lt.s32.totalorder %v5046_v55, 16  ;;  %v18274_v34 = vld [vmem:[#allocation3 + $0x28] sm:$0xff]   ;;  %v5570_v51 = vsel %vm17955_vm8, %v5561_v45, %v17868_v29  ;;  %v5600_v1 = vsel %vm17955_vm8, %v5591_v8, %v17922_v50  ;;  %v12553_v35 = vcombine.low %v5319_v9, %v5319_v9 }
 0x2ad   : > { %v12554_v18 = vcombine.high %v5319_v9, %v5319_v9  ;;  %v5047_v22 = vsel %vm4975_vm15, %v5011_v43, %v4845_v2  ;;  %vm5190_vm9 = vmpackc.low %vm5082_vm1, %vm5082_vm1  ;;  %5829 = vst [vmem:[#allocation3 + $0x44] sm:$0xf] %v5570_v51  ;;  %v5601_v10 = vrot.slane %v17922_v50, 4  ;;  %v6066_v54 = vor.u32 %v6064_v57, %v18203_v13  ;;  %13763 = vmatmul.mubr.bf16.gmra.mxu0 %v18274_v34 }
 0x2ae   : > { %5832 = vst [vmem:[#allocation3 + $0x50] sm:$0xf] %v5600_v1  ;;  %vm5083_vm11 = vcmp.lt.s32.totalorder %v5047_v22, 16  ;;  %v5226_v42 = vsel %vm5190_vm9, 65537, %v20950_v15  ;;  %v6068_v12 = vshll.u32 %v18274_v34, 16  ;;  %13805 = vmatpush3.bf16.msra.mxu1 %v14536_v19  ;;  %v5753_v29 = vshrl.u32 %v12553_v35, 16 }
 0x2af   : > { %v5756_v61 = vshll.u32 %v12553_v35, 16  ;;  %v5763_v40 = vshrl.u32 %v12554_v18, 16  ;;  %vm5191_vm12 = vmpackc.low %vm5083_vm11, %vm5083_vm11  ;;  %v6072_v62 = vshrl.u32 %v18274_v34, 16  ;;  %13894 = vmatprep.subr.bf16.mxu1 %v18271_v16  ;;  %v18290_v17 = vld [vmem:[#allocation3 + $0x30] sm:$0xff]   ;;  %v5610_v13 = vsel %vm17955_vm8, %v5601_v10, %v17901_v32 }
 0x2b0   : > { %v5227_v50 = vsel %vm5191_vm12, 65537, %v20950_v15  ;;  %v6070_v28 = vrot.slane %v6068_v12, 1  ;;  %v18292_v56 = vld [vmem:[#allocation3 + $0x38] sm:$0xff]   ;;  %v5620_v57 = vsel %vm17955_vm8, %v5611_v38, %v17976_v25  ;;  %v5755_v19 = vrot.slane %v5753_v29, 6  ;;  %5833 = vst [vmem:[#allocation3 + $0x54] sm:$0xf] %v5610_v13  ;;  %13766 = vmatprep.mubr.bf16.mxu0 %v18290_v17 }
 0x2b1   : > { %v5758_v47 = vrot.slane %v5756_v61, 7  ;;  %v5766_v7 = vshll.u32 %v12554_v18, 16  ;;  %v4435_v15 = vsel %vm4399_vm7, %v18168_v58, %v4417_v3  ;;  %5834 = vst [vmem:[#allocation3 + $0x58] sm:$0xf] %v5620_v57  ;;  %v12517_v2 = vcombine.low %v5226_v42, %v5227_v50 }
 0x2b2   : > { %vm20978_vm5 = vsmask.f32 7424  ;;  %v6074_v32 = vor.u32 %v6072_v62, %v6070_v28  ;;  %v6076_v21 = vshll.u32 %v18290_v17, 16  ;;  %v18312_v38 = vor.u32 %v18081_v53, %v18079_v27  ;;  %v18323_v55 = vld [vmem:[#allocation3 + $0x48] sm:$0xff]  }
 0x2b3   : > { %v6071_v4 = vsel %vm20978_vm5, %v6066_v54, %v6070_v28  ;;  %v18316_v45 = vor.u32 %v18123_v44, %v18107_v0  ;;  %v18320_v58 = vor.u32 %v18141_v63, %v18139_v39  ;;  %v6084_v3 = vshll.u32 %v18292_v56, 16  ;;  %vm20979_vm14 = vmmov %vm20978_vm5 }
 0x2b4   : > { %13710 = vmatprep.mubr.bf16.mxu1 %v6071_v4  ;;  %v5765_v23 = vrot.slane %v5763_v40, 6  ;;  %vm5300_vm7 = vcmp.ne.s16.totalorder %v12517_v2, 0  ;;  %v6078_v14 = vrot.slane %v6076_v21, 1  ;;  %v18325_v8 = vld [vmem:[#allocation3 + $0x40] sm:$0xff]   ;;  %v5630_v27 = vsel %vm17955_vm8, %v5621_v48, %v18128_v60  ;;  %vm20980_vm13 = vmmov %vm20978_vm5 }
 0x2b5   : > { %v5318_v53 = vsel %vm5300_vm7, %v4435_v15, 0  ;;  %v6080_v0 = vshrl.u32 %v18290_v17, 16  ;;  %v6086_v44 = vrot.slane %v6084_v3, 1  ;;  %v6088_v39 = vshrl.u32 %v18292_v56, 16  ;;  %5835 = vst [vmem:[#allocation3 + $0x5c] sm:$0xf] %v5630_v27  ;;  %13767 = vmatmul.mubr.bf16.gmra.mxu0 %v18292_v56  ;;  %vm20981_vm10 = vmmov %vm20978_vm5 }
 0x2b6   : > { %v5768_v63 = vrot.slane %v5766_v7, 7  ;;  %v12551_v43 = vcombine.low %v5318_v53, %v5318_v53  ;;  %v12552_v9 = vcombine.high %v5318_v53, %v5318_v53  ;;  %v6079_v51 = vsel %vm20979_vm14, %v6074_v32, %v6078_v14  ;;  %13770 = vmatprep.mubr.bf16.mxu0 %v18325_v8  ;;  %vm20982_vm0 = vmmov %vm20978_vm5 }
 0x2b7   : > { %13711 = vmatmul.mubr.bf16.gmra.mxu1 %v6079_v51  ;;  %v6082_v1 = vor.u32 %v6080_v0, %v6078_v14  ;;  %v6090_v25 = vor.u32 %v6088_v39, %v6086_v44  ;;  %v6092_v48 = vshll.u32 %v18325_v8, 16  ;;  %v6100_v35 = vshll.u32 %v18323_v55, 16  ;;  %v18341_v40 = vld [vmem:[#allocation3 + $0x50] sm:$0xff]   ;;  %vm20985_vm6 = vmmov %vm20982_vm0 }
 0x2b8   : > { %v5733_v18 = vshrl.u32 %v12551_v43, 16  ;;  %v5736_v22 = vshll.u32 %v12551_v43, 16  ;;  %v5743_v10 = vshrl.u32 %v12552_v9, 16  ;;  %v5746_v42 = vshll.u32 %v12552_v9, 16  ;;  %vm20986_vm4 = vmmov %vm20982_vm0 }
 0x2b9   : > { %v6087_v54 = vsel %vm20980_vm13, %v6082_v1, %v6086_v44  ;;  %v6094_v12 = vrot.slane %v6092_v48, 1  ;;  %v6096_v29 = vshrl.u32 %v18325_v8, 16  ;;  %v6102_v61 = vrot.slane %v6100_v35, 1  ;;  %vm20989_vm15 = vmmov %vm20982_vm0 }
 0x2ba   : > { %v5735_v62 = vrot.slane %v5733_v18, 6  ;;  %v5738_v50 = vrot.slane %v5736_v22, 7  ;;  %v5745_v28 = vrot.slane %v5743_v10, 6  ;;  %v5748_v13 = vrot.slane %v5746_v42, 7  ;;  %13714 = vmatprep.mubr.bf16.mxu1 %v6087_v54  ;;  %vm20990_vm1 = vmmov %vm20982_vm0 }
 0x2bb   : > { %v5701_v57 = vrot.slane %v18320_v58, 4  ;;  %v5709_v7 = vor.u32 %v18178_v46, %v18150_v24  ;;  %v18346_v15 = vor.u32 %v5758_v47, %v5755_v19  ;;  %v18348_v2 = vor.u32 %v5768_v63, %v5765_v23  ;;  %vm20995_vm7 = vmmov %vm20982_vm0 }
 0x2bc   : > { %v5739_v4 = vor.u32 %v5738_v50, %v5735_v62  ;;  %v6098_v32 = vor.u32 %v6096_v29, %v6094_v12  ;;  %v6108_v21 = vshll.u32 %v18341_v40, 16  ;;  %v18351_v3 = vld [vmem:[#allocation3 + $0x58] sm:$0xff]   ;;  %v5631_v14 = vrot.slane %v18128_v60, 4  ;;  %v6662_v29 = vld [vmem:[#allocation3] sm:$0xe]  ;;  %vm20997_vm13 = vmmov %vm20982_vm0 }
 0x2bd   : > { %v6095_v27 = vsel %vm20981_vm10, %v6090_v25, %v6094_v12  ;;  %v6104_v53 = vshrl.u32 %v18323_v55, 16  ;;  %v5641_v0 = vrot.slane %v17999_v6, 4  ;;  %v5660_v24 = vsel %vm17955_vm8, %v5651_v31, %v18077_v36  ;;  %13771 = vmatmul.mubr.bf16.gmra.mxu0 %v18323_v55  ;;  %v5852_v12 = vld [vmem:[#allocation3 + $0x98] sm:$0x3]  ;;  %v7034_v50 = vld [vmem:[#allocation3 + $0x8] sm:$0xe] }
 0x2be   : > { %v5749_v46 = vor.u32 %v5748_v13, %v5745_v28  ;;  %v6103_v19 = vsel %vm20982_vm0, %v6098_v32, %v6102_v61  ;;  %v6112_v47 = vshrl.u32 %v18341_v40, 16  ;;  %v5640_v60 = vsel %vm17955_vm8, %v5631_v14, %v17999_v6  ;;  %5838 = vst [vmem:[#allocation3 + $0x68] sm:$0xf] %v5660_v24  ;;  %13774 = vmatprep.mubr.bf16.mxu0 %v18341_v40  ;;  %v14668_v32 = vld [vmem:[#allocation3 + $0x4] sm:$0xf] }
 0x2bf   : > { %v5741_v23 = vrot.slane %v5739_v4, 4  ;;  %13715 = vmatmul.mubr.bf16.gmra.mxu1 %v6095_v27  ;;  %v6116_v44 = vshll.u32 %v18351_v3, 16  ;;  %v5650_v31 = vsel %vm17955_vm8, %v5641_v0, %v17966_v37  ;;  %5836 = vst [vmem:[#allocation3 + $0x60] sm:$0xf] %v5640_v60  ;;  %v5671_v39 = vrot.slane %v18312_v38, 4  ;;  %v18440_v60 = vld [vmem:[#allocation3 + $0x18] sm:$0xff]  }
 0x2c0   : > { %13718 = vmatprep.mubr.bf16.mxu1 %v6103_v19  ;;  %v6110_v63 = vrot.slane %v6108_v21, 1  ;;  %5837 = vst [vmem:[#allocation3 + $0x64] sm:$0xf] %v5650_v31  ;;  %v5670_v6 = vsel %vm17955_vm8, %v5661_v49, %v18312_v38  ;;  %v5681_v43 = vrot.slane %v18176_v52, 4  ;;  %v20983_v9 = vrot.slane %v18052_v59, 4 }
 0x2c1   : > { %5839 = vst [vmem:[#allocation3 + $0x6c] sm:$0xf] %v5670_v6  ;;  %v5680_v51 = vsel %vm17955_vm8, %v5671_v39, %v18176_v52  ;;  %v5710_v1 = vsel %vm17955_vm8, %v5701_v57, %v5709_v7  ;;  %v5711_v36 = vrot.slane %v5709_v7, 4  ;;  %v5721_v49 = vrot.slane %v18316_v45, 4  ;;  %v18419_v57 = vld [vmem:[#allocation3 + $0xc] sm:$0xf] }
 0x2c2   : > { %v5700_v37 = vsel %vm17955_vm8, %v20983_v9, %v18320_v58  ;;  %v6106_v38 = vor.u32 %v6104_v53, %v6102_v61  ;;  %v5690_v25 = vsel %vm17955_vm8, %v5681_v43, %v18052_v59  ;;  %5840 = vst [vmem:[#allocation3 + $0x70] sm:$0xf] %v5680_v51  ;;  %5843 = vst [vmem:[#allocation3 + $0x7c] sm:$0xf] %v5710_v1  ;;  %v20984_v58 = vrot.slane %v18109_v26, 4 }
 0x2c3   : > { %5842 = vst [vmem:[#allocation3 + $0x78] sm:$0xf] %v5700_v37  ;;  %v6118_v52 = vrot.slane %v6116_v44, 1  ;;  %5841 = vst [vmem:[#allocation3 + $0x74] sm:$0xf] %v5690_v25  ;;  %v5720_v35 = vsel %vm17955_vm8, %v5711_v36, %v18316_v45  ;;  %v5730_v18 = vsel %vm17955_vm8, %v5721_v49, %v18109_v26  ;;  %v5750_v59 = vsel %vm17955_vm8, %v5741_v23, %v5749_v46 }
 0x2c4   : > { %v5740_v48 = vsel %vm17955_vm8, %v20984_v58, %v5739_v4  ;;  %v5761_v22 = vrot.slane %v18346_v15, 4  ;;  %v5771_v10 = vrot.slane %v18348_v2, 4  ;;  %5844 = vst [vmem:[#allocation3 + $0x80] sm:$0xf] %v5720_v35  ;;  %5845 = vst [vmem:[#allocation3 + $0x84] sm:$0xf] %v5730_v18  ;;  %v6114_v54 = vor.u32 %v6112_v47, %v6110_v63 }
 0x2c5   : > { %5846 = vst [vmem:[#allocation3 + $0x88] sm:$0xf] %v5740_v48  ;;  %5847 = vst [vmem:[#allocation3 + $0x8c] sm:$0xf] %v5750_v59  ;;  %v5751_v42 = vrot.slane %v5749_v46, 4  ;;  %v6111_v45 = vsel %vm20985_vm6, %v6106_v38, %v6110_v63  ;;  %13775 = vmatmul.mubr.bf16.gmra.mxu0 %v18351_v3  ;;  %v6120_v28 = vshrl.u32 %v18351_v3, 16  ;;  %v12590_v21 = vcombine.low %v6662_v29, %v14668_v32 }
 0x2c6   : > { %v6119_v61 = vsel %vm20986_vm4, %v6114_v54, %v6118_v52  ;;  %v5770_v7 = vsel %vm17955_vm8, %v5761_v22, %v18348_v2  ;;  %v18437_v24 = vcombine.low %v7034_v50, %v18419_v57  ;;  %v7206_v31 = vshrl.u32 %v18432_v30, 16  ;;  %v18460_v48 = vld [vmem:[#allocation3 + $0x20] sm:$0xff]   ;;  %v18464_v22 = vld [vmem:[#allocation3 + $0x8] sm:$0xff]  }
 0x2c7   : > { %v5760_v26 = vsel %vm17955_vm8, %v5751_v42, %v18346_v15  ;;  %13719 = vmatmul.mubr.bf16.gmra.mxu1 %v6111_v45  ;;  %v18414_v62 = vld [vmem:[#allocation3 + $0x60] sm:$0xff]   ;;  %v5853_v15 = vsel %vm17939_vm3, %v5771_v10, %v5852_v12  ;;  %5849 = vst [vmem:[#allocation3 + $0x94] sm:$0xf] %v5770_v7  ;;  %v6122_v14 = vor.u32 %v6120_v28, %v6118_v52  ;;  %vm20987_vm3 = vmmov %vm20982_vm0  ;;  %v7209_v39 = vshll.u32 %v18432_v30, 16  ;;  %v18470_v50 = vld [vmem:[#allocation3 + $0x28] sm:$0xff]  }
 0x2c8   : > { %5848 = vst [vmem:[#allocation3 + $0x90] sm:$0xf] %v5760_v26  ;;  %13722 = vmatprep.mubr.bf16.mxu1 %v6119_v61  ;;  %v18417_v13 = vld [vmem:[#allocation3 + $0x68] sm:$0xff]   ;;  %13778 = vmatprep.mubr.bf16.mxu0 %v18414_v62  ;;  %v6124_v4 = vshll.u32 %v18414_v62, 16  ;;  %5854 = vst [vmem:[#allocation3 + $0x98] sm:$0x3] %v5853_v15 }
 0x2c9   : > { %v6128_v27 = vshrl.u32 %v18414_v62, 16  ;;  %v6132_v53 = vshll.u32 %v18417_v13, 16  ;;  %v18448_v63 = vrot.slane %v12590_v21, 1  ;;  %vm20988_vm8 = vmmov %vm20982_vm0  ;;  %v6136_v43 = vshrl.u32 %v18417_v13, 16 }
 0x2ca   : > { %v18430_v0 = vld [vmem:[#allocation3 + $0x70] sm:$0xff]   ;;  %v6126_v2 = vrot.slane %v6124_v4, 1  ;;  %v18434_v5 = vld [vmem:[#allocation3 + $0x78] sm:$0xff]   ;;  %v7198_v37 = vshrl.u32 %v18437_v24, 16  ;;  %v7201_v1 = vshll.u32 %v18437_v24, 16  ;;  %v7215_v36 = vshrl.u32 %v18440_v60, 16 }
 0x2cb   : > { %v6134_v46 = vrot.slane %v6132_v53, 1  ;;  %v6140_v47 = vshll.u32 %v18430_v0, 16  ;;  %v18444_v44 = vld [vmem:[#allocation3 + $0x80] sm:$0xff]   ;;  %v6148_v9 = vshll.u32 %v18434_v5, 16  ;;  %v7218_v49 = vshll.u32 %v18440_v60, 16 }
 0x2cc   : > { %v6130_v19 = vor.u32 %v6128_v27, %v6126_v2  ;;  %v6127_v23 = vsel %vm20987_vm3, %v6122_v14, %v6126_v2  ;;  %v6144_v25 = vshrl.u32 %v18430_v0, 16  ;;  %v6156_v58 = vshll.u32 %v18444_v44, 16  ;;  %v18462_v35 = vld [vmem:[#allocation3 + $0x88] sm:$0xff]  }
 0x2cd   : > { %13779 = vmatmul.mubr.bf16.gmra.mxu0 %v18417_v13  ;;  %v6142_v51 = vrot.slane %v6140_v47, 1  ;;  %v6138_v38 = vor.u32 %v6136_v43, %v6134_v46  ;;  %v6150_v52 = vrot.slane %v6148_v9, 1  ;;  %v7208_v18 = vrot.slane %v7206_v31, 1  ;;  %v18488_v47 = vld [vmem:[#allocation3 + $0x30] sm:$0xff]  }
 0x2ce   : > { %v6135_v6 = vsel %vm20988_vm8, %v6130_v19, %v6134_v46  ;;  %13782 = vmatprep.mubr.bf16.mxu0 %v18430_v0  ;;  %v7211_v59 = vrot.slane %v7209_v39, 2  ;;  %v6683_v10 = vrot.slane %v18464_v22, 1  ;;  %v6687_v42 = vrot.slane %v18135_v41, 1  ;;  %vm21003_vm8 = vmmov %vm20990_vm1 }
 0x2cf   : > { %13723 = vmatmul.mubr.bf16.gmra.mxu1 %v6127_v23  ;;  %v6146_v54 = vor.u32 %v6144_v25, %v6142_v51  ;;  %v7200_v12 = vrot.slane %v7198_v37, 1  ;;  %v7203_v29 = vrot.slane %v7201_v1, 2  ;;  %v7217_v45 = vrot.slane %v7215_v36, 1  ;;  %v18476_v32 = vld [vmem:[#allocation3 + $0x90] ss:$0 sps:$4 sm:$0x11]  }
 0x2d0   : > { %13726 = vmatprep.mubr.bf16.mxu1 %v6135_v6  ;;  %v6143_v26 = vsel %vm20989_vm15, %v6138_v38, %v6142_v51  ;;  %v7220_v61 = vrot.slane %v7218_v49, 2  ;;  %v6689_v28 = vrot.slane %v18161_v20, 1  ;;  %v6158_v15 = vrot.slane %v6156_v58, 1  ;;  %v18494_v6 = vld [vmem:[#allocation3 + $0x38] sm:$0xff]  }
 0x2d1   : > { %v6151_v7 = vsel %vm20990_vm1, %v6146_v54, %v6150_v52  ;;  %v6164_v4 = vshll.u32 %v18462_v35, 16  ;;  %v6691_v21 = vrot.slane %v18274_v34, 1  ;;  %v6152_v14 = vshrl.u32 %v18434_v5, 16  ;;  %v5860_v22 = vld [vmem:[#allocation3 + $0x98] sm:$0xe] }
 0x2d2   : > { %v7212_v27 = vor.u32 %v7211_v59, %v7208_v18  ;;  %v7224_v53 = vshrl.u32 %v18460_v48, 16  ;;  %vm20991_vm9 = vcmask 1046528   ;;  %v6160_v2 = vshrl.u32 %v18444_v44, 16 }
 0x2d3   : > { %v18484_v20 = vsel %vm20991_vm9, %v6687_v42, %v6689_v28  ;;  %v7204_v46 = vor.u32 %v7203_v29, %v7200_v12  ;;  %v7227_v19 = vshll.u32 %v18460_v48, 16  ;;  %vm20992_vm11 = vmmov %vm20991_vm9  ;;  %v6154_v23 = vor.u32 %v6152_v14, %v6150_v52  ;;  %v18521_v14 = vld [vmem:[#allocation3 + $0x50] sm:$0xff]  }
 0x2d4   : > { %v18491_v34 = vsel %vm20992_vm11, %v6689_v28, %v6691_v21  ;;  %v6168_v31 = vshrl.u32 %v18462_v35, 16  ;;  %v7221_v39 = vor.u32 %v7220_v61, %v7217_v45  ;;  %v6693_v43 = vrot.slane %v18290_v17, 1  ;;  %vm20993_vm12 = vmmov %vm20991_vm9  ;;  %v18506_v17 = vld [vmem:[#allocation3 + $0x40] sm:$0xff]   ;;  %v18518_v28 = vld [vmem:[#allocation3 + $0x48] sm:$0xff]  }
 0x2d5   : > { %13783 = vmatmul.mubr.bf16.gmra.mxu0 %v18434_v5  ;;  %v6162_v9 = vor.u32 %v6160_v2, %v6158_v15  ;;  %v6166_v37 = vrot.slane %v6164_v4, 1  ;;  %v6172_v51 = vshll.u32 %v18476_v32, 16  ;;  %v6695_v1 = vrot.slane %v18292_v56, 1  ;;  %vm20994_vm5 = vmmov %vm20991_vm9 }
 0x2d6   : > { %13786 = vmatprep.mubr.bf16.mxu0 %v18444_v44  ;;  %v7226_v36 = vrot.slane %v7224_v53, 1  ;;  %v7233_v49 = vshrl.u32 %v18470_v50, 16  ;;  %v7236_v38 = vshll.u32 %v18470_v50, 16  ;;  %v18502_v25 = vsel %vm20993_vm12, %v6691_v21, %v6693_v43  ;;  %vm20998_vm10 = vmmov %vm20994_vm5 }
 0x2d7   : > { %13727 = vmatmul.mubr.bf16.gmra.mxu1 %v6143_v26  ;;  %v7229_v58 = vrot.slane %v7227_v19, 2  ;;  %v7242_v52 = vshrl.u32 %v18488_v47, 16  ;;  %v7245_v18 = vshll.u32 %v18488_v47, 16  ;;  %v18509_v59 = vsel %vm20994_vm5, %v6693_v43, %v6695_v1  ;;  %vm20999_vm0 = vmmov %vm20994_vm5 }
 0x2d8   : > { %13730 = vmatprep.mubr.bf16.mxu1 %v6151_v7  ;;  %v6159_v56 = vsel %vm20995_vm7, %v6154_v23, %v6158_v15  ;;  %vm20996_vm14 = vsmask.f32 6400  ;;  %v7251_v12 = vshrl.u32 %v18494_v6, 16  ;;  %v6697_v29 = vrot.slane %v18325_v8, 1  ;;  %vm21001_vm4 = vmmov %vm20999_vm0 }
 0x2d9   : > { %v7213_v54 = vsel %vm20996_vm14, %v7204_v46, %v7212_v27  ;;  %v6167_v45 = vsel %vm20997_vm13, %v6162_v9, %v6166_v37  ;;  %v6170_v26 = vor.u32 %v6168_v31, %v6166_v37  ;;  %v7254_v61 = vshll.u32 %v18494_v6, 16  ;;  %vm21000_vm6 = vmmov %vm20996_vm14 }
 0x2da   : > { %v6699_v7 = vrot.slane %v18323_v55, 1  ;;  %v6174_v15 = vrot.slane %v6172_v51, 1  ;;  %v7235_v4 = vrot.slane %v7233_v49, 1  ;;  %v7238_v21 = vrot.slane %v7236_v38, 2  ;;  %vm21002_vm3 = vmmov %vm20999_vm0 }
 0x2db   : > { %v18524_v53 = vsel %vm20998_vm10, %v6695_v1, %v6697_v29  ;;  %v7230_v8 = vor.u32 %v7229_v58, %v7226_v36  ;;  %v7244_v2 = vrot.slane %v7242_v52, 1  ;;  %v7260_v46 = vshrl.u32 %v18506_v17, 16  ;;  %vm21004_vm15 = vmmov %vm21000_vm6 }
 0x2dc   : > { %v18528_v19 = vsel %vm20999_vm0, %v6697_v29, %v6699_v7  ;;  %v7247_v23 = vrot.slane %v7245_v18, 2  ;;  %v7253_v31 = vrot.slane %v7251_v12, 1  ;;  %v7263_v55 = vshll.u32 %v18506_v17, 16  ;;  %v14550_v18 = vld [vmem:[#allocation4 + $0x170] sm:$0xff]   ;;  %vm21005_vm1 = vmmov %vm20999_vm0 }
 0x2dd   : > { %13787 = vmatmul.mubr.bf16.gmra.mxu0 %v18462_v35  ;;  %v6701_v43 = vrot.slane %v18341_v40, 1  ;;  %v7256_v9 = vrot.slane %v7254_v61, 2  ;;  %v6703_v37 = vrot.slane %v18351_v3, 1  ;;  %v7222_v51 = vsel %vm21000_vm6, %v7212_v27, %v7221_v39  ;;  %v18551_v29 = vld [vmem:[#allocation3 + $0x58] sm:$0xff]   ;;  %vm21006_vm9 = vmmov %vm20999_vm0 }
 0x2de   : > { %13858 = vmatprep.mubr.bf16.mxu0 %v7213_v54  ;;  %v7269_v1 = vshrl.u32 %v18518_v28, 16  ;;  %v7272_v36 = vshll.u32 %v18518_v28, 16  ;;  %v7262_v38 = vrot.slane %v7260_v46, 1  ;;  %v7278_v58 = vshrl.u32 %v18521_v14, 16  ;;  %vm21007_vm11 = vmmov %vm20999_vm0 }
 0x2df   : > { %13731 = vmatmul.mubr.bf16.gmra.mxu1 %v6159_v56  ;;  %v18537_v49 = vsel %vm21001_vm4, %v6699_v7, %v6701_v43  ;;  %v7281_v52 = vshll.u32 %v18521_v14, 16  ;;  %v18542_v40 = vsel %vm21002_vm3, %v6701_v43, %v6703_v37  ;;  %v6175_v3 = vsel %vm21003_vm8, %v6170_v26, %v6174_v15  ;;  %v14670_v26 = vld [vmem:[#allocation3 + $0x10] sm:$0xff]   ;;  %vm21008_vm12 = vmmov %vm20999_vm0 }
 0x2e0   : > { %13734 = vmatprep.mubr.bf16.mxu1 %v6167_v45  ;;  %v7231_v27 = vsel %vm21004_vm15, %v7221_v39, %v7230_v8  ;;  %v7265_v56 = vrot.slane %v7263_v55, 2  ;;  %v6705_v54 = vrot.slane %v18414_v62, 1  ;;  %v6684_v12 = vsel %vm21005_vm1, %v18448_v63, %v6683_v10  ;;  %v14554_v45 = vld [vmem:[#allocation4 + $0x168] sm:$0xff]   ;;  %v18555_v62 = vld [vmem:[#allocation3 + $0x60] sm:$0xff]   ;;  %vm21009_vm5 = vmmov %vm20999_vm0 }
 0x2e1   : > { %v6707_v61 = vrot.slane %v18417_v13, 1  ;;  %v6685_v7 = vrot.slane %v14670_v26, 1  ;;  %v7271_v39 = vrot.slane %v7269_v1, 1  ;;  %v7274_v15 = vrot.slane %v7272_v36, 2  ;;  %vm21010_vm7 = vmmov %vm20999_vm0 }
 0x2e2   : > { %v18558_v46 = vsel %vm21006_vm9, %v6703_v37, %v6705_v54  ;;  %v7239_v55 = vor.u32 %v7238_v21, %v7235_v4  ;;  %v7280_v63 = vrot.slane %v7278_v58, 1  ;;  %v7283_v43 = vrot.slane %v7281_v52, 2  ;;  %vm21011_vm14 = vmmov %vm21000_vm6  ;;  %v14558_v58 = vld [vmem:[#allocation4 + $0x160] sm:$0xff]  }
 0x2e3   : > { %v7248_v13 = vor.u32 %v7247_v23, %v7244_v2  ;;  %v7287_v1 = vshrl.u32 %v18551_v29, 16  ;;  %v7290_v36 = vshll.u32 %v18551_v29, 16  ;;  %v6711_v37 = vrot.slane %v18434_v5, 1  ;;  %vm21012_vm13 = vmmov %vm20999_vm0 }
 0x2e4   : > { %v6686_v21 = vsel %vm21008_vm12, %v6683_v10, %v6685_v7  ;;  %v6688_v2 = vsel %vm21009_vm5, %v6685_v7, %v6687_v42  ;;  %v7275_v23 = vor.u32 %v7274_v15, %v7271_v39  ;;  %vm21013_vm10 = vmmov %vm21000_vm6  ;;  %v7928_v7 = vrot.slane %v18518_v28, 2 }
 0x2e5   : > { %13859 = vmatmul.mubr.bf16.vlgmr.msra.gmra.mxu0 %v7222_v51  ;;  %v18561_v51 = vsel %vm21007_vm11, %v6705_v54, %v6707_v61  ;;  %v7249_v41 = vsel %vm21013_vm10, %v7239_v55, %v7248_v13  ;;  %vm21014_vm0 = vmmov %vm21000_vm6  ;;  %v7289_v52 = vrot.slane %v7287_v1, 1  ;;  %v6715_v54 = vrot.slane %v18462_v35, 1 }
 0x2e6   : > { %13862 = vmatprep.mubr.bf16.mxu0 %v7231_v27  ;;  %13947 = vmatpush3.bf16.msra.mxu0 %v18159_v33  ;;  %v7266_v27 = vor.u32 %v7265_v56, %v7262_v38  ;;  %v7893_v33 = vld [vmem:[#allocation3 + $0x8] sm:$0xc]  ;;  %v18578_v38 = vor.u32 %v7283_v43, %v7280_v63  ;;  %vm21015_vm6 = vmmov %vm21014_vm0  ;;  %v7299_v56 = vshll.u32 %v18555_v62, 16  ;;  %v7914_v63 = vrot.slane %v18432_v30, 2  ;;  %v14562_v43 = vld [vmem:[#allocation4 + $0x158] sm:$0xff]  }
 0x2e7   : > { %13735 = vmatmul.mubr.bf16.gmra.mxu1 %v6175_v3  ;;  %13948 = vmatprep.subr.bf16.mxu0 %v14550_v18  ;;  %v7257_v3 = vor.u32 %v7256_v9, %v7253_v31  ;;  %v12635_v4 = vcombine.low %v7893_v33, %v18419_v57  ;;  %v7240_v31 = vsel %vm21011_vm14, %v7230_v8, %v7239_v55  ;;  %v14544_v9 = vld [vmem:[#allocation4 + $0xf0] sm:$0xff]   ;;  %v7296_v57 = vshrl.u32 %v18555_v62, 16  ;;  %vm21016_vm4 = vmmov %vm21014_vm0  ;;  %v14549_v55 = vld [vmem:[#allocation4 + $0xe8] sm:$0xff]  }
 0x2e8   : > { %13806 = vmatprep.mubr.bf16.mxu1 %v6684_v12  ;;  %v6709_v12 = vrot.slane %v18430_v0, 1  ;;  %v6713_v8 = vrot.slane %v18444_v44, 1  ;;  %vm21017_vm3 = vmmov %vm21005_vm1  ;;  %v5861_v44 = vsel %vm17683_vm2, 0, %v5860_v22  ;;  %v18615_v1 = vrot.slane %v7299_v56, 2  ;;  %v14557_v56 = vld [vmem:[#allocation4 + $0xd8] sm:$0xff]  }
 0x2e9   : > { %v7258_v10 = vsel %vm21014_vm0, %v7248_v13, %v7257_v3  ;;  %v7267_v42 = vsel %vm21015_vm6, %v7257_v3, %v7266_v27  ;;  %v7913_v39 = vrot.slane %v12635_v4, 2  ;;  %vm21019_vm8 = vmmov %vm21014_vm0  ;;  %v18603_v35 = vrot.slane %v7296_v57, 1  ;;  %5862 = vst [vmem:[#allocation3 + $0x98] sm:$0xe] %v5861_v44  ;;  %v14553_v4 = vld [vmem:[#allocation4 + $0xe0] sm:$0xff]   ;;  %v14565_v57 = vld [vmem:[#allocation4 + $0x150] sm:$0xff]  }
 0x2ea   : > { %13949 = vmatpush3.bf16.msra.mxu0 %v14550_v18  ;;  %v18575_v0 = vsel %vm21010_vm7, %v6707_v61, %v6709_v12  ;;  %v18582_v5 = vsel %vm21012_vm13, %v6709_v12, %v6711_v37  ;;  %v7292_v18 = vrot.slane %v7290_v36, 2  ;;  %v18592_v61 = vsel %vm21016_vm4, %v7266_v27, %v7275_v23  ;;  %vm21020_vm15 = vmmov %vm21005_vm1 }
 0x2eb   : > { %13950 = vmatprep.subr.bf16.mxu0 %v14554_v45  ;;  %v18595_v26 = vsel %vm21017_vm3, %v6711_v37, %v6713_v8  ;;  %v18601_v15 = vsel %vm21019_vm8, %v7275_v23, %v18578_v38  ;;  %v6717_v13 = vrot.slane %v18476_v32, 1  ;;  %v7613_v3 = vrot.slane %v18437_v24, 1  ;;  %vm21022_vm9 = vmmov %vm21005_vm1 }
 0x2ec   : > { %v7614_v27 = vrot.slane %v18432_v30, 1  ;;  %v7916_v12 = vrot.slane %v18440_v60, 2  ;;  %v18613_v33 = vor.u32 %v7292_v18, %v7289_v52  ;;  %vm21021_vm2 = vcmask 1045504   ;;  %vm21025_vm5 = vmmov %vm21005_vm1 }
 0x2ed   : > { %13863 = vmatmul.mubr.bf16.gmra.mxu0 %v7240_v31  ;;  %v7918_v36 = vrot.slane %v18460_v48, 2  ;;  %v18622_v37 = vsel %vm21005_vm1, %v6715_v54, %v6717_v13  ;;  %vm21023_vm11 = vmmov %vm21021_vm2  ;;  %v7616_v24 = vrot.slane %v18440_v60, 1  ;;  %v7920_v23 = vrot.slane %v18470_v50, 2 }
 0x2ee   : > { %13866 = vmatprep.mubr.bf16.mxu0 %v7249_v41  ;;  %13951 = vmatpush3.bf16.msra.mxu0 %v14554_v45  ;;  %v18618_v45 = vsel %vm21021_vm2, %v7913_v39, %v7914_v63  ;;  %v18625_v32 = vsel %vm21022_vm9, %v7613_v3, %v7614_v27  ;;  %v18628_v30 = vsel %vm21023_vm11, %v7914_v63, %v7916_v12  ;;  %vm21024_vm12 = vmmov %vm21021_vm2  ;;  %v7922_v31 = vrot.slane %v18488_v47, 2  ;;  %v14568_v63 = vld [vmem:[#allocation4 + $0x148] sm:$0xff]  }
 0x2ef   : > { %13807 = vmatmul.mubr.bf16.vlgmr.msra.gmra.mxu1 %v6686_v21  ;;  %13952 = vmatprep.subr.bf16.mxu0 %v14558_v58  ;;  %v18632_v21 = vsel %vm21024_vm12, %v7916_v12, %v7918_v36  ;;  %v18640_v22 = vsel %vm21025_vm5, %v7614_v27, %v7616_v24  ;;  %v7620_v60 = vrot.slane %v18470_v50, 1  ;;  %v7622_v41 = vrot.slane %v18488_v47, 1  ;;  %vm21026_vm7 = vmmov %vm21005_vm1  ;;  %v18657_v50 = vld [vmem:[#allocation3 + $0x70] sm:$0xff]  }
 0x2f0   : > { %13810 = vmatprep.mubr.bf16.mxu1 %v6688_v2  ;;  %13895 = vmatpush3.bf16.msra.mxu1 %v18271_v16  ;;  %v18606_v16 = vsel %vm21020_vm15, %v6713_v8, %v6715_v54  ;;  %v7618_v2 = vrot.slane %v18460_v48, 1  ;;  %vm21027_vm14 = vmmov %vm21021_vm2  ;;  %v7926_v52 = vrot.slane %v18506_v17, 2  ;;  %v7624_v18 = vrot.slane %v18494_v6, 1 }
 0x2f1   : > { %13896 = vmatprep.subr.bf16.mxu1 %v14544_v9  ;;  %vm21028_vm13 = vmmov %vm21021_vm2  ;;  %v7930_v44 = vrot.slane %v18521_v14, 2  ;;  %v7630_v27 = vrot.slane %v18521_v14, 1  ;;  %v7934_v14 = vrot.slane %v18555_v62, 2  ;;  %vm21038_vm11 = vsmask.f32 6400 }
 0x2f2   : > { %13953 = vmatpush3.bf16.msra.mxu0 %v14558_v58  ;;  %v7924_v58 = vrot.slane %v18494_v6, 2  ;;  %v18647_v48 = vsel %vm21026_vm7, %v7616_v24, %v7618_v2  ;;  %v18653_v8 = vsel %vm21028_vm13, %v7920_v23, %v7922_v31  ;;  %vm21029_vm10 = vmmov %vm21005_vm1 }
 0x2f3   : > { %13954 = vmatprep.subr.bf16.mxu0 %v14562_v43  ;;  %v18660_v47 = vsel %vm21029_vm10, %v7618_v2, %v7620_v60  ;;  %vm21030_vm0 = vmmov %vm21005_vm1  ;;  %v18688_v3 = vsel %vm21021_vm2, %v7928_v7, %v7930_v44  ;;  %v18697_v2 = vld [vmem:[#allocation3 + $0x78] sm:$0xff]  }
 0x2f4   : > { %13897 = vmatpush3.bf16.msra.mxu1 %v14544_v9  ;;  %v18637_v9 = vld [vmem:[#allocation3 + $0x68] sm:$0xff]   ;;  %vm21031_vm6 = vmmov %vm21021_vm2 }
 0x2f5   : > { %13898 = vmatprep.subr.bf16.mxu1 %v14549_v55  ;;  %13867 = vmatmul.mubr.bf16.gmra.mxu0 %v7258_v10  ;;  %v18650_v10 = vsel %vm21027_vm14, %v7918_v36, %v7920_v23  ;;  %vm21032_vm4 = vmmov %vm21021_vm2  ;;  %v18699_v23 = vld [vmem:[#allocation3 + $0x80] sm:$0xff]  }
 0x2f6   : > { %13870 = vmatprep.mubr.bf16.mxu0 %v7267_v42  ;;  %v18666_v42 = vsel %vm21031_vm6, %v7922_v31, %v7924_v58  ;;  %13955 = vmatpush3.bf16.msra.mxu0 %v14562_v43  ;;  %v18670_v54 = vsel %vm21032_vm4, %v7924_v58, %v7926_v52  ;;  %vm21033_vm3 = vmmov %vm21030_vm0  ;;  %v7628_v43 = vrot.slane %v18518_v28, 1  ;;  %v7932_v28 = vrot.slane %v18551_v29, 2  ;;  %v14561_v31 = vld [vmem:[#allocation4 + $0xd0] sm:$0xff]  }
 0x2f7   : > { %13811 = vmatmul.mubr.bf16.gmra.mxu1 %v18484_v20  ;;  %v18663_v20 = vsel %vm21030_vm0, %v7620_v60, %v7622_v41  ;;  %13956 = vmatprep.subr.bf16.mxu0 %v14565_v57  ;;  %v18678_v6 = vsel %vm21033_vm3, %v7622_v41, %v7624_v18  ;;  %vm21034_vm8 = vmmov %vm21030_vm0  ;;  %v7634_v41 = vrot.slane %v18555_v62, 1  ;;  %v7294_v58 = vsel %vm21038_vm11, %v18578_v38, %v18613_v33 }
 0x2f8   : > { %13814 = vmatprep.mubr.bf16.mxu1 %v18491_v34  ;;  %13899 = vmatpush3.bf16.msra.mxu1 %v14549_v55  ;;  %v7626_v34 = vrot.slane %v18506_v17, 1  ;;  %vm21035_vm15 = vmmov %vm21021_vm2 }
 0x2f9   : > { %13900 = vmatprep.subr.bf16.mxu1 %v14553_v4  ;;  %v18685_v17 = vsel %vm21035_vm15, %v7926_v52, %v7928_v7  ;;  %vm21036_vm1 = vmmov %vm21030_vm0  ;;  %v18711_v52 = vld [vmem:[#allocation3 + $0x88] sm:$0xff]   ;;  %v7936_v7 = vrot.slane %v18637_v9, 2 }
 0x2fa   : > { %v18682_v13 = vsel %vm21034_vm8, %v7624_v18, %v7626_v34  ;;  %v18694_v24 = vsel %vm21036_vm1, %v7626_v34, %v7628_v43  ;;  %13957 = vmatpush3.bf16.msra.mxu0 %v14565_v57  ;;  %vm21037_vm9 = vmmov %vm21030_vm0  ;;  %v18713_v18 = vld [vmem:[#allocation3 + $0x90] sm:$0xff]   ;;  %v14570_v57 = vld [vmem:[#allocation4 + $0x140] sm:$0xff]   ;;  %v7944_v12 = vrot.slane %v18711_v52, 2  ;;  %v7644_v11 = vrot.slane %v18711_v52, 1 }
 0x2fb   : > { %v18702_v60 = vsel %vm21037_vm9, %v7628_v43, %v7630_v27  ;;  %13958 = vmatprep.subr.bf16.mxu0 %v14568_v63  ;;  %vm21039_vm12 = vmmov %vm21021_vm2  ;;  %v7302_v43 = vor.u32 %v18615_v1, %v18603_v35  ;;  %v7942_v35 = vrot.slane %v18699_v23, 2  ;;  %v7640_v1 = vrot.slane %v18697_v2, 1 }
 0x2fc   : > { %13901 = vmatpush3.bf16.msra.mxu1 %v14553_v4  ;;  %v7632_v4 = vrot.slane %v18551_v29, 1  ;;  %v18716_v34 = vsel %vm21039_vm12, %v7930_v44, %v7932_v28  ;;  %v7938_v29 = vrot.slane %v18657_v50, 2  ;;  %vm21040_vm5 = vmmov %vm21021_vm2  ;;  %v7636_v44 = vrot.slane %v18637_v9, 1 }
 0x2fd   : > { %13902 = vmatprep.subr.bf16.mxu1 %v14557_v56  ;;  %13871 = vmatmul.mubr.bf16.gmra.mxu0 %v18592_v61  ;;  %v18723_v62 = vsel %vm21040_vm5, %v7932_v28, %v7934_v14  ;;  %vm21041_vm7 = vmmov %vm21030_vm0 }
 0x2fe   : > { %13874 = vmatprep.mubr.bf16.mxu0 %v18601_v15  ;;  %v18726_v38 = vsel %vm21041_vm7, %v7630_v27, %v7632_v4  ;;  %vm21042_vm14 = vmmov %vm21030_vm0  ;;  %v7638_v27 = vrot.slane %v18657_v50, 1  ;;  %13959 = vmatpush3.bf16.msra.mxu0 %v14568_v63  ;;  %v18745_v36 = vsel %vm21030_vm0, %v7634_v41, %v7636_v44  ;;  %v7946_v63 = vrot.slane %v18713_v18, 2 }
 0x2ff   : > { %13815 = vmatmul.mubr.bf16.gmra.mxu1 %v18502_v25  ;;  %v18729_v61 = vsel %vm21042_vm14, %v7632_v4, %v7634_v41  ;;  %v14566_v25 = vld [vmem:[#allocation4 + $0xc8] sm:$0xff]   ;;  %vm21043_vm13 = vmmov %vm21021_vm2  ;;  %v18742_v4 = vld [vmem:[#allocation3 + $0x98] ss:$0 sps:$4 sm:$0x33]   ;;  %21045 = vst [vmem:[#allocation57_spill] sm:$0xff] %v18745_v36  ;;  %13960 = vmatprep.subr.bf16.mxu0 %v14570_v57 }
 0x300   : > { %13818 = vmatprep.mubr.bf16.mxu1 %v18509_v59  ;;  %13903 = vmatpush3.bf16.msra.mxu1 %v14557_v56  ;;  %v18736_v15 = vsel %vm21043_vm13, %v7934_v14, %v7936_v7  ;;  %vm21044_vm10 = vmmov %vm21021_vm2  ;;  %v7940_v59 = vrot.slane %v18697_v2, 2  ;;  %v18750_v56 = vld [vmem:[#allocation4 + $0x1b8] sm:$0xff]  }
 0x301   : > { %v18739_v28 = vsel %vm21044_vm10, %v7936_v7, %v7938_v29  ;;  %13904 = vmatprep.subr.bf16.mxu1 %v14561_v31  ;;  %vm21046_vm6 = vmmov %vm21030_vm0  ;;  %v7642_v7 = vrot.slane %v18699_v23, 1 }
 0x302   : > { %v18753_v14 = vsel %vm21046_vm6, %v7636_v44, %v7638_v27  ;;  %vm21048_vm4 = vmmov %vm21021_vm2  ;;  %13961 = vmatpush3.bf16.msra.mxu0 %v14570_v57 }
 0x303   : > { %21047 = vst [vmem:[#allocation13_spill] sm:$0xff] %v18753_v14  ;;  %v18759_v41 = vsel %vm21048_vm4, %v7938_v29, %v7940_v59  ;;  %vm21049_vm3 = vmmov %vm21021_vm2  ;;  %v18772_v14 = vsel %vm21021_vm2, %v7942_v35, %v7944_v12  ;;  %v21060_v29 = vshrl.u32 %v18657_v50, 16  ;;  %14050 = vmatprep.subr.bf16.mxu0 %v18750_v56 }
 0x304   : > { %v18762_v55 = vsel %vm21049_vm3, %v7940_v59, %v7942_v35  ;;  %vm21051_vm8 = vmmov %vm21030_vm0  ;;  %13905 = vmatpush3.bf16.msra.mxu1 %v14561_v31  ;;  %v21057_v59 = vshrl.u32 %v18637_v9, 16  ;;  %v14571_v31 = vld [vmem:[#allocation4 + $0xc0] sm:$0xff]   ;;  %v7948_v35 = vrot.slane %v18742_v4, 2  ;;  %vm21072_vm3 = vcmask 1044480  }
 0x305   : > { %21050 = vst [vmem:[#allocation14_spill] sm:$0xff] %v18762_v55  ;;  %v18765_v39 = vsel %vm21051_vm8, %v7638_v27, %v7640_v1  ;;  %vm21053_vm15 = vmmov %vm21030_vm0  ;;  %v21058_v27 = vshll.u32 %v18637_v9, 16  ;;  %13906 = vmatprep.subr.bf16.mxu1 %v14566_v25  ;;  %13875 = vmatmul.mubr.bf16.gmra.mxu0 %v7294_v58  ;;  %v21062_v9 = vrot.slane %v18713_v18, 1 }
 0x306   : > { %21052 = vst [vmem:[#allocation16_spill] sm:$0xff] %v18765_v39  ;;  %v18769_v44 = vsel %vm21053_vm15, %v7640_v1, %v7642_v7  ;;  %vm21055_vm1 = vmmov %vm21021_vm2  ;;  %v7307_v55 = vrot.slane %v21057_v59, 1  ;;  %v21061_v59 = vshll.u32 %v18657_v50, 16  ;;  %v7323_v50 = vshrl.u32 %v18697_v2, 16 }
 0x307   : > { %21054 = vst [vmem:[#allocation17_spill] sm:$0xff] %v18769_v44  ;;  %v18775_v36 = vsel %vm21055_vm1, %v7944_v12, %v7946_v63  ;;  %v7310_v39 = vrot.slane %v21058_v27, 2  ;;  %vm21059_vm9 = vmmov %vm21030_vm0  ;;  %v7303_v12 = vsel %vm21038_vm11, %v18613_v33, %v7302_v43  ;;  %v7316_v44 = vrot.slane %v21060_v29, 1  ;;  %13819 = vmatmul.mubr.bf16.gmra.mxu1 %v18524_v53  ;;  %v18805_v29 = vld [vmem:[#allocation4 + $0x1f8] sm:$0xff]  }
 0x308   : > { %21056 = vst [vmem:[#allocation18_spill] sm:$0xff] %v18775_v36  ;;  %v18783_v1 = vsel %vm21059_vm9, %v7642_v7, %v7644_v11  ;;  %v7319_v36 = vrot.slane %v21061_v59, 2  ;;  %vm21063_vm12 = vmmov %vm21030_vm0  ;;  %13878 = vmatprep.mubr.bf16.mxu0 %v7303_v12  ;;  %13822 = vmatprep.mubr.bf16.mxu1 %v18528_v19  ;;  %v7326_v7 = vshll.u32 %v18697_v2, 16  ;;  %v7335_v53 = vshll.u32 %v18699_v23, 16 }
 0x309   : > { %v18796_v57 = vsel %vm21063_vm12, %v7644_v11, %v21062_v9  ;;  %vm21064_vm5 = vmmov %vm21055_vm1  ;;  %13907 = vmatpush3.bf16.msra.mxu1 %v14566_v25  ;;  %v7311_v33 = vor.u32 %v7310_v39, %v7307_v55  ;;  %v7332_v11 = vshrl.u32 %v18699_v23, 16  ;;  %v7341_v2 = vshrl.u32 %v18711_v52, 16 }
 0x30a   : > { %v18800_v58 = vsel %vm21064_vm5, %v7946_v63, %v7948_v35  ;;  %13908 = vmatprep.subr.bf16.mxu1 %v14571_v31  ;;  %v7320_v27 = vor.u32 %v7319_v36, %v7316_v44  ;;  %vm21065_vm7 = vmmov %vm21038_vm11  ;;  %v7325_v35 = vrot.slane %v7323_v50, 1  ;;  %v7328_v12 = vrot.slane %v7326_v7, 2 }
 0x30b   : > { %v7312_v63 = vsel %vm21065_vm7, %v7302_v43, %v7311_v33  ;;  %vm21066_vm14 = vmmov %vm21065_vm7  ;;  %v7334_v39 = vrot.slane %v7332_v11, 1  ;;  %v7337_v55 = vrot.slane %v7335_v53, 2  ;;  %v7344_v23 = vshll.u32 %v18711_v52, 16 }
 0x30c   : > { %v7321_v19 = vsel %vm21066_vm14, %v7311_v33, %v7320_v27  ;;  %v7329_v36 = vor.u32 %v7328_v12, %v7325_v35  ;;  %v7350_v25 = vshrl.u32 %v18713_v18, 16  ;;  %v7353_v44 = vshll.u32 %v18713_v18, 16  ;;  %vm21067_vm13 = vmmov %vm21065_vm7 }
 0x30d   : > { %13909 = vmatpush3.bf16.msra.mxu1 %v14571_v31  ;;  %13879 = vmatmul.mubr.bf16.gmra.mxu0 %v7312_v63  ;;  %v7338_v43 = vor.u32 %v7337_v55, %v7334_v39  ;;  %v7343_v59 = vrot.slane %v7341_v2, 1  ;;  %v7346_v9 = vrot.slane %v7344_v23, 2  ;;  %vm21068_vm10 = vmmov %vm21065_vm7  ;;  %v7359_v52 = vshrl.u32 %v18742_v4, 16  ;;  %v18836_v55 = vld [vmem:[#allocation3 + $0x20] sm:$0xff]   ;;  %v18847_v23 = vld [vmem:[#allocation3 + $0x48] sm:$0xff]  }
 0x30e   : > { %13998 = vmatprep.subr.bf16.mxu1 %v18805_v29  ;;  %13882 = vmatprep.mubr.bf16.mxu0 %v7321_v19  ;;  %v7330_v31 = vsel %vm21067_vm13, %v7320_v27, %v7329_v36  ;;  %v7352_v33 = vrot.slane %v7350_v25, 1  ;;  %v7355_v50 = vrot.slane %v7353_v44, 2  ;;  %v7362_v7 = vshll.u32 %v18742_v4, 16  ;;  %vm21069_vm0 = vmmov %vm21065_vm7  ;;  %v18829_v19 = vld [vmem:[#allocation3 + $0x14] sm:$0xf]  ;;  %v18831_v4 = vld [vmem:[#allocation3 + $0x18] sm:$0xff]  }
 0x30f   : > { %13823 = vmatmul.mubr.bf16.gmra.mxu1 %v18537_v49  ;;  %v7339_v49 = vsel %vm21068_vm10, %v7329_v36, %v7338_v43  ;;  %v7361_v53 = vrot.slane %v7359_v52, 1  ;;  %vm21070_vm6 = vmmov %vm21069_vm0  ;;  %v18843_v36 = vld [vmem:[#allocation3 + $0x38] sm:$0xff]   ;;  %v18845_v2 = vld [vmem:[#allocation3 + $0x40] sm:$0xff]   ;;  %v9217_v25 = vrot.slane %v18831_v4, 3  ;;  %v9219_v44 = vrot.slane %v18836_v55, 3 }
 0x310   : > { %13826 = vmatprep.mubr.bf16.mxu1 %v18542_v40  ;;  %v7347_v40 = vor.u32 %v7346_v9, %v7343_v59  ;;  %v7356_v11 = vor.u32 %v7355_v50, %v7352_v33  ;;  %v7364_v63 = vrot.slane %v7362_v7, 2  ;;  %vm21071_vm4 = vmmov %vm21069_vm0  ;;  %v18859_v59 = vld [vmem:[#allocation3 + $0x70] sm:$0xff]   ;;  %v9225_v50 = vrot.slane %v18843_v36, 3  ;;  %v18867_v52 = vld [vmem:[#allocation3 + $0x78] sm:$0xff]  }
 0x311   : > { %v18869_v7 = vld [vmem:[#allocation3 + $0x80] sm:$0xff]   ;;  %vm21073_vm8 = vmmov %vm21072_vm3 }
 0x312   : > { %v7348_v27 = vsel %vm21069_vm0, %v7338_v43, %v7347_v40  ;;  %v7357_v35 = vsel %vm21070_vm6, %v7347_v40, %v7356_v11  ;;  %v14576_v40 = vld [vmem:[#allocation4 + $0x1b0] sm:$0xff]   ;;  %vm21074_vm15 = vmmov %vm21072_vm3 }
 0x313   : > { %vm21076_vm2 = vmmov %vm21072_vm3 }
 0x314   : > { %vm21078_vm1 = vmmov %vm21076_vm2 }
 0x315   : > { %13883 = vmatmul.mubr.bf16.gmra.mxu0 %v7330_v31  ;;  %v18857_v31 = vld [vmem:[#allocation3 + $0x68] sm:$0xff]   ;;  %vm21080_vm9 = vmmov %vm21078_vm1 }
 0x316   : > { %13886 = vmatprep.mubr.bf16.mxu0 %v7339_v49  ;;  %vm21082_vm11 = vmmov %vm21078_vm1 }
 0x317   : > { %13827 = vmatmul.mubr.bf16.gmra.mxu1 %v18558_v46  ;;  %v7365_v46 = vor.u32 %v7364_v63, %v7361_v53  ;;  %v18876_v53 = vld [vmem:[#allocation3 + $0x88] sm:$0xff]   ;;  %vm21084_vm12 = vmmov %vm21078_vm1 }
 0x318   : > { %13830 = vmatprep.mubr.bf16.mxu1 %v18561_v51  ;;  %v9196_v51 = vld [vmem:[#allocation3 + $0x10] sm:$0x8]  ;;  %vm21086_vm5 = vmmov %vm21078_vm1 }
 0x319   : > { %v7366_v12 = vsel %vm21071_vm4, %v7356_v11, %v7365_v46  ;;  %v12680_v39 = vcombine.low %v9196_v51, %v18829_v19  ;;  %v18872_v11 = vsel %vm21073_vm8, %v9217_v25, %v9219_v44  ;;  %v9229_v51 = vrot.slane %v18847_v23, 3  ;;  %vm21088_vm7 = vmmov %vm21078_vm1 }
 0x31a   : > { %vm21090_vm14 = vmmov %vm21078_vm1 }
 0x31b   : > { %v9216_v43 = vrot.slane %v12680_v39, 3  ;;  %vm21092_vm13 = vmmov %vm21078_vm1 }
 0x31c   : > { %vm21094_vm10 = vmmov %vm21078_vm1 }
 0x31d   : > { %13887 = vmatmul.mubr.bf16.gmra.mxu0 %v7348_v27  ;;  %v18862_v9 = vsel %vm21072_vm3, %v9216_v43, %v9217_v25  ;;  %v9227_v27 = vrot.slane %v18845_v2, 3  ;;  %vm21096_vm0 = vmmov %vm21078_vm1 }
 0x31e   : > { %13890 = vmatprep.mubr.bf16.mxu0 %v7357_v35  ;;  %vm21098_vm6 = vmmov %vm21096_vm0 }
 0x31f   : > { %13831 = vmatmul.mubr.bf16.gmra.mxu1 %v18575_v0  ;;  %v18839_v0 = vld [vmem:[#allocation3 + $0x28] sm:$0xff]   ;;  %v18895_v39 = vsel %vm21080_vm9, %v9225_v50, %v9227_v27  ;;  %vm21100_vm4 = vmmov %vm21096_vm0 }
 0x320   : > { %13834 = vmatprep.mubr.bf16.mxu1 %v18582_v5  ;;  %v18841_v5 = vld [vmem:[#allocation3 + $0x30] sm:$0xff]   ;;  %v9221_v49 = vrot.slane %v18839_v0, 3  ;;  %21081 = vst [vmem:[#allocation64_spill] sm:$0xff] %v18895_v39  ;;  %vm21102_vm3 = vmmov %vm21096_vm0 }
 0x321   : > { %v9223_v33 = vrot.slane %v18841_v5, 3  ;;  %vm21104_vm8 = vmmov %vm21096_vm0 }
 0x322   : > { %v18879_v63 = vsel %vm21074_vm15, %v9219_v44, %v9221_v49  ;;  %v18901_v44 = vld [vmem:[#allocation3 + $0xa0] ss:$0 sps:$4 sm:$0x77]   ;;  %vm21112_vm15 = vcmask 1045504  }
 0x323   : > { %21075 = vst [vmem:[#allocation46_spill] sm:$0xff] %v18879_v63  ;;  %v18882_v35 = vsel %vm21076_vm2, %v9221_v49, %v9223_v33  ;;  %v18885_v46 = vsel %vm21078_vm1, %v9223_v33, %v9225_v50  ;;  %v9237_v49 = vrot.slane %v18857_v31, 3  ;;  %v9239_v33 = vrot.slane %v18859_v59, 3  ;;  %v14578_v50 = vld [vmem:[#allocation4 + $0x1a8] sm:$0xff]   ;;  %vm21113_vm2 = vmmov %vm21112_vm15 }
 0x324   : > { %21077 = vst [vmem:[#allocation60_spill] sm:$0xff] %v18882_v35  ;;  %21079 = vst [vmem:[#allocation62_spill] sm:$0xff] %v18885_v46  ;;  %v9243_v46 = vrot.slane %v18869_v7, 3  ;;  %v9245_v63 = vrot.slane %v18876_v53, 3  ;;  %vm21115_vm1 = vcmask 1046528  }
 0x325   : > { %13891 = vmatmul.mubr.bf16.gmra.mxu0 %v7366_v12  ;;  %v18890_v12 = vld [vmem:[#allocation3 + $0x90] sm:$0xff]   ;;  %v18924_v35 = vsel %vm21092_vm13, %v9237_v49, %v9239_v33  ;;  %vm21116_vm9 = vmmov %vm21113_vm2 }
 0x326   : > { %13962 = vmatprep.mubr.bf16.mxu0 %v18618_v45  ;;  %v18852_v45 = vld [vmem:[#allocation3 + $0x58] sm:$0xff]   ;;  %21093 = vst [vmem:[#allocation68_spill] sm:$0xff] %v18924_v35  ;;  %vm21122_vm13 = vmmov %vm21113_vm2 }
 0x327   : > { %13835 = vmatmul.mubr.bf16.gmra.mxu1 %v18595_v26  ;;  %v18850_v26 = vld [vmem:[#allocation3 + $0x50] sm:$0xff]   ;;  %v9233_v25 = vrot.slane %v18852_v45, 3 }
 0x328   : > { %13838 = vmatprep.mubr.bf16.mxu1 %v18606_v16  ;;  %v18855_v16 = vld [vmem:[#allocation3 + $0x60] sm:$0xff]   ;;  %v9231_v43 = vrot.slane %v18850_v26, 3 }
 0x32a   : > { %v18910_v39 = vsel %vm21084_vm12, %v9229_v51, %v9231_v43  ;;  %vm21118_vm12 = vmmov %vm21113_vm2 }
 0x32b   : > { %21085 = vst [vmem:[#allocation59_spill] sm:$0xff] %v18910_v39 }
 0x32d   : > { %13963 = vmatmul.mubr.bf16.vlgmr.msra.gmra.mxu0 %v18628_v30  ;;  %v18892_v30 = vld [vmem:[#allocation3 + $0x98] sm:$0xff]  }
 0x32e   : > { %13966 = vmatprep.mubr.bf16.mxu0 %v18632_v21  ;;  %14051 = vmatpush3.bf16.msra.mxu0 %v18750_v56  ;;  %v9235_v21 = vrot.slane %v18855_v16, 3  ;;  %v9241_v56 = vrot.slane %v18867_v52, 3  ;;  %v9249_v39 = vrot.slane %v18892_v30, 3 }
 0x32f   : > { %13839 = vmatmul.mubr.bf16.gmra.mxu1 %v18622_v37  ;;  %v18904_v37 = vsel %vm21082_vm11, %v9227_v27, %v9229_v51  ;;  %14052 = vmatprep.subr.bf16.mxu0 %v14576_v40  ;;  %vm21117_vm11 = vsmask.f32 5376 }
 0x330   : > { %13910 = vmatprep.mubr.bf16.mxu1 %v18625_v32  ;;  %21083 = vst [vmem:[#allocation58_spill] sm:$0xff] %v18904_v37  ;;  %v18913_v32 = vsel %vm21086_vm5, %v9231_v43, %v9233_v25  ;;  %v18918_v27 = vsel %vm21088_vm7, %v9233_v25, %v9235_v21  ;;  %v18921_v37 = vsel %vm21090_vm14, %v9235_v21, %v9237_v49  ;;  %v9251_v21 = vrot.slane %v18901_v44, 3  ;;  %v14573_v49 = vld [vmem:[#allocation4 + $0x1f0] sm:$0xff]   ;;  %vm21119_vm5 = vmmov %vm21113_vm2 }
 0x331   : > { %21087 = vst [vmem:[#allocation61_spill] sm:$0xff] %v18913_v32  ;;  %21089 = vst [vmem:[#allocation63_spill] sm:$0xff] %v18918_v27  ;;  %v18928_v51 = vsel %vm21094_vm10, %v9239_v33, %v9241_v56  ;;  %v18931_v43 = vsel %vm21096_vm0, %v9241_v56, %v9243_v46  ;;  %v9247_v32 = vrot.slane %v18890_v12, 3  ;;  %v18936_v25 = vsel %vm21098_vm6, %v9243_v46, %v9245_v63  ;;  %v14580_v56 = vld [vmem:[#allocation4 + $0x1a0] sm:$0xff]   ;;  %v14583_v46 = vld [vmem:[#allocation4 + $0x190] sm:$0xff]  }
 0x332   : > { %21091 = vst [vmem:[#allocation67_spill] sm:$0xff] %v18921_v37  ;;  %21095 = vst [vmem:[#allocation65_spill] sm:$0xff] %v18928_v51  ;;  %14053 = vmatpush3.bf16.msra.mxu0 %v14576_v40  ;;  %v14575_v40 = vld [vmem:[#allocation4 + $0x1e8] sm:$0xff]  }
 0x333   : > { %21097 = vst [vmem:[#allocation66_spill] sm:$0xff] %v18931_v43  ;;  %21099 = vst [vmem:[#allocation70_spill] sm:$0xff] %v18936_v25  ;;  %14054 = vmatprep.subr.bf16.mxu0 %v14578_v50  ;;  %v18940_v35 = vsel %vm21100_vm4, %v9245_v63, %v9247_v32  ;;  %v18943_v33 = vsel %vm21102_vm3, %v9247_v32, %v9249_v39  ;;  %v18947_v43 = vsel %vm21104_vm8, %v9249_v39, %v9251_v21  ;;  %v14582_v63 = vld [vmem:[#allocation4 + $0x198] sm:$0xff]  }
 0x334   : > { %21101 = vst [vmem:[#allocation23_spill] sm:$0xff] %v18940_v35  ;;  %21103 = vst [vmem:[#allocation69_spill] sm:$0xff] %v18943_v33  ;;  %v14614_v33 = vld [vmem:[#allocation4 + $0x210] sm:$0xff]  }
 0x335   : > { %13967 = vmatmul.mubr.bf16.gmra.mxu0 %v18650_v10  ;;  %21105 = vst [vmem:[#allocation15_spill] sm:$0xff] %v18947_v43  ;;  %v14577_v10 = vld [vmem:[#allocation4 + $0x1e0] sm:$0xff]   ;;  %vm21120_vm7 = vmmov %vm21117_vm11 }
 0x336   : > { %13970 = vmatprep.mubr.bf16.mxu0 %v18653_v8  ;;  %14055 = vmatpush3.bf16.msra.mxu0 %v14578_v50  ;;  %v14581_v8 = vld [vmem:[#allocation4 + $0x1d0] sm:$0xff]   ;;  %vm21121_vm14 = vmmov %vm21120_vm7 }
 0x337   : > { %13911 = vmatmul.mubr.bf16.vlgmr.msra.gmra.mxu1 %v18640_v22  ;;  %14056 = vmatprep.subr.bf16.mxu0 %v14580_v56  ;;  %v14579_v22 = vld [vmem:[#allocation4 + $0x1d8] sm:$0xff]   ;;  %vm21123_vm10 = vmmov %vm21113_vm2 }
 0x338   : > { %13914 = vmatprep.mubr.bf16.mxu1 %v18647_v48  ;;  %13999 = vmatpush3.bf16.msra.mxu1 %v18805_v29  ;;  %v14585_v48 = vld [vmem:[#allocation4 + $0x188] sm:$0xff]   ;;  %v18973_v29 = vld [vmem:[#allocation4 + $0x238] sm:$0xff]   ;;  %vm21124_vm0 = vmmov %vm21120_vm7 }
 0x339   : > { %14000 = vmatprep.subr.bf16.mxu1 %v14573_v49  ;;  %vm21125_vm6 = vmmov %vm21124_vm0 }
 0x33a   : > { %14057 = vmatpush3.bf16.msra.mxu0 %v14580_v56  ;;  %v21106_v56 = vld [vmem:[#allocation57_spill] sm:$0xff]  ;;  %vm21127_vm4 = vmmov %vm21113_vm2 }
 0x33b   : > { %14058 = vmatprep.subr.bf16.mxu0 %v14582_v63  ;;  %vm21128_vm3 = vmmov %vm21113_vm2 }
 0x33c   : > { %14001 = vmatpush3.bf16.msra.mxu1 %v14573_v49  ;;  %vm21129_vm8 = vmmov %vm21124_vm0 }
 0x33d   : > { %14002 = vmatprep.subr.bf16.mxu1 %v14575_v40  ;;  %13971 = vmatmul.mubr.bf16.gmra.mxu0 %v18666_v42  ;;  %v14588_v42 = vld [vmem:[#allocation4 + $0x180] sm:$0xff]  }
 0x33e   : > { %13974 = vmatprep.mubr.bf16.mxu0 %v18670_v54  ;;  %14059 = vmatpush3.bf16.msra.mxu0 %v14582_v63  ;;  %v18964_v54 = vld [vmem:[%s20482_s5 + $0x38] sm:$0xff]   ;;  %v21108_v63 = vld [vmem:[#allocation13_spill] sm:$0xff] }
 0x33f   : > { %13915 = vmatmul.mubr.bf16.gmra.mxu1 %v18660_v47  ;;  %14060 = vmatprep.subr.bf16.mxu0 %v14583_v46  ;;  %v14584_v47 = vld [vmem:[#allocation4 + $0x1c8] sm:$0xff]  }
 0x340   : > { %13918 = vmatprep.mubr.bf16.mxu1 %v18663_v20  ;;  %14003 = vmatpush3.bf16.msra.mxu1 %v14575_v40  ;;  %v13756_v20 = vpop.f32.mrf.mxu0  ;;  %v21107_v40 = vld [vmem:[#allocation14_spill] sm:$0xff] }
 0x341   : > { %14004 = vmatprep.subr.bf16.mxu1 %v14577_v10 }
 0x342   : > { %14061 = vmatpush3.bf16.msra.mxu0 %v14583_v46  ;;  %v8337_v46 = vld [vmem:[#allocation3 + $0x10] sm:$0xc] }
 0x343   : > { %14062 = vmatprep.subr.bf16.mxu0 %v14585_v48 }
 0x344   : > { %14005 = vmatpush3.bf16.msra.mxu1 %v14577_v10 }
 0x345   : > { %14006 = vmatprep.subr.bf16.mxu1 %v14579_v22  ;;  %13975 = vmatmul.mubr.bf16.gmra.mxu0 %v18685_v17  ;;  %v14589_v17 = vld [vmem:[#allocation4 + $0x1c0] sm:$0xff]  }
 0x346   : > { %13978 = vmatprep.mubr.bf16.mxu0 %v18688_v3  ;;  %14063 = vmatpush3.bf16.msra.mxu0 %v14585_v48  ;;  %v21111_v48 = vld [vmem:[#allocation17_spill] sm:$0xff] }
 0x347   : > { %13919 = vmatmul.mubr.bf16.gmra.mxu1 %v18678_v6  ;;  %14064 = vmatprep.subr.bf16.mxu0 %v14588_v42  ;;  %v6519_v6 = vpop.f32.mrf.mxu0 }
 0x348   : > { %13922 = vmatprep.mubr.bf16.mxu1 %v18682_v13  ;;  %14007 = vmatpush3.bf16.msra.mxu1 %v14579_v22  ;;  %v21109_v22 = vld [vmem:[#allocation16_spill] sm:$0xff] }
 0x349   : > { %14008 = vmatprep.subr.bf16.mxu1 %v14581_v8  ;;  %v13757_v39 = vpop.f32.mrf.mxu0 }
 0x34a   : > { %14065 = vmatpush3.bf16.msra.mxu0 %v14588_v42  ;;  %v12644_v42 = vcombine.low %v8337_v46, %v18829_v19  ;;  %v8919_v46 = vrot.slane %v18836_v55, 2 }
 0x34b   : > { %14154 = vmatprep.subr.bf16.mxu0 %v18964_v54 }
 0x34c   : > { %14009 = vmatpush3.bf16.msra.mxu1 %v14581_v8 }
 0x34d   : > { %14010 = vmatprep.subr.bf16.mxu1 %v14584_v47  ;;  %13979 = vmatmul.mubr.bf16.gmra.mxu0 %v18716_v34 }
 0x34e   : > { %13982 = vmatprep.mubr.bf16.mxu0 %v18723_v62 }
 0x34f   : > { %13923 = vmatmul.mubr.bf16.gmra.mxu1 %v18694_v24  ;;  %v13704_v13 = vpop.f32.mrf.mxu1  ;;  %v6522_v24 = vpop.f32.mrf.mxu0 }
 0x350   : > { %13926 = vmatprep.mubr.bf16.mxu1 %v18702_v60  ;;  %14011 = vmatpush3.bf16.msra.mxu1 %v14584_v47  ;;  %v18971_v3 = vadd.f32 %v13756_v20, %v13704_v13  ;;  %v8509_v13 = vshrl.u32 %v18831_v4, 16 }
 0x351   : > { %14012 = vmatprep.subr.bf16.mxu1 %v14589_v17  ;;  %v6276_v50 = vpop.f32.mrf.mxu1 }
 0x352   : > { %v18975_v32 = vadd.f32 %v6519_v6, %v6276_v50  ;;  %v8916_v50 = vrot.slane %v12644_v42, 2 }
 0x353   : > { %v13705_v34 = vpop.f32.mrf.mxu1 }
 0x354   : > { %14013 = vmatpush3.bf16.msra.mxu1 %v14589_v17  ;;  %v18977_v21 = vadd.f32 %v13757_v39, %v13705_v34  ;;  %v8917_v17 = vrot.slane %v18831_v4, 2  ;;  %v8512_v39 = vshll.u32 %v18831_v4, 16 }
 0x355   : > { %14102 = vmatprep.subr.bf16.mxu1 %v18973_v29  ;;  %13983 = vmatmul.mubr.bf16.gmra.mxu0 %v18736_v15  ;;  %v6279_v60 = vpop.f32.mrf.mxu1 }
 0x356   : > { %13986 = vmatprep.mubr.bf16.mxu0 %v18739_v28  ;;  %v18983_v62 = vadd.f32 %v6522_v24, %v6279_v60  ;;  %v8501_v24 = vshrl.u32 %v12644_v42, 16  ;;  %v8504_v60 = vshll.u32 %v12644_v42, 16  ;;  %v8918_v19 = vsel %vm21112_vm15, %v8916_v50, %v8917_v17  ;;  %vm21130_vm15 = vmmov %vm21124_vm0 }
 0x357   : > { %13927 = vmatmul.mubr.bf16.gmra.mxu1 %v18726_v38 }
 0x358   : > { %13930 = vmatprep.mubr.bf16.mxu1 %v18729_v61  ;;  %v21110_v61 = vld [vmem:[#allocation18_spill] sm:$0xff]  ;;  %v8503_v4 = vrot.slane %v8501_v24, 2 }
 0x359   : > { %v13760_v49 = vpop.f32.mrf.mxu0 }
 0x35b   : > { %v6535_v15 = vpop.f32.mrf.mxu0 }
 0x35d   : > { %13987 = vmatmul.mubr.bf16.gmra.mxu0 %v18759_v41  ;;  %v13761_v38 = vpop.f32.mrf.mxu0 }
 0x35e   : > { %13990 = vmatprep.mubr.bf16.mxu0 %v21107_v40  ;;  %v8514_v40 = vrot.slane %v8512_v39, 3 }
 0x35f   : > { %13931 = vmatmul.mubr.bf16.gmra.mxu1 %v21106_v56  ;;  %v6538_v20 = vpop.f32.mrf.mxu0  ;;  %v8511_v56 = vrot.slane %v8509_v13, 2  ;;  %v21114_v13 = vrot.slane %v18713_v18, 1 }
 0x360   : > { %13934 = vmatprep.mubr.bf16.mxu1 %v21108_v63 }
 0x364   : > { %v13708_v10 = vpop.f32.mrf.mxu1 }
 0x365   : > { %13991 = vmatmul.mubr.bf16.gmra.mxu0 %v18772_v14  ;;  %v18991_v28 = vadd.f32 %v13760_v49, %v13708_v10  ;;  %v8506_v10 = vrot.slane %v8504_v60, 3 }
 0x366   : > { %13994 = vmatprep.mubr.bf16.mxu0 %v21110_v61  ;;  %v6292_v41 = vpop.f32.mrf.mxu1  ;;  %v8521_v61 = vshll.u32 %v18836_v55, 16 }
 0x367   : > { %13935 = vmatmul.mubr.bf16.gmra.mxu1 %v21109_v22  ;;  %v18996_v8 = vadd.f32 %v6535_v15, %v6292_v41  ;;  %v14590_v15 = vld [vmem:[#allocation3 + $0x98] ss:$0 sps:$4 sm:$0x11]   ;;  %v8921_v22 = vrot.slane %v18839_v0, 2  ;;  %v8515_v41 = vor.u32 %v8514_v40, %v8511_v56 }
 0x368   : > { %13938 = vmatprep.mubr.bf16.mxu1 %v21111_v48  ;;  %v13709_v47 = vpop.f32.mrf.mxu1  ;;  %v8530_v48 = vshll.u32 %v18839_v0, 16  ;;  %v8523_v60 = vrot.slane %v8521_v61, 3 }
 0x369   : > { %v19000_v6 = vadd.f32 %v13761_v38, %v13709_v47  ;;  %v8507_v47 = vor.u32 %v8506_v10, %v8503_v4  ;;  %v8923_v4 = vrot.slane %v18841_v5, 2  ;;  %v8925_v10 = vrot.slane %v18843_v36, 2 }
 0x36a   : > { %v6295_v14 = vpop.f32.mrf.mxu1  ;;  %v8532_v56 = vrot.slane %v8530_v48, 3  ;;  %v8539_v48 = vshll.u32 %v18841_v5, 16 }
 0x36b   : > { %v19004_v34 = vadd.f32 %v6538_v20, %v6295_v14  ;;  %v8920_v20 = vsel %vm21113_vm2, %v8917_v17, %v8919_v46  ;;  %v14603_v14 = vld [vmem:[%s20482_s5 + $0x30] sm:$0xff]  }
 0x36d   : > { %v13764_v49 = vpop.f32.mrf.mxu0  ;;  %13995 = vmatmul.mubr.bf16.gmra.mxu0 %v18800_v58  ;;  %v8518_v58 = vshrl.u32 %v18836_v55, 16  ;;  %v8922_v55 = vsel %vm21116_vm9, %v8919_v46, %v8921_v22  ;;  %v14607_v46 = vld [vmem:[%s20482_s5 + $0x28] sm:$0xff]   ;;  %vm21133_vm9 = vmmov %vm21124_vm0 }
 0x36e   : > { %14066 = vmatprep.mubr.bf16.mxu0 %v8918_v19  ;;  %v8516_v19 = vsel %vm21117_vm11, %v8507_v47, %v8515_v41  ;;  %v8545_v47 = vshrl.u32 %v18843_v36, 16  ;;  %vm21134_vm11 = vmmov %vm21124_vm0 }
 0x36f   : > { %13939 = vmatmul.mubr.bf16.gmra.mxu1 %v18783_v1  ;;  %v6551_v63 = vpop.f32.mrf.mxu0  ;;  %v8527_v1 = vshrl.u32 %v18839_v0, 16  ;;  %v8520_v24 = vrot.slane %v8518_v58, 2 }
 0x370   : > { %13942 = vmatprep.mubr.bf16.mxu1 %v18796_v57  ;;  %v7648_v57 = vrot.slane %v14590_v15, 1 }
 0x371   : > { %v13765_v38 = vpop.f32.mrf.mxu0  ;;  %v8529_v17 = vrot.slane %v8527_v1, 2  ;;  %v8524_v1 = vor.u32 %v8523_v60, %v8520_v24  ;;  %v14597_v24 = vld [vmem:[#allocation4 + $0x230] sm:$0xff]  }
 0x372   : > { %v7649_v39 = vsel %vm21115_vm1, %v21114_v13, %v7648_v57  ;;  %vm21132_vm1 = vmmov %vm21113_vm2 }
 0x373   : > { %v6554_v42 = vpop.f32.mrf.mxu0 }
 0x375   : > { %v13768_v50 = vpop.f32.mrf.mxu0  ;;  %14067 = vmatmul.mubr.bf16.vlgmr.msra.gmra.mxu0 %v8920_v20  ;;  %v8548_v20 = vshll.u32 %v18843_v36, 16  ;;  %v14611_v36 = vld [vmem:[%s20482_s5 + $0x20] sm:$0xff]  }
 0x376   : > { %14070 = vmatprep.mubr.bf16.mxu0 %v8922_v55  ;;  %14155 = vmatpush3.bf16.msra.mxu0 %v18964_v54  ;;  %v8533_v54 = vor.u32 %v8532_v56, %v8529_v17  ;;  %v8541_v56 = vrot.slane %v8539_v48, 3  ;;  %v20526_v48 = vrot.slane %v18847_v23, 2 }
 0x377   : > { %v13712_v0 = vpop.f32.mrf.mxu1  ;;  %13943 = vmatmul.mubr.bf16.gmra.mxu1 %v7649_v39  ;;  %v6567_v15 = vpop.f32.mrf.mxu0  ;;  %14156 = vmatprep.subr.bf16.mxu0 %v14603_v14 }
 0x378   : > { %v19025_v40 = vadd.f32 %v13764_v49, %v13712_v0  ;;  %14014 = vmatprep.mubr.bf16.mxu1 %v8516_v19  ;;  %v8536_v49 = vshrl.u32 %v18841_v5, 16  ;;  %v8926_v0 = vsel %vm21119_vm5, %v8923_v4, %v8925_v10  ;;  %v8525_v5 = vsel %vm21120_vm7, %v8515_v41, %v8524_v1  ;;  %vm21136_vm5 = vmmov %vm21124_vm0 }
 0x379   : > { %v6308_v18 = vpop.f32.mrf.mxu1  ;;  %v13769_v61 = vpop.f32.mrf.mxu0  ;;  %vm21137_vm7 = vmmov %vm21132_vm1 }
 0x37a   : > { %v19033_v58 = vadd.f32 %v6551_v63, %v6308_v18  ;;  %14157 = vmatpush3.bf16.msra.mxu0 %v14603_v14  ;;  %v8924_v63 = vsel %vm21118_vm12, %v8921_v22, %v8923_v4  ;;  %v8538_v17 = vrot.slane %v8536_v49, 2  ;;  %v8534_v22 = vsel %vm21121_vm14, %v8524_v1, %v8533_v54  ;;  %vm21135_vm12 = vmmov %vm21132_vm1 }
 0x37b   : > { %v13713_v57 = vpop.f32.mrf.mxu1  ;;  %v6570_v39 = vpop.f32.mrf.mxu0  ;;  %14158 = vmatprep.subr.bf16.mxu0 %v14607_v46  ;;  %v8547_v14 = vrot.slane %v8545_v47, 2  ;;  %v8550_v18 = vrot.slane %v8548_v20, 3  ;;  %v8927_v49 = vrot.slane %v18845_v2, 2  ;;  %v8554_v47 = vshrl.u32 %v18845_v2, 16  ;;  %vm21138_vm14 = vmmov %vm21124_vm0 }
 0x37c   : > { %v19039_v13 = vadd.f32 %v13765_v38, %v13713_v57  ;;  %v14602_v57 = vld [vmem:[#allocation4 + $0x228] sm:$0xff]  }
 0x37d   : > { %v6311_v55 = vpop.f32.mrf.mxu1  ;;  %v13772_v19 = vpop.f32.mrf.mxu0  ;;  %14071 = vmatmul.mubr.bf16.gmra.mxu0 %v8924_v63  ;;  %v8542_v63 = vor.u32 %v8541_v56, %v8538_v17  ;;  %v8928_v56 = vsel %vm21122_vm13, %v8925_v10, %v8927_v49  ;;  %v14620_v10 = vld [vmem:[%s20482_s5 + $0x10] sm:$0xff]   ;;  %vm21142_vm13 = vmmov %vm21124_vm0 }
 0x37e   : > { %v19043_v60 = vadd.f32 %v6554_v42, %v6311_v55  ;;  %14074 = vmatprep.mubr.bf16.mxu0 %v8926_v0  ;;  %14159 = vmatpush3.bf16.msra.mxu0 %v14607_v46  ;;  %v8551_v0 = vor.u32 %v8550_v18, %v8547_v14 }
 0x37f   : > { %v13716_v38 = vpop.f32.mrf.mxu1  ;;  %14015 = vmatmul.mubr.bf16.vlgmr.msra.gmra.mxu1 %v8525_v5  ;;  %v6583_v41 = vpop.f32.mrf.mxu0  ;;  %14160 = vmatprep.subr.bf16.mxu0 %v14611_v36  ;;  %v8563_v5 = vshrl.u32 %v18847_v23, 16  ;;  %v8543_v14 = vsel %vm21124_vm0, %v8533_v54, %v8542_v63  ;;  %vm21144_vm0 = vmmov %vm21132_vm1 }
 0x380   : > { %v19050_v4 = vadd.f32 %v13768_v50, %v13716_v38  ;;  %14018 = vmatprep.mubr.bf16.mxu1 %v8534_v22  ;;  %14103 = vmatpush3.bf16.msra.mxu1 %v18973_v29  ;;  %v8557_v50 = vshll.u32 %v18845_v2, 16  ;;  %v14615_v29 = vld [vmem:[%s20482_s5 + $0x18] sm:$0xff]   ;;  %v8566_v38 = vshll.u32 %v18847_v23, 16  ;;  %v8930_v2 = vsel %vm21123_vm10, %v8927_v49, %v20526_v48  ;;  %v14606_v22 = vld [vmem:[#allocation4 + $0x220] sm:$0xff]   ;;  %vm21143_vm10 = vmmov %vm21132_vm1 }
 0x381   : > { %v6324_v42 = vpop.f32.mrf.mxu1  ;;  %14104 = vmatprep.subr.bf16.mxu1 %v14597_v24  ;;  %v13773_v1 = vpop.f32.mrf.mxu0  ;;  %v8552_v49 = vsel %vm21125_vm6, %v8542_v63, %v8551_v0  ;;  %v8565_v48 = vrot.slane %v8563_v5, 2  ;;  %v8572_v5 = vshrl.u32 %v18850_v26, 16  ;;  %vm21146_vm6 = vmmov %vm21136_vm5 }
 0x382   : > { %v19055_v55 = vadd.f32 %v6567_v15, %v6324_v42  ;;  %14161 = vmatpush3.bf16.msra.mxu0 %v14611_v36  ;;  %v8568_v36 = vrot.slane %v8566_v38, 3 }
 0x383   : > { %v13717_v20 = vpop.f32.mrf.mxu1  ;;  %v6586_v15 = vpop.f32.mrf.mxu0  ;;  %14162 = vmatprep.subr.bf16.mxu0 %v14615_v29 }
 0x384   : > { %v19064_v46 = vadd.f32 %v13769_v61, %v13717_v20  ;;  %14105 = vmatpush3.bf16.msra.mxu1 %v14597_v24  ;;  %v8556_v61 = vrot.slane %v8554_v47, 2  ;;  %v8559_v20 = vrot.slane %v8557_v50, 3  ;;  %v8931_v47 = vrot.slane %v18850_v26, 2 }
 0x385   : > { %v6327_v17 = vpop.f32.mrf.mxu1  ;;  %14106 = vmatprep.subr.bf16.mxu1 %v14602_v57  ;;  %v13776_v18 = vpop.f32.mrf.mxu0  ;;  %14075 = vmatmul.mubr.bf16.gmra.mxu0 %v8928_v56  ;;  %v20527_v50 = vrot.slane %v18852_v45, 2  ;;  %v14610_v56 = vld [vmem:[#allocation4 + $0x218] sm:$0xff]  }
 0x386   : > { %v19070_v42 = vadd.f32 %v6570_v39, %v6327_v17  ;;  %14078 = vmatprep.mubr.bf16.mxu0 %v8930_v2  ;;  %14163 = vmatpush3.bf16.msra.mxu0 %v14615_v29  ;;  %v8560_v63 = vor.u32 %v8559_v20, %v8556_v61  ;;  %v8569_v2 = vor.u32 %v8568_v36, %v8565_v48  ;;  %v21126_v20 = vrot.slane %v18847_v23, 2  ;;  %v14625_v23 = vld [vmem:[%s20482_s5] sm:$0xff]  }
 0x387   : > { %v13720_v24 = vpop.f32.mrf.mxu1  ;;  %14019 = vmatmul.mubr.bf16.gmra.mxu1 %v8543_v14  ;;  %v6599_v54 = vpop.f32.mrf.mxu0  ;;  %14164 = vmatprep.subr.bf16.mxu0 %v14620_v10 }
 0x388   : > { %v19077_v39 = vadd.f32 %v13772_v19, %v13720_v24  ;;  %14022 = vmatprep.mubr.bf16.mxu1 %v8552_v49  ;;  %14107 = vmatpush3.bf16.msra.mxu1 %v14602_v57  ;;  %v8575_v19 = vshll.u32 %v18850_v26, 16  ;;  %v14624_v57 = vld [vmem:[%s20482_s5 + $0x8] sm:$0xff]   ;;  %v8581_v24 = vshrl.u32 %v18852_v45, 16  ;;  %v8584_v49 = vshll.u32 %v18852_v45, 16 }
 0x389   : > { %v6340_v17 = vpop.f32.mrf.mxu1  ;;  %14108 = vmatprep.subr.bf16.mxu1 %v14606_v22  ;;  %v13777_v14 = vpop.f32.mrf.mxu0  ;;  %v8932_v26 = vsel %vm21127_vm4, %v21126_v20, %v8931_v47  ;;  %v8561_v36 = vsel %vm21129_vm8, %v8551_v0, %v8560_v63  ;;  %vm21153_vm4 = vmmov %vm21144_vm0 }
 0x38a   : > { %v19081_v43 = vadd.f32 %v6583_v41, %v6340_v17  ;;  %v8934_v17 = vsel %vm21128_vm3, %v8931_v47, %v20527_v50  ;;  %14165 = vmatpush3.bf16.msra.mxu0 %v14620_v10  ;;  %v8570_v47 = vsel %vm21130_vm15, %v8560_v63, %v8569_v2  ;;  %v8583_v50 = vrot.slane %v8581_v24, 2  ;;  %vm21155_vm3 = vmmov %vm21144_vm0 }
 0x38b   : > { %v13721_v38 = vpop.f32.mrf.mxu1  ;;  %v6602_v41 = vpop.f32.mrf.mxu0  ;;  %14166 = vmatprep.subr.bf16.mxu0 %v14624_v57  ;;  %v8586_v10 = vrot.slane %v8584_v49, 3  ;;  %v8590_v24 = vshrl.u32 %v18855_v16, 16  ;;  %vm21156_vm8 = vmmov %vm21136_vm5 }
 0x38c   : > { %v19090_v29 = vadd.f32 %v13773_v1, %v13721_v38  ;;  %14109 = vmatpush3.bf16.msra.mxu1 %v14606_v22  ;;  %v8574_v38 = vrot.slane %v8572_v5, 2  ;;  %v8577_v22 = vrot.slane %v8575_v19, 3  ;;  %v8935_v5 = vrot.slane %v18855_v16, 2  ;;  %vm21157_vm15 = vmmov %vm21136_vm5 }
 0x38d   : > { %v6343_v61 = vpop.f32.mrf.mxu1  ;;  %14110 = vmatprep.subr.bf16.mxu1 %v14610_v56  ;;  %v13780_v1 = vpop.f32.mrf.mxu0  ;;  %14079 = vmatmul.mubr.bf16.gmra.mxu0 %v8932_v26  ;;  %v8937_v19 = vrot.slane %v18857_v31, 2  ;;  %v14618_v26 = vld [vmem:[#allocation4 + $0x208] sm:$0xff]  }
 0x38e   : > { %v19098_v48 = vadd.f32 %v6586_v15, %v6343_v61  ;;  %14082 = vmatprep.mubr.bf16.mxu0 %v8934_v17  ;;  %14167 = vmatpush3.bf16.msra.mxu0 %v14624_v57  ;;  %v8578_v63 = vor.u32 %v8577_v22, %v8574_v38  ;;  %v8587_v17 = vor.u32 %v8586_v10, %v8583_v50 }
 0x38f   : > { %v13724_v20 = vpop.f32.mrf.mxu1  ;;  %14023 = vmatmul.mubr.bf16.gmra.mxu1 %v8561_v36  ;;  %v6615_v0 = vpop.f32.mrf.mxu0  ;;  %14168 = vmatprep.subr.bf16.mxu0 %v14625_v23  ;;  %v8938_v22 = vsel %vm21132_vm1, %v8935_v5, %v8937_v19  ;;  %vm21160_vm1 = vmmov %vm21144_vm0 }
 0x390   : > { %v19105_v15 = vadd.f32 %v13776_v18, %v13724_v20  ;;  %14026 = vmatprep.mubr.bf16.mxu1 %v8570_v47  ;;  %14111 = vmatpush3.bf16.msra.mxu1 %v14610_v56  ;;  %v8593_v18 = vshll.u32 %v18855_v16, 16  ;;  %v8599_v56 = vshrl.u32 %v18857_v31, 16  ;;  %v8602_v20 = vshll.u32 %v18857_v31, 16  ;;  %v14621_v16 = vld [vmem:[#allocation4 + $0x200] sm:$0xff]  }
 0x391   : > { %v6356_v61 = vpop.f32.mrf.mxu1  ;;  %14112 = vmatprep.subr.bf16.mxu1 %v14614_v33  ;;  %v13781_v36 = vpop.f32.mrf.mxu0  ;;  %v8579_v50 = vsel %vm21133_vm9, %v8569_v2, %v8578_v63  ;;  %v8592_v31 = vrot.slane %v8590_v24, 2  ;;  %v8608_v2 = vshrl.u32 %v18859_v59, 16  ;;  %v8611_v24 = vshll.u32 %v18859_v59, 16  ;;  %vm21161_vm9 = vmmov %vm21136_vm5 }
 0x392   : > { %v19109_v35 = vadd.f32 %v6599_v54, %v6356_v61  ;;  %v21131_v54 = vrot.slane %v18852_v45, 2  ;;  %14169 = vmatpush3.bf16.msra.mxu0 %v14625_v23  ;;  %v8601_v45 = vrot.slane %v8599_v56, 2  ;;  %v8939_v23 = vrot.slane %v18859_v59, 2 }
 0x393   : > { %v13725_v49 = vpop.f32.mrf.mxu1  ;;  %v6618_v25 = vpop.f32.mrf.mxu0  ;;  %v8941_v56 = vrot.slane %v18867_v52, 2 }
 0x394   : > { %v19115_v47 = vadd.f32 %v13777_v14, %v13725_v49  ;;  %14113 = vmatpush3.bf16.msra.mxu1 %v14614_v33  ;;  %v8936_v38 = vsel %vm21113_vm2, %v21131_v54, %v8935_v5  ;;  %v8595_v14 = vrot.slane %v8593_v18, 3  ;;  %v8588_v33 = vsel %vm21134_vm11, %v8578_v63, %v8587_v17  ;;  %vm21162_vm11 = vmmov %vm21136_vm5 }
 0x395   : > { %v6359_v57 = vpop.f32.mrf.mxu1  ;;  %14114 = vmatprep.subr.bf16.mxu1 %v14618_v26  ;;  %v13784_v10 = vpop.f32.mrf.mxu0  ;;  %14083 = vmatmul.mubr.bf16.gmra.mxu0 %v8936_v38  ;;  %v8604_v54 = vrot.slane %v8602_v20, 3  ;;  %v8617_v38 = vshrl.u32 %v18867_v52, 16  ;;  %v8940_v59 = vsel %vm21135_vm12, %v8937_v19, %v8939_v23  ;;  %vm21158_vm2 = vsmask.f32 6400 }
 0x396   : > { %v19121_v61 = vadd.f32 %v6602_v41, %v6359_v57  ;;  %14086 = vmatprep.mubr.bf16.mxu0 %v8938_v22  ;;  %v8596_v63 = vor.u32 %v8595_v14, %v8592_v31  ;;  %vm21163_vm12 = vmmov %vm21158_vm2 }
 0x397   : > { %v13728_v49 = vpop.f32.mrf.mxu1  ;;  %14027 = vmatmul.mubr.bf16.gmra.mxu1 %v8579_v50  ;;  %v6631_v5 = vpop.f32.mrf.mxu0 }
 0x398   : > { %v19125_v51 = vadd.f32 %v13780_v1, %v13728_v49  ;;  %14030 = vmatprep.mubr.bf16.mxu1 %v8588_v33  ;;  %14115 = vmatpush3.bf16.msra.mxu1 %v14618_v26  ;;  %v8605_v1 = vor.u32 %v8604_v54, %v8601_v45  ;;  %v8620_v26 = vshll.u32 %v18867_v52, 16  ;;  %v8610_v33 = vrot.slane %v8608_v2, 2 }
 0x399   : > { %v6372_v41 = vpop.f32.mrf.mxu1  ;;  %14116 = vmatprep.subr.bf16.mxu1 %v14621_v16  ;;  %v13785_v57 = vpop.f32.mrf.mxu0  ;;  %v8597_v31 = vsel %vm21136_vm5, %v8587_v17, %v8596_v63  ;;  %v8942_v45 = vsel %vm21137_vm7, %v8939_v23, %v8941_v56  ;;  %v8943_v17 = vrot.slane %v18869_v7, 2  ;;  %v8626_v23 = vshrl.u32 %v18869_v7, 16  ;;  %vm21164_vm5 = vmmov %vm21158_vm2 }
 0x39a   : > { %v19130_v18 = vadd.f32 %v6615_v0, %v6372_v41  ;;  %v8613_v0 = vrot.slane %v8611_v24, 3  ;;  %v8606_v52 = vsel %vm21138_vm14, %v8596_v63, %v8605_v1  ;;  %v8945_v24 = vrot.slane %v18876_v53, 2  ;;  %vm21165_vm7 = vmmov %vm21146_vm6 }
 0x39b   : > { %v13729_v20 = vpop.f32.mrf.mxu1  ;;  %v6634_v50 = vpop.f32.mrf.mxu0  ;;  %vm21166_vm14 = vmmov %vm21158_vm2 }
 0x39c   : > { %v19135_v22 = vadd.f32 %v13781_v36, %v13729_v20  ;;  %14117 = vmatpush3.bf16.msra.mxu1 %v14621_v16  ;;  %v8619_v36 = vrot.slane %v8617_v38, 2  ;;  %v8622_v16 = vrot.slane %v8620_v26, 3  ;;  %v8614_v2 = vor.u32 %v8613_v0, %v8610_v33  ;;  %v14627_v0 = vld [vmem:[%s14882_s8 + $0x10] sm:$0xff]  }
 0x39d   : > { %v6375_v49 = vpop.f32.mrf.mxu1  ;;  %v13788_v14 = vpop.f32.mrf.mxu0  ;;  %14087 = vmatmul.mubr.bf16.gmra.mxu0 %v8940_v59  ;;  %v8629_v38 = vshll.u32 %v18869_v7, 16  ;;  %v8635_v26 = vshrl.u32 %v18876_v53, 16 }
 0x39e   : > { %v19138_v41 = vadd.f32 %v6618_v25, %v6375_v49  ;;  %14090 = vmatprep.mubr.bf16.mxu0 %v8942_v45  ;;  %v14626_v45 = vld [vmem:[%s14882_s8 + $0x8] sm:$0xfe]   ;;  %v8615_v37 = vsel %vm21142_vm13, %v8605_v1, %v8614_v2  ;;  %vm21167_vm13 = vmmov %vm21158_vm2 }
 0x39f   : > { %v13732_v54 = vpop.f32.mrf.mxu1  ;;  %14031 = vmatmul.mubr.bf16.gmra.mxu1 %v8597_v31  ;;  %v6647_v19 = vpop.f32.mrf.mxu0  ;;  %v8623_v31 = vor.u32 %v8622_v16, %v8619_v36  ;;  %v8637_v36 = vrot.slane %v8635_v26, 2  ;;  %v9826_v1 = vshll.u32 %v14626_v45, 16 }
 0x3a0   : > { %v19143_v20 = vadd.f32 %v13784_v10, %v13732_v54  ;;  %14034 = vmatprep.mubr.bf16.mxu1 %v8606_v52  ;;  %v8638_v10 = vshll.u32 %v18876_v53, 16  ;;  %v8631_v53 = vrot.slane %v8629_v38, 3  ;;  %v8947_v38 = vrot.slane %v18890_v12, 2 }
 0x3a1   : > { %v6388_v25 = vpop.f32.mrf.mxu1  ;;  %v13789_v63 = vpop.f32.mrf.mxu0 }
 0x3a2   : > { %21139 = vst [vmem:[#allocation51_spill] sm:$0xff] %v19143_v20  ;;  %v19148_v49 = vadd.f32 %v6631_v5, %v6388_v25  ;;  %v8944_v5 = vsel %vm21143_vm10, %v8941_v56, %v8943_v17  ;;  %v8946_v25 = vsel %vm21144_vm0, %v8943_v17, %v8945_v24  ;;  %v8640_v16 = vrot.slane %v8638_v10, 3  ;;  %vm21171_vm10 = vmmov %vm21158_vm2 }
 0x3a3   : > { %v13733_v59 = vpop.f32.mrf.mxu1  ;;  %v6650_v33 = vpop.f32.mrf.mxu0  ;;  %v9834_v17 = vshll.u32 %v14627_v0, 16  ;;  %vm21173_vm0 = vmmov %vm21158_vm2 }
 0x3a4   : > { %21140 = vst [vmem:[#allocation24_spill] sm:$0xff] %v19148_v49  ;;  %v19154_v54 = vadd.f32 %v13785_v57, %v13733_v59  ;;  %v8628_v49 = vrot.slane %v8626_v23, 2  ;;  %v8624_v59 = vsel %vm21146_vm6, %v8614_v2, %v8623_v31  ;;  %v8647_v2 = vshll.u32 %v18890_v12, 16  ;;  %vm21179_vm6 = vmmov %vm21173_vm0 }
 0x3a5   : > { %v6391_v52 = vpop.f32.mrf.mxu1  ;;  %v19162_v20 = vpop.f32.mrf.mxu0  ;;  %14091 = vmatmul.mubr.bf16.gmra.mxu0 %v8944_v5  ;;  %v8653_v5 = vshrl.u32 %v18892_v30, 16 }
 0x3a6   : > { %21141 = vst [vmem:[#allocation10_spill] sm:$0xff] %v19154_v54  ;;  %v19160_v7 = vadd.f32 %v6634_v50, %v6391_v52  ;;  %21145 = vst [vmem:[#allocation48_spill] sm:$0xff] %v19162_v20  ;;  %14094 = vmatprep.mubr.bf16.mxu0 %v8946_v25  ;;  %v9823_v54 = vshrl.u32 %v14626_v45, 16  ;;  %v9831_v50 = vshrl.u32 %v14627_v0, 16  ;;  %v8632_v45 = vor.u32 %v8631_v53, %v8628_v49 }
 0x3a7   : > { %v13736_v57 = vpop.f32.mrf.mxu1  ;;  %14035 = vmatmul.mubr.bf16.gmra.mxu1 %v8615_v37  ;;  %v19167_v56 = vpop.f32.mrf.mxu0  ;;  %v8644_v37 = vshrl.u32 %v18890_v12, 16  ;;  %v8641_v52 = vor.u32 %v8640_v16, %v8637_v36  ;;  %v8656_v0 = vshll.u32 %v18892_v30, 16  ;;  %v9836_v12 = vrot.slane %v9834_v17, 2 }
 0x3a8   : > { %v19165_v27 = vadd.f32 %v13788_v14, %v13736_v57  ;;  %14038 = vmatprep.mubr.bf16.mxu1 %v8624_v59  ;;  %21148 = vst [vmem:[#allocation11_spill] sm:$0xff] %v19167_v56  ;;  %v9825_v57 = vrot.slane %v9823_v54, 1  ;;  %v9828_v59 = vrot.slane %v9826_v1, 2  ;;  %v14628_v56 = vld [vmem:[%s14882_s8 + $0x18] sm:$0xff]   ;;  %v21154_v49 = vrot.slane %v18892_v30, 2 }
 0x3a9   : > { %v6404_v23 = vpop.f32.mrf.mxu1  ;;  %v19175_v14 = vpop.f32.mrf.mxu0  ;;  %v8646_v36 = vrot.slane %v8644_v37, 2  ;;  %v8649_v16 = vrot.slane %v8647_v2, 3  ;;  %v8655_v17 = vrot.slane %v8653_v5, 2 }
 0x3aa   : > { %21147 = vst [vmem:[#allocation25_spill] sm:$0xff] %v19165_v27  ;;  %v19173_v10 = vadd.f32 %v6647_v19, %v6404_v23  ;;  %21150 = vst [vmem:[#allocation50_spill] sm:$0xff] %v19175_v14  ;;  %v9833_v27 = vrot.slane %v9831_v50, 1  ;;  %v14629_v19 = vld [vmem:[%s14882_s8 + $0x20] sm:$0xff]   ;;  %v8948_v14 = vsel %vm21153_vm4, %v8945_v24, %v8947_v38  ;;  %v8950_v53 = vsel %vm21155_vm3, %v8947_v38, %v21154_v49 }
 0x3ab   : > { %v13737_v25 = vpop.f32.mrf.mxu1  ;;  %v19182_v20 = vpop.f32.mrf.mxu0  ;;  %v8642_v50 = vsel %vm21157_vm15, %v8632_v45, %v8641_v52  ;;  %v8658_v24 = vrot.slane %v8656_v0, 3  ;;  %v9843_v38 = vshll.u32 %v14628_v56, 16  ;;  %v9849_v2 = vshrl.u32 %v14629_v19, 16  ;;  %vm21181_vm4 = vmmov %vm21173_vm0 }
 0x3ac   : > { %21149 = vst [vmem:[#allocation27_spill] sm:$0xff] %v19173_v10  ;;  %v19180_v26 = vadd.f32 %v13789_v63, %v13737_v25  ;;  %21152 = vst [vmem:[#allocation12_spill] sm:$0xff] %v19182_v20  ;;  %v14619_v10 = vld [vmem:[#allocation3 + $0xa0] ss:$0 sps:$4 sm:$0x33]   ;;  %v8633_v63 = vsel %vm21156_vm8, %v8623_v31, %v8632_v45  ;;  %v9829_v20 = vor.u32 %v9828_v59, %v9825_v57 }
 0x3ad   : > { %v6407_v23 = vpop.f32.mrf.mxu1  ;;  %v19192_v1 = vpop.f32.mrf.mxu0  ;;  %14095 = vmatmul.mubr.bf16.gmra.mxu0 %v8948_v14  ;;  %v9837_v31 = vor.u32 %v9836_v12, %v9833_v27  ;;  %v8951_v14 = vrot.slane %v14619_v10, 2  ;;  %v8650_v57 = vor.u32 %v8649_v16, %v8646_v36  ;;  %v8659_v49 = vor.u32 %v8658_v24, %v8655_v17  ;;  %v14630_v27 = vld [vmem:[%s14882_s8 + $0x28] sm:$0xff]   ;;  %vm21187_vm3 = vmmov %vm21173_vm0 }
 0x3ae   : > { %21151 = vst [vmem:[#allocation26_spill] sm:$0xff] %v19180_v26  ;;  %v19189_v54 = vadd.f32 %v6650_v33, %v6407_v23  ;;  %14098 = vmatprep.mubr.bf16.mxu0 %v8950_v53  ;;  %v9840_v26 = vshrl.u32 %v14628_v56, 16  ;;  %v9852_v23 = vshll.u32 %v14629_v19, 16  ;;  %v8662_v56 = vshrl.u32 %v18901_v44, 16  ;;  %vm21189_vm8 = vmmov %vm21173_vm0 }
 0x3af   : > { %v13808_v25 = vpop.f32.mrf.mxu1  ;;  %14039 = vmatmul.mubr.bf16.gmra.mxu1 %v8633_v63  ;;  %v19198_v33 = vpop.f32.mrf.mxu0  ;;  %v9845_v63 = vrot.slane %v9843_v38, 2  ;;  %v9851_v19 = vrot.slane %v9849_v2, 1  ;;  %v21159_v16 = vrot.slane %v18892_v30, 2  ;;  %v9861_v30 = vshll.u32 %v14630_v27, 16  ;;  %vm21196_vm15 = vmmov %vm21173_vm0 }
 0x3b0   : > { %v19196_v37 = vadd.f32 %v13808_v25, %v18971_v3  ;;  %14042 = vmatprep.mubr.bf16.mxu1 %v8642_v50  ;;  %v8665_v3 = vshll.u32 %v18901_v44, 16  ;;  %v9842_v53 = vrot.slane %v9840_v26, 1  ;;  %v9854_v50 = vrot.slane %v9852_v23, 2  ;;  %v14631_v25 = vld [vmem:[%s14882_s8 + $0x30] sm:$0xff]  }
 0x3b1   : > { %v6819_v45 = vpop.f32.mrf.mxu1  ;;  %v19203_v0 = vpop.f32.mrf.mxu0  ;;  %v8952_v44 = vsel %vm21160_vm1, %v21159_v16, %v8951_v14  ;;  %v8651_v26 = vsel %vm21161_vm9, %v8641_v52, %v8650_v57  ;;  %v9858_v23 = vshrl.u32 %v14630_v27, 16  ;;  %v14632_v16 = vld [vmem:[%s14882_s8 + $0x38] sm:$0xff]   ;;  %vm21210_vm1 = vmmov %vm21173_vm0 }
 0x3b2   : > { %v19201_v5 = vadd.f32 %v6819_v45, %v18975_v32  ;;  %v9838_v32 = vsel %vm21158_vm2, %v9829_v20, %v9837_v31  ;;  %v8667_v38 = vrot.slane %v8665_v3, 3  ;;  %v8660_v20 = vsel %vm21162_vm11, %v8650_v57, %v8659_v49  ;;  %vm21199_vm2 = vmmov %vm21173_vm0 }
 0x3b3   : > { %v13809_v59 = vpop.f32.mrf.mxu1  ;;  %v19211_v10 = vpop.f32.mrf.mxu0  ;;  %v9846_v2 = vor.u32 %v9845_v63, %v9842_v53  ;;  %v9855_v52 = vor.u32 %v9854_v50, %v9851_v19  ;;  %vm21214_vm9 = vmmov %vm21173_vm0 }
 0x3b4   : > { %v19209_v12 = vadd.f32 %v13809_v59, %v18977_v21  ;;  %v8664_v21 = vrot.slane %v8662_v56, 2  ;;  %v9867_v59 = vshrl.u32 %v14631_v25, 16  ;;  %v9870_v56 = vshll.u32 %v14631_v25, 16  ;;  %vm21222_vm11 = vmmov %vm21173_vm0 }
 0x3b5   : > { %v6822_v36 = vpop.f32.mrf.mxu1  ;;  %v19222_v24 = vpop.f32.mrf.mxu0  ;;  %14099 = vmatmul.mubr.bf16.gmra.mxu0 %v8952_v44  ;;  %v9847_v27 = vsel %vm21163_vm12, %v9837_v31, %v9846_v2  ;;  %v9856_v50 = vsel %vm21164_vm5, %v9846_v2, %v9855_v52  ;;  %vm21225_vm12 = vmmov %vm21173_vm0 }
 0x3b6   : > { %v19219_v17 = vadd.f32 %v6822_v36, %v18983_v62  ;;  %14170 = vmatprep.mubr.bf16.mxu0 %v9838_v32  ;;  %v8668_v53 = vor.u32 %v8667_v38, %v8664_v21  ;;  %v9860_v32 = vrot.slane %v9858_v23, 1  ;;  %v9869_v25 = vrot.slane %v9867_v59, 1  ;;  %vm21230_vm5 = vmmov %vm21173_vm0 }
 0x3b7   : > { %v13812_v45 = vpop.f32.mrf.mxu1  ;;  %14043 = vmatmul.mubr.bf16.gmra.mxu1 %v8651_v26  ;;  %v19228_v62 = vpop.f32.mrf.mxu0  ;;  %v9872_v26 = vrot.slane %v9870_v56, 2  ;;  %v9876_v23 = vshrl.u32 %v14632_v16, 16 }
 0x3b8   : > { %v19226_v14 = vadd.f32 %v13812_v45, %v18991_v28  ;;  %14046 = vmatprep.mubr.bf16.mxu1 %v8660_v20  ;;  %v9863_v28 = vrot.slane %v9861_v30, 2  ;;  %v8669_v21 = vsel %vm21165_vm7, %v8659_v49, %v8668_v53  ;;  %v9879_v30 = vshll.u32 %v14632_v16, 16  ;;  %v14634_v16 = vld [vmem:[%s14882_s8 + $0x48] sm:$0xff]  }
 0x3b9   : > { %v6835_v3 = vpop.f32.mrf.mxu1  ;;  %v19233_v57 = vpop.f32.mrf.mxu0 }
 0x3ba   : > { %v19231_v36 = vadd.f32 %v6835_v3, %v18996_v8  ;;  %v14633_v8 = vld [vmem:[%s14882_s8 + $0x40] sm:$0xff]  }
 0x3bb   : > { %v13813_v63 = vpop.f32.mrf.mxu1  ;;  %v19240_v19 = vpop.f32.mrf.mxu0  ;;  %v9885_v49 = vshrl.u32 %v14633_v8, 16  ;;  %v9888_v56 = vshll.u32 %v14633_v8, 16 }
 0x3bc   : > { %v19238_v44 = vadd.f32 %v13813_v63, %v19000_v6  ;;  %v9864_v6 = vor.u32 %v9863_v28, %v9860_v32  ;;  %v9878_v28 = vrot.slane %v9876_v23, 1  ;;  %v9894_v23 = vshrl.u32 %v14634_v16, 16 }
 0x3bd   : > { %v6838_v45 = vpop.f32.mrf.mxu1  ;;  %v19248_v31 = vpop.f32.mrf.mxu0  ;;  %14171 = vmatmul.mubr.bf16.vlgmr.msra.gmra.mxu0 %v9847_v27  ;;  %v9890_v8 = vrot.slane %v9888_v56, 2 }
 0x3be   : > { %v19245_v20 = vadd.f32 %v6838_v45, %v19004_v34  ;;  %14174 = vmatprep.mubr.bf16.mxu0 %v9856_v50  ;;  %v9873_v34 = vor.u32 %v9872_v26, %v9869_v25  ;;  %v9865_v32 = vsel %vm21166_vm14, %v9855_v52, %v9864_v6  ;;  %v9887_v26 = vrot.slane %v9885_v49, 1  ;;  %v14635_v45 = vld [vmem:[%s14882_s8 + $0x50] sm:$0xff]   ;;  %v21168_v49 = vld [vmem:[#allocation46_spill] sm:$0xff] }
 0x3bf   : > { %v13816_v38 = vpop.f32.mrf.mxu1  ;;  %14047 = vmatmul.mubr.bf16.gmra.mxu1 %v8669_v21  ;;  %v19254_v59 = vpop.f32.mrf.mxu0 }
 0x3c0   : > { %v19251_v2 = vadd.f32 %v13816_v38, %v19025_v40  ;;  %14118 = vmatprep.mubr.bf16.mxu1 %v18862_v9  ;;  %v9881_v40 = vrot.slane %v9879_v30, 2  ;;  %v9874_v25 = vsel %vm21167_vm13, %v9864_v6, %v9873_v34  ;;  %v9897_v30 = vshll.u32 %v14634_v16, 16 }
 0x3c1   : > { %v6851_v3 = vpop.f32.mrf.mxu1  ;;  %v19259_v63 = vpop.f32.mrf.mxu0  ;;  %v9896_v16 = vrot.slane %v9894_v23, 1  ;;  %v21175_v23 = vld [vmem:[#allocation60_spill] sm:$0xff] }
 0x3c2   : > { %v19257_v53 = vadd.f32 %v6851_v3, %v19033_v58  ;;  %v9903_v3 = vshrl.u32 %v14635_v45, 16 }
 0x3c3   : > { %v13817_v27 = vpop.f32.mrf.mxu1  ;;  %v19266_v50 = vpop.f32.mrf.mxu0 }
 0x3c4   : > { %v19264_v9 = vadd.f32 %v13817_v27, %v19039_v13  ;;  %v9882_v13 = vor.u32 %v9881_v40, %v9878_v28  ;;  %v9906_v27 = vshll.u32 %v14635_v45, 16 }
 0x3c5   : > { %v6854_v58 = vpop.f32.mrf.mxu1  ;;  %v19273_v38 = vpop.f32.mrf.mxu0  ;;  %14175 = vmatmul.mubr.bf16.gmra.mxu0 %v9865_v32 }
 0x3c6   : > { %v19271_v21 = vadd.f32 %v6854_v58, %v19043_v60  ;;  %14178 = vmatprep.mubr.bf16.mxu0 %v9874_v25  ;;  %v9891_v60 = vor.u32 %v9890_v8, %v9887_v26  ;;  %v9883_v40 = vsel %vm21171_vm10, %v9873_v34, %v9882_v13  ;;  %v14636_v25 = vld [vmem:[%s14882_s8 + $0x58] sm:$0xff]   ;;  %v9905_v8 = vrot.slane %v9903_v3, 1  ;;  %v21176_v3 = vld [vmem:[#allocation62_spill] sm:$0xff] }
 0x3c7   : > { %v13820_v52 = vpop.f32.mrf.mxu1  ;;  %14119 = vmatmul.mubr.bf16.vlgmr.msra.gmra.mxu1 %v18872_v11  ;;  %v19280_v56 = vpop.f32.mrf.mxu0  ;;  %v9908_v45 = vrot.slane %v9906_v27, 2 }
 0x3c8   : > { %v19277_v6 = vadd.f32 %v13820_v52, %v19050_v4  ;;  %14122 = vmatprep.mubr.bf16.mxu1 %v21168_v49  ;;  %21169 = vst [vmem:[#allocation28_spill] sm:$0xff] %v19280_v56  ;;  %v9899_v4 = vrot.slane %v9897_v30, 2  ;;  %v9892_v26 = vsel %vm21173_vm0, %v9882_v13, %v9891_v60  ;;  %v14637_v56 = vld [vmem:[%s14882_s8 + $0x60] sm:$0xff]   ;;  %v9912_v30 = vshrl.u32 %v14636_v25, 16 }
 0x3c9   : > { %v6867_v32 = vpop.f32.mrf.mxu1  ;;  %v19285_v11 = vpop.f32.mrf.mxu0 }
 0x3ca   : > { %v19283_v58 = vadd.f32 %v6867_v32, %v19055_v55  ;;  %21170 = vst [vmem:[#allocation43_spill] sm:$0xff] %v19285_v11 }
 0x3cb   : > { %v13821_v28 = vpop.f32.mrf.mxu1  ;;  %v19292_v49 = vpop.f32.mrf.mxu0 }
 0x3cc   : > { %v19290_v52 = vadd.f32 %v13821_v28, %v19064_v46  ;;  %21172 = vst [vmem:[#allocation29_spill] sm:$0xff] %v19292_v49  ;;  %v9900_v46 = vor.u32 %v9899_v4, %v9896_v16  ;;  %v9915_v28 = vshll.u32 %v14636_v25, 16  ;;  %v9914_v25 = vrot.slane %v9912_v30, 1  ;;  %v21183_v30 = vld [vmem:[#allocation64_spill] sm:$0xff] }
 0x3cd   : > { %v6870_v55 = vpop.f32.mrf.mxu1  ;;  %v19299_v11 = vpop.f32.mrf.mxu0  ;;  %14179 = vmatmul.mubr.bf16.gmra.mxu0 %v9883_v40 }
 0x3ce   : > { %v19297_v32 = vadd.f32 %v6870_v55, %v19070_v42  ;;  %21174 = vst [vmem:[#allocation44_spill] sm:$0xff] %v19299_v11  ;;  %14182 = vmatprep.mubr.bf16.mxu0 %v9892_v26  ;;  %v9909_v42 = vor.u32 %v9908_v45, %v9905_v8  ;;  %v9921_v55 = vshrl.u32 %v14637_v56, 16  ;;  %v9924_v11 = vshll.u32 %v14637_v56, 16 }
 0x3cf   : > { %v13824_v34 = vpop.f32.mrf.mxu1  ;;  %14123 = vmatmul.mubr.bf16.gmra.mxu1 %v21175_v23  ;;  %v19306_v27 = vpop.f32.mrf.mxu0  ;;  %v9901_v4 = vsel %vm21179_vm6, %v9891_v60, %v9900_v46 }
 0x3d0   : > { %v19303_v13 = vadd.f32 %v13824_v34, %v19077_v39  ;;  %14126 = vmatprep.mubr.bf16.mxu1 %v21176_v3  ;;  %21177 = vst [vmem:[#allocation21_spill] sm:$0xff] %v19306_v27  ;;  %v9917_v39 = vrot.slane %v9915_v28, 2  ;;  %v14638_v34 = vld [vmem:[%s14882_s8 + $0x68] sm:$0xff]   ;;  %v9910_v8 = vsel %vm21181_vm4, %v9900_v46, %v9909_v42  ;;  %v9923_v56 = vrot.slane %v9921_v55, 1  ;;  %v14639_v27 = vld [vmem:[%s14882_s8 + $0x70] sm:$0xff]  }
 0x3d1   : > { %v6883_v40 = vpop.f32.mrf.mxu1  ;;  %v19311_v26 = vpop.f32.mrf.mxu0  ;;  %v9926_v45 = vrot.slane %v9924_v11, 2  ;;  %v9930_v28 = vshrl.u32 %v14638_v34, 16  ;;  %v21184_v11 = vld [vmem:[#allocation58_spill] sm:$0xff] }
 0x3d2   : > { %v19309_v49 = vadd.f32 %v6883_v40, %v19081_v43  ;;  %21178 = vst [vmem:[#allocation22_spill] sm:$0xff] %v19311_v26 }
 0x3d3   : > { %v13825_v16 = vpop.f32.mrf.mxu1  ;;  %v19318_v3 = vpop.f32.mrf.mxu0 }
 0x3d4   : > { %v19316_v23 = vadd.f32 %v13825_v16, %v19090_v29  ;;  %21180 = vst [vmem:[#allocation49_spill] sm:$0xff] %v19318_v3  ;;  %v9918_v29 = vor.u32 %v9917_v39, %v9914_v25  ;;  %v9933_v16 = vshll.u32 %v14638_v34, 16  ;;  %v9932_v34 = vrot.slane %v9930_v28, 1  ;;  %v21191_v28 = vld [vmem:[#allocation59_spill] sm:$0xff] }
 0x3d5   : > { %v6886_v43 = vpop.f32.mrf.mxu1  ;;  %v19325_v26 = vpop.f32.mrf.mxu0  ;;  %14183 = vmatmul.mubr.bf16.gmra.mxu0 %v9901_v4 }
 0x3d6   : > { %v19323_v40 = vadd.f32 %v6886_v43, %v19098_v48  ;;  %21182 = vst [vmem:[#allocation30_spill] sm:$0xff] %v19325_v26  ;;  %14186 = vmatprep.mubr.bf16.mxu0 %v9910_v8  ;;  %v9927_v48 = vor.u32 %v9926_v45, %v9923_v56  ;;  %v9939_v43 = vshrl.u32 %v14639_v27, 16  ;;  %v9942_v26 = vshll.u32 %v14639_v27, 16 }
 0x3d7   : > { %v13828_v60 = vpop.f32.mrf.mxu1  ;;  %14127 = vmatmul.mubr.bf16.gmra.mxu1 %v21183_v30  ;;  %v19332_v55 = vpop.f32.mrf.mxu0  ;;  %v9919_v39 = vsel %vm21187_vm3, %v9909_v42, %v9918_v29 }
 0x3d8   : > { %v19329_v46 = vadd.f32 %v13828_v60, %v19105_v15  ;;  %14130 = vmatprep.mubr.bf16.mxu1 %v21184_v11  ;;  %21185 = vst [vmem:[#allocation20_spill] sm:$0xff] %v19332_v55  ;;  %v9935_v15 = vrot.slane %v9933_v16, 2  ;;  %v14640_v60 = vld [vmem:[%s14882_s8 + $0x78] sm:$0xff]   ;;  %v9928_v56 = vsel %vm21189_vm8, %v9918_v29, %v9927_v48  ;;  %v9941_v27 = vrot.slane %v9939_v43, 1  ;;  %v14641_v55 = vld [vmem:[%s14882_s8 + $0x80] sm:$0xff]  }
 0x3d9   : > { %v6899_v4 = vpop.f32.mrf.mxu1  ;;  %v19337_v8 = vpop.f32.mrf.mxu0  ;;  %v9944_v45 = vrot.slane %v9942_v26, 2  ;;  %v9948_v16 = vshrl.u32 %v14640_v60, 16  ;;  %v21192_v26 = vld [vmem:[#allocation61_spill] sm:$0xff] }
 0x3da   : > { %v19335_v3 = vadd.f32 %v6899_v4, %v19109_v35  ;;  %21186 = vst [vmem:[#allocation31_spill] sm:$0xff] %v19337_v8 }
 0x3db   : > { %v13829_v25 = vpop.f32.mrf.mxu1  ;;  %v19344_v11 = vpop.f32.mrf.mxu0 }
 0x3dc   : > { %v19342_v30 = vadd.f32 %v13829_v25, %v19115_v47  ;;  %21188 = vst [vmem:[#allocation32_spill] sm:$0xff] %v19344_v11  ;;  %v9936_v47 = vor.u32 %v9935_v15, %v9932_v34  ;;  %v9951_v25 = vshll.u32 %v14640_v60, 16  ;;  %v9950_v60 = vrot.slane %v9948_v16, 1  ;;  %v21202_v16 = vld [vmem:[#allocation63_spill] sm:$0xff] }
 0x3dd   : > { %v6902_v35 = vpop.f32.mrf.mxu1  ;;  %v19351_v8 = vpop.f32.mrf.mxu0  ;;  %14187 = vmatmul.mubr.bf16.gmra.mxu0 %v9919_v39 }
 0x3de   : > { %v19349_v4 = vadd.f32 %v6902_v35, %v19121_v61  ;;  %21190 = vst [vmem:[#allocation52_spill] sm:$0xff] %v19351_v8  ;;  %14190 = vmatprep.mubr.bf16.mxu0 %v9928_v56  ;;  %v9945_v61 = vor.u32 %v9944_v45, %v9941_v27  ;;  %v9957_v35 = vshrl.u32 %v14641_v55, 16  ;;  %v9960_v8 = vshll.u32 %v14641_v55, 16 }
 0x3df   : > { %v13832_v42 = vpop.f32.mrf.mxu1  ;;  %14131 = vmatmul.mubr.bf16.gmra.mxu1 %v21191_v28  ;;  %v19358_v43 = vpop.f32.mrf.mxu0  ;;  %v9937_v15 = vsel %vm21196_vm15, %v9927_v48, %v9936_v47 }
 0x3e0   : > { %v19355_v29 = vadd.f32 %v13832_v42, %v19125_v51  ;;  %14134 = vmatprep.mubr.bf16.mxu1 %v21192_v26  ;;  %21193 = vst [vmem:[#allocation54_spill] sm:$0xff] %v19358_v43  ;;  %v9953_v51 = vrot.slane %v9951_v25, 2  ;;  %v14642_v42 = vld [vmem:[%s14882_s8 + $0x88] sm:$0xff]   ;;  %v9946_v27 = vsel %vm21199_vm2, %v9936_v47, %v9945_v61  ;;  %v9959_v55 = vrot.slane %v9957_v35, 1  ;;  %v14643_v43 = vld [vmem:[%s14882_s8 + $0x90] sm:$0xff]  }
 0x3e1   : > { %v6915_v39 = vpop.f32.mrf.mxu1  ;;  %v19363_v56 = vpop.f32.mrf.mxu0  ;;  %v9962_v45 = vrot.slane %v9960_v8, 2  ;;  %v9966_v25 = vshrl.u32 %v14642_v42, 16  ;;  %v21205_v8 = vld [vmem:[#allocation67_spill] sm:$0xff] }
 0x3e2   : > { %v19361_v11 = vadd.f32 %v6915_v39, %v19130_v18  ;;  %21195 = vst [vmem:[#allocation45_spill] sm:$0xff] %v19363_v56 }
 0x3e3   : > { %v13833_v34 = vpop.f32.mrf.mxu1  ;;  %v19370_v26 = vpop.f32.mrf.mxu0 }
 0x3e4   : > { %21194 = vst [vmem:[#allocation53_spill] sm:$0xff] %v19361_v11  ;;  %v19368_v28 = vadd.f32 %v13833_v34, %v19135_v22  ;;  %21198 = vst [vmem:[#allocation33_spill] sm:$0xff] %v19370_v26  ;;  %v9954_v22 = vor.u32 %v9953_v51, %v9950_v60  ;;  %v9969_v34 = vshll.u32 %v14642_v42, 16  ;;  %v21203_v26 = vld [vmem:[#allocation51_spill] sm:$0xff]  ;;  %v9968_v42 = vrot.slane %v9966_v25, 1 }
 0x3e5   : > { %v6918_v18 = vpop.f32.mrf.mxu1  ;;  %v19377_v56 = vpop.f32.mrf.mxu0  ;;  %14191 = vmatmul.mubr.bf16.gmra.mxu0 %v9937_v15  ;;  %v21207_v15 = vld [vmem:[#allocation24_spill] sm:$0xff] }
 0x3e6   : > { %21197 = vst [vmem:[#allocation36_spill] sm:$0xff] %v19368_v28  ;;  %v19375_v39 = vadd.f32 %v6918_v18, %v19138_v41  ;;  %21201 = vst [vmem:[#allocation47_spill] sm:$0xff] %v19377_v56  ;;  %14194 = vmatprep.mubr.bf16.mxu0 %v9946_v27  ;;  %v9963_v41 = vor.u32 %v9962_v45, %v9959_v55  ;;  %v9975_v18 = vshrl.u32 %v14643_v43, 16  ;;  %v9971_v27 = vrot.slane %v9969_v34, 2 }
 0x3e7   : > { %v13836_v48 = vpop.f32.mrf.mxu1  ;;  %14135 = vmatmul.mubr.bf16.gmra.mxu1 %v21202_v16  ;;  %v19384_v35 = vpop.f32.mrf.mxu0  ;;  %v9955_v51 = vsel %vm21210_vm1, %v9945_v61, %v9954_v22  ;;  %v21216_v61 = vld [vmem:[#allocation68_spill] sm:$0xff] }
 0x3e8   : > { %21200 = vst [vmem:[#allocation40_spill] sm:$0xff] %v19375_v39  ;;  %v19381_v47 = vadd.f32 %v13836_v48, %v21203_v26  ;;  %14138 = vmatprep.mubr.bf16.mxu1 %v21205_v8  ;;  %21206 = vst [vmem:[#allocation37_spill] sm:$0xff] %v19384_v35  ;;  %v9978_v39 = vshll.u32 %v14643_v43, 16  ;;  %v14644_v26 = vld [vmem:[%s14882_s8 + $0x98] ss:$0 sps:$4 sm:$0x33]   ;;  %v9964_v55 = vsel %vm21214_vm9, %v9954_v22, %v9963_v41 }
 0x3e9   : > { %v6931_v56 = vpop.f32.mrf.mxu1  ;;  %v19389_v16 = vpop.f32.mrf.mxu0  ;;  %v21211_v48 = vld [vmem:[#allocation10_spill] sm:$0xff]  ;;  %v9977_v43 = vrot.slane %v9975_v18, 1  ;;  %v9972_v25 = vor.u32 %v9971_v27, %v9968_v42  ;;  %v9984_v34 = vshrl.u32 %v14644_v26, 16  ;;  %s14701_s8 = sshll.u32 %s14768_s19, 4  ;;  %s14702_s8 = int_to_ptr.vmem [resolvable:$false] %s14701_s8 }
 0x3ea   : > { %21204 = vst [vmem:[#allocation34_spill] sm:$0xff] %v19381_v47  ;;  %v19387_v28 = vadd.f32 %v6931_v56, %v21207_v15  ;;  %21209 = vst [vmem:[#allocation35_spill] sm:$0xff] %v19389_v16  ;;  %v9980_v45 = vrot.slane %v9978_v39, 2  ;;  %v21223_v42 = vld [vmem:[#allocation26_spill] sm:$0xff]  ;;  %s14703_s20 = scalar_lea.vmem %s14702_s8, 2048  ;;  %p14704_p11 = scmp.lt.s32.totalorder %s20431_s13, %s14702_s8 }
 0x3eb   : > { %v13837_v60 = vpop.f32.mrf.mxu1  ;;  %v19396_v8 = vpop.f32.mrf.mxu0  ;;  %p14705_p12 = scmp.lt.s32.totalorder %s14703_s20, %s14697_s18 }
 0x3ec   : > { %21208 = vst [vmem:[#allocation38_spill] sm:$0xff] %v19387_v28  ;;  %v19394_v47 = vadd.f32 %v13837_v60, %v21211_v48  ;;  %21213 = vst [vmem:[#allocation42_spill] sm:$0xff] %v19396_v8  ;;  %v9987_v60 = vshll.u32 %v14644_v26, 16  ;;  %v21217_v48 = vld [vmem:[#allocation25_spill] sm:$0xff]  ;;  %v9981_v39 = vor.u32 %v9980_v45, %v9977_v43  ;;  %v21220_v28 = vld [vmem:[#allocation27_spill] sm:$0xff] }
 0x3ed   : > { %v6934_v35 = vpop.f32.mrf.mxu1  ;;  %v13964_v15 = vpop.f32.mrf.mxu0  ;;  %14195 = vmatmul.mubr.bf16.gmra.mxu0 %v9955_v51  ;;  %v21219_v8 = vld [vmem:[#allocation65_spill] sm:$0xff]  ;;  %v21226_v45 = vld [vmem:[#allocation66_spill] sm:$0xff]  ;;  %p14706_p13 = por %p14705_p12, %p14704_p11 }
 0x3ee   : > { %21212 = vst [vmem:[#allocation41_spill] sm:$0xff] %v19394_v47  ;;  %v19400_v56 = vadd.f32 %v6934_v35, %v19160_v7  ;;  %14198 = vmatprep.mubr.bf16.mxu0 %v9964_v55  ;;  %v9989_v55 = vrot.slane %v9987_v60, 2  ;;  %v21228_v60 = vld [vmem:[#allocation70_spill] sm:$0xff] }
 0x3ef   : > { %v13840_v16 = vpop.f32.mrf.mxu1  ;;  %14139 = vmatmul.mubr.bf16.gmra.mxu1 %v21216_v61  ;;  %v8050_v22 = vpop.f32.mrf.mxu0  ;;  %v9986_v61 = vrot.slane %v9984_v34, 1  ;;  %p14707_p0 = pnand %p14706_p13, %p14700_p10 }
 0x3f0   : > { %21215 = vst [vmem:[#allocation56_spill] sm:$0xff] %v19400_v56  ;;  %v19404_v47 = vadd.f32 %v13840_v16, %v21217_v48  ;;  %14142 = vmatprep.mubr.bf16.mxu1 %v21219_v8  ;;  %v9973_v56 = vsel %vm21222_vm11, %v9963_v41, %v9972_v25  ;;  %v9982_v16 = vsel %vm21225_vm12, %v9972_v25, %v9981_v39  ;;  %v21227_v41 = vld [vmem:[#allocation48_spill] sm:$0xff] }
 0x3f1   : > { %v6947_v18 = vpop.f32.mrf.mxu1  ;;  %v13965_v35 = vpop.f32.mrf.mxu0 }
 0x3f2   : > { %21218 = vst [vmem:[#allocation55_spill] sm:$0xff] %v19404_v47  ;;  %v19408_v7 = vadd.f32 %v6947_v18, %v21220_v28  ;;  %v9990_v18 = vor.u32 %v9989_v55, %v9986_v61 }
 0x3f3   : > { %v13841_v51 = vpop.f32.mrf.mxu1  ;;  %v8053_v26 = vpop.f32.mrf.mxu0 }
 0x3f4   : > { %21221 = vst [vmem:[#allocation39_spill] sm:$0xff] %v19408_v7  ;;  %v19412_v27 = vadd.f32 %v13841_v51, %v21223_v42  ;;  %v21229_v7 = vld [vmem:[#allocation11_spill] sm:$0xff] }
 0x3f5   : > { %v6950_v48 = vpop.f32.mrf.mxu1  ;;  %v13968_v43 = vpop.f32.mrf.mxu0  ;;  %14199 = vmatmul.mubr.bf16.gmra.mxu0 %v9973_v56 }
 0x3f6   : > { %21224 = vst [vmem:[#allocation57_spill] sm:$0xff] %v19412_v27  ;;  %v19416_v8 = vadd.f32 %v6950_v48, %v19189_v54  ;;  %14202 = vmatprep.mubr.bf16.mxu0 %v9982_v16  ;;  %v9991_v54 = vsel %vm21230_vm5, %v9981_v39, %v9990_v18 }
 0x3f7   : > { %v13912_v28 = vpop.f32.mrf.mxu1  ;;  %14143 = vmatmul.mubr.bf16.gmra.mxu1 %v21226_v45  ;;  %v8066_v51 = vpop.f32.mrf.mxu0  ;;  %v21231_v45 = vld [vmem:[#allocation50_spill] sm:$0xff] }
 0x3f8   : > { %v7759_v34 = vadd.f32 %v13912_v28, %v21227_v41  ;;  %14146 = vmatprep.mubr.bf16.mxu1 %v21228_v60  ;;  %v21232_v60 = vld [vmem:[#allocation12_spill] sm:$0xff] }
 0x3f9   : > { %v7750_v42 = vpop.f32.mrf.mxu1  ;;  %v13969_v47 = vpop.f32.mrf.mxu0 }
 0x3fa   : > { %v8195_v27 = vadd.f32 %v13964_v15, %v7759_v34  ;;  %v7751_v25 = vadd.f32 %v7750_v42, %v21229_v7  ;;  %v21233_v42 = vld [vmem:[#allocation23_spill] sm:$0xff] }
 0x3fb   : > { %v13913_v11 = vpop.f32.mrf.mxu1  ;;  %v8069_v61 = vpop.f32.mrf.mxu0 }
 0x3fc   : > { %v19424_v56 = vadd.f32 %v8195_v27, %v19196_v37  ;;  %v8193_v48 = vadd.f32 %v8050_v22, %v7751_v25  ;;  %v7762_v16 = vadd.f32 %v13913_v11, %v21231_v45  ;;  %v21234_v11 = vld [vmem:[#allocation69_spill] sm:$0xff] }
 0x3fd   : > { %v7753_v55 = vpop.f32.mrf.mxu1  ;;  %v13972_v34 = vpop.f32.mrf.mxu0  ;;  %14203 = vmatmul.mubr.bf16.gmra.mxu0 %v9991_v54 }
 0x3fe   : > { %v19428_v28 = vadd.f32 %v8193_v48, %v19201_v5  ;;  %v8196_v41 = vadd.f32 %v13965_v35, %v7762_v16  ;;  %v7754_v15 = vadd.f32 %v7753_v55, %v21232_v60 }
 0x3ff   : > { %v13916_v7 = vpop.f32.mrf.mxu1  ;;  %14147 = vmatmul.mubr.bf16.gmra.mxu1 %v21233_v42  ;;  %v8082_v27 = vpop.f32.mrf.mxu0 }
 0x400   : > { %v19433_v39 = vadd.f32 %v8196_v41, %v19209_v12  ;;  %v8194_v37 = vadd.f32 %v8053_v26, %v7754_v15  ;;  %v7775_v22 = vadd.f32 %v13916_v7, %v19192_v1  ;;  %14150 = vmatprep.mubr.bf16.mxu1 %v21234_v11  ;;  %v21235_v15 = vld [vmem:[#allocation15_spill] sm:$0xff] }
 0x401   : > { %v7766_v18 = vpop.f32.mrf.mxu1  ;;  %v13973_v54 = vpop.f32.mrf.mxu0 }
 0x402   : > { %v19438_v5 = vadd.f32 %v8194_v37, %v19219_v17  ;;  %v8199_v35 = vadd.f32 %v13968_v43, %v7775_v22  ;;  %v7767_v25 = vadd.f32 %v7766_v18, %v19198_v33 }
 0x403   : > { %v13917_v48 = vpop.f32.mrf.mxu1  ;;  %v8085_v16 = vpop.f32.mrf.mxu0 }
 0x404   : > { %v19442_v45 = vadd.f32 %v8199_v35, %v19226_v14  ;;  %v8197_v12 = vadd.f32 %v8066_v51, %v7767_v25  ;;  %v7778_v26 = vadd.f32 %v13917_v48, %v19203_v0 }
 0x405   : > { %v7769_v1 = vpop.f32.mrf.mxu1  ;;  %v13976_v60 = vpop.f32.mrf.mxu0 }
 0x406   : > { %v19446_v55 = vadd.f32 %v8197_v12, %v19231_v36  ;;  %v8200_v41 = vadd.f32 %v13969_v47, %v7778_v26  ;;  %v7770_v17 = vadd.f32 %v7769_v1, %v19211_v10 }
 0x407   : > { %v13920_v43 = vpop.f32.mrf.mxu1  ;;  %14151 = vmatmul.mubr.bf16.gmra.mxu1 %v21235_v15  ;;  %v8098_v7 = vpop.f32.mrf.mxu0 }
 0x408   : > { %v19451_v33 = vadd.f32 %v8200_v41, %v19238_v44  ;;  %v8198_v14 = vadd.f32 %v8069_v61, %v7770_v17  ;;  %v7791_v51 = vadd.f32 %v13920_v43, %v19222_v24 }
 0x409   : > { %v7782_v0 = vpop.f32.mrf.mxu1  ;;  %v13977_v37 = vpop.f32.mrf.mxu0 }
 0x40a   : > { %v19455_v42 = vadd.f32 %v8198_v14, %v19245_v20  ;;  %v8203_v36 = vadd.f32 %v13972_v34, %v7791_v51  ;;  %v7783_v47 = vadd.f32 %v7782_v0, %v19228_v62 }
 0x40b   : > { %v13921_v10 = vpop.f32.mrf.mxu1  ;;  %v8101_v18 = vpop.f32.mrf.mxu0 }
 0x40c   : > { %v19459_v22 = vadd.f32 %v8203_v36, %v19251_v2  ;;  %v8201_v11 = vadd.f32 %v8082_v27, %v7783_v47  ;;  %v7794_v44 = vadd.f32 %v13921_v10, %v19233_v57  ;;  %v21236_v36 = vld [vmem:[#allocation28_spill] sm:$0xff] }
 0x40d   : > { %v7785_v61 = vpop.f32.mrf.mxu1  ;;  %v13980_v25 = vpop.f32.mrf.mxu0 }
 0x40e   : > { %v19463_v24 = vadd.f32 %v8201_v11, %v19257_v53  ;;  %v8204_v35 = vadd.f32 %v13973_v54, %v7794_v44  ;;  %v7786_v20 = vadd.f32 %v7785_v61, %v19240_v19  ;;  %v21237_v11 = vld [vmem:[#allocation43_spill] sm:$0xff] }
 0x40f   : > { %v13924_v34 = vpop.f32.mrf.mxu1  ;;  %v8114_v12 = vpop.f32.mrf.mxu0 }
 0x410   : > { %v19467_v62 = vadd.f32 %v8204_v35, %v19264_v9  ;;  %v8202_v48 = vadd.f32 %v8085_v16, %v7786_v20  ;;  %v7807_v2 = vadd.f32 %v13924_v34, %v19248_v31  ;;  %v21238_v35 = vld [vmem:[#allocation29_spill] sm:$0xff] }
 0x411   : > { %v7798_v27 = vpop.f32.mrf.mxu1  ;;  %v13981_v53 = vpop.f32.mrf.mxu0 }
 0x412   : > { %v8274_v57 = vadd.f32 %v8202_v48, %v19271_v21  ;;  %v8207_v26 = vadd.f32 %v13976_v60, %v7807_v2  ;;  %v7799_v1 = vadd.f32 %v7798_v27, %v19254_v59  ;;  %v21239_v2 = vld [vmem:[#allocation44_spill] sm:$0xff] }
 0x413   : > { %v13925_v41 = vpop.f32.mrf.mxu1  ;;  %v8117_v9 = vpop.f32.mrf.mxu0 }
 0x414   : > { %8310 = vst [vmem:[#allocation2 + $0x48] sm:$0xff] %v8274_v57  ;;  %v8279_v19 = vadd.f32 %v8207_v26, %v19277_v6  ;;  %v8205_v54 = vadd.f32 %v8098_v7, %v7799_v1  ;;  %v7810_v17 = vadd.f32 %v13925_v41, %v19259_v63  ;;  %v21240_v1 = vld [vmem:[#allocation21_spill] sm:$0xff] }
 0x415   : > { %v7801_v43 = vpop.f32.mrf.mxu1  ;;  %v13984_v21 = vpop.f32.mrf.mxu0 }
 0x416   : > { %8315 = vst [vmem:[#allocation2 + $0x70] sm:$0xff] %v8279_v19  ;;  %v8277_v31 = vadd.f32 %v8205_v54, %v19283_v58  ;;  %v8208_v16 = vadd.f32 %v13977_v37, %v7810_v17  ;;  %v7802_v15 = vadd.f32 %v7801_v43, %v19266_v50  ;;  %v21241_v17 = vld [vmem:[#allocation22_spill] sm:$0xff] }
 0x417   : > { %v13928_v60 = vpop.f32.mrf.mxu1  ;;  %v8130_v6 = vpop.f32.mrf.mxu0 }
 0x418   : > { %8313 = vst [vmem:[#allocation2 + $0x60] sm:$0xff] %v8277_v31  ;;  %v8280_v59 = vadd.f32 %v8208_v16, %v19290_v52  ;;  %v8206_v14 = vadd.f32 %v8101_v18, %v7802_v15  ;;  %v7823_v51 = vadd.f32 %v13928_v60, %v19273_v38  ;;  %v21242_v15 = vld [vmem:[#allocation49_spill] sm:$0xff] }
 0x419   : > { %v7814_v7 = vpop.f32.mrf.mxu1  ;;  %v13985_v58 = vpop.f32.mrf.mxu0 }
 0x41a   : > { %8316 = vst [vmem:[#allocation2 + $0x78] sm:$0xff] %v8280_v59  ;;  %v8278_v63 = vadd.f32 %v8206_v14, %v19297_v32  ;;  %v8211_v0 = vadd.f32 %v13980_v25, %v7823_v51  ;;  %v7815_v47 = vadd.f32 %v7814_v7, %v21236_v36  ;;  %v21243_v51 = vld [vmem:[#allocation30_spill] sm:$0xff]  ;;  %v21244_v36 = vld [vmem:[#allocation20_spill] sm:$0xff] }
 0x41b   : > { %v13929_v37 = vpop.f32.mrf.mxu1  ;;  %v8133_v52 = vpop.f32.mrf.mxu0 }
 0x41c   : > { %8314 = vst [vmem:[#allocation2 + $0x68] sm:$0xff] %v8278_v63  ;;  %v8283_v50 = vadd.f32 %v8211_v0, %v19303_v13  ;;  %v8209_v10 = vadd.f32 %v8114_v12, %v7815_v47  ;;  %v7826_v44 = vadd.f32 %v13929_v37, %v21237_v11 }
 0x41d   : > { %v7817_v18 = vpop.f32.mrf.mxu1  ;;  %v13988_v32 = vpop.f32.mrf.mxu0 }
 0x41e   : > { %8319 = vst [vmem:[#allocation2 + $0x90] sm:$0xff] %v8283_v50  ;;  %v8281_v38 = vadd.f32 %v8209_v10, %v19309_v49  ;;  %v8212_v61 = vadd.f32 %v13981_v53, %v7826_v44  ;;  %v7818_v20 = vadd.f32 %v7817_v18, %v21238_v35  ;;  %v21245_v10 = vld [vmem:[#allocation31_spill] sm:$0xff] }
 0x41f   : > { %v13932_v25 = vpop.f32.mrf.mxu1  ;;  %v8146_v13 = vpop.f32.mrf.mxu0 }
 0x420   : > { %8317 = vst [vmem:[#allocation2 + $0x80] sm:$0xff] %v8281_v38  ;;  %v8284_v34 = vadd.f32 %v8212_v61, %v19316_v23  ;;  %v8210_v48 = vadd.f32 %v8117_v9, %v7818_v20  ;;  %v7839_v27 = vadd.f32 %v13932_v25, %v21239_v2  ;;  %v21247_v61 = vld [vmem:[#allocation32_spill] sm:$0xff] }
 0x421   : > { %v7830_v12 = vpop.f32.mrf.mxu1  ;;  %v13989_v49 = vpop.f32.mrf.mxu0 }
 0x422   : > { %8320 = vst [vmem:[#allocation2 + $0x98] sm:$0xff] %v8284_v34  ;;  %v8282_v57 = vadd.f32 %v8210_v48, %v19323_v40  ;;  %v8215_v26 = vadd.f32 %v13984_v21, %v7839_v27  ;;  %v7831_v41 = vadd.f32 %v7830_v12, %v21240_v1  ;;  %v21249_v48 = vld [vmem:[#allocation52_spill] sm:$0xff] }
 0x423   : > { %v13933_v53 = vpop.f32.mrf.mxu1  ;;  %v8149_v23 = vpop.f32.mrf.mxu0 }
 0x424   : > { %8318 = vst [vmem:[#allocation2 + $0x88] sm:$0xff] %v8282_v57  ;;  %v8287_v19 = vadd.f32 %v8215_v26, %v19329_v46  ;;  %v8213_v54 = vadd.f32 %v8130_v6, %v7831_v41  ;;  %v7842_v43 = vadd.f32 %v13933_v53, %v21241_v17  ;;  %v21251_v26 = vld [vmem:[#allocation54_spill] sm:$0xff]  ;;  %v21253_v17 = vld [vmem:[#allocation45_spill] sm:$0xff] }
 0x425   : > { %v7833_v9 = vpop.f32.mrf.mxu1  ;;  %v13992_v40 = vpop.f32.mrf.mxu0  ;;  %v21252_v53 = vld [vmem:[#allocation34_spill] sm:$0xff] }
 0x426   : > { %8323 = vst [vmem:[#allocation2 + $0xb0] sm:$0xff] %v8287_v19  ;;  %v8285_v31 = vadd.f32 %v8213_v54, %v19335_v3  ;;  %v8216_v16 = vadd.f32 %v13985_v58, %v7842_v43  ;;  %v7834_v60 = vadd.f32 %v7833_v9, %v21242_v15 }
 0x427   : > { %v13936_v21 = vpop.f32.mrf.mxu1  ;;  %v8162_v46 = vpop.f32.mrf.mxu0 }
 0x428   : > { %8321 = vst [vmem:[#allocation2 + $0xa0] sm:$0xff] %v8285_v31  ;;  %v8288_v59 = vadd.f32 %v8216_v16, %v19342_v30  ;;  %v8214_v14 = vadd.f32 %v8133_v52, %v7834_v60  ;;  %v7855_v7 = vadd.f32 %v13936_v21, %v21243_v51  ;;  %v21246_v52 = vld [vmem:[#allocation53_spill] sm:$0xff]  ;;  %v21254_v31 = vld [vmem:[#allocation38_spill] sm:$0xff] }
 0x429   : > { %v7846_v6 = vpop.f32.mrf.mxu1  ;;  %v13993_v3 = vpop.f32.mrf.mxu0  ;;  %v21255_v60 = vld [vmem:[#allocation33_spill] sm:$0xff] }
 0x42a   : > { %8324 = vst [vmem:[#allocation2 + $0xb8] sm:$0xff] %v8288_v59  ;;  %v8286_v63 = vadd.f32 %v8214_v14, %v19349_v4  ;;  %v8219_v0 = vadd.f32 %v13988_v32, %v7855_v7  ;;  %v7847_v47 = vadd.f32 %v7846_v6, %v21244_v36  ;;  %v21248_v32 = vld [vmem:[#allocation36_spill] sm:$0xff]  ;;  %v21256_v14 = vld [vmem:[#allocation41_spill] sm:$0xff]  ;;  %v21257_v6 = vld [vmem:[#allocation47_spill] sm:$0xff] }
 0x42b   : > { %v13937_v58 = vpop.f32.mrf.mxu1  ;;  %v8165_v30 = vpop.f32.mrf.mxu0  ;;  %v21258_v36 = vld [vmem:[#allocation56_spill] sm:$0xff] }
 0x42c   : > { %8322 = vst [vmem:[#allocation2 + $0xa8] sm:$0xff] %v8286_v63  ;;  %v8291_v37 = vadd.f32 %v8219_v0, %v19355_v29  ;;  %v8217_v50 = vadd.f32 %v8146_v13, %v7847_v47  ;;  %v7858_v11 = vadd.f32 %v13937_v58, %v21245_v10  ;;  %v21250_v13 = vld [vmem:[#allocation40_spill] sm:$0xff] }
 0x42d   : > { %v7849_v44 = vpop.f32.mrf.mxu1  ;;  %v13996_v4 = vpop.f32.mrf.mxu0 }
 0x42e   : > { %8327 = vst [vmem:[#allocation2 + $0xd0] sm:$0xff] %v8291_v37  ;;  %v8289_v18 = vadd.f32 %v8217_v50, %v21246_v52  ;;  %v8220_v38 = vadd.f32 %v13989_v49, %v7858_v11  ;;  %v7850_v35 = vadd.f32 %v7849_v44, %v21247_v61  ;;  %v21259_v37 = vld [vmem:[#allocation37_spill] sm:$0xff]  ;;  %v21260_v11 = vld [vmem:[#allocation55_spill] sm:$0xff] }
 0x42f   : > { %v13940_v20 = vpop.f32.mrf.mxu1  ;;  %v8178_v29 = vpop.f32.mrf.mxu0 }
 0x430   : > { %8325 = vst [vmem:[#allocation2 + $0xc0] sm:$0xff] %v8289_v18  ;;  %v8292_v25 = vadd.f32 %v8220_v38, %v21248_v32  ;;  %v8218_v34 = vadd.f32 %v8149_v23, %v7850_v35  ;;  %v7871_v2 = vadd.f32 %v13940_v20, %v21249_v48  ;;  %v21261_v18 = vld [vmem:[#allocation35_spill] sm:$0xff] }
 0x431   : > { %v7862_v27 = vpop.f32.mrf.mxu1  ;;  %v13997_v41 = vpop.f32.mrf.mxu0  ;;  %v21262_v35 = vld [vmem:[#allocation39_spill] sm:$0xff] }
 0x432   : > { %8328 = vst [vmem:[#allocation2 + $0xd8] sm:$0xff] %v8292_v25  ;;  %v8290_v12 = vadd.f32 %v8218_v34, %v21250_v13  ;;  %v8223_v57 = vadd.f32 %v13992_v40, %v7871_v2  ;;  %v7863_v1 = vadd.f32 %v7862_v27, %v21251_v26  ;;  %v21263_v25 = vld [vmem:[#allocation42_spill] sm:$0xff]  ;;  %v21264_v2 = vld [vmem:[#allocation57_spill] sm:$0xff] }
 0x433   : > { %v13941_v49 = vpop.f32.mrf.mxu1  ;;  %v8181_v9 = vpop.f32.mrf.mxu0 }
 0x434   : > { %8326 = vst [vmem:[#allocation2 + $0xc8] sm:$0xff] %v8290_v12  ;;  %v8295_v19 = vadd.f32 %v8223_v57, %v21252_v53  ;;  %v8221_v54 = vadd.f32 %v8162_v46, %v7863_v1  ;;  %v7874_v43 = vadd.f32 %v13941_v49, %v21253_v17 }
 0x435   : > { %v7865_v23 = vpop.f32.mrf.mxu1  ;;  %v14068_v59 = vpop.f32.mrf.mxu0 }
 0x436   : > { %8331 = vst [vmem:[#allocation2 + $0xf0] sm:$0xff] %v8295_v19  ;;  %v8293_v16 = vadd.f32 %v8221_v54, %v21254_v31  ;;  %v8224_v15 = vadd.f32 %v13993_v3, %v7874_v43  ;;  %v7866_v21 = vadd.f32 %v7865_v23, %v21255_v60 }
 0x437   : > { %v13944_v40 = vpop.f32.mrf.mxu1  ;;  %v9053_v0 = vpop.f32.mrf.mxu0 }
 0x438   : > { %8329 = vst [vmem:[#allocation2 + $0xe0] sm:$0xff] %v8293_v16  ;;  %v8296_v51 = vadd.f32 %v8224_v15, %v21256_v14  ;;  %v8222_v7 = vadd.f32 %v8165_v30, %v7866_v21  ;;  %v7887_v63 = vadd.f32 %v13944_v40, %v21257_v6 }
 0x439   : > { %v7878_v46 = vpop.f32.mrf.mxu1  ;;  %v14069_v10 = vpop.f32.mrf.mxu0 }
 0x43a   : > { %8332 = vst [vmem:[#allocation2 + $0xf8] sm:$0xff] %v8296_v51  ;;  %v8294_v47 = vadd.f32 %v8222_v7, %v21258_v36  ;;  %v8227_v58 = vadd.f32 %v13996_v4, %v7887_v63  ;;  %v7879_v50 = vadd.f32 %v7878_v46, %v21259_v37 }
 0x43b   : > { %v13945_v3 = vpop.f32.mrf.mxu1  ;;  %v9056_v61 = vpop.f32.mrf.mxu0 }
 0x43c   : > { %8330 = vst [vmem:[#allocation2 + $0xe8] sm:$0xff] %v8294_v47  ;;  %v8299_v44 = vadd.f32 %v8227_v58, %v21260_v11  ;;  %v8225_v52 = vadd.f32 %v8178_v29, %v7879_v50  ;;  %v7890_v38 = vadd.f32 %v13945_v3, %v21261_v18 }
 0x43d   : > { %v7881_v30 = vpop.f32.mrf.mxu1  ;;  %v14072_v48 = vpop.f32.mrf.mxu0 }
 0x43e   : > { %8335 = vst [vmem:[#allocation2 + $0x110] sm:$0xff] %v8299_v44  ;;  %v8297_v20 = vadd.f32 %v8225_v52, %v21262_v35  ;;  %v8228_v32 = vadd.f32 %v13997_v41, %v7890_v38  ;;  %v7882_v34 = vadd.f32 %v7881_v30, %v21263_v25 }
 0x43f   : > { %v14016_v4 = vpop.f32.mrf.mxu1  ;;  %v9069_v57 = vpop.f32.mrf.mxu0 }
 0x440   : > { %8333 = vst [vmem:[#allocation2 + $0x100] sm:$0xff] %v8297_v20  ;;  %v8300_v27 = vadd.f32 %v8228_v32, %v21264_v2  ;;  %v8226_v13 = vadd.f32 %v8181_v9, %v7882_v34  ;;  %v19517_v12 = vadd.f32 %v14068_v59, %v14016_v4 }
 0x441   : > { %v8770_v29 = vpop.f32.mrf.mxu1  ;;  %v14073_v49 = vpop.f32.mrf.mxu0 }
 0x442   : > { %8336 = vst [vmem:[#allocation2 + $0x118] sm:$0xff] %v8300_v27  ;;  %v8298_v26 = vadd.f32 %v8226_v13, %v19416_v8  ;;  %v19520_v1 = vadd.f32 %v9053_v0, %v8770_v29 }
 0x443   : > { %v14017_v53 = vpop.f32.mrf.mxu1  ;;  %v9072_v19 = vpop.f32.mrf.mxu0 }
 0x444   : > { %8334 = vst [vmem:[#allocation2 + $0x108] sm:$0xff] %v8298_v26  ;;  %v19522_v41 = vadd.f32 %v14069_v10, %v14017_v53 }
 0x445   : > { %v8773_v54 = vpop.f32.mrf.mxu1  ;;  %v14076_v43 = vpop.f32.mrf.mxu0 }
 0x446   : > { %v19524_v17 = vadd.f32 %v9056_v61, %v8773_v54 }
 0x447   : > { %v14020_v9 = vpop.f32.mrf.mxu1  ;;  %v9085_v31 = vpop.f32.mrf.mxu0 }
 0x448   : > { %v19526_v23 = vadd.f32 %v14072_v48, %v14020_v9 }
 0x449   : > { %v8786_v16 = vpop.f32.mrf.mxu1  ;;  %v14077_v8 = vpop.f32.mrf.mxu0 }
 0x44a   : > { %v19528_v15 = vadd.f32 %v9069_v57, %v8786_v16 }
 0x44b   : > { %v14021_v60 = vpop.f32.mrf.mxu1  ;;  %v9088_v59 = vpop.f32.mrf.mxu0 }
 0x44c   : > { %v19530_v21 = vadd.f32 %v14073_v49, %v14021_v60 }
 0x44d   : > { %v8789_v40 = vpop.f32.mrf.mxu1  ;;  %v14080_v51 = vpop.f32.mrf.mxu0 }
 0x44e   : > { %v19532_v14 = vadd.f32 %v9072_v19, %v8789_v40 }
 0x44f   : > { %v14024_v7 = vpop.f32.mrf.mxu1  ;;  %v9101_v63 = vpop.f32.mrf.mxu0 }
 0x450   : > { %v19534_v6 = vadd.f32 %v14076_v43, %v14024_v7 }
 0x451   : > { %v8802_v0 = vpop.f32.mrf.mxu1  ;;  %v14081_v36 = vpop.f32.mrf.mxu0 }
 0x452   : > { %v19536_v46 = vadd.f32 %v9085_v31, %v8802_v0 }
 0x453   : > { %v14025_v47 = vpop.f32.mrf.mxu1  ;;  %v9104_v37 = vpop.f32.mrf.mxu0 }
 0x454   : > { %v19538_v58 = vadd.f32 %v14077_v8, %v14025_v47 }
 0x455   : > { %v8805_v50 = vpop.f32.mrf.mxu1  ;;  %v14084_v3 = vpop.f32.mrf.mxu0 }
 0x456   : > { %v19540_v10 = vadd.f32 %v9088_v59, %v8805_v50 }
 0x457   : > { %v14028_v11 = vpop.f32.mrf.mxu1  ;;  %v9117_v52 = vpop.f32.mrf.mxu0 }
 0x458   : > { %v19542_v44 = vadd.f32 %v14080_v51, %v14028_v11 }
 0x459   : > { %v8818_v18 = vpop.f32.mrf.mxu1  ;;  %v14085_v61 = vpop.f32.mrf.mxu0 }
 0x45a   : > { %v19544_v38 = vadd.f32 %v9101_v63, %v8818_v18 }
 0x45b   : > { %v14029_v30 = vpop.f32.mrf.mxu1  ;;  %v9120_v20 = vpop.f32.mrf.mxu0 }
 0x45c   : > { %v19546_v35 = vadd.f32 %v14081_v36, %v14029_v30 }
 0x45d   : > { %v8821_v32 = vpop.f32.mrf.mxu1  ;;  %v14088_v34 = vpop.f32.mrf.mxu0 }
 0x45e   : > { %v19548_v25 = vadd.f32 %v9104_v37, %v8821_v32 }
 0x45f   : > { %v14032_v48 = vpop.f32.mrf.mxu1  ;;  %v9133_v2 = vpop.f32.mrf.mxu0 }
 0x460   : > { %v19550_v4 = vadd.f32 %v14084_v3, %v14032_v48 }
 0x461   : > { %v8834_v27 = vpop.f32.mrf.mxu1  ;;  %v14089_v57 = vpop.f32.mrf.mxu0 }
 0x462   : > { %v19552_v13 = vadd.f32 %v9117_v52, %v8834_v27 }
 0x463   : > { %v14033_v29 = vpop.f32.mrf.mxu1  ;;  %v9136_v49 = vpop.f32.mrf.mxu0 }
 0x464   : > { %v19554_v26 = vadd.f32 %v14085_v61, %v14033_v29 }
 0x465   : > { %v8837_v53 = vpop.f32.mrf.mxu1  ;;  %v14092_v54 = vpop.f32.mrf.mxu0 }
 0x466   : > { %v19556_v19 = vadd.f32 %v9120_v20, %v8837_v53 }
 0x467   : > { %v14036_v43 = vpop.f32.mrf.mxu1  ;;  %v9149_v31 = vpop.f32.mrf.mxu0 }
 0x468   : > { %v19558_v9 = vadd.f32 %v14088_v34, %v14036_v43 }
 0x469   : > { %v8850_v16 = vpop.f32.mrf.mxu1  ;;  %v14093_v60 = vpop.f32.mrf.mxu0 }
 0x46a   : > { %v19560_v8 = vadd.f32 %v9133_v2, %v8850_v16 }
 0x46b   : > { %v14037_v59 = vpop.f32.mrf.mxu1  ;;  %v9152_v51 = vpop.f32.mrf.mxu0 }
 0x46c   : > { %21265 = vst [vmem:[#allocation14_spill] sm:$0xff] %v19560_v8  ;;  %v19562_v40 = vadd.f32 %v14089_v57, %v14037_v59 }
 0x46d   : > { %v8853_v7 = vpop.f32.mrf.mxu1  ;;  %v14096_v0 = vpop.f32.mrf.mxu0 }
 0x46e   : > { %21266 = vst [vmem:[#allocation13_spill] sm:$0xff] %v19562_v40  ;;  %v19564_v63 = vadd.f32 %v9136_v49, %v8853_v7 }
 0x46f   : > { %v14040_v36 = vpop.f32.mrf.mxu1  ;;  %v9165_v37 = vpop.f32.mrf.mxu0 }
 0x470   : > { %21267 = vst [vmem:[#allocation16_spill] sm:$0xff] %v19564_v63  ;;  %v19566_v47 = vadd.f32 %v14092_v54, %v14040_v36 }
 0x471   : > { %v8866_v50 = vpop.f32.mrf.mxu1  ;;  %v14097_v11 = vpop.f32.mrf.mxu0 }
 0x472   : > { %21268 = vst [vmem:[#allocation18_spill] sm:$0xff] %v19566_v47  ;;  %v19568_v3 = vadd.f32 %v9149_v31, %v8866_v50 }
 0x473   : > { %v14041_v52 = vpop.f32.mrf.mxu1  ;;  %v9168_v61 = vpop.f32.mrf.mxu0 }
 0x474   : > { %21269 = vst [vmem:[#allocation17_spill] sm:$0xff] %v19568_v3  ;;  %v19570_v18 = vadd.f32 %v14093_v60, %v14041_v52 }
 0x475   : > { %v8869_v30 = vpop.f32.mrf.mxu1  ;;  %v14100_v32 = vpop.f32.mrf.mxu0 }
 0x476   : > { %21270 = vst [vmem:[#allocation46_spill] sm:$0xff] %v19570_v18  ;;  %v19572_v20 = vadd.f32 %v9152_v51, %v8869_v30 }
 0x477   : > { %v14044_v34 = vpop.f32.mrf.mxu1  ;;  %v9181_v2 = vpop.f32.mrf.mxu0 }
 0x478   : > { %21271 = vst [vmem:[#allocation60_spill] sm:$0xff] %v19572_v20  ;;  %v19574_v48 = vadd.f32 %v14096_v0, %v14044_v34 }
 0x479   : > { %v8882_v27 = vpop.f32.mrf.mxu1  ;;  %v14101_v29 = vpop.f32.mrf.mxu0 }
 0x47a   : > { %21272 = vst [vmem:[#allocation62_spill] sm:$0xff] %v19574_v48  ;;  %v19576_v57 = vadd.f32 %v9165_v37, %v8882_v27 }
 0x47b   : > { %v14045_v49 = vpop.f32.mrf.mxu1  ;;  %v9184_v54 = vpop.f32.mrf.mxu0 }
 0x47c   : > { %21273 = vst [vmem:[#allocation64_spill] sm:$0xff] %v19576_v57  ;;  %v19578_v53 = vadd.f32 %v14097_v11, %v14045_v49  ;;  %v14767_v11 = vmov 1966171168  }
 0x47d   : > { %v8885_v43 = vpop.f32.mrf.mxu1  ;;  %v14172_v16 = vpop.f32.mrf.mxu0  ;;  %v10416_v34 = vunpack.c.l.s4 %v14767_v11 }
 0x47e   : > { %21274 = vst [vmem:[#allocation58_spill] sm:$0xff] %v19578_v53  ;;  %v19580_v31 = vadd.f32 %v9168_v61, %v8885_v43 }
 0x47f   : > { %v14048_v60 = vpop.f32.mrf.mxu1  ;;  %v10092_v51 = vpop.f32.mrf.mxu0 }
 0x480   : > { %21275 = vst [vmem:[#allocation59_spill] sm:$0xff] %v19580_v31  ;;  %v19582_v59 = vadd.f32 %v14100_v32, %v14048_v60  ;;  %v10417_v60 = vunpack.c.0.s8 %v10416_v34 }
 0x481   : > { %v8898_v7 = vpop.f32.mrf.mxu1  ;;  %v14173_v36 = vpop.f32.mrf.mxu0 }
 0x482   : > { %21276 = vst [vmem:[#allocation61_spill] sm:$0xff] %v19582_v59  ;;  %v19584_v0 = vadd.f32 %v9181_v2, %v8898_v7 }
 0x483   : > { %v14049_v50 = vpop.f32.mrf.mxu1  ;;  %v10095_v52 = vpop.f32.mrf.mxu0 }
 0x484   : > { %21277 = vst [vmem:[#allocation63_spill] sm:$0xff] %v19584_v0  ;;  %v19586_v37 = vadd.f32 %v14101_v29, %v14049_v50  ;;  %v12716_v29 = vld [vmem:[%s20481_s4] ss:$0 sm:$0xff] }
 0x485   : > { %v8901_v30 = vpop.f32.mrf.mxu1  ;;  %v14176_v43 = vpop.f32.mrf.mxu0 }
 0x486   : > { %21278 = vst [vmem:[#allocation51_spill] sm:$0xff] %v19586_v37  ;;  %v19588_v27 = vadd.f32 %v9184_v54, %v8901_v30 }
 0x487   : > { %v14120_v61 = vpop.f32.mrf.mxu1  ;;  %v10108_v11 = vpop.f32.mrf.mxu0 }
 0x488   : > { %21279 = vst [vmem:[#allocation67_spill] sm:$0xff] %v19588_v27  ;;  %v9498_v49 = vadd.f32 %v14120_v61, %v19517_v12  ;;  %v12717_v12 = vld [vmem:[%s20483_s6] ss:$0 sm:$0xff]  ;;  %v21280_v61 = vld [vmem:[#allocation19_spill] sm:$0xff] }
 0x489   : > { %v9353_v32 = vpop.f32.mrf.mxu1  ;;  %v14177_v37 = vpop.f32.mrf.mxu0 }
 0x48a   : > { %v9570_v59 = vadd.f32 %v9498_v49, %v19424_v56  ;;  %v9496_v2 = vadd.f32 %v9353_v32, %v19520_v1  ;;  %v19602_v56 = vsub.s32 %v10417_v60, %v21280_v61  ;;  %v11550_v1 = vcombine.high %v12716_v29, %v12716_v29 }
 0x48b   : > { %v14121_v7 = vpop.f32.mrf.mxu1 }
 0x48c   : > { %v9568_v50 = vadd.f32 %v9496_v2, %v19428_v28  ;;  %v9499_v54 = vadd.f32 %v14121_v7, %v19522_v41  ;;  %v10237_v30 = vadd.f32 %v14172_v16, %v9570_v59  ;;  %v11557_v41 = vrot.slane %v12716_v29, %v19602_v56 }
 0x48d   : > { %v9356_v34 = vpop.f32.mrf.mxu1  ;;  %v11677_v16 = vcombine.high %v12717_v12, %v12717_v12  ;;  %v11564_v61 = vrot.slane %v11550_v1, %v19602_v56 }
 0x48e   : > { %v9571_v49 = vadd.f32 %v9499_v54, %v19433_v39  ;;  %v9497_v32 = vadd.f32 %v9356_v34, %v19524_v17  ;;  %10273 = vst [vmem:[#allocation2 + $0x10] sm:$0xff] %v10237_v30  ;;  %v10235_v27 = vadd.f32 %v10092_v51, %v9568_v50  ;;  %v11684_v39 = vrot.slane %v12717_v12, %v19602_v56  ;;  %v10111_v30 = vpop.f32.mrf.mxu0 }
 0x48f   : > { %v14124_v28 = vpop.f32.mrf.mxu1  ;;  %v11565_v54 = vcombine.high %v11557_v41, %v11557_v41  ;;  %v11566_v34 = vcombine.high %v11564_v61, %v11564_v61  ;;  %v19617_v12 = vrot.slane %v11557_v41, %v19602_v56 }
 0x490   : > { %v9569_v59 = vadd.f32 %v9497_v32, %v19438_v5  ;;  %v9502_v2 = vadd.f32 %v14124_v28, %v19526_v23  ;;  %10271 = vst [vmem:[#allocation2] sm:$0xff] %v10235_v27  ;;  %v10238_v7 = vadd.f32 %v14173_v36, %v9571_v49  ;;  %v11691_v5 = vrot.slane %v11677_v16, %v19602_v56 }
 0x491   : > { %v9369_v60 = vpop.f32.mrf.mxu1  ;;  %v19628_v32 = vrot.slane %v11684_v39, %v19602_v56 }
 0x492   : > { %v9574_v17 = vadd.f32 %v9502_v2, %v19442_v45  ;;  %v9500_v51 = vadd.f32 %v9369_v60, %v19528_v15  ;;  %10274 = vst [vmem:[#allocation2 + $0x18] sm:$0xff] %v10238_v7  ;;  %v10236_v50 = vadd.f32 %v10095_v52, %v9569_v59  ;;  %v19620_v45 = vrot.slane %v11564_v61, %v19602_v56  ;;  %v14180_v2 = vpop.f32.mrf.mxu0 }
 0x493   : > { %v14125_v29 = vpop.f32.mrf.mxu1  ;;  %v11692_v15 = vcombine.high %v11684_v39, %v11684_v39 }
 0x494   : > { %v9572_v23 = vadd.f32 %v9500_v51, %v19446_v55  ;;  %v9503_v36 = vadd.f32 %v14125_v29, %v19530_v21  ;;  %10272 = vst [vmem:[#allocation2 + $0x8] sm:$0xff] %v10236_v50  ;;  %v10241_v27 = vadd.f32 %v14176_v43, %v9574_v17  ;;  %v19625_v21 = vrot.slane %v11565_v54, %v19602_v56 }
 0x495   : > { %v9372_v52 = vpop.f32.mrf.mxu1  ;;  %v11693_v43 = vcombine.high %v11691_v5, %v11691_v5  ;;  %v19641_v60 = vcombine.high %v19620_v45, %v19620_v45  ;;  %v19653_v54 = vrot.slane %v11691_v5, %v19602_v56 }
 0x496   : > { %v9575_v1 = vadd.f32 %v9503_v36, %v19451_v33  ;;  %v9501_v49 = vadd.f32 %v9372_v52, %v19532_v14  ;;  %10277 = vst [vmem:[#allocation2 + $0x30] sm:$0xff] %v10241_v27  ;;  %v10239_v55 = vadd.f32 %v10108_v11, %v9572_v23  ;;  %v19633_v14 = vrot.slane %v11566_v34, %v19602_v56 }
 0x497   : > { %v14128_v28 = vpop.f32.mrf.mxu1  ;;  %v19637_v11 = vcombine.high %v19617_v12, %v19617_v12  ;;  %v19650_v29 = vcombine.high %v19625_v21, %v19625_v21  ;;  %v19656_v23 = vrot.slane %v11693_v43, %v19602_v56  ;;  %v19660_v36 = vcombine.high %v19628_v32, %v19628_v32 }
 0x498   : > { %v9573_v41 = vadd.f32 %v9501_v49, %v19455_v42  ;;  %v9506_v16 = vadd.f32 %v14128_v28, %v19534_v6  ;;  %10275 = vst [vmem:[#allocation2 + $0x20] sm:$0xff] %v10239_v55  ;;  %v10242_v59 = vadd.f32 %v14177_v37, %v9575_v1  ;;  %v19644_v42 = vrot.slane %v11692_v15, %v19602_v56  ;;  %v10124_v15 = vpop.f32.mrf.mxu0 }
 0x499   : > { %v10309_v33 = vld [vmem:[#allocation2 + $0x10] ss:$2 sm:$0xff]  ;;  %v10345_v7 = vld [vmem:[#allocation2 + $0x11] ss:$2 sm:$0xff]  ;;  %v9385_v6 = vpop.f32.mrf.mxu1  ;;  %v19671_v1 = vcombine.high %v19633_v14, %v19633_v14 }
 0x49a   : > { %v10379_v61 = vadd.f32 %v10345_v7, %v10309_v33  ;;  %v9578_v37 = vadd.f32 %v9506_v16, %v19459_v22  ;;  %v9504_v39 = vadd.f32 %v9385_v6, %v19536_v46  ;;  %10278 = vst [vmem:[#allocation2 + $0x38] sm:$0xff] %v10242_v59  ;;  %v10240_v17 = vadd.f32 %v10111_v30, %v9573_v41 }
 0x49b   : > { %v10307_v51 = vld [vmem:[#allocation2] ss:$2 sm:$0xff]  ;;  %v10343_v50 = vld [vmem:[#allocation2 + $0x1] ss:$2 sm:$0xff]  ;;  %v14129_v22 = vpop.f32.mrf.mxu1  ;;  %v19666_v5 = vcombine.high %v19644_v42, %v19644_v42 }
 0x49c   : > { %v10463_v46 = vcombine.high %v10379_v61, %v10379_v61  ;;  %v10470_v27 = vrot.slane %v10379_v61, %v19602_v56  ;;  %v10378_v30 = vadd.f32 %v10343_v50, %v10307_v51  ;;  %v9576_v34 = vadd.f32 %v9504_v39, %v19463_v24  ;;  %10276 = vst [vmem:[#allocation2 + $0x28] sm:$0xff] %v10240_v17 }
 0x49d   : > { %v9507_v52 = vadd.f32 %v14129_v22, %v19538_v58  ;;  %v10245_v49 = vadd.f32 %v14180_v2, %v9578_v37  ;;  %v9388_v24 = vpop.f32.mrf.mxu1  ;;  %v19681_v58 = vcombine.high %v19653_v54, %v19653_v54  ;;  %v19687_v61 = vcombine.high %v19656_v23, %v19656_v23  ;;  %v19689_v37 = vpop.f32.mrf.mxu0 }
 0x49e   : > { %v10477_v55 = vrot.slane %v10463_v46, %v19602_v56  ;;  %v10478_v43 = vcombine.high %v10470_v27, %v10470_v27  ;;  %v10486_v28 = vrot.slane %v10470_v27, %v19602_v56  ;;  %v10414_v41 = vcombine.high %v10378_v30, %v10378_v30 }
 0x49f   : > { %v10421_v16 = vrot.slane %v10378_v30, %v19602_v56  ;;  %v19677_v59 = vadd.f32 %v9507_v52, %v19467_v62  ;;  %10281 = vst [vmem:[#allocation2 + $0x50] sm:$0xff] %v10245_v49  ;;  %v10243_v33 = vadd.f32 %v10124_v15, %v9576_v34  ;;  %v19694_v15 = vpop.f32.mrf.mxu1 }
 0x4a0   : > { %v10479_v7 = vcombine.high %v10477_v55, %v10477_v55  ;;  %v10493_v2 = vrot.slane %v10477_v55, %v19602_v56  ;;  %v10500_v6 = vrot.slane %v10478_v43, %v19602_v56  ;;  %v10508_v39 = vcombine.high %v10486_v28, %v10486_v28 }
 0x4a1   : > { %v10428_v62 = vrot.slane %v10414_v41, %v19602_v56  ;;  %v10429_v17 = vcombine.high %v10421_v16, %v10421_v16  ;;  %v10437_v51 = vrot.slane %v10421_v16, %v19602_v56  ;;  %v10313_v50 = vld [vmem:[#allocation2 + $0x30] ss:$2 sm:$0xff]  ;;  %v10349_v22 = vld [vmem:[#allocation2 + $0x31] ss:$2 sm:$0xff]  ;;  %10279 = vst [vmem:[#allocation2 + $0x40] sm:$0xff] %v10243_v33  ;;  %v19701_v33 = vpop.f32.mrf.mxu0  ;;  %v9401_v48 = vpop.f32.mrf.mxu1 }
 0x4a2   : > { %v10507_v46 = vrot.slane %v10479_v7, %v19602_v56  ;;  %v10509_v27 = vcombine.high %v10493_v2, %v10493_v2  ;;  %v10510_v30 = vcombine.high %v10500_v6, %v10500_v6  ;;  %v10381_v34 = vadd.f32 %v10349_v22, %v10313_v50 }
 0x4a3   : > { %v10430_v52 = vcombine.high %v10428_v62, %v10428_v62  ;;  %v10444_v49 = vrot.slane %v10428_v62, %v19602_v56  ;;  %v10451_v55 = vrot.slane %v10429_v17, %v19602_v56  ;;  %v10459_v43 = vcombine.high %v10437_v51, %v10437_v51  ;;  %v19711_v63 = vpop.f32.mrf.mxu0 }
 0x4a4   : > { %v10511_v28 = vcombine.high %v10507_v46, %v10507_v46  ;;  %v11416_v41 = vadd.f32 %v10500_v6, %v10437_v51  ;;  %v10561_v0 = vcombine.high %v10381_v34, %v10381_v34  ;;  %v19699_v16 = vrot.slane %v10381_v34, %v19602_v56 }
 0x4a5   : > { %v19704_v7 = vrot.slane %v10430_v52, %v19602_v56  ;;  %v10460_v50 = vcombine.high %v10444_v49, %v10444_v49  ;;  %v10461_v22 = vcombine.high %v10451_v55, %v10451_v55  ;;  %v11417_v31 = vadd.f32 %v10508_v39, %v10451_v55 }
 0x4a6   : > { %v11418_v53 = vadd.f32 %v10510_v30, %v10459_v43  ;;  %v11420_v57 = vadd.f32 %v10507_v46, %v10444_v49  ;;  %v11480_v62 = vmul.f32 0.25, %v11416_v41  ;;  %v10575_v17 = vrot.slane %v10561_v0, %v19602_v56  ;;  %v10347_v41 = vld [vmem:[#allocation2 + $0x21] ss:$2 sm:$0xff] }
 0x4a7   : > { %v11419_v20 = vadd.f32 %v10493_v2, %v10461_v22  ;;  %v11421_v6 = vadd.f32 %v10509_v27, %v19704_v7  ;;  %v11422_v51 = vadd.f32 %v10511_v28, %v10460_v50  ;;  %v11481_v34 = vmul.f32 0.25, %v11417_v31  ;;  %v10311_v28 = vld [vmem:[#allocation2 + $0x20] ss:$2 sm:$0xff] }
 0x4a8   : > { %v11482_v18 = vmul.f32 0.25, %v11418_v53  ;;  %v11484_v3 = vmul.f32 0.25, %v11420_v57  ;;  %v11607_v47 = vadd.f32 %v19617_v12, %v11480_v62  ;;  %v10576_v52 = vcombine.high %v19699_v16, %v19699_v16  ;;  %v14133_v57 = vpop.f32.mrf.mxu1 }
 0x4a9   : > { %v11483_v39 = vmul.f32 0.25, %v11419_v20  ;;  %v11485_v46 = vmul.f32 0.25, %v11421_v6  ;;  %v11486_v30 = vmul.f32 0.25, %v11422_v51  ;;  %v11608_v0 = vadd.f32 %v19625_v21, %v11481_v34  ;;  %v9541_v51 = vld [vmem:[#allocation2 + $0x48] sm:$0xff] }
 0x4aa   : > { %v11609_v2 = vadd.f32 %v19637_v11, %v11482_v18  ;;  %v11611_v27 = vadd.f32 %v19620_v45, %v11484_v3  ;;  %v10577_v49 = vcombine.high %v10575_v17, %v10575_v17  ;;  %v9505_v53 = vadd.f32 %v9388_v24, %v19540_v10  ;;  %v19725_v10 = vpop.f32.mrf.mxu0 }
 0x4ab   : > { %v11610_v31 = vadd.f32 %v19650_v29, %v11483_v39  ;;  %v11612_v55 = vadd.f32 %v19633_v14, %v11485_v46  ;;  %v11734_v43 = vadd.f32 %v19628_v32, %v11607_v47  ;;  %v11735_v20 = vadd.f32 %v19644_v42, %v11608_v0  ;;  %v9404_v0 = vpop.f32.mrf.mxu1 }
 0x4ac   : > { %v11613_v50 = vadd.f32 %v19641_v60, %v11486_v30  ;;  %v11736_v18 = vadd.f32 %v19660_v36, %v11609_v2  ;;  %v11738_v3 = vadd.f32 %v19653_v54, %v11611_v27  ;;  %v10591_v22 = vrot.slane %v10575_v17, %v19602_v56  ;;  %v19743_v34 = vpop.f32.mrf.mxu0 }
 0x4ad   : > { %v11737_v24 = vadd.f32 %v19666_v5, %v11610_v31  ;;  %v11739_v62 = vadd.f32 %v19656_v23, %v11612_v55  ;;  %v11862_v6 = vcombine.low %v11734_v43, %v11735_v20  ;;  %v19730_v47 = vrot.slane %v10576_v52, %v19602_v56 }
 0x4ae   : > { %v10605_v39 = vrot.slane %v10577_v49, %v19602_v56  ;;  %v10380_v46 = vadd.f32 %v10347_v41, %v10311_v28  ;;  %v9577_v30 = vadd.f32 %v9541_v51, %v9505_v53  ;;  %v10606_v27 = vcombine.high %v10591_v22, %v10591_v22  ;;  %v19765_v40 = vpop.f32.mrf.mxu0 }
 0x4af   : > { %v11863_v17 = vcombine.low %v11736_v18, %v11737_v24  ;;  %v11864_v2 = vcombine.low %v11738_v3, %v11739_v62  ;;  %v10462_v31 = vcombine.high %v19704_v7, %v19704_v7  ;;  %v19738_v55 = vrot.slane %v11862_v6, %v19602_v56  ;;  %v9546_v24 = vld [vmem:[#allocation2 + $0x70] sm:$0xff]  ;;  %v14136_v6 = vpop.f32.mrf.mxu1 }
 0x4b0   : > { %v10607_v52 = vcombine.high %v19730_v47, %v19730_v47  ;;  %v10512_v43 = vcombine.high %v10380_v46, %v10380_v46  ;;  %v10519_v20 = vrot.slane %v10380_v46, %v19602_v56  ;;  %v10608_v53 = vcombine.high %v10605_v39, %v10605_v39 }
 0x4b1   : > { %v19746_v49 = vrot.slane %v11863_v17, %v19602_v56  ;;  %v19749_v28 = vadd.f32 %v19681_v58, %v11613_v50  ;;  %v9510_v7 = vadd.f32 %v19694_v15, %v19542_v44  ;;  %v10246_v62 = vadd.f32 %v19689_v37, %v19677_v59  ;;  %v9417_v50 = vpop.f32.mrf.mxu1 }
 0x4b2   : > { %v10526_v41 = vrot.slane %v10512_v43, %v19602_v56  ;;  %v10527_v18 = vcombine.high %v10519_v20, %v10519_v20  ;;  %v10535_v3 = vrot.slane %v10519_v20, %v19602_v56  ;;  %v19758_v51 = vrot.slane %v11864_v2, %v19602_v56 }
 0x4b3   : > { %21281 = vst [vmem:[#allocation24_spill] sm:$0xff] %v19746_v49  ;;  %v9582_v46 = vadd.f32 %v9546_v24, %v9510_v7  ;;  %v9508_v17 = vadd.f32 %v9401_v48, %v19544_v38  ;;  %10282 = vst [vmem:[#allocation2 + $0x58] sm:$0xff] %v10246_v62  ;;  %v9511_v37 = vadd.f32 %v14133_v57, %v19546_v35 }
 0x4b4   : > { %v10528_v44 = vcombine.high %v10526_v41, %v10526_v41  ;;  %v10542_v15 = vrot.slane %v10526_v41, %v19602_v56  ;;  %v10549_v43 = vrot.slane %v10527_v18, %v19602_v56  ;;  %v10557_v20 = vcombine.high %v10535_v3, %v10535_v3  ;;  %v9544_v41 = vld [vmem:[#allocation2 + $0x60] sm:$0xff] }
 0x4b5   : > { %v11423_v59 = vadd.f32 %v10535_v3, %v10462_v31  ;;  %v10244_v2 = vadd.f32 %v19701_v33, %v9577_v30  ;;  %v9509_v8 = vadd.f32 %v9404_v0, %v19548_v25  ;;  %v9580_v62 = vadd.f32 %v9544_v41, %v9508_v17  ;;  %v9547_v25 = vld [vmem:[#allocation2 + $0x78] sm:$0xff]  ;;  %v9545_v30 = vld [vmem:[#allocation2 + $0x68] sm:$0xff]  ;;  %v19775_v0 = vpop.f32.mrf.mxu0 }
 0x4b6   : > { %v19771_v7 = vrot.slane %v10528_v44, %v19602_v56  ;;  %v10558_v38 = vcombine.high %v10542_v15, %v10542_v15  ;;  %v10559_v48 = vcombine.high %v10549_v43, %v10549_v43  ;;  %v11424_v24 = vadd.f32 %v10607_v52, %v10557_v20 }
 0x4b7   : > { %v11426_v18 = vadd.f32 %v10605_v39, %v10542_v15  ;;  %v11487_v49 = vmul.f32 0.25, %v11423_v59  ;;  %10280 = vst [vmem:[#allocation2 + $0x48] sm:$0xff] %v10244_v2  ;;  %v10249_v31 = vadd.f32 %v19711_v63, %v9582_v46  ;;  %v9583_v43 = vadd.f32 %v9547_v25, %v9511_v37 }
 0x4b8   : > { %v11425_v3 = vadd.f32 %v10591_v22, %v10559_v48  ;;  %v11427_v35 = vadd.f32 %v10606_v27, %v19771_v7  ;;  %v11428_v33 = vadd.f32 %v10608_v53, %v10558_v38  ;;  %v11488_v57 = vmul.f32 0.25, %v11424_v24  ;;  %v14137_v22 = vpop.f32.mrf.mxu1  ;;  %v19790_v24 = vpop.f32.mrf.mxu0 }
 0x4b9   : > { %v11490_v44 = vmul.f32 0.25, %v11426_v18  ;;  %v11614_v52 = vadd.f32 %v19671_v1, %v11487_v49  ;;  %v19778_v20 = vadd.f32 %v9545_v30, %v9509_v8  ;;  %10285 = vst [vmem:[#allocation2 + $0x70] sm:$0xff] %v10249_v31  ;;  %v10560_v2 = vcombine.high %v19771_v7, %v19771_v7 }
 0x4ba   : > { %v11489_v39 = vmul.f32 0.25, %v11425_v3  ;;  %v11491_v17 = vmul.f32 0.25, %v11427_v35  ;;  %v11492_v15 = vmul.f32 0.25, %v11428_v33  ;;  %v11615_v63 = vadd.f32 %v19617_v12, %v11488_v57  ;;  %v10317_v46 = vld [vmem:[#allocation2 + $0x50] ss:$2 sm:$0xff] }
 0x4bb   : > { %v11617_v27 = vadd.f32 %v19637_v11, %v11490_v44  ;;  %v11741_v53 = vadd.f32 %v19687_v61, %v11614_v52  ;;  %v10353_v59 = vld [vmem:[#allocation2 + $0x51] ss:$2 sm:$0xff]  ;;  %v10247_v49 = vadd.f32 %v19725_v10, %v9580_v62  ;;  %v9514_v48 = vadd.f32 %v14136_v6, %v19550_v4  ;;  %v9420_v6 = vpop.f32.mrf.mxu1 }
 0x4bc   : > { %v11616_v8 = vadd.f32 %v19625_v21, %v11489_v39  ;;  %v11618_v37 = vadd.f32 %v19650_v29, %v11491_v17  ;;  %v11619_v38 = vadd.f32 %v19620_v45, %v11492_v15  ;;  %v11742_v41 = vadd.f32 %v19628_v32, %v11615_v63  ;;  %v9550_v44 = vld [vmem:[#allocation2 + $0x90] sm:$0xff]  ;;  %v19806_v63 = vpop.f32.mrf.mxu0 }
 0x4bd   : > { %v11744_v18 = vadd.f32 %v19660_v36, %v11617_v27  ;;  %v11865_v31 = vcombine.low %v19749_v28, %v11741_v53  ;;  %v10383_v3 = vadd.f32 %v10353_v59, %v10317_v46  ;;  %10283 = vst [vmem:[#allocation2 + $0x60] sm:$0xff] %v10247_v49  ;;  %v9512_v33 = vadd.f32 %v9417_v50, %v19552_v13 }
 0x4be   : > { %v11743_v10 = vadd.f32 %v19644_v42, %v11616_v8  ;;  %v11745_v7 = vadd.f32 %v19666_v5, %v11618_v37  ;;  %v10315_v62 = vld [vmem:[#allocation2 + $0x40] ss:$2 sm:$0xff]  ;;  %v10351_v35 = vld [vmem:[#allocation2 + $0x41] ss:$2 sm:$0xff]  ;;  %v10250_v4 = vadd.f32 %v19743_v34, %v9583_v43  ;;  %v19804_v17 = vadd.f32 %v19653_v54, %v11619_v38  ;;  %v19818_v8 = vpop.f32.mrf.mxu1 }
 0x4bf   : > { %v19800_v57 = vrot.slane %v11865_v31, %v19602_v56  ;;  %v10657_v25 = vcombine.high %v10383_v3, %v10383_v3  ;;  %v10664_v30 = vrot.slane %v10383_v3, %v19602_v56  ;;  %v10382_v28 = vadd.f32 %v10351_v35, %v10315_v62  ;;  %v9548_v43 = vld [vmem:[#allocation2 + $0x80] sm:$0xff]  ;;  %v9551_v3 = vld [vmem:[#allocation2 + $0x98] sm:$0xff] }
 0x4c0   : > { %v11911_v52 = vcombine.low %v11742_v41, %v11743_v10  ;;  %v11912_v39 = vcombine.low %v11744_v18, %v11745_v7  ;;  %v9586_v15 = vadd.f32 %v9550_v44, %v9514_v48  ;;  %10286 = vst [vmem:[#allocation2 + $0x78] sm:$0xff] %v10250_v4  ;;  %v9515_v27 = vadd.f32 %v14137_v22, %v19554_v26  ;;  %v19832_v10 = vpop.f32.mrf.mxu0  ;;  %v19843_v44 = vpop.f32.mrf.mxu1 }
 0x4c1   : > { %v10671_v13 = vrot.slane %v10657_v25, %v19602_v56  ;;  %v10672_v34 = vcombine.high %v10664_v30, %v10664_v30  ;;  %v19810_v50 = vrot.slane %v10664_v30, %v19602_v56  ;;  %v10609_v46 = vcombine.high %v10382_v28, %v10382_v28 }
 0x4c2   : > { %v10616_v59 = vrot.slane %v10382_v28, %v19602_v56  ;;  %v19816_v49 = vadd.f32 %v9548_v43, %v9512_v33  ;;  %v19821_v37 = vrot.slane %v11911_v52, %v19602_v56  ;;  %v19824_v38 = vrot.slane %v11912_v39, %v19602_v56 }
 0x4c3   : > { %v10673_v48 = vcombine.high %v10671_v13, %v10671_v13  ;;  %v10687_v41 = vrot.slane %v10671_v13, %v19602_v56  ;;  %v19828_v26 = vrot.slane %v10672_v34, %v19602_v56  ;;  %v10623_v22 = vrot.slane %v10609_v46, %v19602_v56 }
 0x4c4   : > { %21282 = vst [vmem:[#allocation10_spill] sm:$0xff] %v19821_v37  ;;  %v10624_v18 = vcombine.high %v10616_v59, %v10616_v59  ;;  %v10632_v31 = vrot.slane %v10616_v59, %v19602_v56  ;;  %v19837_v35 = vadd.f32 %v9551_v3, %v9515_v27  ;;  %v10248_v33 = vadd.f32 %v19765_v40, %v19778_v20 }
 0x4c5   : > { %v10701_v7 = vrot.slane %v10673_v48, %v19602_v56  ;;  %v10625_v4 = vcombine.high %v10623_v22, %v10623_v22  ;;  %v10639_v25 = vrot.slane %v10623_v22, %v19602_v56  ;;  %v10703_v52 = vcombine.high %v10687_v41, %v10687_v41  ;;  %v19853_v22 = vpop.f32.mrf.mxu0 }
 0x4c6   : > { %v10646_v30 = vrot.slane %v10624_v18, %v19602_v56  ;;  %v10654_v28 = vcombine.high %v10632_v31, %v10632_v31  ;;  %v11429_v13 = vadd.f32 %v10632_v31, %v10560_v2  ;;  %10284 = vst [vmem:[#allocation2 + $0x68] sm:$0xff] %v10248_v33  ;;  %v10253_v27 = vadd.f32 %v19775_v0, %v9586_v15 }
 0x4c7   : > { %v10705_v39 = vcombine.high %v10701_v7, %v10701_v7  ;;  %v10321_v34 = vld [vmem:[#allocation2 + $0x70] ss:$2 sm:$0xff]  ;;  %v10357_v43 = vld [vmem:[#allocation2 + $0x71] ss:$2 sm:$0xff]  ;;  %v19847_v46 = vrot.slane %v10625_v4, %v19602_v56  ;;  %v10655_v40 = vcombine.high %v10639_v25, %v10639_v25  ;;  %v21283_v20 = vrot.slane %v19699_v16, %v19602_v56  ;;  %v14141_v4 = vpop.f32.mrf.mxu1 }
 0x4c8   : > { %v11431_v48 = vadd.f32 %v10654_v28, %v19730_v47  ;;  %v11432_v41 = vadd.f32 %v10701_v7, %v10639_v25  ;;  %v11493_v18 = vmul.f32 0.25, %v11429_v13  ;;  %v10385_v2 = vadd.f32 %v10357_v43, %v10321_v34  ;;  %10289 = vst [vmem:[#allocation2 + $0x90] sm:$0xff] %v10253_v27  ;;  %v9554_v34 = vld [vmem:[#allocation2 + $0xb0] sm:$0xff] }
 0x4c9   : > { %v11430_v59 = vadd.f32 %v10646_v30, %v21283_v20  ;;  %v9513_v31 = vadd.f32 %v9420_v6, %v19556_v19  ;;  %v11433_v0 = vadd.f32 %v10703_v52, %v19847_v46  ;;  %v11434_v15 = vadd.f32 %v10705_v39, %v10655_v40  ;;  %v19861_v19 = vpop.f32.mrf.mxu0 }
 0x4ca   : > { %v11495_v33 = vmul.f32 0.25, %v11431_v48  ;;  %v11496_v53 = vmul.f32 0.25, %v11432_v41  ;;  %v11620_v16 = vadd.f32 %v19633_v14, %v11493_v18  ;;  %v10755_v30 = vcombine.high %v10385_v2, %v10385_v2  ;;  %v9436_v41 = vpop.f32.mrf.mxu1 }
 0x4cb   : > { %v11494_v3 = vmul.f32 0.25, %v11430_v59  ;;  %v10762_v47 = vrot.slane %v10385_v2, %v19602_v56  ;;  %v11497_v28 = vmul.f32 0.25, %v11433_v0  ;;  %v11498_v20 = vmul.f32 0.25, %v11434_v15 }
 0x4cc   : > { %v11622_v25 = vadd.f32 %v19671_v1, %v11495_v33  ;;  %v11623_v6 = vadd.f32 %v19617_v12, %v11496_v53  ;;  %v11747_v52 = vadd.f32 %v19656_v23, %v11620_v16  ;;  %v19866_v39 = vrot.slane %v10755_v30, %v19602_v56  ;;  %v9549_v30 = vld [vmem:[#allocation2 + $0x88] sm:$0xff] }
 0x4cd   : > { %v11621_v7 = vadd.f32 %v19641_v60, %v11494_v3  ;;  %v10770_v13 = vcombine.high %v10762_v47, %v10762_v47  ;;  %v11624_v43 = vadd.f32 %v19625_v21, %v11497_v28  ;;  %v10319_v59 = vld [vmem:[#allocation2 + $0x60] ss:$2 sm:$0xff]  ;;  %v10355_v48 = vld [vmem:[#allocation2 + $0x61] ss:$2 sm:$0xff]  ;;  %v11625_v53 = vadd.f32 %v19637_v11, %v11498_v20  ;;  %v19885_v28 = vpop.f32.mrf.mxu0 }
 0x4ce   : > { %v11749_v40 = vadd.f32 %v19687_v61, %v11622_v25  ;;  %v11913_v18 = vcombine.low %v19804_v17, %v11747_v52  ;;  %v10771_v2 = vcombine.high %v19866_v39, %v19866_v39  ;;  %v19878_v0 = vrot.slane %v10762_v47, %v19602_v56 }
 0x4cf   : > { %v11748_v27 = vadd.f32 %v19681_v58, %v11621_v7  ;;  %v11750_v15 = vadd.f32 %v19628_v32, %v11623_v6  ;;  %v11751_v3 = vadd.f32 %v19644_v42, %v11624_v43  ;;  %v19883_v16 = vrot.slane %v10770_v13, %v19602_v56  ;;  %v19900_v43 = vpop.f32.mrf.mxu1 }
 0x4d0   : > { %v19890_v20 = vrot.slane %v10771_v2, %v19602_v56  ;;  %v10384_v7 = vadd.f32 %v10355_v48, %v10319_v59  ;;  %v9585_v47 = vadd.f32 %v9549_v30, %v9513_v31  ;;  %v19893_v25 = vrot.slane %v11913_v18, %v19602_v56 }
 0x4d1   : > { %v11914_v33 = vcombine.low %v11748_v27, %v11749_v40  ;;  %v11960_v52 = vcombine.low %v11750_v15, %v11751_v3  ;;  %v10656_v40 = vcombine.high %v19847_v46, %v19847_v46  ;;  %v19910_v18 = vadd.f32 %v19660_v36, %v11625_v53  ;;  %v19916_v3 = vpop.f32.mrf.mxu0 }
 0x4d2   : > { %21284 = vst [vmem:[#allocation68_spill] sm:$0xff] %v19893_v25  ;;  %v10706_v59 = vcombine.high %v10384_v7, %v10384_v7  ;;  %v10713_v31 = vrot.slane %v10384_v7, %v19602_v56  ;;  %v10802_v48 = vcombine.high %v19890_v20, %v19890_v20  ;;  %v9518_v2 = vadd.f32 %v19818_v8, %v19558_v9  ;;  %v21286_v7 = vld [vmem:[#allocation14_spill] sm:$0xff]  ;;  %v21287_v8 = vld [vmem:[#allocation13_spill] sm:$0xff] }
 0x4d3   : > { %v19896_v6 = vrot.slane %v11914_v33, %v19602_v56  ;;  %v10251_v15 = vadd.f32 %v19790_v24, %v19816_v49  ;;  %v9516_v17 = vadd.f32 %v19843_v44, %v21286_v7  ;;  %v10254_v9 = vadd.f32 %v19806_v63, %v19837_v35  ;;  %v9449_v49 = vpop.f32.mrf.mxu1  ;;  %v9552_v44 = vld [vmem:[#allocation2 + $0xa0] sm:$0xff]  ;;  %v19933_v63 = vpop.f32.mrf.mxu0 }
 0x4d4   : > { %v10720_v33 = vrot.slane %v10706_v59, %v19602_v56  ;;  %v10721_v46 = vcombine.high %v10713_v31, %v10713_v31  ;;  %v10729_v30 = vrot.slane %v10713_v31, %v19602_v56  ;;  %v9519_v13 = vadd.f32 %v14141_v4, %v21287_v8 }
 0x4d5   : > { %21285 = vst [vmem:[#allocation25_spill] sm:$0xff] %v19896_v6  ;;  %10287 = vst [vmem:[#allocation2 + $0x80] sm:$0xff] %v10251_v15  ;;  %v10252_v24 = vadd.f32 %v19832_v10, %v9585_v47  ;;  %v19931_v7 = vrot.slane %v11960_v52, %v19602_v56  ;;  %v9590_v53 = vadd.f32 %v9554_v34, %v9518_v2  ;;  %v9555_v47 = vld [vmem:[#allocation2 + $0xb8] sm:$0xff] }
 0x4d6   : > { %v10722_v27 = vcombine.high %v10720_v33, %v10720_v33  ;;  %v10736_v59 = vrot.slane %v10720_v33, %v19602_v56  ;;  %v10743_v31 = vrot.slane %v10721_v46, %v19602_v56  ;;  %v10751_v62 = vcombine.high %v10729_v30, %v10729_v30  ;;  %10290 = vst [vmem:[#allocation2 + $0x98] sm:$0xff] %v10254_v9  ;;  %v21289_v33 = vld [vmem:[#allocation16_spill] sm:$0xff] }
 0x4d7   : > { %21288 = vst [vmem:[#allocation65_spill] sm:$0xff] %v19931_v7  ;;  %v11435_v15 = vadd.f32 %v10729_v30, %v10656_v40  ;;  %v9588_v6 = vadd.f32 %v9552_v44, %v9516_v17  ;;  %10288 = vst [vmem:[#allocation2 + $0x88] sm:$0xff] %v10252_v24  ;;  %v9517_v46 = vadd.f32 %v9436_v41, %v21289_v33  ;;  %v19943_v17 = vpop.f32.mrf.mxu1 }
 0x4d8   : > { %v10752_v10 = vcombine.high %v10736_v59, %v10736_v59  ;;  %v10753_v35 = vcombine.high %v10743_v31, %v10743_v31  ;;  %v11436_v4 = vadd.f32 %v10743_v31, %v19810_v50  ;;  %v11437_v8 = vadd.f32 %v10751_v62, %v19828_v26 }
 0x4d9   : > { %v21290_v52 = vcombine.high %v19828_v26, %v19828_v26  ;;  %v11499_v40 = vmul.f32 0.25, %v11435_v15  ;;  %v19941_v34 = vadd.f32 %v9555_v47, %v9519_v13  ;;  %v19946_v2 = vrot.slane %v10722_v27, %v19602_v56  ;;  %v9553_v26 = vld [vmem:[#allocation2 + $0xa8] sm:$0xff]  ;;  %v19953_v13 = vpop.f32.mrf.mxu0 }
 0x4da   : > { %v21291_v30 = vcombine.high %v19810_v50, %v19810_v50  ;;  %v11440_v24 = vadd.f32 %v10802_v48, %v10752_v10  ;;  %v11500_v41 = vmul.f32 0.25, %v11436_v4  ;;  %v11501_v31 = vmul.f32 0.25, %v11437_v8 }
 0x4db   : > { %v11439_v25 = vadd.f32 %v10736_v59, %v21290_v52  ;;  %v11626_v44 = vadd.f32 %v19650_v29, %v11499_v40  ;;  %v10257_v59 = vadd.f32 %v19853_v22, %v9590_v53  ;;  %v19956_v33 = vadd.f32 %v9553_v26, %v9517_v46  ;;  %v21292_v40 = vld [vmem:[#allocation18_spill] sm:$0xff] }
 0x4dc   : > { %v11438_v9 = vadd.f32 %v10753_v35, %v21291_v30  ;;  %v11504_v47 = vmul.f32 0.25, %v11440_v24  ;;  %v11627_v27 = vadd.f32 %v19620_v45, %v11500_v41  ;;  %v11628_v50 = vadd.f32 %v19633_v14, %v11501_v31  ;;  %v19962_v35 = vpop.f32.mrf.mxu1  ;;  %v19973_v31 = vpop.f32.mrf.mxu0 }
 0x4dd   : > { %v11503_v62 = vmul.f32 0.25, %v11439_v25  ;;  %v11753_v10 = vadd.f32 %v19666_v5, %v11626_v44  ;;  %10293 = vst [vmem:[#allocation2 + $0xb0] sm:$0xff] %v10257_v59  ;;  %v10255_v25 = vadd.f32 %v19861_v19, %v9588_v6  ;;  %v10325_v4 = vld [vmem:[#allocation2 + $0x90] ss:$2 sm:$0xff]  ;;  %v10361_v8 = vld [vmem:[#allocation2 + $0x91] ss:$2 sm:$0xff]  ;;  %v10754_v46 = vcombine.high %v19946_v2, %v19946_v2 }
 0x4de   : > { %v11502_v15 = vmul.f32 0.25, %v11438_v9  ;;  %v11754_v53 = vadd.f32 %v19653_v54, %v11627_v27  ;;  %v10323_v52 = vld [vmem:[#allocation2 + $0x80] ss:$2 sm:$0xff]  ;;  %v9522_v30 = vadd.f32 %v19900_v43, %v21292_v40  ;;  %v11631_v9 = vadd.f32 %v19617_v12, %v11504_v47  ;;  %v10359_v41 = vld [vmem:[#allocation2 + $0x81] ss:$2 sm:$0xff]  ;;  %v19993_v40 = vpop.f32.mrf.mxu0 }
 0x4df   : > { %v11630_v48 = vadd.f32 %v19671_v1, %v11503_v62  ;;  %v11755_v24 = vadd.f32 %v19656_v23, %v11628_v50  ;;  %v11961_v19 = vcombine.low %v19910_v18, %v11753_v10  ;;  %v10387_v6 = vadd.f32 %v10361_v8, %v10325_v4  ;;  %10291 = vst [vmem:[#allocation2 + $0xa0] sm:$0xff] %v10255_v25  ;;  %v21293_v2 = vld [vmem:[#allocation17_spill] sm:$0xff]  ;;  %v9558_v18 = vld [vmem:[#allocation2 + $0xd0] sm:$0xff]  ;;  %v19982_v50 = vpop.f32.mrf.mxu1 }
 0x4e0   : > { %v11629_v22 = vadd.f32 %v19641_v60, %v11502_v15  ;;  %v10386_v26 = vadd.f32 %v10359_v41, %v10323_v52  ;;  %v9520_v59 = vadd.f32 %v9449_v49, %v21293_v2  ;;  %v10258_v7 = vadd.f32 %v19885_v28, %v19941_v34 }
 0x4e1   : > { %v11757_v44 = vadd.f32 %v19687_v61, %v11630_v48  ;;  %v11962_v15 = vcombine.low %v11754_v53, %v11755_v24  ;;  %v19979_v43 = vrot.slane %v11961_v19, %v19602_v56  ;;  %v10851_v47 = vcombine.high %v10387_v6, %v10387_v6  ;;  %v9556_v48 = vld [vmem:[#allocation2 + $0xc0] sm:$0xff] }
 0x4e2   : > { %v11756_v62 = vadd.f32 %v19681_v58, %v11629_v22  ;;  %v10858_v27 = vrot.slane %v10387_v6, %v19602_v56  ;;  %v10803_v25 = vcombine.high %v10386_v26, %v10386_v26  ;;  %v10810_v4 = vrot.slane %v10386_v26, %v19602_v56  ;;  %v20008_v26 = vpop.f32.mrf.mxu1  ;;  %10294 = vst [vmem:[#allocation2 + $0xb8] sm:$0xff] %v10258_v7 }
 0x4e3   : > { %21294 = vst [vmem:[#allocation27_spill] sm:$0xff] %v19979_v43  ;;  %v19985_v22 = vadd.f32 %v9558_v18, %v9522_v30  ;;  %v10865_v8 = vrot.slane %v10851_v47, %v19602_v56  ;;  %v19989_v53 = vadd.f32 %v19628_v32, %v11631_v9  ;;  %v19991_v52 = vadd.f32 %v9556_v48, %v9520_v59 }
 0x4e4   : > { %v11963_v10 = vcombine.low %v11756_v62, %v11757_v44  ;;  %v10866_v49 = vcombine.high %v10858_v27, %v10858_v27  ;;  %v19996_v24 = vrot.slane %v11962_v15, %v19602_v56  ;;  %v19999_v19 = vrot.slane %v10858_v27, %v19602_v56 }
 0x4e5   : > { %v10817_v30 = vrot.slane %v10803_v25, %v19602_v56  ;;  %v10818_v6 = vcombine.high %v10810_v4, %v10810_v4  ;;  %v10867_v62 = vcombine.high %v10865_v8, %v10865_v8  ;;  %v10826_v44 = vrot.slane %v10810_v4, %v19602_v56  ;;  %v20023_v4 = vpop.f32.mrf.mxu0 }
 0x4e6   : > { %21295 = vst [vmem:[#allocation26_spill] sm:$0xff] %v19996_v24  ;;  %v20003_v41 = vrot.slane %v11963_v10, %v19602_v56  ;;  %v20011_v2 = vrot.slane %v10865_v8, %v19602_v56  ;;  %v20016_v27 = vrot.slane %v10866_v49, %v19602_v56  ;;  %v21297_v49 = vcombine.high %v19883_v16, %v19883_v16  ;;  %v20033_v10 = vpop.f32.mrf.mxu1 }
 0x4e7   : > { %v10819_v59 = vcombine.high %v10817_v30, %v10817_v30  ;;  %v10833_v15 = vrot.slane %v10817_v30, %v19602_v56  ;;  %v10840_v47 = vrot.slane %v10818_v6, %v19602_v56  ;;  %v20019_v18 = vrot.slane %v10867_v62, %v19602_v56  ;;  %v20044_v28 = vpop.f32.mrf.mxu0 }
 0x4e8   : > { %21296 = vst [vmem:[#allocation66_spill] sm:$0xff] %v20003_v41  ;;  %v10848_v25 = vcombine.high %v10826_v44, %v10826_v44  ;;  %v11441_v43 = vadd.f32 %v10826_v44, %v10754_v46  ;;  %v21298_v24 = vcombine.high %v19878_v0, %v19878_v0  ;;  %v21299_v46 = vrot.slane %v19866_v39, %v19602_v56 }
 0x4e9   : > { %v10847_v48 = vrot.slane %v10819_v59, %v19602_v56  ;;  %v10849_v8 = vcombine.high %v10833_v15, %v10833_v15  ;;  %v10850_v9 = vcombine.high %v10840_v47, %v10840_v47  ;;  %v11442_v30 = vadd.f32 %v10840_v47, %v19878_v0 }
 0x4ea   : > { %v11443_v6 = vadd.f32 %v10848_v25, %v19883_v16  ;;  %v11445_v62 = vadd.f32 %v10833_v15, %v21297_v49  ;;  %v11505_v25 = vmul.f32 0.25, %v11441_v43  ;;  %v10897_v16 = vcombine.high %v20011_v2, %v20011_v2  ;;  %v21300_v43 = vld [vmem:[#allocation46_spill] sm:$0xff] }
 0x4eb   : > { %v11444_v59 = vadd.f32 %v10850_v9, %v21298_v24  ;;  %v11446_v44 = vadd.f32 %v10847_v48, %v21299_v46  ;;  %v11447_v47 = vadd.f32 %v10849_v8, %v19890_v20  ;;  %v11506_v15 = vmul.f32 0.25, %v11442_v30  ;;  %v9468_v8 = vpop.f32.mrf.mxu1 }
 0x4ec   : > { %v11507_v49 = vmul.f32 0.25, %v11443_v6  ;;  %v11509_v41 = vmul.f32 0.25, %v11445_v62  ;;  %v11632_v24 = vadd.f32 %v19625_v21, %v11505_v25  ;;  %v9523_v48 = vadd.f32 %v19943_v17, %v21300_v43  ;;  %v20059_v25 = vpop.f32.mrf.mxu0 }
 0x4ed   : > { %v11508_v34 = vmul.f32 0.25, %v11444_v59  ;;  %v11510_v37 = vmul.f32 0.25, %v11446_v44  ;;  %v11511_v0 = vmul.f32 0.25, %v11447_v47  ;;  %v11633_v39 = vadd.f32 %v19637_v11, %v11506_v15  ;;  %v9559_v59 = vld [vmem:[#allocation2 + $0xd8] sm:$0xff] }
 0x4ee   : > { %v11634_v9 = vadd.f32 %v19650_v29, %v11507_v49  ;;  %v11636_v20 = vadd.f32 %v19633_v14, %v11509_v41  ;;  %v11759_v62 = vadd.f32 %v19644_v42, %v11632_v24  ;;  %v9595_v41 = vadd.f32 %v9559_v59, %v9523_v48  ;;  %v21301_v24 = vld [vmem:[#allocation60_spill] sm:$0xff] }
 0x4ef   : > { %v11635_v30 = vadd.f32 %v19620_v45, %v11508_v34  ;;  %v11637_v7 = vadd.f32 %v19641_v60, %v11510_v37  ;;  %v11638_v6 = vadd.f32 %v19671_v1, %v11511_v0  ;;  %v11760_v46 = vadd.f32 %v19660_v36, %v11633_v39 }
 0x4f0   : > { %v11761_v44 = vadd.f32 %v19666_v5, %v11634_v9  ;;  %v11763_v47 = vadd.f32 %v19656_v23, %v11636_v20  ;;  %v12009_v49 = vcombine.low %v19989_v53, %v11759_v62  ;;  %v10256_v0 = vadd.f32 %v19916_v3, %v19956_v33  ;;  %v14152_v20 = vpop.f32.mrf.mxu1  ;;  %v21302_v62 = vld [vmem:[#allocation62_spill] sm:$0xff] }
 0x4f1   : > { %v11762_v17 = vadd.f32 %v19653_v54, %v11635_v30  ;;  %v11764_v15 = vadd.f32 %v19681_v58, %v11637_v7  ;;  %v11765_v37 = vadd.f32 %v19687_v61, %v11638_v6  ;;  %v9521_v39 = vadd.f32 %v19962_v35, %v21301_v24  ;;  %v10329_v30 = vld [vmem:[#allocation2 + $0xb0] ss:$2 sm:$0xff]  ;;  %v10365_v7 = vld [vmem:[#allocation2 + $0xb1] ss:$2 sm:$0xff]  ;;  %v9557_v6 = vld [vmem:[#allocation2 + $0xc8] sm:$0xff] }
 0x4f2   : > { %v12010_v34 = vcombine.low %v11760_v46, %v11761_v44  ;;  %v10261_v9 = vadd.f32 %v19933_v63, %v19985_v22  ;;  %v10898_v43 = vcombine.high %v20016_v27, %v20016_v27  ;;  %v10899_v53 = vcombine.high %v20019_v18, %v20019_v18  ;;  %10292 = vst [vmem:[#allocation2 + $0xa8] sm:$0xff] %v10256_v0  ;;  %v9562_v63 = vld [vmem:[#allocation2 + $0xf0] sm:$0xff]  ;;  %v10207_v46 = vpop.f32.mrf.mxu0  ;;  %v21303_v24 = vld [vmem:[#allocation64_spill] sm:$0xff] }
 0x4f3   : > { %v12011_v48 = vcombine.low %v11762_v17, %v11763_v47  ;;  %v9526_v3 = vadd.f32 %v19982_v50, %v21302_v62  ;;  %v12012_v33 = vcombine.low %v11764_v15, %v11765_v37  ;;  %v10389_v59 = vadd.f32 %v10365_v7, %v10329_v30  ;;  %v21305_v7 = vld [vmem:[#allocation59_spill] sm:$0xff] }
 0x4f4   : > { %v9593_v35 = vadd.f32 %v9557_v6, %v9521_v39  ;;  %10297 = vst [vmem:[#allocation2 + $0xd0] sm:$0xff] %v10261_v9  ;;  %v10259_v22 = vadd.f32 %v19953_v13, %v19991_v52  ;;  %v20080_v44 = vrot.slane %v12009_v49, %v19602_v56  ;;  %v20083_v47 = vrot.slane %v12010_v34, %v19602_v56  ;;  %v9560_v39 = vld [vmem:[#allocation2 + $0xe0] sm:$0xff]  ;;  %v9481_v52 = vpop.f32.mrf.mxu1  ;;  %v21304_v9 = vld [vmem:[#allocation58_spill] sm:$0xff] }
 0x4f5   : > { %v9598_v17 = vadd.f32 %v9562_v63, %v9526_v3  ;;  %v9524_v50 = vadd.f32 %v20008_v26, %v21303_v24  ;;  %v20088_v15 = vrot.slane %v12011_v48, %v19602_v56  ;;  %v10949_v37 = vcombine.high %v10389_v59, %v10389_v59  ;;  %v9563_v3 = vld [vmem:[#allocation2 + $0xf8] sm:$0xff] }
 0x4f6   : > { %v10956_v0 = vrot.slane %v10389_v59, %v19602_v56  ;;  %10295 = vst [vmem:[#allocation2 + $0xc0] sm:$0xff] %v10259_v22  ;;  %v10262_v13 = vadd.f32 %v19973_v31, %v9595_v41  ;;  %v9527_v34 = vadd.f32 %v20033_v10, %v21304_v9  ;;  %v10260_v30 = vadd.f32 %v19993_v40, %v9593_v35  ;;  %v9561_v59 = vld [vmem:[#allocation2 + $0xe8] sm:$0xff]  ;;  %v14204_v41 = vpop.f32.mrf.mxu0  ;;  %v21306_v10 = vld [vmem:[#allocation61_spill] sm:$0xff] }
 0x4f7   : > { %v9596_v49 = vadd.f32 %v9560_v39, %v9524_v50  ;;  %v9525_v6 = vadd.f32 %v9468_v8, %v21305_v7  ;;  %v10963_v26 = vrot.slane %v10949_v37, %v19602_v56  ;;  %v10265_v31 = vadd.f32 %v20023_v4, %v9598_v17  ;;  %v9566_v4 = vld [vmem:[#allocation2 + $0x110] sm:$0xff]  ;;  %v14153_v17 = vpop.f32.mrf.mxu1 }
 0x4f8   : > { %v10964_v48 = vcombine.high %v10956_v0, %v10956_v0  ;;  %v20098_v62 = vrot.slane %v10956_v0, %v19602_v56  ;;  %10298 = vst [vmem:[#allocation2 + $0xd8] sm:$0xff] %v10262_v13  ;;  %v9599_v63 = vadd.f32 %v9563_v3, %v9527_v34  ;;  %10296 = vst [vmem:[#allocation2 + $0xc8] sm:$0xff] %v10260_v30  ;;  %v21308_v3 = vld [vmem:[#allocation51_spill] sm:$0xff] }
 0x4f9   : > { %v9597_v22 = vadd.f32 %v9561_v59, %v9525_v6  ;;  %v9530_v24 = vadd.f32 %v14152_v20, %v21306_v10  ;;  %v10263_v40 = vadd.f32 %v20044_v28, %v9596_v49  ;;  %v20104_v8 = vrot.slane %v12012_v33, %v19602_v56  ;;  %10301 = vst [vmem:[#allocation2 + $0xf0] sm:$0xff] %v10265_v31  ;;  %v10327_v39 = vld [vmem:[#allocation2 + $0xa0] ss:$2 sm:$0xff]  ;;  %v10363_v13 = vld [vmem:[#allocation2 + $0xa1] ss:$2 sm:$0xff]  ;;  %v21307_v28 = vld [vmem:[#allocation63_spill] sm:$0xff] }
 0x4fa   : > { %v10965_v35 = vcombine.high %v10963_v26, %v10963_v26  ;;  %v20107_v50 = vrot.slane %v10963_v26, %v19602_v56  ;;  %v20110_v37 = vrot.slane %v10964_v48, %v19602_v56  ;;  %v11455_v0 = vadd.f32 %v20098_v62, %v10899_v53  ;;  %v9564_v6 = vld [vmem:[#allocation2 + $0x100] sm:$0xff]  ;;  %v10220_v53 = vpop.f32.mrf.mxu0 }
 0x4fb   : > { %v9602_v20 = vadd.f32 %v9566_v4, %v9530_v24  ;;  %10299 = vst [vmem:[#allocation2 + $0xe0] sm:$0xff] %v10263_v40  ;;  %v9528_v49 = vadd.f32 %v9481_v52, %v21307_v28  ;;  %v10266_v33 = vadd.f32 %v20059_v25, %v9599_v63  ;;  %v10388_v7 = vadd.f32 %v10363_v13, %v10327_v39  ;;  %v9567_v24 = vld [vmem:[#allocation2 + $0x118] sm:$0xff]  ;;  %v9484_v40 = vpop.f32.mrf.mxu1  ;;  %v21309_v25 = vld [vmem:[#allocation67_spill] sm:$0xff] }
 0x4fc   : > { %v20118_v34 = vrot.slane %v10965_v35, %v19602_v56  ;;  %v11519_v26 = vmul.f32 0.25, %v11455_v0  ;;  %v9531_v59 = vadd.f32 %v14153_v17, %v21308_v3  ;;  %v10264_v52 = vadd.f32 %v10207_v46, %v9597_v22 }
 0x4fd   : > { %v9600_v48 = vadd.f32 %v9564_v6, %v9528_v49  ;;  %10302 = vst [vmem:[#allocation2 + $0xf8] sm:$0xff] %v10266_v33  ;;  %v10996_v31 = vcombine.high %v20110_v37, %v20110_v37  ;;  %v10900_v63 = vcombine.high %v10388_v7, %v10388_v7  ;;  %v10907_v10 = vrot.slane %v10388_v7, %v19602_v56  ;;  %v14205_v7 = vpop.f32.mrf.mxu0 }
 0x4fe   : > { %v10997_v0 = vcombine.high %v20118_v34, %v20118_v34  ;;  %v9603_v39 = vadd.f32 %v9567_v24, %v9531_v59  ;;  %10300 = vst [vmem:[#allocation2 + $0xe8] sm:$0xff] %v10264_v52  ;;  %v10269_v17 = vadd.f32 %v14204_v41, %v9602_v20  ;;  %v11646_v3 = vadd.f32 %v19671_v1, %v11519_v26 }
 0x4ff   : > { %v10333_v35 = vld [vmem:[#allocation2 + $0xd0] ss:$2 sm:$0xff]  ;;  %v10369_v4 = vld [vmem:[#allocation2 + $0xd1] ss:$2 sm:$0xff]  ;;  %v10267_v46 = vadd.f32 %v10220_v53, %v9600_v48  ;;  %v10914_v22 = vrot.slane %v10900_v63, %v19602_v56  ;;  %v10915_v13 = vcombine.high %v10907_v10, %v10907_v10  ;;  %v10923_v28 = vrot.slane %v10907_v10, %v19602_v56  ;;  %v10331_v33 = vld [vmem:[#allocation2 + $0xc0] ss:$2 sm:$0xff] }
 0x500   : > { %v10391_v49 = vadd.f32 %v10369_v4, %v10333_v35  ;;  %v10367_v6 = vld [vmem:[#allocation2 + $0xc1] ss:$2 sm:$0xff]  ;;  %v9529_v30 = vadd.f32 %v9484_v40, %v21309_v25  ;;  %10305 = vst [vmem:[#allocation2 + $0x110] sm:$0xff] %v10269_v17  ;;  %v10270_v59 = vadd.f32 %v14205_v7, %v9603_v39  ;;  %v21312_v37 = vcombine.high %v20107_v50, %v20107_v50 }
 0x501   : > { %v10390_v9 = vadd.f32 %v10367_v6, %v10331_v33  ;;  %10303 = vst [vmem:[#allocation2 + $0x100] sm:$0xff] %v10267_v46  ;;  %v10916_v52 = vcombine.high %v10914_v22, %v10914_v22  ;;  %v10930_v41 = vrot.slane %v10914_v22, %v19602_v56  ;;  %v10937_v20 = vrot.slane %v10915_v13, %v19602_v56 }
 0x502   : > { %v10945_v53 = vcombine.high %v10923_v28, %v10923_v28  ;;  %v11046_v48 = vcombine.high %v10391_v49, %v10391_v49  ;;  %v11053_v63 = vrot.slane %v10391_v49, %v19602_v56  ;;  %10306 = vst [vmem:[#allocation2 + $0x118] sm:$0xff] %v10270_v59 }
 0x503   : > { %v10998_v10 = vcombine.high %v10390_v9, %v10390_v9  ;;  %v20138_v24 = vrot.slane %v10390_v9, %v19602_v56  ;;  %v10944_v26 = vrot.slane %v10916_v52, %v19602_v56  ;;  %v10946_v25 = vcombine.high %v10930_v41, %v10930_v41 }
 0x504   : > { %v10947_v40 = vcombine.high %v10937_v20, %v10937_v20  ;;  %v11448_v35 = vadd.f32 %v10937_v20, %v19999_v19  ;;  %v11449_v4 = vadd.f32 %v10945_v53, %v20016_v27  ;;  %v11451_v39 = vadd.f32 %v10930_v41, %v10898_v43 }
 0x505   : > { %v11060_v17 = vrot.slane %v11046_v48, %v19602_v56  ;;  %v11061_v46 = vcombine.high %v11053_v63, %v11053_v63  ;;  %v10948_v22 = vcombine.high %v10944_v26, %v10944_v26  ;;  %v21310_v9 = vcombine.high %v19999_v19, %v19999_v19 }
 0x506   : > { %v11452_v28 = vadd.f32 %v10944_v26, %v20011_v2  ;;  %v11453_v49 = vadd.f32 %v10946_v25, %v20019_v18  ;;  %v11512_v33 = vmul.f32 0.25, %v11448_v35  ;;  %v11513_v6 = vmul.f32 0.25, %v11449_v4 }
 0x507   : > { %v11450_v13 = vadd.f32 %v10947_v40, %v21310_v9  ;;  %v11515_v7 = vmul.f32 0.25, %v11451_v39  ;;  %v11062_v59 = vcombine.high %v11060_v17, %v11060_v17  ;;  %v11454_v27 = vadd.f32 %v10948_v22, %v10897_v16 }
 0x508   : > { %v11516_v52 = vmul.f32 0.25, %v11452_v28  ;;  %v11517_v41 = vmul.f32 0.25, %v11453_v49  ;;  %v11639_v20 = vadd.f32 %v19617_v12, %v11512_v33  ;;  %v11640_v19 = vadd.f32 %v19625_v21, %v11513_v6 }
 0x509   : > { %v11514_v43 = vmul.f32 0.25, %v11450_v13  ;;  %v11642_v53 = vadd.f32 %v19650_v29, %v11515_v7  ;;  %v11069_v48 = vrot.slane %v11053_v63, %v19602_v56  ;;  %v11518_v18 = vmul.f32 0.25, %v11454_v27  ;;  %v9565_v13 = vld [vmem:[#allocation2 + $0x108] sm:$0xff] }
 0x50a   : > { %v11643_v25 = vadd.f32 %v19620_v45, %v11516_v52  ;;  %v11644_v40 = vadd.f32 %v19633_v14, %v11517_v41  ;;  %v11766_v2 = vadd.f32 %v19628_v32, %v11639_v20  ;;  %v11767_v16 = vadd.f32 %v19644_v42, %v11640_v19  ;;  %v10373_v20 = vld [vmem:[#allocation2 + $0xf1] ss:$2 sm:$0xff]  ;;  %v21322_v19 = vld [vmem:[#allocation26_spill] sm:$0xff] }
 0x50b   : > { %v11641_v26 = vadd.f32 %v19637_v11, %v11514_v43  ;;  %v11769_v35 = vadd.f32 %v19666_v5, %v11642_v53  ;;  %v20166_v4 = vrot.slane %v11060_v17, %v19602_v56  ;;  %v11645_v39 = vadd.f32 %v19641_v60, %v11518_v18 }
 0x50c   : > { %v11770_v22 = vadd.f32 %v19653_v54, %v11643_v25  ;;  %v11771_v9 = vadd.f32 %v19656_v23, %v11644_v40  ;;  %v20173_v28 = vadd.f32 %v19687_v61, %v11646_v3  ;;  %v12058_v49 = vcombine.low %v11766_v2, %v11767_v16 }
 0x50d   : > { %v11768_v63 = vadd.f32 %v19660_v36, %v11641_v26  ;;  %v11083_v33 = vrot.slane %v11061_v46, %v19602_v56  ;;  %v20176_v6 = vadd.f32 %v9565_v13, %v9529_v30  ;;  %v20179_v17 = vadd.f32 %v19681_v58, %v11645_v39  ;;  %v10337_v30 = vld [vmem:[#allocation2 + $0xf0] ss:$2 sm:$0xff] }
 0x50e   : > { %v12060_v27 = vcombine.low %v11770_v22, %v11771_v9  ;;  %v20182_v43 = vrot.slane %v11062_v59, %v19602_v56  ;;  %v11091_v52 = vcombine.high %v11069_v48, %v11069_v48  ;;  %v11461_v41 = vadd.f32 %v11069_v48, %v10997_v0 }
 0x50f   : > { %v12059_v7 = vcombine.low %v11768_v63, %v11769_v35  ;;  %v11012_v3 = vrot.slane %v10998_v10, %v19602_v56  ;;  %v11013_v46 = vcombine.high %v20138_v24, %v20138_v24  ;;  %v20193_v53 = vrot.slane %v12058_v49, %v19602_v56 }
 0x510   : > { %v11092_v59 = vcombine.high %v20166_v4, %v20166_v4  ;;  %v11021_v18 = vrot.slane %v20138_v24, %v19602_v56  ;;  %v11525_v0 = vmul.f32 0.25, %v11461_v41  ;;  %v20205_v40 = vrot.slane %v12060_v27, %v19602_v56 }
 0x511   : > { %v11014_v48 = vcombine.high %v11012_v3, %v11012_v3  ;;  %v11028_v10 = vrot.slane %v11012_v3, %v19602_v56  ;;  %v11035_v26 = vrot.slane %v11013_v46, %v19602_v56  ;;  %v20202_v25 = vrot.slane %v12059_v7, %v19602_v56 }
 0x512   : > { %v11462_v2 = vadd.f32 %v11083_v33, %v11021_v18  ;;  %v10393_v16 = vadd.f32 %v10373_v20, %v10337_v30  ;;  %v11093_v24 = vcombine.high %v20182_v43, %v20182_v43  ;;  %v11652_v22 = vadd.f32 %v19633_v14, %v11525_v0 }
 0x513   : > { %v11042_v35 = vrot.slane %v11014_v48, %v19602_v56  ;;  %v11043_v39 = vcombine.high %v11028_v10, %v11028_v10  ;;  %v11044_v63 = vcombine.high %v11035_v26, %v11035_v26  ;;  %v11457_v9 = vadd.f32 %v11028_v10, %v10996_v31 }
 0x514   : > { %v11463_v13 = vadd.f32 %v11091_v52, %v11035_v26  ;;  %v11526_v49 = vmul.f32 0.25, %v11462_v2  ;;  %v21311_v33 = vcombine.high %v20098_v62, %v20098_v62  ;;  %v11143_v3 = vcombine.high %v10393_v16, %v10393_v16 }
 0x515   : > { %v11045_v7 = vcombine.high %v11042_v35, %v11042_v35  ;;  %v11458_v41 = vadd.f32 %v11042_v35, %v20107_v50  ;;  %v11459_v46 = vadd.f32 %v11043_v39, %v20118_v34  ;;  %v11521_v30 = vmul.f32 0.25, %v11457_v9 }
 0x516   : > { %v11456_v27 = vadd.f32 %v11044_v63, %v21311_v33  ;;  %v11527_v20 = vmul.f32 0.25, %v11463_v13  ;;  %v11653_v18 = vadd.f32 %v19641_v60, %v11526_v49  ;;  %v11150_v48 = vrot.slane %v10393_v16, %v19602_v56 }
 0x517   : > { %v11460_v31 = vadd.f32 %v11045_v7, %v21312_v37  ;;  %v11522_v0 = vmul.f32 0.25, %v11458_v41  ;;  %v11523_v10 = vmul.f32 0.25, %v11459_v46  ;;  %v11648_v62 = vadd.f32 %v19625_v21, %v11521_v30 }
 0x518   : > { %v11520_v52 = vmul.f32 0.25, %v11456_v27  ;;  %v11654_v26 = vadd.f32 %v19671_v1, %v11527_v20  ;;  %v11780_v2 = vadd.f32 %v19681_v58, %v11653_v18  ;;  %v11157_v63 = vrot.slane %v11143_v3, %v19602_v56  ;;  %v10335_v20 = vld [vmem:[#allocation2 + $0xe0] ss:$2 sm:$0xff] }
 0x519   : > { %v11524_v34 = vmul.f32 0.25, %v11460_v31  ;;  %v11649_v39 = vadd.f32 %v19637_v11, %v11522_v0  ;;  %v11650_v50 = vadd.f32 %v19650_v29, %v11523_v10  ;;  %v11775_v9 = vadd.f32 %v19644_v42, %v11648_v62  ;;  %v10371_v0 = vld [vmem:[#allocation2 + $0xe1] ss:$2 sm:$0xff]  ;;  %v10341_v10 = vld [vmem:[#allocation2 + $0x110] ss:$2 sm:$0xff] }
 0x51a   : > { %v11647_v35 = vadd.f32 %v19617_v12, %v11520_v52  ;;  %v11781_v16 = vadd.f32 %v19687_v61, %v11654_v26  ;;  %v11158_v13 = vcombine.high %v11150_v48, %v11150_v48  ;;  %v11159_v27 = vcombine.high %v11157_v63, %v11157_v63  ;;  %v10377_v62 = vld [vmem:[#allocation2 + $0x111] ss:$2 sm:$0xff] }
 0x51b   : > { %v11651_v49 = vadd.f32 %v19620_v45, %v11524_v34  ;;  %v11776_v33 = vadd.f32 %v19660_v36, %v11649_v39  ;;  %v11777_v41 = vadd.f32 %v19666_v5, %v11650_v50  ;;  %v11166_v3 = vrot.slane %v11150_v48, %v19602_v56 }
 0x51c   : > { %v11774_v7 = vadd.f32 %v19628_v32, %v11647_v35  ;;  %v12110_v46 = vcombine.low %v11780_v2, %v11781_v16  ;;  %v20239_v30 = vrot.slane %v11157_v63, %v19602_v56  ;;  %v11779_v18 = vadd.f32 %v19656_v23, %v11652_v22 }
 0x51d   : > { %v11778_v37 = vadd.f32 %v19653_v54, %v11651_v49  ;;  %v11180_v52 = vrot.slane %v11158_v13, %v19602_v56  ;;  %v12108_v2 = vcombine.low %v11776_v33, %v11777_v41  ;;  %v20250_v34 = vrot.slane %v11159_v27, %v19602_v56  ;;  %v10223_v49 = vpop.f32.mrf.mxu0 }
 0x51e   : > { %v12107_v31 = vcombine.low %v11774_v7, %v11775_v9  ;;  %v20247_v48 = vrot.slane %v12110_v46, %v19602_v56  ;;  %v11188_v35 = vcombine.high %v11166_v3, %v11166_v3  ;;  %v11467_v63 = vadd.f32 %v11166_v3, %v11093_v24 }
 0x51f   : > { %v12109_v22 = vcombine.low %v11778_v37, %v11779_v18  ;;  %v11190_v9 = vcombine.high %v11180_v52, %v11180_v52  ;;  %v10392_v16 = vadd.f32 %v10371_v0, %v10335_v20  ;;  %v10395_v13 = vadd.f32 %v10377_v62, %v10341_v10 }
 0x520   : > { %v20256_v50 = vrot.slane %v12107_v31, %v19602_v56  ;;  %v20259_v7 = vrot.slane %v12108_v2, %v19602_v56  ;;  %v11531_v27 = vmul.f32 0.25, %v11467_v63  ;;  %v10268_v41 = vadd.f32 %v10223_v49, %v20176_v6  ;;  %v21313_v31 = vld [vmem:[#allocation24_spill] sm:$0xff] }
 0x521   : > { %v20262_v33 = vrot.slane %v12109_v22, %v19602_v56  ;;  %v11094_v46 = vcombine.high %v10392_v16, %v10392_v16  ;;  %v11101_v24 = vrot.slane %v10392_v16, %v19602_v56  ;;  %v11240_v3 = vcombine.high %v10395_v13, %v10395_v13 }
 0x522   : > { %v11247_v18 = vrot.slane %v10395_v13, %v19602_v56  ;;  %v11658_v20 = vadd.f32 %v19650_v29, %v11531_v27  ;;  %v11191_v37 = vcombine.high %v20250_v34, %v20250_v34  ;;  %10304 = vst [vmem:[#allocation2 + $0x108] sm:$0xff] %v10268_v41  ;;  %v21314_v0 = vcombine.low %v19738_v55, %v21313_v31  ;;  %v21316_v55 = vld [vmem:[#allocation10_spill] sm:$0xff] }
 0x523   : > { %v21315_v6 = vcombine.low %v19758_v51, %v19800_v57  ;;  %v11108_v2 = vrot.slane %v11094_v46, %v19602_v56  ;;  %v11109_v22 = vcombine.high %v11101_v24, %v11101_v24  ;;  %v11117_v63 = vrot.slane %v11101_v24, %v19602_v56 }
 0x524   : > { %v11902_v10 = vrot.slane %v21314_v0, %v19602_v56  ;;  %v11254_v16 = vrot.slane %v11240_v3, %v19602_v56  ;;  %v11255_v13 = vcombine.high %v11247_v18, %v11247_v18  ;;  %v11943_v27 = vcombine.low %v21316_v55, %v19824_v38 }
 0x525   : > { %v11909_v62 = vrot.slane %v21315_v6, %v19602_v56  ;;  %v11110_v41 = vcombine.high %v11108_v2, %v11108_v2  ;;  %v11124_v31 = vrot.slane %v11108_v2, %v19602_v56  ;;  %v11131_v51 = vrot.slane %v11109_v22, %v19602_v56 }
 0x526   : > { %v11139_v57 = vcombine.high %v11117_v63, %v11117_v63  ;;  %v20290_v46 = vadd.f32 %v19666_v5, %v11658_v20  ;;  %v11468_v24 = vadd.f32 %v11180_v52, %v11117_v63  ;;  %v11256_v0 = vcombine.high %v11254_v16, %v11254_v16 }
 0x527   : > { %v11910_v49 = vcombine.low %v11902_v10, %v11909_v62  ;;  %v20293_v3 = vrot.slane %v11247_v18, %v19602_v56  ;;  %v11138_v38 = vrot.slane %v11110_v41, %v19602_v56  ;;  %v11140_v10 = vcombine.high %v11124_v31, %v11124_v31 }
 0x528   : > { %v11141_v6 = vcombine.high %v11131_v51, %v11131_v51  ;;  %v11469_v62 = vadd.f32 %v11188_v35, %v11131_v51  ;;  %v11470_v2 = vadd.f32 %v11190_v9, %v11139_v57  ;;  %v11532_v22 = vmul.f32 0.25, %v11468_v24 }
 0x529   : > { %12262 = vst [vmem:[%s20295_s9] sm:$0xff] %v11910_v49  ;;  %v20300_v55 = vrot.slane %v11254_v16, %v19602_v56  ;;  %v11277_v52 = vrot.slane %v11255_v13, %v19602_v56  ;;  %v11142_v20 = vcombine.high %v11138_v38, %v11138_v38  ;;  %v11464_v18 = vadd.f32 %v11138_v38, %v20166_v4  ;;  %v10339_v9 = vld [vmem:[#allocation2 + $0x100] ss:$2 sm:$0xff]  ;;  %v10375_v57 = vld [vmem:[#allocation2 + $0x101] ss:$2 sm:$0xff] }
 0x52a   : > { %v11465_v63 = vadd.f32 %v11140_v10, %v20182_v43  ;;  %v11471_v26 = vadd.f32 %v20239_v30, %v11141_v6  ;;  %v11533_v49 = vmul.f32 0.25, %v11469_v62  ;;  %v11534_v34 = vmul.f32 0.25, %v11470_v2 }
 0x52b   : > { %v11659_v41 = vadd.f32 %v19620_v45, %v11532_v22  ;;  %v11284_v35 = vrot.slane %v11256_v0, %v19602_v56  ;;  %v11466_v16 = vadd.f32 %v11142_v20, %v11092_v59  ;;  %v11528_v31 = vmul.f32 0.25, %v11464_v18 }
 0x52c   : > { %v11529_v13 = vmul.f32 0.25, %v11465_v63  ;;  %v11535_v51 = vmul.f32 0.25, %v11471_v26  ;;  %v11660_v24 = vadd.f32 %v19633_v14, %v11533_v49  ;;  %v11661_v43 = vadd.f32 %v19641_v60, %v11534_v34 }
 0x52d   : > { %v11786_v38 = vadd.f32 %v19653_v54, %v11659_v41  ;;  %v11285_v10 = vcombine.high %v20293_v3, %v20293_v3  ;;  %v11530_v6 = vmul.f32 0.25, %v11466_v16  ;;  %v11655_v0 = vadd.f32 %v19617_v12, %v11528_v31 }
 0x52e   : > { %v11656_v62 = vadd.f32 %v19625_v21, %v11529_v13  ;;  %v11662_v4 = vadd.f32 %v19671_v1, %v11535_v51  ;;  %v11787_v59 = vadd.f32 %v19656_v23, %v11660_v24  ;;  %v11788_v26 = vadd.f32 %v19681_v58, %v11661_v43 }
 0x52f   : > { %v11473_v2 = vadd.f32 %v20293_v3, %v11191_v37  ;;  %v10394_v22 = vadd.f32 %v10375_v57, %v10339_v9  ;;  %v11657_v34 = vadd.f32 %v19637_v11, %v11530_v6  ;;  %v11782_v20 = vadd.f32 %v19628_v32, %v11655_v0 }
 0x530   : > { %v11783_v18 = vadd.f32 %v19644_v42, %v11656_v62  ;;  %v11789_v63 = vadd.f32 %v19687_v61, %v11662_v4  ;;  %v12158_v49 = vcombine.low %v11786_v38, %v11787_v59  ;;  %v11286_v37 = vcombine.high %v20300_v55, %v20300_v55 }
 0x531   : > { %v11537_v41 = vmul.f32 0.25, %v11473_v2  ;;  %v11192_v16 = vcombine.high %v10394_v22, %v10394_v22  ;;  %v11199_v31 = vrot.slane %v10394_v22, %v19602_v56  ;;  %v20328_v13 = vadd.f32 %v19660_v36, %v11657_v34 }
 0x532   : > { %v12156_v51 = vcombine.low %v11782_v20, %v11783_v18  ;;  %v12159_v24 = vcombine.low %v11788_v26, %v11789_v63  ;;  %v11287_v3 = vcombine.high %v11277_v52, %v11277_v52  ;;  %v11951_v43 = vrot.slane %v11943_v27, %v19602_v56  ;;  %v21318_v20 = vld [vmem:[#allocation68_spill] sm:$0xff]  ;;  %v21319_v18 = vld [vmem:[#allocation25_spill] sm:$0xff] }
 0x533   : > { %v11206_v9 = vrot.slane %v11192_v16, %v19602_v56  ;;  %v11207_v57 = vcombine.high %v11199_v31, %v11199_v31  ;;  %v20337_v6 = vrot.slane %v12158_v49, %v19602_v56  ;;  %v11664_v0 = vadd.f32 %v19625_v21, %v11537_v41 }
 0x534   : > { %v11215_v62 = vrot.slane %v11199_v31, %v19602_v56  ;;  %v20342_v4 = vrot.slane %v12156_v51, %v19602_v56  ;;  %v20347_v27 = vrot.slane %v12159_v24, %v19602_v56  ;;  %v21320_v63 = vcombine.low %v21318_v20, %v21319_v18 }
 0x535   : > { %v11208_v59 = vcombine.high %v11206_v9, %v11206_v9  ;;  %v11222_v26 = vrot.slane %v11206_v9, %v19602_v56  ;;  %v11229_v2 = vrot.slane %v11207_v57, %v19602_v56  ;;  %v21321_v57 = vld [vmem:[#allocation66_spill] sm:$0xff]  ;;  %v11791_v20 = vadd.f32 %v19644_v42, %v11664_v0  ;;  %v21325_v42 = vld [vmem:[#allocation27_spill] sm:$0xff] }
 0x536   : > { %21317 = vst [vmem:[#allocation48_spill] sm:$0xff] %v20342_v4  ;;  %v11237_v22 = vcombine.high %v11215_v62, %v11215_v62  ;;  %v11474_v34 = vadd.f32 %v11277_v52, %v11215_v62  ;;  %v11958_v21 = vrot.slane %v21320_v63, %v19602_v56  ;;  %v11993_v24 = vcombine.low %v21322_v19, %v21321_v57 }
 0x537   : > { %v11236_v49 = vrot.slane %v11208_v59, %v19602_v56  ;;  %v11238_v41 = vcombine.high %v11229_v2, %v11229_v2  ;;  %v11475_v16 = vadd.f32 %v11285_v10, %v11229_v2  ;;  %v11478_v31 = vadd.f32 %v11284_v35, %v11222_v26 }
 0x538   : > { %v11476_v51 = vadd.f32 %v11287_v3, %v11237_v22  ;;  %v11538_v9 = vmul.f32 0.25, %v11474_v34  ;;  %v11959_v38 = vcombine.low %v11951_v43, %v11958_v21  ;;  %v21323_v35 = vcombine.high %v20239_v30, %v20239_v30 }
 0x539   : > { %v11239_v39 = vcombine.high %v11236_v49, %v11236_v49  ;;  %v11477_v52 = vadd.f32 %v20300_v55, %v11238_v41  ;;  %v11479_v62 = vadd.f32 %v11286_v37, %v11236_v49  ;;  %v11539_v4 = vmul.f32 0.25, %v11475_v16  ;;  %v21324_v37 = vld [vmem:[#allocation65_spill] sm:$0xff] }
 0x53a   : > { %v11540_v18 = vmul.f32 0.25, %v11476_v51  ;;  %v11542_v63 = vmul.f32 0.25, %v11478_v31  ;;  %v11665_v59 = vadd.f32 %v19637_v11, %v11538_v9  ;;  %12263 = vst [vmem:[%s20295_s9 + $0x8] sm:$0xff] %v11959_v38  ;;  %v21326_v0 = vcombine.low %v21324_v37, %v21325_v42 }
 0x53b   : > { %v11472_v10 = vadd.f32 %v11239_v39, %v21323_v35  ;;  %v11541_v3 = vmul.f32 0.25, %v11477_v52  ;;  %v11543_v43 = vmul.f32 0.25, %v11479_v62  ;;  %v11666_v19 = vadd.f32 %v19650_v29, %v11539_v4 }
 0x53c   : > { %v11667_v26 = vadd.f32 %v19620_v45, %v11540_v18  ;;  %v11669_v55 = vadd.f32 %v19641_v60, %v11542_v63  ;;  %v12000_v2 = vrot.slane %v21326_v0, %v19602_v56  ;;  %v12007_v11 = vrot.slane %v11993_v24, %v19602_v56 }
 0x53d   : > { %v11536_v38 = vmul.f32 0.25, %v11472_v10  ;;  %v11668_v30 = vadd.f32 %v19633_v14, %v11541_v3  ;;  %v11670_v39 = vadd.f32 %v19671_v1, %v11543_v43  ;;  %v11793_v22 = vadd.f32 %v19666_v5, %v11666_v19  ;;  %v21332_v9 = vld [vmem:[#allocation48_spill] sm:$0xff] }
 0x53e   : > { %v11792_v29 = vadd.f32 %v19660_v36, %v11665_v59  ;;  %v11794_v45 = vadd.f32 %v19653_v54, %v11667_v26  ;;  %v12008_v60 = vcombine.low %v12000_v2, %v12007_v11  ;;  %v12042_v4 = vcombine.low %v20088_v15, %v20104_v8 }
 0x53f   : > { %v11663_v34 = vadd.f32 %v19617_v12, %v11536_v38  ;;  %v11795_v21 = vadd.f32 %v19656_v23, %v11668_v30  ;;  %v11796_v49 = vadd.f32 %v19681_v58, %v11669_v55  ;;  %v11797_v14 = vadd.f32 %v19687_v61, %v11670_v39 }
 0x540   : > { %v12189_v1 = vcombine.low %v20337_v6, %v20347_v27  ;;  %v21327_v36 = vcombine.low %v20080_v44, %v20083_v47  ;;  %v12056_v5 = vrot.slane %v12042_v4, %v19602_v56  ;;  %v21328_v12 = vcombine.low %v20179_v17, %v20173_v28  ;;  %12264 = vst [vmem:[%s20295_s9 + $0x10] sm:$0xff] %v12008_v60 }
 0x541   : > { %v11790_v23 = vadd.f32 %v19628_v32, %v11663_v34  ;;  %v12206_v58 = vcombine.low %v11792_v29, %v11793_v22  ;;  %v12207_v61 = vcombine.low %v11794_v45, %v11795_v21  ;;  %v12208_v8 = vcombine.low %v11796_v49, %v11797_v14 }
 0x542   : > { %v12049_v54 = vrot.slane %v21327_v36, %v19602_v56  ;;  %v12089_v15 = vrot.slane %v21328_v12, %v19602_v56  ;;  %v12139_v44 = vcombine.low %v20256_v50, %v20259_v7  ;;  %v21329_v47 = vcombine.low %v20262_v33, %v20247_v48 }
 0x543   : > { %v12205_v28 = vcombine.low %v11790_v23, %v11791_v20  ;;  %v12229_v17 = vrot.slane %v12207_v61, %v19602_v56  ;;  %v12236_v32 = vrot.slane %v12208_v8, %v19602_v56  ;;  %v21330_v16 = vcombine.low %v20328_v13, %v20290_v46 }
 0x544   : > { %v12057_v6 = vcombine.low %v12049_v54, %v12056_v5  ;;  %v12091_v27 = vcombine.low %v20205_v40, %v12089_v15  ;;  %v12154_v41 = vrot.slane %v21329_v47, %v19602_v56  ;;  %v21331_v50 = vcombine.low %v20193_v53, %v20202_v25 }
 0x545   : > { %v12173_v40 = vrot.slane %v21330_v16, %v19602_v56  ;;  %v12147_v33 = vrot.slane %v12139_v44, %v19602_v56  ;;  %v12215_v31 = vrot.slane %v12205_v28, %v19602_v56  ;;  %v12222_v51 = vrot.slane %v12206_v58, %v19602_v56 }
 0x546   : > { %v12098_v7 = vrot.slane %v21331_v50, %v19602_v56  ;;  %v12105_v48 = vrot.slane %v12091_v27, %v19602_v56  ;;  %12265 = vst [vmem:[%s20295_s9 + $0x18] sm:$0xff] %v12057_v6  ;;  %v12238_v13 = vcombine.low %v12229_v17, %v12236_v32  ;;  %v12203_v52 = vrot.slane %v12189_v1, %v19602_v56 }
 0x547   : > { %v12188_v46 = vcombine.low %v21332_v9, %v12173_v40  ;;  %v12155_v24 = vcombine.low %v12147_v33, %v12154_v41  ;;  %v12237_v53 = vcombine.low %v12215_v31, %v12222_v51 }
 0x548   : > { %v12106_v57 = vcombine.low %v12098_v7, %v12105_v48  ;;  %v12252_v18 = vrot.slane %v12238_v13, %v19602_v56 }
 0x549   : > { %v12196_v25 = vrot.slane %v12188_v46, %v19602_v56  ;;  %12267 = vst [vmem:[%s20295_s9 + $0x28] sm:$0xff] %v12155_v24  ;;  %v12245_v20 = vrot.slane %v12237_v53, %v19602_v56 }
 0x54a   : > { %12266 = vst [vmem:[%s20295_s9 + $0x20] sm:$0xff] %v12106_v57 }
 0x54b   : > { %v12204_v62 = vcombine.low %v12196_v25, %v12203_v52  ;;  %v12253_v63 = vcombine.low %v12245_v20, %v12252_v18 }
 0x54d   : > { %12268 = vst [vmem:[%s20295_s9 + $0x30] sm:$0xff] %v12204_v62  ;;  %12269 = vst [vmem:[%s20295_s9 + $0x38] sm:$0xff] %v12253_v63 }
 0x54e   : > { %14710 = shalt.err (!%p14707_p0)
}
 0x54f   : > { %s14711_s21 = scalar_lea.hbm %s20429_s17, 1024  ;;  %s14715_s29 = scalar_lea.hbm %s20484_s7, 2048 }
 0x550   : > { %p14712_p1 = scmp.ne.s32.totalorder %s20429_s17, %s14711_s21  ;;  %p14716_p4 = scmp.lt.s32.totalorder %s20429_s17, %s20484_s7 }
 0x551   : > { %p14717_p7 = scmp.lt.s32.totalorder %s14715_s29, %s14711_s21 }
 0x552   : > { %p14713_p2 = pnand %p14712_p1, %p14849_p5 }
 0x553   : > { %p14718_p8 = por %p14717_p7, %p14716_p4 }
 0x554   : > { %p14714_p3 = pneg %p14713_p2 }
 0x556   : > { %p14719_p6 = pnand %p14718_p8, %p14714_p3 }
 0x558   : > { %14722 = shalt.err (!%p14719_p6)
}
 0x559   : > { %s14769_s15 = smov 128   ;;  %s14770_s16 = smov 8  }
 0x55a   : > { %14299 = dma.vmem_to_hbm [thread:$0]  (%p14849_p5), %s20431_s13, 1024, %s20429_s17, %s20437_s28, %s14769_s15, %s14769_s15, %s14770_s16  }
 0x55b PF: > { %p14311_p9 = scmp.ge.s32.totalorder %s14761_s27, 2  ;;  %s12299_s18 = sand.u32 1, %s14749_s24  }
 0x55c   : > { %p21333_p10 = scmp.ne.s32.totalorder %s20534_s12, 0  ;;  %s12300_s19 = scalar_lea.sflag [#allocation6], %s12299_s18 }
 0x55e   : > { %p14306_p11 = pnand %p14311_p9, %p21333_p10 }
 0x560   : > { %p14307_p12 = pneg %p14306_p11 }
 0x562   : > { %14744 = dma.done.wait (%p14307_p12), %s12300_s19, 1024  }
 0x563   : > { %14746 = vsyncadd (%p14307_p12), %s12300_s19, 4294966272  ;;  %p18_p13 = scmp.ge.s32.totalorder %s14836_s30, 4   ;;  %s21334_s24 = smov %s14753_s25 }
 0x564   : > { %s21335_s25 = smov %s14757_s26  ;;  %s21336_s26 = smov %s14847_s10 }
 0x565   : > { %s21337_s27 = smov %s14836_s30  ;;  %20 = sbr.rel (!%p18_p13) target bundleno = 4 (0x4), region = 123 }
 0x56a   :  { %12305 = vsyncpa [#allocation5], 1 }
 0x56b   :  { %12307 = vsyncpa [#allocation5 + $0x1], 1 }
 0x56c   :  { %12308 = vsyncpa [#allocation6], 1 }
 0x56d   :  { %12310 = vsyncpa [#allocation6 + $0x1], 1 }

</bundles_post_ra>
